<compile_context>
chip_gen: v7x
topology: tpu7x:2x2x1
jax: 0.10.0
libtpu: 0.0.40
codegen_flags: <defaults>
</compile_context>

<pallas_src>
import functools
import math

import jax
import jax.numpy as jnp
from jax import lax
from jax.experimental import pallas as pl
from jax.experimental.pallas import tpu as pltpu

NEG_SLOPE = 0.01
COUT_PAD = 128          # conv output channels padded to a full lane width
A_PAD = 128             # n_actions padded to a full lane width
VMEM_LIMIT = 32 * 1024 * 1024


def _leaky(x):
    return jnp.where(x >= 0, x, NEG_SLOPE * x)


def _tensorcores_per_jax_device() -> int:
    """2 when one JAX device hosts two TensorCores (megacore), else 1."""
    try:
        kind = jax.devices()[0].device_kind.lower()
    except Exception:
        return 1
    if "lite" in kind or "v5e" in kind or "v6e" in kind or "v6" in kind:
        return 1                                   # v4i / v5e / v6e: single TC
    if any(tag in kind for tag in ("7x", "v7", "v4", "v5p", "v5")):
        return 2                                   # megacore: 2 TCs per device
    return 1


HEAD_NSPLIT = 2 if _tensorcores_per_jax_device() >= 2 else 1


# --------------------------------------------------------------------------
# Pallas kernels
# --------------------------------------------------------------------------
def _conv_mm_kernel(p_ref, w_ref, b_ref, o_ref):
    """o = leaky_relu(P @ W + b), lane-dense output.

    p: (Ho*Wo, K) bf16 im2col patches of one batch element (K = Cin*kh*kw,
       channel-major ordering, matching the weight flatten below).
    w: (K, COUT_PAD) bf16, b: (1, COUT_PAD) f32, o: (Ho*Wo, COUT_PAD).
    """
    acc = jnp.dot(p_ref[...], w_ref[...], preferred_element_type=jnp.float32)
    o_ref[...] = _leaky(acc + b_ref[...]).astype(o_ref.dtype)


def _iqn_head_kernel(feat_ref, tau_ref, wt_ref, bt_ref,
                     w1_ref, b1_ref, w2_ref, o_ref,
                     *, n_tau, n_samples):
    """Fused tau embedding + tau_fc1 + (feat*tau) + fc1 + fc2 (partial over N1).

    Grid axis 0 splits fc1's hidden dim (1 block on single-TC chips, 2 on
    megacore).  The fc2 bias is added once in the wrapper.
    """
    m = tau_ref.shape[0]                         # B * n_samples
    bsz, d = feat_ref.shape

    # cos(pi * i * tau), i = 0 .. n_tau-1  (matches torch's `range(self.n_tau)`)
    idx = lax.broadcasted_iota(jnp.int32, (m, n_tau), 1).astype(jnp.float32)
    emb = jnp.cos(jnp.pi * idx * tau_ref[...])                       # (M, n_tau) f32
    tau_h = jnp.dot(emb.astype(jnp.bfloat16), wt_ref[...],
                    preferred_element_type=jnp.float32) + bt_ref[...]
    tau_h = _leaky(tau_h)                                            # (M, D) f32

    # Broadcast conv features across samples without materializing an (M, D)
    # copy of feat (row r uses feat[r // n_samples]).
    h = (feat_ref[...][:, None, :]
         * tau_h.reshape(bsz, n_samples, d)).reshape(m, d)
    h = h.astype(jnp.bfloat16)                                       # MXU operand

    h1 = _leaky(jnp.dot(h, w1_ref[...], preferred_element_type=jnp.float32)
                + b1_ref[...])                                       # (M, nblk) f32
    o_ref[...] = jnp.dot(h1.astype(jnp.bfloat16), w2_ref[...],
                         preferred_element_type=jnp.float32).astype(o_ref.dtype)


# --------------------------------------------------------------------------
# Conv layer = single channels-last im2col op + Pallas matmul/bias/LeakyReLU
# --------------------------------------------------------------------------
def conv_layer(x_nhwc, w_kc, b, *, k, stride, cin_real, out_dtype):
    bsz, hh, ww, _ = x_nhwc.shape
    ho = (hh - k) // stride + 1
    wo = (ww - k) // stride + 1
    kk = cin_real * k * k
    cout_pad = w_kc.shape[1]

    # Slice the real channels (drop zero padding carried from the previous
    # layer) and produce the patches in bf16 -- halves the largest activation
    # DMA and removes the per-element cast in the kernel.
    x_in = x_nhwc[..., :cin_real].astype(jnp.bfloat16)
    patches = lax.conv_general_dilated_patches(
        x_in, filter_shape=(k, k), window_strides=(stride, stride),
        padding="VALID", dimension_numbers=("NHWC", "HWIO", "NHWC"))
    p = patches.reshape(bsz, ho * wo, kk)        # feature order = (cin, kh, kw)

    out = pl.pallas_call(
        _conv_mm_kernel,
        out_shape=jax.ShapeDtypeStruct((bsz, ho * wo, cout_pad), out_dtype),
        grid=(bsz,),
        in_specs=[pl.BlockSpec((None, ho * wo, kk), lambda i: (i, 0, 0)),
                  pl.BlockSpec((kk, cout_pad), lambda i: (0, 0)),
                  pl.BlockSpec((1, cout_pad), lambda i: (0, 0))],
        out_specs=pl.BlockSpec((None, ho * wo, cout_pad), lambda i: (i, 0, 0)),
        compiler_params=pltpu.CompilerParams(
            dimension_semantics=("parallel",), vmem_limit_bytes=VMEM_LIMIT),
    )(p, w_kc, b)
    return out.reshape(bsz, ho, wo, cout_pad)


# --------------------------------------------------------------------------
# Fused IQN head (tau embedding + fc_net), optionally split over fc1's hidden dim
# --------------------------------------------------------------------------
def pallas_iqn_head(feat, tau_flat, w_tau, b_tau, w_f1, b_f1, w_f2,
                    *, n_tau, n_samples, nsplit):
    bsz, d = feat.shape
    m = tau_flat.shape[0]
    n1 = w_f1.shape[1]
    a_pad = w_f2.shape[1]
    assert n1 % nsplit == 0
    nblk = n1 // nsplit

    kern = functools.partial(_iqn_head_kernel, n_tau=n_tau, n_samples=n_samples)
    partials = pl.pallas_call(
        kern,
        out_shape=jax.ShapeDtypeStruct((nsplit, m, a_pad), jnp.float32),
        grid=(nsplit,),
        in_specs=[
            pl.BlockSpec((bsz, d), lambda j: (0, 0)),        # feat  (f32)
            pl.BlockSpec((m, 1), lambda j: (0, 0)),          # tau   (f32)
            pl.BlockSpec((n_tau, d), lambda j: (0, 0)),      # w_tau (bf16)
            pl.BlockSpec((1, d), lambda j: (0, 0)),          # b_tau (f32)
            pl.BlockSpec((d, nblk), lambda j: (0, j)),       # w_f1 column block (bf16)
            pl.BlockSpec((1, nblk), lambda j: (0, j)),       # b_f1 block (f32)
            pl.BlockSpec((nblk, a_pad), lambda j: (j, 0)),   # w_f2 row block (bf16)
        ],
        out_specs=pl.BlockSpec((None, m, a_pad), lambda j: (j, 0, 0)),
        compiler_params=pltpu.CompilerParams(
            dimension_semantics=("parallel",), vmem_limit_bytes=VMEM_LIMIT),
    )(feat, tau_flat, w_tau, b_tau, w_f1, b_f1, w_f2)
    if nsplit == 1:
        return partials[0]
    return jnp.sum(partials, axis=0)


# --------------------------------------------------------------------------
# Parameters (kaiming-normal weights like the module's init; padded layouts)
# --------------------------------------------------------------------------
def init_params(key, stack_size=4, n_actions=18, n_tau=64):
    assert n_actions <= A_PAD
    ks = jax.random.split(key, 12)

    def kaiming(k, shape, fan_in):                 # gain sqrt(2) for leaky_relu(a=0)
        std = math.sqrt(2.0 / fan_in)
        return std * jax.random.normal(k, shape, dtype=jnp.float32)

    def ubias(k, n, fan_in):                       # PyTorch default bias init
        bound = 1.0 / math.sqrt(fan_in)
        return jax.random.uniform(k, (n,), minval=-bound, maxval=bound,
                                  dtype=jnp.float32)

    def conv_params(kw_, kb_, cin, cout, ksz):
        fan_in = cin * ksz * ksz
        w = kaiming(kw_, (cout, cin, ksz, ksz), fan_in)     # torch (Cout,Cin,kh,kw)
        # (Cout,Cin,kh,kw) -> (Cin,kh,kw,Cout) -> (K, Cout), lane-pad Cout to 128.
        w = jnp.transpose(w, (1, 2, 3, 0)).reshape(fan_in, cout)
        w_pad = jnp.zeros((fan_in, COUT_PAD), jnp.float32).at[:, :cout].set(w)
        b = jnp.zeros((COUT_PAD,), jnp.float32).at[:cout].set(
            ubias(kb_, cout, fan_in))
        return w_pad.astype(jnp.bfloat16), b.reshape(1, COUT_PAD)

    p = {}
    # Conv2d(stack,32,8,s4) / Conv2d(32,64,4,s2) / Conv2d(64,64,3,s1)
    p["w_c1"], p["b_c1"] = conv_params(ks[0], ks[1], stack_size, 32, 8)
    p["w_c2"], p["b_c2"] = conv_params(ks[2], ks[3], 32, 64, 4)
    p["w_c3"], p["b_c3"] = conv_params(ks[4], ks[5], 64, 64, 3)

    d = 3136
    p["w_f1"] = kaiming(ks[6], (d, 1024), d).astype(jnp.bfloat16)
    p["b_f1"] = ubias(ks[7], 1024, d).reshape(1, 1024)
    w_f2 = jnp.zeros((1024, A_PAD), jnp.float32)
    p["w_f2"] = w_f2.at[:, :n_actions].set(
        kaiming(ks[8], (1024, n_actions), 1024)).astype(jnp.bfloat16)
    p["b_f2"] = ubias(ks[9], n_actions, 1024)                 # added in the wrapper
    p["w_tau"] = kaiming(ks[10], (n_tau, d), n_tau).astype(jnp.bfloat16)
    p["b_tau"] = ubias(ks[11], d, n_tau).reshape(1, d)
    return p


# --------------------------------------------------------------------------
# Forward pass (mirrors ImplicitQuantileNetwork.forward)
# --------------------------------------------------------------------------
def iqn_forward(params, x_nchw, rng, n_samples=8, n_tau=64, n_actions=18):
    if x_nchw.ndim == 3:
        x_nchw = x_nchw[None]
    bsz = x_nchw.shape[0]
    x = jnp.transpose(x_nchw.astype(jnp.float32), (0, 2, 3, 1))         # NHWC

    # conv_net (channels-last, real channels only between layers)
    h = conv_layer(x, params["w_c1"], params["b_c1"], k=8, stride=4,
                   cin_real=x.shape[-1], out_dtype=jnp.bfloat16)        # (B,20,20,128)
    h = conv_layer(h, params["w_c2"], params["b_c2"], k=4, stride=2,
                   cin_real=32, out_dtype=jnp.bfloat16)                 # (B, 9, 9,128)
    h = conv_layer(h, params["w_c3"], params["b_c3"], k=3, stride=1,
                   cin_real=64, out_dtype=jnp.float32)                  # (B, 7, 7,128)
    # Flatten the 64 real channels.  Ordering is (H, W, C) vs torch's (C, H, W):
    # equivalent under random init; permute if porting torch weights.
    feat = h[..., :64].reshape(bsz, -1)                                 # (B, 3136)

    # TODO(synk): torch.rand RNG stream cannot be reproduced bit-exactly; jax.random used.
    taus = jax.random.uniform(rng, (bsz, n_samples), dtype=jnp.float32)
    tau_flat = taus.reshape(bsz * n_samples, 1)                         # row = b*S + s

    atoms_flat = pallas_iqn_head(feat, tau_flat,
                                 params["w_tau"], params["b_tau"],
                                 params["w_f1"], params["b_f1"], params["w_f2"],
                                 n_tau=n_tau, n_samples=n_samples,
                                 nsplit=HEAD_NSPLIT)                    # (B*S, A_PAD)
    atoms = (atoms_flat[:, :n_actions] + params["b_f2"]
             ).reshape(bsz, n_samples, n_actions)
    return atoms, taus


# --------------------------------------------------------------------------
# Pure-JAX reference (same dtype policy, no Pallas) for a tolerance check
# --------------------------------------------------------------------------
def iqn_reference(params, x_nchw, taus, n_tau=64, n_actions=18):
    bsz = x_nchw.shape[0]
    x = jnp.transpose(x_nchw.astype(jnp.float32), (0, 2, 3, 1))

    def conv(h, w, b, k, s, cin):
        hh = h[..., :cin].astype(jnp.bfloat16)
        p = lax.conv_general_dilated_patches(
            hh, (k, k), (s, s), "VALID",
            dimension_numbers=("NHWC", "HWIO", "NHWC"))
        B, Ho, Wo, K = p.shape
        o = jnp.dot(p.reshape(B, Ho * Wo, K), w,
                    preferred_element_type=jnp.float32) + b
        return _leaky(o).reshape(B, Ho, Wo, -1)

    h = conv(x, params["w_c1"], params["b_c1"], 8, 4, x.shape[-1]).astype(jnp.bfloat16)
    h = conv(h, params["w_c2"], params["b_c2"], 4, 2, 32).astype(jnp.bfloat16)
    h = conv(h, params["w_c3"], params["b_c3"], 3, 1, 64)
    feat = h[..., :64].reshape(bsz, -1)

    s = taus.shape[1]
    tau = taus.reshape(bsz * s, 1)
    i = jnp.arange(n_tau, dtype=jnp.float32)[None, :]
    emb = jnp.cos(jnp.pi * i * tau)
    tau_h = _leaky(jnp.dot(emb.astype(jnp.bfloat16), params["w_tau"],
                           preferred_element_type=jnp.float32) + params["b_tau"])
    hm = (feat[:, None, :] * tau_h.reshape(bsz, s, -1)).reshape(bsz * s, -1)
    h1 = _leaky(jnp.dot(hm.astype(jnp.bfloat16), params["w_f1"],
                        preferred_element_type=jnp.float32) + params["b_f1"])
    out = jnp.dot(h1.astype(jnp.bfloat16), params["w_f2"],
                  preferred_element_type=jnp.float32)
    return (out[:, :n_actions] + params["b_f2"]).reshape(bsz, s, n_actions)


# --------------------------------------------------------------------------
if __name__ == "__main__":
    # fc_net hard-codes 3136 = 64*7*7, which forces an 84x84 spatial input
    # (standard Atari).  batch=2, stack_size=4.
    batch, stack, H, W = 2, 4, 84, 84
    n_actions, n_tau, n_samples = 18, 64, 8

    key = jax.random.PRNGKey(0)
    k_param, k_obs, k_tau = jax.random.split(key, 3)

    params = init_params(k_param, stack_size=stack, n_actions=n_actions, n_tau=n_tau)
    x = jax.random.uniform(k_obs, (batch, stack, H, W), dtype=jnp.float32)

    fwd = jax.jit(iqn_forward, static_argnames=("n_samples", "n_tau", "n_actions"))
    atoms, taus = fwd(params, x, k_tau,
                      n_samples=n_samples, n_tau=n_tau, n_actions=n_actions)
    atoms = jax.block_until_ready(atoms)
    taus = jax.block_until_ready(taus)

    assert atoms.shape == (batch, n_samples, n_actions), atoms.shape
    assert taus.shape == (batch, n_samples), taus.shape
    assert bool(jnp.all(jnp.isfinite(atoms)))

    # Tolerance check against the pure-JAX reference (same params, same taus).
    ref = jax.block_until_ready(
        iqn_reference(params, x, taus, n_tau=n_tau, n_actions=n_actions))
    rel_err = float(jnp.max(jnp.abs(atoms - ref)) / (jnp.max(jnp.abs(ref)) + 1e-6))
    assert rel_err < 3e-2, f"kernel vs reference mismatch: rel_err={rel_err:.3e}"

    print("KERNEL_OK")
</pallas_src>

<mosaic_0001>
module attributes {stable_mosaic.version = 11 : i64} {
  func.func @_conv_mm_kernel(%arg0: i32, %arg1: memref<1x400x256xbf16, #tpu.memory_space<vmem>>, %arg2: memref<256x128xbf16, #tpu.memory_space<vmem>>, %arg3: memref<1x128xf32, #tpu.memory_space<vmem>>, %arg4: memref<1x400x128xbf16, #tpu.memory_space<vmem>>) attributes {dimension_semantics = [#tpu.dimension_semantics<parallel>], iteration_bounds = array<i64: 2>, scalar_prefetch = 0 : i64, scratch_operands = 0 : i64, tpu.core_type = #tpu.core_type<tc>, window_params = [{transform_indices = @transform_0, window_bounds = array<i64: 1, 400, 256>}, {pipeline_mode = #tpu.pipeline_mode<synchronous>, transform_indices = @transform_1, window_bounds = array<i64: 256, 128>}, {pipeline_mode = #tpu.pipeline_mode<synchronous>, transform_indices = @transform_2, window_bounds = array<i64: 1, 128>}, {transform_indices = @transform_3, window_bounds = array<i64: 1, 400, 128>}]} {
    %c0 = arith.constant 0 : index
    %c0_0 = arith.constant 0 : index
    %c0_1 = arith.constant 0 : index
    %0 = vector.load %arg1[%c0, %c0_0, %c0_1] : memref<1x400x256xbf16, #tpu.memory_space<vmem>>, vector<1x400x256xbf16>
    %1 = vector.shape_cast %0 : vector<1x400x256xbf16> to vector<400x256xbf16>
    %c0_2 = arith.constant 0 : index
    %c0_3 = arith.constant 0 : index
    %2 = vector.load %arg2[%c0_2, %c0_3] : memref<256x128xbf16, #tpu.memory_space<vmem>>, vector<256x128xbf16>
    %cst = arith.constant dense<0.000000e+00> : vector<400x128xf32>
    %3 = tpu.matmul %1, %2, %cst {dimension_numbers = #tpu.dot_dimension_numbers<[1], [0], [0], [1], [0, 0, 1, 1], [], []>} : vector<400x256xbf16>, vector<256x128xbf16>, vector<400x128xf32> -> vector<400x128xf32>
    %c0_4 = arith.constant 0 : index
    %c0_5 = arith.constant 0 : index
    %4 = vector.load %arg3[%c0_4, %c0_5] : memref<1x128xf32, #tpu.memory_space<vmem>>, vector<1x128xf32>
    %5 = vector.broadcast %4 : vector<1x128xf32> to vector<400x128xf32>
    %6 = arith.addf %3, %5 : vector<400x128xf32>
    %cst_6 = arith.constant 0.000000e+00 : f32
    %7 = vector.broadcast %cst_6 : f32 to vector<400x128xf32>
    %8 = arith.cmpf oge, %6, %7 : vector<400x128xf32>
    %cst_7 = arith.constant 0.00999999977 : f32
    %9 = vector.broadcast %cst_7 : f32 to vector<400x128xf32>
    %10 = arith.mulf %9, %6 : vector<400x128xf32>
    %11 = arith.select %8, %6, %10 : vector<400x128xi1>, vector<400x128xf32>
    %12 = arith.truncf %11 : vector<400x128xf32> to vector<400x128xbf16>
    %c0_8 = arith.constant 0 : index
    %c0_9 = arith.constant 0 : index
    %c0_10 = arith.constant 0 : index
    %13 = vector.load %arg4[%c0_8, %c0_9, %c0_10] : memref<1x400x128xbf16, #tpu.memory_space<vmem>>, vector<1x400x128xbf16>
    %14 = vector.shape_cast %13 : vector<1x400x128xbf16> to vector<400x128xbf16>
    %15 = vector.shape_cast %12 : vector<400x128xbf16> to vector<1x400x128xbf16>
    tpu.vector_store %arg4[%c0_8, %c0_9, %c0_10], %15 {strides = array<i32>} : memref<1x400x128xbf16, #tpu.memory_space<vmem>>, vector<1x400x128xbf16>,
    return
  }
  func.func @transform_0(%arg0: i32) -> (i32, i32, i32) {
    %c0_i32 = arith.constant 0 : i32
    %c0_i32_0 = arith.constant 0 : i32
    %c0_i32_1 = arith.constant 0 : i32
    return %arg0, %c0_i32, %c0_i32_0 : i32, i32, i32
  }
  func.func @transform_1(%arg0: i32) -> (i32, i32) {
    %c0_i32 = arith.constant 0 : i32
    %c0_i32_0 = arith.constant 0 : i32
    %c0_i32_1 = arith.constant 0 : i32
    return %c0_i32, %c0_i32_0 : i32, i32
  }
  func.func @transform_2(%arg0: i32) -> (i32, i32) {
    %c0_i32 = arith.constant 0 : i32
    %c0_i32_0 = arith.constant 0 : i32
    %c0_i32_1 = arith.constant 0 : i32
    return %c0_i32, %c0_i32_0 : i32, i32
  }
  func.func @transform_3(%arg0: i32) -> (i32, i32, i32) {
    %c0_i32 = arith.constant 0 : i32
    %c0_i32_0 = arith.constant 0 : i32
    %c0_i32_1 = arith.constant 0 : i32
    return %arg0, %c0_i32, %c0_i32_0 : i32, i32, i32
  }
}

module attributes {stable_mosaic.version = 11 : i64} {
  func.func @_conv_mm_kernel(%arg0: i32, %arg1: memref<1x81x512xbf16, #tpu.memory_space<vmem>>, %arg2: memref<512x128xbf16, #tpu.memory_space<vmem>>, %arg3: memref<1x128xf32, #tpu.memory_space<vmem>>, %arg4: memref<1x81x128xbf16, #tpu.memory_space<vmem>>) attributes {dimension_semantics = [#tpu.dimension_semantics<parallel>], iteration_bounds = array<i64: 2>, scalar_prefetch = 0 : i64, scratch_operands = 0 : i64, tpu.core_type = #tpu.core_type<tc>, window_params = [{transform_indices = @transform_0, window_bounds = array<i64: 1, 81, 512>}, {pipeline_mode = #tpu.pipeline_mode<synchronous>, transform_indices = @transform_1, window_bounds = array<i64: 512, 128>}, {pipeline_mode = #tpu.pipeline_mode<synchronous>, transform_indices = @transform_2, window_bounds = array<i64: 1, 128>}, {transform_indices = @transform_3, window_bounds = array<i64: 1, 81, 128>}]} {
    %c0 = arith.constant 0 : index
    %c0_0 = arith.constant 0 : index
    %c0_1 = arith.constant 0 : index
    %0 = vector.load %arg1[%c0, %c0_0, %c0_1] : memref<1x81x512xbf16, #tpu.memory_space<vmem>>, vector<1x81x512xbf16>
    %1 = vector.shape_cast %0 : vector<1x81x512xbf16> to vector<81x512xbf16>
    %c0_2 = arith.constant 0 : index
    %c0_3 = arith.constant 0 : index
    %2 = vector.load %arg2[%c0_2, %c0_3] : memref<512x128xbf16, #tpu.memory_space<vmem>>, vector<512x128xbf16>
    %cst = arith.constant dense<0.000000e+00> : vector<81x128xf32>
    %3 = tpu.matmul %1, %2, %cst {dimension_numbers = #tpu.dot_dimension_numbers<[1], [0], [0], [1], [0, 0, 1, 1], [], []>} : vector<81x512xbf16>, vector<512x128xbf16>, vector<81x128xf32> -> vector<81x128xf32>
    %c0_4 = arith.constant 0 : index
    %c0_5 = arith.constant 0 : index
    %4 = vector.load %arg3[%c0_4, %c0_5] : memref<1x128xf32, #tpu.memory_space<vmem>>, vector<1x128xf32>
    %5 = vector.broadcast %4 : vector<1x128xf32> to vector<81x128xf32>
    %6 = arith.addf %3, %5 : vector<81x128xf32>
    %cst_6 = arith.constant 0.000000e+00 : f32
    %7 = vector.broadcast %cst_6 : f32 to vector<81x128xf32>
    %8 = arith.cmpf oge, %6, %7 : vector<81x128xf32>
    %cst_7 = arith.constant 0.00999999977 : f32
    %9 = vector.broadcast %cst_7 : f32 to vector<81x128xf32>
    %10 = arith.mulf %9, %6 : vector<81x128xf32>
    %11 = arith.select %8, %6, %10 : vector<81x128xi1>, vector<81x128xf32>
    %12 = arith.truncf %11 : vector<81x128xf32> to vector<81x128xbf16>
    %c0_8 = arith.constant 0 : index
    %c0_9 = arith.constant 0 : index
    %c0_10 = arith.constant 0 : index
    %13 = vector.load %arg4[%c0_8, %c0_9, %c0_10] : memref<1x81x128xbf16, #tpu.memory_space<vmem>>, vector<1x81x128xbf16>
    %14 = vector.shape_cast %13 : vector<1x81x128xbf16> to vector<81x128xbf16>
    %15 = vector.shape_cast %12 : vector<81x128xbf16> to vector<1x81x128xbf16>
    tpu.vector_store %arg4[%c0_8, %c0_9, %c0_10], %15 {strides = array<i32>} : memref<1x81x128xbf16, #tpu.memory_space<vmem>>, vector<1x81x128xbf16>,
    return
  }
  func.func @transform_0(%arg0: i32) -> (i32, i32, i32) {
    %c0_i32 = arith.constant 0 : i32
    %c0_i32_0 = arith.constant 0 : i32
    %c0_i32_1 = arith.constant 0 : i32
    return %arg0, %c0_i32, %c0_i32_0 : i32, i32, i32
  }
  func.func @transform_1(%arg0: i32) -> (i32, i32) {
    %c0_i32 = arith.constant 0 : i32
    %c0_i32_0 = arith.constant 0 : i32
    %c0_i32_1 = arith.constant 0 : i32
    return %c0_i32, %c0_i32_0 : i32, i32
  }
  func.func @transform_2(%arg0: i32) -> (i32, i32) {
    %c0_i32 = arith.constant 0 : i32
    %c0_i32_0 = arith.constant 0 : i32
    %c0_i32_1 = arith.constant 0 : i32
    return %c0_i32, %c0_i32_0 : i32, i32
  }
  func.func @transform_3(%arg0: i32) -> (i32, i32, i32) {
    %c0_i32 = arith.constant 0 : i32
    %c0_i32_0 = arith.constant 0 : i32
    %c0_i32_1 = arith.constant 0 : i32
    return %arg0, %c0_i32, %c0_i32_0 : i32, i32, i32
  }
}

module attributes {stable_mosaic.version = 11 : i64} {
  func.func @_conv_mm_kernel(%arg0: i32, %arg1: memref<1x49x576xbf16, #tpu.memory_space<vmem>>, %arg2: memref<576x128xbf16, #tpu.memory_space<vmem>>, %arg3: memref<1x128xf32, #tpu.memory_space<vmem>>, %arg4: memref<1x49x128xf32, #tpu.memory_space<vmem>>) attributes {dimension_semantics = [#tpu.dimension_semantics<parallel>], iteration_bounds = array<i64: 2>, scalar_prefetch = 0 : i64, scratch_operands = 0 : i64, tpu.core_type = #tpu.core_type<tc>, window_params = [{transform_indices = @transform_0, window_bounds = array<i64: 1, 49, 576>}, {pipeline_mode = #tpu.pipeline_mode<synchronous>, transform_indices = @transform_1, window_bounds = array<i64: 576, 128>}, {pipeline_mode = #tpu.pipeline_mode<synchronous>, transform_indices = @transform_2, window_bounds = array<i64: 1, 128>}, {transform_indices = @transform_3, window_bounds = array<i64: 1, 49, 128>}]} {
    %c0 = arith.constant 0 : index
    %c0_0 = arith.constant 0 : index
    %c0_1 = arith.constant 0 : index
    %0 = vector.load %arg1[%c0, %c0_0, %c0_1] : memref<1x49x576xbf16, #tpu.memory_space<vmem>>, vector<1x49x576xbf16>
    %1 = vector.shape_cast %0 : vector<1x49x576xbf16> to vector<49x576xbf16>
    %c0_2 = arith.constant 0 : index
    %c0_3 = arith.constant 0 : index
    %2 = vector.load %arg2[%c0_2, %c0_3] : memref<576x128xbf16, #tpu.memory_space<vmem>>, vector<576x128xbf16>
    %cst = arith.constant dense<0.000000e+00> : vector<49x128xf32>
    %3 = tpu.matmul %1, %2, %cst {dimension_numbers = #tpu.dot_dimension_numbers<[1], [0], [0], [1], [0, 0, 1, 1], [], []>} : vector<49x576xbf16>, vector<576x128xbf16>, vector<49x128xf32> -> vector<49x128xf32>
    %c0_4 = arith.constant 0 : index
    %c0_5 = arith.constant 0 : index
    %4 = vector.load %arg3[%c0_4, %c0_5] : memref<1x128xf32, #tpu.memory_space<vmem>>, vector<1x128xf32>
    %5 = vector.broadcast %4 : vector<1x128xf32> to vector<49x128xf32>
    %6 = arith.addf %3, %5 : vector<49x128xf32>
    %cst_6 = arith.constant 0.000000e+00 : f32
    %7 = vector.broadcast %cst_6 : f32 to vector<49x128xf32>
    %8 = arith.cmpf oge, %6, %7 : vector<49x128xf32>
    %cst_7 = arith.constant 0.00999999977 : f32
    %9 = vector.broadcast %cst_7 : f32 to vector<49x128xf32>
    %10 = arith.mulf %9, %6 : vector<49x128xf32>
    %11 = arith.select %8, %6, %10 : vector<49x128xi1>, vector<49x128xf32>
    %c0_8 = arith.constant 0 : index
    %c0_9 = arith.constant 0 : index
    %c0_10 = arith.constant 0 : index
    %12 = vector.load %arg4[%c0_8, %c0_9, %c0_10] : memref<1x49x128xf32, #tpu.memory_space<vmem>>, vector<1x49x128xf32>
    %13 = vector.shape_cast %12 : vector<1x49x128xf32> to vector<49x128xf32>
    %14 = vector.shape_cast %11 : vector<49x128xf32> to vector<1x49x128xf32>
    tpu.vector_store %arg4[%c0_8, %c0_9, %c0_10], %14 {strides = array<i32>} : memref<1x49x128xf32, #tpu.memory_space<vmem>>, vector<1x49x128xf32>,
    return
  }
  func.func @transform_0(%arg0: i32) -> (i32, i32, i32) {
    %c0_i32 = arith.constant 0 : i32
    %c0_i32_0 = arith.constant 0 : i32
    %c0_i32_1 = arith.constant 0 : i32
    return %arg0, %c0_i32, %c0_i32_0 : i32, i32, i32
  }
  func.func @transform_1(%arg0: i32) -> (i32, i32) {
    %c0_i32 = arith.constant 0 : i32
    %c0_i32_0 = arith.constant 0 : i32
    %c0_i32_1 = arith.constant 0 : i32
    return %c0_i32, %c0_i32_0 : i32, i32
  }
  func.func @transform_2(%arg0: i32) -> (i32, i32) {
    %c0_i32 = arith.constant 0 : i32
    %c0_i32_0 = arith.constant 0 : i32
    %c0_i32_1 = arith.constant 0 : i32
    return %c0_i32, %c0_i32_0 : i32, i32
  }
  func.func @transform_3(%arg0: i32) -> (i32, i32, i32) {
    %c0_i32 = arith.constant 0 : i32
    %c0_i32_0 = arith.constant 0 : i32
    %c0_i32_1 = arith.constant 0 : i32
    return %arg0, %c0_i32, %c0_i32_0 : i32, i32, i32
  }
}

module attributes {stable_mosaic.version = 11 : i64} {
  func.func @_iqn_head_kernel(%arg0: i32, %arg1: memref<2x3136xf32, #tpu.memory_space<vmem>>, %arg2: memref<16x1xf32, #tpu.memory_space<vmem>>, %arg3: memref<64x3136xbf16, #tpu.memory_space<vmem>>, %arg4: memref<1x3136xf32, #tpu.memory_space<vmem>>, %arg5: memref<3136x1024xbf16, #tpu.memory_space<vmem>>, %arg6: memref<1x1024xf32, #tpu.memory_space<vmem>>, %arg7: memref<1024x128xbf16, #tpu.memory_space<vmem>>, %arg8: memref<1x16x128xf32, #tpu.memory_space<vmem>>) attributes {dimension_semantics = [#tpu.dimension_semantics<parallel>], iteration_bounds = array<i64: 1>, scalar_prefetch = 0 : i64, scratch_operands = 0 : i64, tpu.core_type = #tpu.core_type<tc>, window_params = [{pipeline_mode = #tpu.pipeline_mode<synchronous>, transform_indices = @transform_0, window_bounds = array<i64: 2, 3136>}, {pipeline_mode = #tpu.pipeline_mode<synchronous>, transform_indices = @transform_1, window_bounds = array<i64: 16, 1>}, {pipeline_mode = #tpu.pipeline_mode<synchronous>, transform_indices = @transform_2, window_bounds = array<i64: 64, 3136>}, {pipeline_mode = #tpu.pipeline_mode<synchronous>, transform_indices = @transform_3, window_bounds = array<i64: 1, 3136>}, {transform_indices = @transform_4, window_bounds = array<i64: 3136, 1024>}, {transform_indices = @transform_5, window_bounds = array<i64: 1, 1024>}, {transform_indices = @transform_6, window_bounds = array<i64: 1024, 128>}, {transform_indices = @transform_7, window_bounds = array<i64: 1, 16, 128>}]} {
    %0 = tpu.iota {dimensions = array<i32: 1>} : vector<16x64xi32>
    %1 = arith.sitofp %0 : vector<16x64xi32> to vector<16x64xf32>
    %cst = arith.constant 3.14159274 : f32
    %2 = vector.broadcast %cst : f32 to vector<16x64xf32>
    %3 = arith.mulf %2, %1 : vector<16x64xf32>
    %c0 = arith.constant 0 : index
    %c0_0 = arith.constant 0 : index
    %4 = vector.load %arg2[%c0, %c0_0] : memref<16x1xf32, #tpu.memory_space<vmem>>, vector<16x1xf32>
    %5 = vector.broadcast %4 : vector<16x1xf32> to vector<16x64xf32>
    %6 = arith.mulf %3, %5 : vector<16x64xf32>
    %7 = math.cos %6 : vector<16x64xf32>
    %8 = arith.truncf %7 : vector<16x64xf32> to vector<16x64xbf16>
    %c0_1 = arith.constant 0 : index
    %c0_2 = arith.constant 0 : index
    %9 = vector.load %arg3[%c0_1, %c0_2] : memref<64x3136xbf16, #tpu.memory_space<vmem>>, vector<64x3136xbf16>
    %cst_3 = arith.constant dense<0.000000e+00> : vector<16x3136xf32>
    %10 = tpu.matmul %8, %9, %cst_3 {dimension_numbers = #tpu.dot_dimension_numbers<[1], [0], [0], [1], [0, 0, 1, 1], [], []>} : vector<16x64xbf16>, vector<64x3136xbf16>, vector<16x3136xf32> -> vector<16x3136xf32>
    %c0_4 = arith.constant 0 : index
    %c0_5 = arith.constant 0 : index
    %11 = vector.load %arg4[%c0_4, %c0_5] : memref<1x3136xf32, #tpu.memory_space<vmem>>, vector<1x3136xf32>
    %12 = vector.broadcast %11 : vector<1x3136xf32> to vector<16x3136xf32>
    %13 = arith.addf %10, %12 : vector<16x3136xf32>
    %cst_6 = arith.constant 0.000000e+00 : f32
    %14 = vector.broadcast %cst_6 : f32 to vector<16x3136xf32>
    %15 = arith.cmpf oge, %13, %14 : vector<16x3136xf32>
    %cst_7 = arith.constant 0.00999999977 : f32
    %16 = vector.broadcast %cst_7 : f32 to vector<16x3136xf32>
    %17 = arith.mulf %16, %13 : vector<16x3136xf32>
    %18 = arith.select %15, %13, %17 : vector<16x3136xi1>, vector<16x3136xf32>
    %c0_8 = arith.constant 0 : index
    %c0_9 = arith.constant 0 : index
    %19 = vector.load %arg1[%c0_8, %c0_9] : memref<2x3136xf32, #tpu.memory_space<vmem>>, vector<2x3136xf32>
    %20 = vector.shape_cast %19 : vector<2x3136xf32> to vector<2x1x3136xf32>
    %21 = vector.shape_cast %18 : vector<16x3136xf32> to vector<2x8x3136xf32>
    %22 = vector.broadcast %20 : vector<2x1x3136xf32> to vector<2x8x3136xf32>
    %23 = arith.mulf %22, %21 : vector<2x8x3136xf32>
    %24 = vector.shape_cast %23 : vector<2x8x3136xf32> to vector<16x3136xf32>
    %25 = arith.truncf %24 : vector<16x3136xf32> to vector<16x3136xbf16>
    %c0_10 = arith.constant 0 : index
    %c0_11 = arith.constant 0 : index
    %26 = vector.load %arg5[%c0_10, %c0_11] : memref<3136x1024xbf16, #tpu.memory_space<vmem>>, vector<3136x1024xbf16>
    %cst_12 = arith.constant dense<0.000000e+00> : vector<16x1024xf32>
    %27 = tpu.matmul %25, %26, %cst_12 {dimension_numbers = #tpu.dot_dimension_numbers<[1], [0], [0], [1], [0, 0, 1, 1], [], []>} : vector<16x3136xbf16>, vector<3136x1024xbf16>, vector<16x1024xf32> -> vector<16x1024xf32>
    %c0_13 = arith.constant 0 : index
    %c0_14 = arith.constant 0 : index
    %28 = vector.load %arg6[%c0_13, %c0_14] : memref<1x1024xf32, #tpu.memory_space<vmem>>, vector<1x1024xf32>
    %29 = vector.broadcast %28 : vector<1x1024xf32> to vector<16x1024xf32>
    %30 = arith.addf %27, %29 : vector<16x1024xf32>
    %cst_15 = arith.constant 0.000000e+00 : f32
    %31 = vector.broadcast %cst_15 : f32 to vector<16x1024xf32>
    %32 = arith.cmpf oge, %30, %31 : vector<16x1024xf32>
    %cst_16 = arith.constant 0.00999999977 : f32
    %33 = vector.broadcast %cst_16 : f32 to vector<16x1024xf32>
    %34 = arith.mulf %33, %30 : vector<16x1024xf32>
    %35 = arith.select %32, %30, %34 : vector<16x1024xi1>, vector<16x1024xf32>
    %36 = arith.truncf %35 : vector<16x1024xf32> to vector<16x1024xbf16>
    %c0_17 = arith.constant 0 : index
    %c0_18 = arith.constant 0 : index
    %37 = vector.load %arg7[%c0_17, %c0_18] : memref<1024x128xbf16, #tpu.memory_space<vmem>>, vector<1024x128xbf16>
    %cst_19 = arith.constant dense<0.000000e+00> : vector<16x128xf32>
    %38 = tpu.matmul %36, %37, %cst_19 {dimension_numbers = #tpu.dot_dimension_numbers<[1], [0], [0], [1], [0, 0, 1, 1], [], []>} : vector<16x1024xbf16>, vector<1024x128xbf16>, vector<16x128xf32> -> vector<16x128xf32>
    %c0_20 = arith.constant 0 : index
    %c0_21 = arith.constant 0 : index
    %c0_22 = arith.constant 0 : index
    %39 = vector.load %arg8[%c0_20, %c0_21, %c0_22] : memref<1x16x128xf32, #tpu.memory_space<vmem>>, vector<1x16x128xf32>
    %40 = vector.shape_cast %39 : vector<1x16x128xf32> to vector<16x128xf32>
    %41 = vector.shape_cast %38 : vector<16x128xf32> to vector<1x16x128xf32>
    tpu.vector_store %arg8[%c0_20, %c0_21, %c0_22], %41 {strides = array<i32>} : memref<1x16x128xf32, #tpu.memory_space<vmem>>, vector<1x16x128xf32>,
    return
  }
  func.func @transform_0(%arg0: i32) -> (i32, i32) {
    %c0_i32 = arith.constant 0 : i32
    %c0_i32_0 = arith.constant 0 : i32
    %c0_i32_1 = arith.constant 0 : i32
    return %c0_i32, %c0_i32_0 : i32, i32
  }
  func.func @transform_1(%arg0: i32) -> (i32, i32) {
    %c0_i32 = arith.constant 0 : i32
    %c0_i32_0 = arith.constant 0 : i32
    %c0_i32_1 = arith.constant 0 : i32
    return %c0_i32, %c0_i32_0 : i32, i32
  }
  func.func @transform_2(%arg0: i32) -> (i32, i32) {
    %c0_i32 = arith.constant 0 : i32
    %c0_i32_0 = arith.constant 0 : i32
    %c0_i32_1 = arith.constant 0 : i32
    return %c0_i32, %c0_i32_0 : i32, i32
  }
  func.func @transform_3(%arg0: i32) -> (i32, i32) {
    %c0_i32 = arith.constant 0 : i32
    %c0_i32_0 = arith.constant 0 : i32
    %c0_i32_1 = arith.constant 0 : i32
    return %c0_i32, %c0_i32_0 : i32, i32
  }
  func.func @transform_4(%arg0: i32) -> (i32, i32) {
    %c0_i32 = arith.constant 0 : i32
    %c0_i32_0 = arith.constant 0 : i32
    return %c0_i32, %arg0 : i32, i32
  }
  func.func @transform_5(%arg0: i32) -> (i32, i32) {
    %c0_i32 = arith.constant 0 : i32
    %c0_i32_0 = arith.constant 0 : i32
    return %c0_i32, %arg0 : i32, i32
  }
  func.func @transform_6(%arg0: i32) -> (i32, i32) {
    %c0_i32 = arith.constant 0 : i32
    %c0_i32_0 = arith.constant 0 : i32
    return %arg0, %c0_i32 : i32, i32
  }
  func.func @transform_7(%arg0: i32) -> (i32, i32, i32) {
    %c0_i32 = arith.constant 0 : i32
    %c0_i32_0 = arith.constant 0 : i32
    %c0_i32_1 = arith.constant 0 : i32
    return %arg0, %c0_i32, %c0_i32_0 : i32, i32, i32
  }
}

</mosaic_0001>

<bundles_post_ra>
// kernel: iqn_forward.4
= control target key start
LH: loop header
LB: loop body
LE: loop exit
PB: predicated region body
PF: predicated region fallthrough
CT: control target
= control target key end

     0   :  { %s1783_s12 = smov 0   ;;  %s2018_s0 = inlined_call_operand.vmem [shape: bf16[2,400,256], index: 0, kind: input, shape index: {}]   ;;  %s2019_s1 = inlined_call_operand.vmem [shape: bf16[256,128], index: 1, kind: input, shape index: {}]   ;;  %s2020_s2 = inlined_call_operand.vmem [shape: f32[1,128], index: 2, kind: input, shape index: {}]   ;;  %s2021_s3 = inlined_call_operand.vmem [shape: bf16[2,400,128], index: 3, kind: output, shape index: {}]  }
   0x1 LB: > { %s1295_s13 = sadd.s32 4294967295, %s1760_s12   ;;  %p1299_p0 = scmp.ge.s32.totalorder %s1760_s12, 1  ;;  %s1760_s12 = sphi %s1783_s12, %s13_s12  }
   0x2   : > { %p137_p1 = scmp.lt.s32.totalorder %s1760_s12, 3 }
   0x4   : > { %p138_p2 = pnand %p1299_p0, %p137_p1 }
   0x5   : > { %v1663_v0 = vld [vmem:[%s2019_s1] sm:$0xff] (!%p138_p2)   ;;  %v1762_v1 = vmov (!%p138_p2), 0   ;;  %v1664_v2 = vld [vmem:[%s2019_s1 + $0x8] sm:$0xff] (!%p138_p2)   ;;  %p161_p3 = scmp.lt.s32.totalorder (!%p138_p2), %s1295_s13, 1  ;;  %v1665_v3 = vld [vmem:[%s2019_s1 + $0x10] sm:$0xff] (!%p138_p2)  }
   0x6   : > { %141 = sbr.rel (%p138_p2) target bundleno = 388 (0x184), region = 32  ;;  %607 = vmatprep.subr.bf16.mxu0 (!%p138_p2), %v1762_v1  ;;  %1620 = vmatprep.subr.bf16.mxu1 (!%p138_p2), %v1762_v1  ;;  %v1666_v4 = vld [vmem:[%s2019_s1 + $0x18] sm:$0xff] (!%p138_p2)   ;;  %v1667_v5 = vld [vmem:[%s2019_s1 + $0x20] sm:$0xff] (!%p138_p2)   ;;  %v1668_v7 = vld [vmem:[%s2019_s1 + $0x28] sm:$0xff] (!%p138_p2)  }
   0x7   : > { %608 = vmatpush1.bf16.msra.mxu0 (!%p138_p2), %v1663_v0  ;;  %1636 = vmatpush1.bf16.msra.mxu1 (!%p138_p2), %v1663_v0  ;;  %v1669_v9 = vld [vmem:[%s2019_s1 + $0x30] sm:$0xff] (!%p138_p2)   ;;  %v1670_v10 = vld [vmem:[%s2019_s1 + $0x38] sm:$0xff] (!%p138_p2)   ;;  %v1671_v11 = vld [vmem:[%s2019_s1 + $0x40] sm:$0xff] (!%p138_p2)  }
   0x8   : > { %609 = vmatprep.subr.bf16.mxu0 (!%p138_p2), %v1762_v1  ;;  %1621 = vmatprep.subr.bf16.mxu1 (!%p138_p2), %v1762_v1  ;;  %v1672_v12 = vld [vmem:[%s2019_s1 + $0x48] sm:$0xff] (!%p138_p2)   ;;  %v1673_v13 = vld [vmem:[%s2019_s1 + $0x50] sm:$0xff] (!%p138_p2)   ;;  %v1674_v14 = vld [vmem:[%s2019_s1 + $0x58] sm:$0xff] (!%p138_p2)  }
   0x9   : > { %v1675_v15 = vld [vmem:[%s2019_s1 + $0x60] sm:$0xff] (!%p138_p2)   ;;  %v1676_v16 = vld [vmem:[%s2019_s1 + $0x68] sm:$0xff] (!%p138_p2)   ;;  %v1677_v17 = vld [vmem:[%s2019_s1 + $0x70] sm:$0xff] (!%p138_p2)  }
   0xa   : > { %v1678_v18 = vld [vmem:[%s2019_s1 + $0x78] sm:$0xff] (!%p138_p2)  }
   0xb   : > { %610 = vmatpush1.bf16.msra.mxu0 (!%p138_p2), %v1664_v2  ;;  %1637 = vmatpush1.bf16.msra.mxu1 (!%p138_p2), %v1664_v2 }
   0xc   : > { %611 = vmatprep.subr.bf16.mxu0 (!%p138_p2), %v1762_v1  ;;  %1622 = vmatprep.subr.bf16.mxu1 (!%p138_p2), %v1762_v1 }
   0xd   : > { %s2023_s13 = smov (!%p161_p3, %s1295_s13), 1 }
   0xe   : > { %s1652_s22 = smul.u32 400, %s2023_s13 }
   0xf   : > { %612 = vmatpush1.bf16.msra.mxu0 %v1665_v3  ;;  %1638 = vmatpush1.bf16.msra.mxu1 %v1665_v3  ;;  %v1932_v3 = vld [vmem:[%s2020_s2] ss:$0 sm:$0xff]  ;;  %s1653_s28 = smul.u32 200, %s2023_s13 }
  0x10   : > { %613 = vmatprep.subr.bf16.mxu0 %v1762_v1  ;;  %1623 = vmatprep.subr.bf16.mxu1 %v1762_v1  ;;  %s1820_s27 = scalar_lea.vmem %s2018_s0, %s1652_s22 }
  0x11   : > { %v1681_v6 = vld [vmem:[%s1820_s27 + $0x4] ss:$8 sps:$4 sm:$0xff]   ;;  %v1684_v8 = vld [vmem:[%s1820_s27 + $0xd4] ss:$8 sps:$4 sm:$0xff]   ;;  %v1679_v19 = vld [vmem:[%s1820_s27] ss:$8 sps:$4 sm:$0xff]   ;;  %s1942_s30 = scalar_lea.vmem %s2021_s3, %s1653_s28 }
  0x12   : > { %639 = vmatprep.mubr.bf16.mxu0 %v1681_v6  ;;  %743 = vmatprep.mubr.bf16.mxu1 %v1684_v8  ;;  %v1682_v20 = vld [vmem:[%s1820_s27 + $0xd0] ss:$8 sps:$4 sm:$0xff]   ;;  %v1685_v21 = vld [vmem:[%s1820_s27 + $0x14] ss:$8 sps:$4 sm:$0xff]   ;;  %v1688_v22 = vld [vmem:[%s1820_s27 + $0xe4] ss:$8 sps:$4 sm:$0xff]  }
  0x13   : > { %614 = vmatpush1.bf16.msra.mxu0 %v1666_v4  ;;  %1639 = vmatpush1.bf16.msra.mxu1 %v1666_v4  ;;  %v1687_v23 = vld [vmem:[%s1820_s27 + $0x10] ss:$8 sps:$4 sm:$0xff]   ;;  %v1690_v24 = vld [vmem:[%s1820_s27 + $0xe0] ss:$8 sps:$4 sm:$0xff]   ;;  %v1691_v25 = vld [vmem:[%s1820_s27 + $0x24] ss:$8 sps:$4 sm:$0xff]  }
  0x14   : > { %615 = vmatprep.subr.bf16.mxu0 %v1762_v1  ;;  %1624 = vmatprep.subr.bf16.mxu1 %v1762_v1  ;;  %v1694_v26 = vld [vmem:[%s1820_s27 + $0xf4] ss:$8 sps:$4 sm:$0xff]   ;;  %v1693_v27 = vld [vmem:[%s1820_s27 + $0x20] ss:$8 sps:$4 sm:$0xff]   ;;  %v1696_v28 = vld [vmem:[%s1820_s27 + $0xf0] ss:$8 sps:$4 sm:$0xff]  }
  0x15   : > { %v1697_v29 = vld [vmem:[%s1820_s27 + $0x34] ss:$8 sps:$4 sm:$0xff]   ;;  %v1700_v30 = vld [vmem:[%s1820_s27 + $0x104] ss:$8 sps:$4 sm:$0xff]   ;;  %v1699_v31 = vld [vmem:[%s1820_s27 + $0x30] ss:$8 sps:$4 sm:$0xff]  }
  0x16   : > { %v1702_v32 = vld [vmem:[%s1820_s27 + $0x100] ss:$8 sps:$4 sm:$0xff]   ;;  %v1703_v33 = vld [vmem:[%s1820_s27 + $0x44] ss:$8 sps:$4 sm:$0xff]   ;;  %v1706_v34 = vld [vmem:[%s1820_s27 + $0x114] ss:$8 sps:$4 sm:$0xff]  }
  0x17   : > { %616 = vmatpush1.bf16.msra.mxu0 %v1667_v5  ;;  %1640 = vmatpush1.bf16.msra.mxu1 %v1667_v5  ;;  %v1705_v35 = vld [vmem:[%s1820_s27 + $0x40] ss:$8 sps:$4 sm:$0xff]   ;;  %v1708_v36 = vld [vmem:[%s1820_s27 + $0x110] ss:$8 sps:$4 sm:$0xff]   ;;  %v1709_v37 = vld [vmem:[%s1820_s27 + $0x54] ss:$8 sps:$4 sm:$0xff]  }
  0x18   : > { %617 = vmatprep.subr.bf16.mxu0 %v1762_v1  ;;  %1625 = vmatprep.subr.bf16.mxu1 %v1762_v1  ;;  %v1712_v38 = vld [vmem:[%s1820_s27 + $0x124] ss:$8 sps:$4 sm:$0xff]   ;;  %v1711_v39 = vld [vmem:[%s1820_s27 + $0x50] ss:$8 sps:$4 sm:$0xff]   ;;  %v1714_v40 = vld [vmem:[%s1820_s27 + $0x120] ss:$8 sps:$4 sm:$0xff]  }
  0x19   : > { %v1715_v41 = vld [vmem:[%s1820_s27 + $0x64] ss:$8 sps:$4 sm:$0xff]   ;;  %v1718_v42 = vld [vmem:[%s1820_s27 + $0x134] ss:$8 sps:$4 sm:$0xff]   ;;  %v1717_v43 = vld [vmem:[%s1820_s27 + $0x60] ss:$8 sps:$4 sm:$0xff]  }
  0x1a   : > { %v1720_v44 = vld [vmem:[%s1820_s27 + $0x130] ss:$8 sps:$4 sm:$0xff]   ;;  %v1721_v45 = vld [vmem:[%s1820_s27 + $0x74] ss:$8 sps:$4 sm:$0xff]   ;;  %v1724_v46 = vld [vmem:[%s1820_s27 + $0x144] ss:$8 sps:$4 sm:$0xff]  }
  0x1b   : > { %618 = vmatpush1.bf16.msra.mxu0 %v1668_v7  ;;  %1641 = vmatpush1.bf16.msra.mxu1 %v1668_v7  ;;  %v1723_v47 = vld [vmem:[%s1820_s27 + $0x70] ss:$8 sps:$4 sm:$0xff]   ;;  %v1726_v48 = vld [vmem:[%s1820_s27 + $0x140] ss:$8 sps:$4 sm:$0xff]   ;;  %v1727_v49 = vld [vmem:[%s1820_s27 + $0x84] ss:$8 sps:$4 sm:$0xff]  }
  0x1c   : > { %619 = vmatprep.subr.bf16.mxu0 %v1762_v1  ;;  %1626 = vmatprep.subr.bf16.mxu1 %v1762_v1  ;;  %v1730_v50 = vld [vmem:[%s1820_s27 + $0x154] ss:$8 sps:$4 sm:$0xff]   ;;  %v1729_v51 = vld [vmem:[%s1820_s27 + $0x80] ss:$8 sps:$4 sm:$0xff]   ;;  %v1732_v52 = vld [vmem:[%s1820_s27 + $0x150] ss:$8 sps:$4 sm:$0xff]  }
  0x1d   : > { %v1733_v53 = vld [vmem:[%s1820_s27 + $0x94] ss:$8 sps:$4 sm:$0xff]   ;;  %v1736_v54 = vld [vmem:[%s1820_s27 + $0x164] ss:$8 sps:$4 sm:$0xff]   ;;  %v1735_v55 = vld [vmem:[%s1820_s27 + $0x90] ss:$8 sps:$4 sm:$0xff]  }
  0x1e   : > { %v1738_v56 = vld [vmem:[%s1820_s27 + $0x160] ss:$8 sps:$4 sm:$0xff]   ;;  %v1739_v57 = vld [vmem:[%s1820_s27 + $0xa4] ss:$8 sps:$4 sm:$0xff]   ;;  %v1742_v58 = vld [vmem:[%s1820_s27 + $0x174] ss:$8 sps:$4 sm:$0xff]  }
  0x1f   : > { %620 = vmatpush1.bf16.msra.mxu0 %v1669_v9  ;;  %1642 = vmatpush1.bf16.msra.mxu1 %v1669_v9  ;;  %v1741_v59 = vld [vmem:[%s1820_s27 + $0xa0] ss:$8 sps:$4 sm:$0xff]   ;;  %v1744_v60 = vld [vmem:[%s1820_s27 + $0x170] ss:$8 sps:$4 sm:$0xff]   ;;  %v1745_v61 = vld [vmem:[%s1820_s27 + $0xb4] ss:$8 sps:$4 sm:$0xff]  }
  0x20   : > { %621 = vmatprep.subr.bf16.mxu0 %v1762_v1  ;;  %1627 = vmatprep.subr.bf16.mxu1 %v1762_v1  ;;  %v1748_v62 = vld [vmem:[%s1820_s27 + $0x184] ss:$8 sps:$4 sm:$0xff]   ;;  %v1747_v63 = vld [vmem:[%s1820_s27 + $0xb0] ss:$8 sps:$4 sm:$0xff]   ;;  %v1750_v0 = vld [vmem:[%s1820_s27 + $0x180] ss:$8 sps:$4 sm:$0xff]  }
  0x21   : > { %v1753_v2 = vld [vmem:[%s1820_s27 + $0xc0] ss:$8 sps:$4 sm:$0xff]  }
  0x23   : > { %622 = vmatpush1.bf16.msra.mxu0 %v1670_v10  ;;  %1643 = vmatpush1.bf16.msra.mxu1 %v1670_v10 }
  0x24   : > { %623 = vmatprep.subr.bf16.mxu0 %v1762_v1  ;;  %1628 = vmatprep.subr.bf16.mxu1 %v1762_v1 }
  0x27   : > { %624 = vmatpush1.bf16.msra.mxu0 %v1671_v11  ;;  %1644 = vmatpush1.bf16.msra.mxu1 %v1671_v11 }
  0x28   : > { %625 = vmatprep.subr.bf16.mxu0 %v1762_v1  ;;  %1629 = vmatprep.subr.bf16.mxu1 %v1762_v1 }
  0x2b   : > { %626 = vmatpush1.bf16.msra.mxu0 %v1672_v12  ;;  %1645 = vmatpush1.bf16.msra.mxu1 %v1672_v12 }
  0x2c   : > { %627 = vmatprep.subr.bf16.mxu0 %v1762_v1  ;;  %1630 = vmatprep.subr.bf16.mxu1 %v1762_v1 }
  0x2f   : > { %628 = vmatpush1.bf16.msra.mxu0 %v1673_v13  ;;  %1646 = vmatpush1.bf16.msra.mxu1 %v1673_v13 }
  0x30   : > { %629 = vmatprep.subr.bf16.mxu0 %v1762_v1  ;;  %1631 = vmatprep.subr.bf16.mxu1 %v1762_v1 }
  0x33   : > { %630 = vmatpush1.bf16.msra.mxu0 %v1674_v14  ;;  %1647 = vmatpush1.bf16.msra.mxu1 %v1674_v14 }
  0x34   : > { %631 = vmatprep.subr.bf16.mxu0 %v1762_v1  ;;  %1632 = vmatprep.subr.bf16.mxu1 %v1762_v1 }
  0x37   : > { %632 = vmatpush1.bf16.msra.mxu0 %v1675_v15  ;;  %1648 = vmatpush1.bf16.msra.mxu1 %v1675_v15 }
  0x38   : > { %633 = vmatprep.subr.bf16.mxu0 %v1762_v1  ;;  %1633 = vmatprep.subr.bf16.mxu1 %v1762_v1 }
  0x3b   : > { %634 = vmatpush1.bf16.msra.mxu0 %v1676_v16  ;;  %1649 = vmatpush1.bf16.msra.mxu1 %v1676_v16 }
  0x3c   : > { %635 = vmatprep.subr.bf16.mxu0 %v1762_v1  ;;  %1634 = vmatprep.subr.bf16.mxu1 %v1762_v1 }
  0x3f   : > { %636 = vmatpush1.bf16.msra.mxu0 %v1677_v17  ;;  %1650 = vmatpush1.bf16.msra.mxu1 %v1677_v17 }
  0x40   : > { %637 = vmatprep.subr.bf16.mxu0 %v1762_v1  ;;  %1635 = vmatprep.subr.bf16.mxu1 %v1762_v1  ;;  %v1751_v1 = vld [vmem:[%s1820_s27 + $0xc4] ss:$8 sps:$4 sm:$0xff]  }
  0x43   : > { %638 = vmatpush1.bf16.msra.mxu0 %v1678_v18  ;;  %1651 = vmatpush1.bf16.msra.mxu1 %v1678_v18 }
  0x46   : > { %640 = vmatmul.mubr.bf16.vlgmr.msra.gmra.mrb[0].mxu0 %v1679_v19  ;;  %744 = vmatmul.mubr.bf16.vlgmr.msra.gmra.mrb[0].mxu1 %v1682_v20 }
  0x47   : > { %647 = vmatprep.mubr.bf16.mxu0 %v1685_v21  ;;  %751 = vmatprep.mubr.bf16.mxu1 %v1688_v22 }
  0x4e   : > { %648 = vmatmul.mubr.bf16.gmra.mrb[4].mxu0 %v1687_v23  ;;  %752 = vmatmul.mubr.bf16.gmra.mrb[4].mxu1 %v1690_v24 }
  0x4f   : > { %655 = vmatprep.mubr.bf16.mxu0 %v1691_v25  ;;  %759 = vmatprep.mubr.bf16.mxu1 %v1694_v26 }
  0x56   : > { %656 = vmatmul.mubr.bf16.gmra.mrb[8].mxu0 %v1693_v27  ;;  %760 = vmatmul.mubr.bf16.gmra.mrb[8].mxu1 %v1696_v28 }
  0x57   : > { %663 = vmatprep.mubr.bf16.mxu0 %v1697_v29  ;;  %767 = vmatprep.mubr.bf16.mxu1 %v1700_v30 }
  0x5e   : > { %664 = vmatmul.mubr.bf16.gmra.mrb[12].mxu0 %v1699_v31  ;;  %768 = vmatmul.mubr.bf16.gmra.mrb[12].mxu1 %v1702_v32 }
  0x5f   : > { %671 = vmatprep.mubr.bf16.mxu0 %v1703_v33  ;;  %775 = vmatprep.mubr.bf16.mxu1 %v1706_v34 }
  0x66   : > { %672 = vmatmul.mubr.bf16.gmra.mrb[16].mxu0 %v1705_v35  ;;  %776 = vmatmul.mubr.bf16.gmra.mrb[16].mxu1 %v1708_v36 }
  0x67   : > { %679 = vmatprep.mubr.bf16.mxu0 %v1709_v37  ;;  %783 = vmatprep.mubr.bf16.mxu1 %v1712_v38 }
  0x6e   : > { %680 = vmatmul.mubr.bf16.gmra.mrb[20].mxu0 %v1711_v39  ;;  %784 = vmatmul.mubr.bf16.gmra.mrb[20].mxu1 %v1714_v40 }
  0x6f   : > { %687 = vmatprep.mubr.bf16.mxu0 %v1715_v41  ;;  %791 = vmatprep.mubr.bf16.mxu1 %v1718_v42 }
  0x76   : > { %688 = vmatmul.mubr.bf16.gmra.mrb[24].mxu0 %v1717_v43  ;;  %792 = vmatmul.mubr.bf16.gmra.mrb[24].mxu1 %v1720_v44 }
  0x77   : > { %695 = vmatprep.mubr.bf16.mxu0 %v1721_v45  ;;  %799 = vmatprep.mubr.bf16.mxu1 %v1724_v46 }
  0x7e   : > { %696 = vmatmul.mubr.bf16.gmra.mrb[28].mxu0 %v1723_v47  ;;  %800 = vmatmul.mubr.bf16.gmra.mrb[28].mxu1 %v1726_v48 }
  0x7f   : > { %703 = vmatprep.mubr.bf16.mxu0 %v1727_v49  ;;  %807 = vmatprep.mubr.bf16.mxu1 %v1730_v50 }
  0x86   : > { %704 = vmatmul.mubr.bf16.gmra.mrb[32].mxu0 %v1729_v51  ;;  %808 = vmatmul.mubr.bf16.gmra.mrb[32].mxu1 %v1732_v52 }
  0x87   : > { %711 = vmatprep.mubr.bf16.mxu0 %v1733_v53  ;;  %815 = vmatprep.mubr.bf16.mxu1 %v1736_v54 }
  0x8e   : > { %712 = vmatmul.mubr.bf16.gmra.mrb[36].mxu0 %v1735_v55  ;;  %816 = vmatmul.mubr.bf16.gmra.mrb[36].mxu1 %v1738_v56 }
  0x8f   : > { %719 = vmatprep.mubr.bf16.mxu0 %v1739_v57  ;;  %823 = vmatprep.mubr.bf16.mxu1 %v1742_v58 }
  0x96   : > { %720 = vmatmul.mubr.bf16.gmra.mrb[40].mxu0 %v1741_v59  ;;  %824 = vmatmul.mubr.bf16.gmra.mrb[40].mxu1 %v1744_v60 }
  0x97   : > { %727 = vmatprep.mubr.bf16.mxu0 %v1745_v61  ;;  %831 = vmatprep.mubr.bf16.mxu1 %v1748_v62 }
  0x9e   : > { %728 = vmatmul.mubr.bf16.gmra.mrb[44].mxu0 %v1747_v63  ;;  %832 = vmatmul.mubr.bf16.gmra.mrb[44].mxu1 %v1750_v0 }
  0x9f   : > { %735 = vmatprep.mubr.bf16.mxu0 %v1751_v1 }
  0xa6   : > { %736 = vmatmul.mubr.bf16.gmra.mrb[48].mxu0 %v1753_v2 }
 0x119   : > { %v641_v4 = vpop.f32.mrb[0].mxu0  ;;  %v745_v5 = vpop.f32.mrb[0].mxu1 }
 0x11a   : > { %v642_v6 = vadd.f32 %v1932_v3, %v641_v4  ;;  %v643_v7 = vpop.f32.mrb[1].mxu0  ;;  %v746_v8 = vadd.f32 %v1932_v3, %v745_v5  ;;  %v747_v9 = vpop.f32.mrb[1].mxu1 }
 0x11b   : > { %v644_v10 = vpop.f32.mrb[2].mxu0  ;;  %v748_v11 = vpop.f32.mrb[2].mxu1 }
 0x11c   : > { %v890_v12 = vmul.f32 0.01, %v642_v6  ;;  %v645_v13 = vadd.f32 %v1932_v3, %v644_v10  ;;  %v646_v14 = vpop.f32.mrb[3].mxu0  ;;  %vm866_vm0 = vcmp.ge.f32.partialorder %v746_v8, 0.0  ;;  %v750_v15 = vpop.f32.mrb[3].mxu1  ;;  %vm840_vm1 = vcmp.ge.f32.partialorder %v642_v6, 0.0 }
 0x11d   : > { %v916_v16 = vmul.f32 0.01, %v746_v8  ;;  %v749_v17 = vadd.f32 %v1932_v3, %v748_v11 }
 0x11e   : > { %vm841_vm2 = vcmp.ge.f32.partialorder %v645_v13, 0.0  ;;  %v891_v18 = vmul.f32 0.01, %v645_v13  ;;  %v940_v21 = vsel %vm840_vm1, %v642_v6, %v890_v12 }
 0x11f   : > { %v966_v19 = vsel %vm866_vm0, %v746_v8, %v916_v16  ;;  %vm867_vm3 = vcmp.ge.f32.partialorder %v749_v17, 0.0  ;;  %v917_v20 = vmul.f32 0.01, %v749_v17 }
 0x120   : > { %v941_v22 = vsel %vm841_vm2, %v645_v13, %v891_v18 }
 0x121   : > { %v1474_v23 = vpack.c.bf16 %v941_v22, %v940_v21  ;;  %v967_v24 = vsel %vm867_vm3, %v749_v17, %v917_v20  ;;  %v649_v25 = vpop.f32.mrb[4].mxu0  ;;  %v753_v26 = vpop.f32.mrb[4].mxu1 }
 0x122   : > { %v1539_v27 = vpack.c.bf16 %v967_v24, %v966_v19  ;;  %v650_v28 = vadd.f32 %v1932_v3, %v649_v25  ;;  %v651_v29 = vpop.f32.mrb[5].mxu0  ;;  %v754_v30 = vadd.f32 %v1932_v3, %v753_v26  ;;  %v755_v31 = vpop.f32.mrb[5].mxu1 }
 0x123   : > { %1475 = vst [vmem:[%s1942_s30] sm:$0xff] %v1474_v23   ;;  %v652_v32 = vpop.f32.mrb[6].mxu0  ;;  %v756_v33 = vpop.f32.mrb[6].mxu1 }
 0x124   : > { %1608 = vst [vmem:[%s1942_s30 + $0x68] sm:$0xff] %v1539_v27   ;;  %v892_v34 = vmul.f32 0.01, %v650_v28  ;;  %v653_v35 = vadd.f32 %v1932_v3, %v652_v32  ;;  %v654_v36 = vpop.f32.mrb[7].mxu0  ;;  %vm868_vm4 = vcmp.ge.f32.partialorder %v754_v30, 0.0  ;;  %v758_v37 = vpop.f32.mrb[7].mxu1  ;;  %v757_v39 = vadd.f32 %v1932_v3, %v756_v33 }
 0x125   : > { %vm842_vm5 = vcmp.ge.f32.partialorder %v650_v28, 0.0  ;;  %v918_v38 = vmul.f32 0.01, %v754_v30 }
 0x126   : > { %vm843_vm6 = vcmp.ge.f32.partialorder %v653_v35, 0.0  ;;  %v893_v40 = vmul.f32 0.01, %v653_v35  ;;  %vm869_vm7 = vcmp.ge.f32.partialorder %v757_v39, 0.0  ;;  %v919_v42 = vmul.f32 0.01, %v757_v39 }
 0x127   : > { %v968_v41 = vsel %vm868_vm4, %v754_v30, %v918_v38  ;;  %v942_v43 = vsel %vm842_vm5, %v650_v28, %v892_v34 }
 0x128   : > { %v943_v44 = vsel %vm843_vm6, %v653_v35, %v893_v40  ;;  %v969_v46 = vsel %vm869_vm7, %v757_v39, %v919_v42 }
 0x129   : > { %v1479_v45 = vpack.c.bf16 %v943_v44, %v942_v43  ;;  %v657_v47 = vpop.f32.mrb[8].mxu0  ;;  %v761_v48 = vpop.f32.mrb[8].mxu1  ;;  %v1544_v49 = vpack.c.bf16 %v969_v46, %v968_v41 }
 0x12a   : > { %v658_v50 = vadd.f32 %v1932_v3, %v657_v47  ;;  %v659_v51 = vpop.f32.mrb[9].mxu0  ;;  %v762_v52 = vadd.f32 %v1932_v3, %v761_v48  ;;  %v763_v53 = vpop.f32.mrb[9].mxu1 }
 0x12b   : > { %1596 = vst [vmem:[%s1942_s30 + $0x8] sm:$0xff] %v1479_v45   ;;  %v660_v54 = vpop.f32.mrb[10].mxu0  ;;  %v764_v55 = vpop.f32.mrb[10].mxu1  ;;  %1609 = vst [vmem:[%s1942_s30 + $0x70] sm:$0xff] %v1544_v49  }
 0x12c   : > { %v894_v56 = vmul.f32 0.01, %v658_v50  ;;  %v661_v57 = vadd.f32 %v1932_v3, %v660_v54  ;;  %v662_v58 = vpop.f32.mrb[11].mxu0  ;;  %vm870_vm8 = vcmp.ge.f32.partialorder %v762_v52, 0.0  ;;  %v766_v59 = vpop.f32.mrb[11].mxu1  ;;  %vm844_vm9 = vcmp.ge.f32.partialorder %v658_v50, 0.0 }
 0x12d   : > { %v920_v60 = vmul.f32 0.01, %v762_v52  ;;  %v765_v61 = vadd.f32 %v1932_v3, %v764_v55 }
 0x12e   : > { %vm845_vm10 = vcmp.ge.f32.partialorder %v661_v57, 0.0  ;;  %v895_v62 = vmul.f32 0.01, %v661_v57  ;;  %v944_v1 = vsel %vm844_vm9, %v658_v50, %v894_v56 }
 0x12f   : > { %v970_v63 = vsel %vm870_vm8, %v762_v52, %v920_v60  ;;  %vm871_vm11 = vcmp.ge.f32.partialorder %v765_v61, 0.0  ;;  %v921_v0 = vmul.f32 0.01, %v765_v61 }
 0x130   : > { %v945_v2 = vsel %vm845_vm10, %v661_v57, %v895_v62 }
 0x131   : > { %v1484_v4 = vpack.c.bf16 %v945_v2, %v944_v1  ;;  %v971_v5 = vsel %vm871_vm11, %v765_v61, %v921_v0  ;;  %v665_v6 = vpop.f32.mrb[12].mxu0  ;;  %v769_v7 = vpop.f32.mrb[12].mxu1 }
 0x132   : > { %v1549_v8 = vpack.c.bf16 %v971_v5, %v970_v63  ;;  %v666_v9 = vadd.f32 %v1932_v3, %v665_v6  ;;  %v667_v10 = vpop.f32.mrb[13].mxu0  ;;  %v770_v11 = vadd.f32 %v1932_v3, %v769_v7  ;;  %v771_v12 = vpop.f32.mrb[13].mxu1 }
 0x133   : > { %1597 = vst [vmem:[%s1942_s30 + $0x10] sm:$0xff] %v1484_v4   ;;  %v668_v13 = vpop.f32.mrb[14].mxu0  ;;  %v772_v14 = vpop.f32.mrb[14].mxu1 }
 0x134   : > { %1610 = vst [vmem:[%s1942_s30 + $0x78] sm:$0xff] %v1549_v8   ;;  %v896_v15 = vmul.f32 0.01, %v666_v9  ;;  %v669_v16 = vadd.f32 %v1932_v3, %v668_v13  ;;  %v670_v17 = vpop.f32.mrb[15].mxu0  ;;  %vm872_vm12 = vcmp.ge.f32.partialorder %v770_v11, 0.0  ;;  %v774_v18 = vpop.f32.mrb[15].mxu1  ;;  %v773_v20 = vadd.f32 %v1932_v3, %v772_v14 }
 0x135   : > { %vm846_vm13 = vcmp.ge.f32.partialorder %v666_v9, 0.0  ;;  %v922_v19 = vmul.f32 0.01, %v770_v11 }
 0x136   : > { %vm847_vm14 = vcmp.ge.f32.partialorder %v669_v16, 0.0  ;;  %v897_v21 = vmul.f32 0.01, %v669_v16  ;;  %vm873_vm15 = vcmp.ge.f32.partialorder %v773_v20, 0.0  ;;  %v923_v23 = vmul.f32 0.01, %v773_v20 }
 0x137   : > { %v972_v22 = vsel %vm872_vm12, %v770_v11, %v922_v19  ;;  %v946_v24 = vsel %vm846_vm13, %v666_v9, %v896_v15 }
 0x138   : > { %v947_v25 = vsel %vm847_vm14, %v669_v16, %v897_v21  ;;  %v973_v27 = vsel %vm873_vm15, %v773_v20, %v923_v23 }
 0x139   : > { %v1489_v26 = vpack.c.bf16 %v947_v25, %v946_v24  ;;  %v673_v28 = vpop.f32.mrb[16].mxu0  ;;  %v777_v29 = vpop.f32.mrb[16].mxu1  ;;  %v1554_v30 = vpack.c.bf16 %v973_v27, %v972_v22 }
 0x13a   : > { %v674_v31 = vadd.f32 %v1932_v3, %v673_v28  ;;  %v675_v32 = vpop.f32.mrb[17].mxu0  ;;  %v778_v33 = vadd.f32 %v1932_v3, %v777_v29  ;;  %v779_v34 = vpop.f32.mrb[17].mxu1 }
 0x13b   : > { %1598 = vst [vmem:[%s1942_s30 + $0x18] sm:$0xff] %v1489_v26   ;;  %v676_v35 = vpop.f32.mrb[18].mxu0  ;;  %v780_v36 = vpop.f32.mrb[18].mxu1  ;;  %1611 = vst [vmem:[%s1942_s30 + $0x80] sm:$0xff] %v1554_v30  }
 0x13c   : > { %v898_v37 = vmul.f32 0.01, %v674_v31  ;;  %v677_v38 = vadd.f32 %v1932_v3, %v676_v35  ;;  %v678_v39 = vpop.f32.mrb[19].mxu0  ;;  %vm874_vm0 = vcmp.ge.f32.partialorder %v778_v33, 0.0  ;;  %v782_v40 = vpop.f32.mrb[19].mxu1  ;;  %vm848_vm1 = vcmp.ge.f32.partialorder %v674_v31, 0.0 }
 0x13d   : > { %v924_v41 = vmul.f32 0.01, %v778_v33  ;;  %v781_v42 = vadd.f32 %v1932_v3, %v780_v36 }
 0x13e   : > { %vm849_vm2 = vcmp.ge.f32.partialorder %v677_v38, 0.0  ;;  %v899_v43 = vmul.f32 0.01, %v677_v38  ;;  %v948_v46 = vsel %vm848_vm1, %v674_v31, %v898_v37 }
 0x13f   : > { %v974_v44 = vsel %vm874_vm0, %v778_v33, %v924_v41  ;;  %vm875_vm3 = vcmp.ge.f32.partialorder %v781_v42, 0.0  ;;  %v925_v45 = vmul.f32 0.01, %v781_v42 }
 0x140   : > { %v949_v47 = vsel %vm849_vm2, %v677_v38, %v899_v43 }
 0x141   : > { %v1494_v48 = vpack.c.bf16 %v949_v47, %v948_v46  ;;  %v975_v49 = vsel %vm875_vm3, %v781_v42, %v925_v45  ;;  %v681_v50 = vpop.f32.mrb[20].mxu0  ;;  %v785_v51 = vpop.f32.mrb[20].mxu1 }
 0x142   : > { %v1559_v52 = vpack.c.bf16 %v975_v49, %v974_v44  ;;  %v682_v53 = vadd.f32 %v1932_v3, %v681_v50  ;;  %v683_v54 = vpop.f32.mrb[21].mxu0  ;;  %v786_v55 = vadd.f32 %v1932_v3, %v785_v51  ;;  %v787_v56 = vpop.f32.mrb[21].mxu1 }
 0x143   : > { %1599 = vst [vmem:[%s1942_s30 + $0x20] sm:$0xff] %v1494_v48   ;;  %v684_v57 = vpop.f32.mrb[22].mxu0  ;;  %v788_v58 = vpop.f32.mrb[22].mxu1 }
 0x144   : > { %1612 = vst [vmem:[%s1942_s30 + $0x88] sm:$0xff] %v1559_v52   ;;  %v900_v59 = vmul.f32 0.01, %v682_v53  ;;  %v685_v60 = vadd.f32 %v1932_v3, %v684_v57  ;;  %v686_v61 = vpop.f32.mrb[23].mxu0  ;;  %vm876_vm4 = vcmp.ge.f32.partialorder %v786_v55, 0.0  ;;  %v790_v62 = vpop.f32.mrb[23].mxu1  ;;  %v789_v0 = vadd.f32 %v1932_v3, %v788_v58 }
 0x145   : > { %vm850_vm5 = vcmp.ge.f32.partialorder %v682_v53, 0.0  ;;  %v926_v63 = vmul.f32 0.01, %v786_v55 }
 0x146   : > { %vm851_vm6 = vcmp.ge.f32.partialorder %v685_v60, 0.0  ;;  %v901_v1 = vmul.f32 0.01, %v685_v60  ;;  %vm877_vm7 = vcmp.ge.f32.partialorder %v789_v0, 0.0  ;;  %v927_v4 = vmul.f32 0.01, %v789_v0 }
 0x147   : > { %v976_v2 = vsel %vm876_vm4, %v786_v55, %v926_v63  ;;  %v950_v5 = vsel %vm850_vm5, %v682_v53, %v900_v59 }
 0x148   : > { %v951_v6 = vsel %vm851_vm6, %v685_v60, %v901_v1  ;;  %v977_v8 = vsel %vm877_vm7, %v789_v0, %v927_v4 }
 0x149   : > { %v1499_v7 = vpack.c.bf16 %v951_v6, %v950_v5  ;;  %v689_v9 = vpop.f32.mrb[24].mxu0  ;;  %v793_v10 = vpop.f32.mrb[24].mxu1  ;;  %v1564_v11 = vpack.c.bf16 %v977_v8, %v976_v2 }
 0x14a   : > { %v690_v12 = vadd.f32 %v1932_v3, %v689_v9  ;;  %v691_v13 = vpop.f32.mrb[25].mxu0  ;;  %v794_v14 = vadd.f32 %v1932_v3, %v793_v10  ;;  %v795_v15 = vpop.f32.mrb[25].mxu1 }
 0x14b   : > { %1600 = vst [vmem:[%s1942_s30 + $0x28] sm:$0xff] %v1499_v7   ;;  %v692_v16 = vpop.f32.mrb[26].mxu0  ;;  %v796_v17 = vpop.f32.mrb[26].mxu1  ;;  %1613 = vst [vmem:[%s1942_s30 + $0x90] sm:$0xff] %v1564_v11  }
 0x14c   : > { %v902_v18 = vmul.f32 0.01, %v690_v12  ;;  %v693_v19 = vadd.f32 %v1932_v3, %v692_v16  ;;  %v694_v20 = vpop.f32.mrb[27].mxu0  ;;  %vm878_vm8 = vcmp.ge.f32.partialorder %v794_v14, 0.0  ;;  %v798_v21 = vpop.f32.mrb[27].mxu1  ;;  %vm852_vm9 = vcmp.ge.f32.partialorder %v690_v12, 0.0 }
 0x14d   : > { %v928_v22 = vmul.f32 0.01, %v794_v14  ;;  %v797_v23 = vadd.f32 %v1932_v3, %v796_v17 }
 0x14e   : > { %vm853_vm10 = vcmp.ge.f32.partialorder %v693_v19, 0.0  ;;  %v903_v24 = vmul.f32 0.01, %v693_v19  ;;  %v952_v27 = vsel %vm852_vm9, %v690_v12, %v902_v18 }
 0x14f   : > { %v978_v25 = vsel %vm878_vm8, %v794_v14, %v928_v22  ;;  %vm879_vm11 = vcmp.ge.f32.partialorder %v797_v23, 0.0  ;;  %v929_v26 = vmul.f32 0.01, %v797_v23 }
 0x150   : > { %v953_v28 = vsel %vm853_vm10, %v693_v19, %v903_v24 }
 0x151   : > { %v1504_v29 = vpack.c.bf16 %v953_v28, %v952_v27  ;;  %v979_v30 = vsel %vm879_vm11, %v797_v23, %v929_v26  ;;  %v697_v31 = vpop.f32.mrb[28].mxu0  ;;  %v801_v32 = vpop.f32.mrb[28].mxu1 }
 0x152   : > { %v1569_v33 = vpack.c.bf16 %v979_v30, %v978_v25  ;;  %v698_v34 = vadd.f32 %v1932_v3, %v697_v31  ;;  %v699_v35 = vpop.f32.mrb[29].mxu0  ;;  %v802_v36 = vadd.f32 %v1932_v3, %v801_v32  ;;  %v803_v37 = vpop.f32.mrb[29].mxu1 }
 0x153   : > { %1601 = vst [vmem:[%s1942_s30 + $0x30] sm:$0xff] %v1504_v29   ;;  %v700_v38 = vpop.f32.mrb[30].mxu0  ;;  %v804_v39 = vpop.f32.mrb[30].mxu1 }
 0x154   : > { %1614 = vst [vmem:[%s1942_s30 + $0x98] sm:$0xff] %v1569_v33   ;;  %v904_v40 = vmul.f32 0.01, %v698_v34  ;;  %v701_v41 = vadd.f32 %v1932_v3, %v700_v38  ;;  %v702_v42 = vpop.f32.mrb[31].mxu0  ;;  %vm880_vm12 = vcmp.ge.f32.partialorder %v802_v36, 0.0  ;;  %v806_v43 = vpop.f32.mrb[31].mxu1  ;;  %v805_v45 = vadd.f32 %v1932_v3, %v804_v39 }
 0x155   : > { %vm854_vm13 = vcmp.ge.f32.partialorder %v698_v34, 0.0  ;;  %v930_v44 = vmul.f32 0.01, %v802_v36 }
 0x156   : > { %vm855_vm14 = vcmp.ge.f32.partialorder %v701_v41, 0.0  ;;  %v905_v46 = vmul.f32 0.01, %v701_v41  ;;  %vm881_vm15 = vcmp.ge.f32.partialorder %v805_v45, 0.0  ;;  %v931_v48 = vmul.f32 0.01, %v805_v45 }
 0x157   : > { %v980_v47 = vsel %vm880_vm12, %v802_v36, %v930_v44  ;;  %v954_v49 = vsel %vm854_vm13, %v698_v34, %v904_v40 }
 0x158   : > { %v955_v50 = vsel %vm855_vm14, %v701_v41, %v905_v46  ;;  %v981_v52 = vsel %vm881_vm15, %v805_v45, %v931_v48 }
 0x159   : > { %v1509_v51 = vpack.c.bf16 %v955_v50, %v954_v49  ;;  %v705_v53 = vpop.f32.mrb[32].mxu0  ;;  %v809_v54 = vpop.f32.mrb[32].mxu1  ;;  %v1574_v55 = vpack.c.bf16 %v981_v52, %v980_v47 }
 0x15a   : > { %v706_v56 = vadd.f32 %v1932_v3, %v705_v53  ;;  %v707_v57 = vpop.f32.mrb[33].mxu0  ;;  %v810_v58 = vadd.f32 %v1932_v3, %v809_v54  ;;  %v811_v59 = vpop.f32.mrb[33].mxu1 }
 0x15b   : > { %1602 = vst [vmem:[%s1942_s30 + $0x38] sm:$0xff] %v1509_v51   ;;  %v708_v60 = vpop.f32.mrb[34].mxu0  ;;  %v812_v61 = vpop.f32.mrb[34].mxu1  ;;  %1615 = vst [vmem:[%s1942_s30 + $0xa0] sm:$0xff] %v1574_v55  }
 0x15c   : > { %v906_v62 = vmul.f32 0.01, %v706_v56  ;;  %v709_v63 = vadd.f32 %v1932_v3, %v708_v60  ;;  %v710_v0 = vpop.f32.mrb[35].mxu0  ;;  %vm882_vm0 = vcmp.ge.f32.partialorder %v810_v58, 0.0  ;;  %v814_v1 = vpop.f32.mrb[35].mxu1  ;;  %vm856_vm1 = vcmp.ge.f32.partialorder %v706_v56, 0.0 }
 0x15d   : > { %v932_v2 = vmul.f32 0.01, %v810_v58  ;;  %v813_v4 = vadd.f32 %v1932_v3, %v812_v61 }
 0x15e   : > { %vm857_vm2 = vcmp.ge.f32.partialorder %v709_v63, 0.0  ;;  %v907_v5 = vmul.f32 0.01, %v709_v63  ;;  %v956_v8 = vsel %vm856_vm1, %v706_v56, %v906_v62 }
 0x15f   : > { %v982_v6 = vsel %vm882_vm0, %v810_v58, %v932_v2  ;;  %vm883_vm3 = vcmp.ge.f32.partialorder %v813_v4, 0.0  ;;  %v933_v7 = vmul.f32 0.01, %v813_v4 }
 0x160   : > { %v957_v9 = vsel %vm857_vm2, %v709_v63, %v907_v5 }
 0x161   : > { %v1514_v10 = vpack.c.bf16 %v957_v9, %v956_v8  ;;  %v983_v11 = vsel %vm883_vm3, %v813_v4, %v933_v7  ;;  %v713_v12 = vpop.f32.mrb[36].mxu0  ;;  %v817_v13 = vpop.f32.mrb[36].mxu1 }
 0x162   : > { %v1579_v14 = vpack.c.bf16 %v983_v11, %v982_v6  ;;  %v714_v15 = vadd.f32 %v1932_v3, %v713_v12  ;;  %v715_v16 = vpop.f32.mrb[37].mxu0  ;;  %v818_v17 = vadd.f32 %v1932_v3, %v817_v13  ;;  %v819_v18 = vpop.f32.mrb[37].mxu1 }
 0x163   : > { %1603 = vst [vmem:[%s1942_s30 + $0x40] sm:$0xff] %v1514_v10   ;;  %v716_v19 = vpop.f32.mrb[38].mxu0  ;;  %v820_v20 = vpop.f32.mrb[38].mxu1 }
 0x164   : > { %1616 = vst [vmem:[%s1942_s30 + $0xa8] sm:$0xff] %v1579_v14   ;;  %v908_v21 = vmul.f32 0.01, %v714_v15  ;;  %v717_v22 = vadd.f32 %v1932_v3, %v716_v19  ;;  %v718_v23 = vpop.f32.mrb[39].mxu0  ;;  %vm884_vm4 = vcmp.ge.f32.partialorder %v818_v17, 0.0  ;;  %v822_v24 = vpop.f32.mrb[39].mxu1  ;;  %v821_v26 = vadd.f32 %v1932_v3, %v820_v20 }
 0x165   : > { %vm858_vm5 = vcmp.ge.f32.partialorder %v714_v15, 0.0  ;;  %v934_v25 = vmul.f32 0.01, %v818_v17 }
 0x166   : > { %vm859_vm6 = vcmp.ge.f32.partialorder %v717_v22, 0.0  ;;  %v909_v27 = vmul.f32 0.01, %v717_v22  ;;  %vm885_vm7 = vcmp.ge.f32.partialorder %v821_v26, 0.0  ;;  %v935_v29 = vmul.f32 0.01, %v821_v26 }
 0x167   : > { %v984_v28 = vsel %vm884_vm4, %v818_v17, %v934_v25  ;;  %v958_v30 = vsel %vm858_vm5, %v714_v15, %v908_v21 }
 0x168   : > { %v959_v31 = vsel %vm859_vm6, %v717_v22, %v909_v27  ;;  %v985_v33 = vsel %vm885_vm7, %v821_v26, %v935_v29 }
 0x169   : > { %v1519_v32 = vpack.c.bf16 %v959_v31, %v958_v30  ;;  %v721_v34 = vpop.f32.mrb[40].mxu0  ;;  %v825_v35 = vpop.f32.mrb[40].mxu1  ;;  %v1584_v36 = vpack.c.bf16 %v985_v33, %v984_v28 }
 0x16a   : > { %v722_v37 = vadd.f32 %v1932_v3, %v721_v34  ;;  %v723_v38 = vpop.f32.mrb[41].mxu0  ;;  %v826_v39 = vadd.f32 %v1932_v3, %v825_v35  ;;  %v827_v40 = vpop.f32.mrb[41].mxu1 }
 0x16b   : > { %1604 = vst [vmem:[%s1942_s30 + $0x48] sm:$0xff] %v1519_v32   ;;  %v724_v41 = vpop.f32.mrb[42].mxu0  ;;  %v828_v42 = vpop.f32.mrb[42].mxu1  ;;  %1617 = vst [vmem:[%s1942_s30 + $0xb0] sm:$0xff] %v1584_v36  }
 0x16c   : > { %v910_v43 = vmul.f32 0.01, %v722_v37  ;;  %v725_v44 = vadd.f32 %v1932_v3, %v724_v41  ;;  %v726_v45 = vpop.f32.mrb[43].mxu0  ;;  %vm886_vm8 = vcmp.ge.f32.partialorder %v826_v39, 0.0  ;;  %v830_v46 = vpop.f32.mrb[43].mxu1  ;;  %vm860_vm9 = vcmp.ge.f32.partialorder %v722_v37, 0.0 }
 0x16d   : > { %v936_v47 = vmul.f32 0.01, %v826_v39  ;;  %v829_v48 = vadd.f32 %v1932_v3, %v828_v42 }
 0x16e   : > { %vm861_vm10 = vcmp.ge.f32.partialorder %v725_v44, 0.0  ;;  %v911_v49 = vmul.f32 0.01, %v725_v44  ;;  %v960_v52 = vsel %vm860_vm9, %v722_v37, %v910_v43 }
 0x16f   : > { %v986_v50 = vsel %vm886_vm8, %v826_v39, %v936_v47  ;;  %vm887_vm11 = vcmp.ge.f32.partialorder %v829_v48, 0.0  ;;  %v937_v51 = vmul.f32 0.01, %v829_v48 }
 0x170   : > { %v961_v53 = vsel %vm861_vm10, %v725_v44, %v911_v49 }
 0x171   : > { %v1524_v54 = vpack.c.bf16 %v961_v53, %v960_v52  ;;  %v987_v55 = vsel %vm887_vm11, %v829_v48, %v937_v51  ;;  %v729_v56 = vpop.f32.mrb[44].mxu0  ;;  %v833_v57 = vpop.f32.mrb[44].mxu1 }
 0x172   : > { %v1589_v58 = vpack.c.bf16 %v987_v55, %v986_v50  ;;  %v730_v59 = vadd.f32 %v1932_v3, %v729_v56  ;;  %v731_v60 = vpop.f32.mrb[45].mxu0  ;;  %v834_v61 = vadd.f32 %v1932_v3, %v833_v57  ;;  %v835_v62 = vpop.f32.mrb[45].mxu1 }
 0x173   : > { %1605 = vst [vmem:[%s1942_s30 + $0x50] sm:$0xff] %v1524_v54   ;;  %v732_v63 = vpop.f32.mrb[46].mxu0  ;;  %v836_v0 = vpop.f32.mrb[46].mxu1 }
 0x174   : > { %1618 = vst [vmem:[%s1942_s30 + $0xb8] sm:$0xff] %v1589_v58   ;;  %v912_v1 = vmul.f32 0.01, %v730_v59  ;;  %v733_v2 = vadd.f32 %v1932_v3, %v732_v63  ;;  %v734_v4 = vpop.f32.mrb[47].mxu0  ;;  %vm888_vm12 = vcmp.ge.f32.partialorder %v834_v61, 0.0  ;;  %v838_v5 = vpop.f32.mrb[47].mxu1  ;;  %v837_v7 = vadd.f32 %v1932_v3, %v836_v0 }
 0x175   : > { %vm862_vm13 = vcmp.ge.f32.partialorder %v730_v59, 0.0  ;;  %v938_v6 = vmul.f32 0.01, %v834_v61 }
 0x176   : > { %vm863_vm14 = vcmp.ge.f32.partialorder %v733_v2, 0.0  ;;  %v913_v8 = vmul.f32 0.01, %v733_v2  ;;  %vm889_vm15 = vcmp.ge.f32.partialorder %v837_v7, 0.0  ;;  %v939_v10 = vmul.f32 0.01, %v837_v7 }
 0x177   : > { %v988_v9 = vsel %vm888_vm12, %v834_v61, %v938_v6  ;;  %v962_v11 = vsel %vm862_vm13, %v730_v59, %v912_v1 }
 0x178   : > { %v963_v12 = vsel %vm863_vm14, %v733_v2, %v913_v8  ;;  %v989_v14 = vsel %vm889_vm15, %v837_v7, %v939_v10 }
 0x179   : > { %v1529_v13 = vpack.c.bf16 %v963_v12, %v962_v11  ;;  %v737_v15 = vpop.f32.mrb[48].mxu0  ;;  %v1594_v16 = vpack.c.bf16 %v989_v14, %v988_v9 }
 0x17a   : > { %v738_v17 = vadd.f32 %v1932_v3, %v737_v15  ;;  %v739_v18 = vpop.f32.mrb[49].mxu0 }
 0x17b   : > { %1606 = vst [vmem:[%s1942_s30 + $0x58] sm:$0xff] %v1529_v13   ;;  %v740_v19 = vpop.f32.mrb[50].mxu0  ;;  %1619 = vst [vmem:[%s1942_s30 + $0xc0] sm:$0xff] %v1594_v16  }
 0x17c   : > { %v914_v20 = vmul.f32 0.01, %v738_v17  ;;  %v741_v21 = vadd.f32 %v1932_v3, %v740_v19  ;;  %v742_v22 = vpop.f32.mrb[51].mxu0  ;;  %vm864_vm0 = vcmp.ge.f32.partialorder %v738_v17, 0.0 }
 0x17e   : > { %vm865_vm1 = vcmp.ge.f32.partialorder %v741_v21, 0.0  ;;  %v915_v23 = vmul.f32 0.01, %v741_v21  ;;  %v964_v24 = vsel %vm864_vm0, %v738_v17, %v914_v20 }
 0x180   : > { %v965_v25 = vsel %vm865_vm1, %v741_v21, %v915_v23 }
 0x181   : > { %v1534_v26 = vpack.c.bf16 %v965_v25, %v964_v24 }
 0x183   : > { %1607 = vst [vmem:[%s1942_s30 + $0x60] sm:$0xff] %v1534_v26  }
 0x184 PF: > { %s13_s12 = sadd.s32 1, %s1760_s12  }
 0x185   : > { %p10_p4 = scmp.ge.s32.totalorder %s13_s12, 4  }
 0x187   :  { %12 = sbr.rel (!%p10_p4) target bundleno = 1 (0x1), region = 62 }

// kernel: iqn_forward.5
= control target key start
LH: loop header
LB: loop body
LE: loop exit
PB: predicated region body
PF: predicated region fallthrough
CT: control target
= control target key end

     0   :  { %s1205_s12 = smov 0   ;;  %s1375_s0 = inlined_call_operand.vmem [shape: bf16[2,81,512], index: 0, kind: input, shape index: {}]   ;;  %s1376_s1 = inlined_call_operand.vmem [shape: bf16[512,128], index: 1, kind: input, shape index: {}]   ;;  %s1377_s2 = inlined_call_operand.vmem [shape: f32[1,128], index: 2, kind: input, shape index: {}]   ;;  %s1378_s3 = inlined_call_operand.vmem [shape: bf16[2,81,128], index: 3, kind: output, shape index: {}]  }
   0x1 LB: > { %s880_s13 = sadd.s32 4294967295, %s1183_s12   ;;  %p884_p0 = scmp.ge.s32.totalorder %s1183_s12, 1  ;;  %s1183_s12 = sphi %s1205_s12, %s13_s12  }
   0x2   : > { %p137_p1 = scmp.lt.s32.totalorder %s1183_s12, 3 }
   0x4   : > { %p138_p2 = pnand %p884_p0, %p137_p1 }
   0x5   : > { %v1111_v0 = vld [vmem:[%s1376_s1 + $0x40] sm:$0xff] (!%p138_p2)   ;;  %v1115_v4 = vld [vmem:[%s1376_s1 + $0x48] sm:$0xff] (!%p138_p2)   ;;  %v1119_v8 = vld [vmem:[%s1376_s1 + $0x50] sm:$0xff] (!%p138_p2)   ;;  %p161_p3 = scmp.lt.s32.totalorder (!%p138_p2), %s880_s13, 1  ;;  %vm819_vm10 = vcmask (!%p138_p2), 1040384  }
   0x6   : > { %141 = sbr.rel (%p138_p2) target bundleno = 305 (0x131), region = 32  ;;  %v1112_v1 = vld [vmem:[%s1376_s1 + $0xc0] sm:$0xff] (!%p138_p2)   ;;  %997 = vmatprep.subr.bf16.mxu0 (!%p138_p2), %v1111_v0  ;;  %v1116_v5 = vld [vmem:[%s1376_s1 + $0xc8] sm:$0xff] (!%p138_p2)   ;;  %v1120_v9 = vld [vmem:[%s1376_s1 + $0xd0] sm:$0xff] (!%p138_p2)   ;;  %vm820_vm11 = vsmask.f32 (!%p138_p2), 256 }
   0x7   : > { %v1113_v2 = vld [vmem:[%s1376_s1] sm:$0xff] (!%p138_p2)   ;;  %1049 = vmatprep.subr.bf16.mxu1 (!%p138_p2), %v1112_v1  ;;  %v1117_v6 = vld [vmem:[%s1376_s1 + $0x8] sm:$0xff] (!%p138_p2)   ;;  %v1121_v10 = vld [vmem:[%s1376_s1 + $0x10] sm:$0xff] (!%p138_p2)  }
   0x8   : > { %v1114_v3 = vld [vmem:[%s1376_s1 + $0x80] sm:$0xff] (!%p138_p2)   ;;  %998 = vmatpush3.bf16.msra.mxu0 (!%p138_p2), %v1113_v2  ;;  %v1118_v7 = vld [vmem:[%s1376_s1 + $0x88] sm:$0xff] (!%p138_p2)   ;;  %v1122_v11 = vld [vmem:[%s1376_s1 + $0x90] sm:$0xff] (!%p138_p2)  }
   0x9   : > { %1050 = vmatpush3.bf16.msra.mxu1 (!%p138_p2), %v1114_v3  ;;  %999 = vmatprep.subr.bf16.mxu0 (!%p138_p2), %v1115_v4  ;;  %v1123_v12 = vld [vmem:[%s1376_s1 + $0x58] sm:$0xff] (!%p138_p2)   ;;  %v1127_v16 = vld [vmem:[%s1376_s1 + $0x60] sm:$0xff] (!%p138_p2)   ;;  %v1131_v20 = vld [vmem:[%s1376_s1 + $0x68] sm:$0xff] (!%p138_p2)  }
   0xa   : > { %1051 = vmatprep.subr.bf16.mxu1 (!%p138_p2), %v1116_v5  ;;  %v1124_v13 = vld [vmem:[%s1376_s1 + $0xd8] sm:$0xff] (!%p138_p2)   ;;  %v1128_v17 = vld [vmem:[%s1376_s1 + $0xe0] sm:$0xff] (!%p138_p2)   ;;  %v1132_v21 = vld [vmem:[%s1376_s1 + $0xe8] sm:$0xff] (!%p138_p2)  }
   0xb   : > { %v1125_v14 = vld [vmem:[%s1376_s1 + $0x18] sm:$0xff] (!%p138_p2)   ;;  %v1129_v18 = vld [vmem:[%s1376_s1 + $0x20] sm:$0xff] (!%p138_p2)   ;;  %v1133_v22 = vld [vmem:[%s1376_s1 + $0x28] sm:$0xff] (!%p138_p2)  }
   0xc   : > { %1000 = vmatpush3.bf16.msra.mxu0 (!%p138_p2), %v1117_v6  ;;  %v1126_v15 = vld [vmem:[%s1376_s1 + $0x98] sm:$0xff] (!%p138_p2)   ;;  %v1130_v19 = vld [vmem:[%s1376_s1 + $0xa0] sm:$0xff] (!%p138_p2)   ;;  %v1134_v23 = vld [vmem:[%s1376_s1 + $0xa8] sm:$0xff] (!%p138_p2)  }
   0xd   : > { %1052 = vmatpush3.bf16.msra.mxu1 %v1118_v7  ;;  %1001 = vmatprep.subr.bf16.mxu0 %v1119_v8  ;;  %s1380_s13 = smov (!%p161_p3, %s880_s13), 1  ;;  %v1135_v24 = vld [vmem:[%s1376_s1 + $0x70] sm:$0xff]   ;;  %v1139_v28 = vld [vmem:[%s1376_s1 + $0x78] sm:$0xff]   ;;  %v1346_v60 = vld [vmem:[%s1377_s2] ss:$0 sm:$0xff] }
   0xe   : > { %1053 = vmatprep.subr.bf16.mxu1 %v1120_v9  ;;  %v1136_v25 = vld [vmem:[%s1376_s1 + $0xf0] sm:$0xff]   ;;  %s1101_s16 = smul.u32 176, %s1380_s13  ;;  %v1140_v29 = vld [vmem:[%s1376_s1 + $0xf8] sm:$0xff]   ;;  %vm821_vm13 = vmand %vm819_vm10, %vm820_vm11 }
   0xf   : > { %v1137_v26 = vld [vmem:[%s1376_s1 + $0x30] sm:$0xff]   ;;  %v1141_v30 = vld [vmem:[%s1376_s1 + $0x38] sm:$0xff]   ;;  %s1102_s7 = smul.u32 44, %s1380_s13 }
  0x10   : > { %1002 = vmatpush3.bf16.msra.mxu0 %v1121_v10  ;;  %v1138_v27 = vld [vmem:[%s1376_s1 + $0xb0] sm:$0xff]   ;;  %s1313_s27 = scalar_lea.vmem %s1375_s0, %s1101_s16  ;;  %v1142_v31 = vld [vmem:[%s1376_s1 + $0xb8] sm:$0xff]  }
  0x11   : > { %1054 = vmatpush3.bf16.msra.mxu1 %v1122_v11  ;;  %1003 = vmatprep.subr.bf16.mxu0 %v1123_v12  ;;  %v1143_v32 = vld [vmem:[%s1313_s27] ss:$16 sps:$4 sm:$0xff]   ;;  %v1145_v33 = vld [vmem:[%s1313_s27 + $0x4] ss:$16 sps:$4 sm:$0xff]   ;;  %v1146_v34 = vld [vmem:[%s1313_s27 + $0x8] ss:$16 sps:$4 sm:$0xff]   ;;  %s1354_s10 = scalar_lea.vmem %s1378_s3, %s1102_s7 }
  0x12   : > { %1055 = vmatprep.subr.bf16.mxu1 %v1124_v13  ;;  %v1148_v35 = vld [vmem:[%s1313_s27 + $0xc] ss:$16 sps:$4 sm:$0xff]   ;;  %603 = vmatprep.mubr.bf16.mxu0 %v1145_v33  ;;  %v1149_v36 = vld [vmem:[%s1313_s27 + $0x24] ss:$16 sps:$4 sm:$0xff]   ;;  %v1153_v38 = vld [vmem:[%s1313_s27 + $0x20] ss:$16 sps:$4 sm:$0xff]  }
  0x13   : > { %683 = vmatprep.mubr.bf16.mxu1 %v1148_v35  ;;  %v1151_v37 = vld [vmem:[%s1313_s27 + $0x2c] ss:$16 sps:$4 sm:$0xff]   ;;  %v1154_v39 = vld [vmem:[%s1313_s27 + $0x28] ss:$16 sps:$4 sm:$0xff]   ;;  %v1155_v40 = vld [vmem:[%s1313_s27 + $0x44] ss:$16 sps:$4 sm:$0xff]  }
  0x14   : > { %1004 = vmatpush3.bf16.msra.mxu0 %v1125_v14  ;;  %v1157_v41 = vld [vmem:[%s1313_s27 + $0x4c] ss:$16 sps:$4 sm:$0xff]   ;;  %v1159_v42 = vld [vmem:[%s1313_s27 + $0x40] ss:$16 sps:$4 sm:$0xff]   ;;  %v1160_v43 = vld [vmem:[%s1313_s27 + $0x48] ss:$16 sps:$4 sm:$0xff]  }
  0x15   : > { %1056 = vmatpush3.bf16.msra.mxu1 %v1126_v15  ;;  %1005 = vmatprep.subr.bf16.mxu0 %v1127_v16  ;;  %v1161_v44 = vld [vmem:[%s1313_s27 + $0x64] ss:$16 sps:$4 sm:$0xff]   ;;  %v1163_v45 = vld [vmem:[%s1313_s27 + $0x6c] ss:$16 sps:$4 sm:$0xff]   ;;  %v1165_v46 = vld [vmem:[%s1313_s27 + $0x60] ss:$16 sps:$4 sm:$0xff]  }
  0x16   : > { %1057 = vmatprep.subr.bf16.mxu1 %v1128_v17  ;;  %v1166_v47 = vld [vmem:[%s1313_s27 + $0x68] ss:$16 sps:$4 sm:$0xff]   ;;  %v1167_v48 = vld [vmem:[%s1313_s27 + $0x84] ss:$16 sps:$4 sm:$0xff]   ;;  %v1169_v49 = vld [vmem:[%s1313_s27 + $0x8c] ss:$16 sps:$4 sm:$0xff]  }
  0x17   : > { %v192_v50 = vld [vmem:[%s1313_s27 + $0xa0] sm:$0x11]  ;;  %v193_v51 = vld [vmem:[%s1313_s27 + $0xa8] sm:$0x11] }
  0x18   : > { %1006 = vmatpush3.bf16.msra.mxu0 %v1129_v18  ;;  %v1171_v52 = vld [vmem:[%s1313_s27 + $0x80] ss:$16 sps:$4 sm:$0xff]   ;;  %v1172_v53 = vld [vmem:[%s1313_s27 + $0x88] ss:$16 sps:$4 sm:$0xff]   ;;  %v909_v54 = vcombine.high %v192_v50, %v192_v50  ;;  %v911_v55 = vcombine.high %v193_v51, %v193_v51  ;;  %v908_v56 = vcombine.low %v192_v50, %v192_v50  ;;  %v910_v57 = vcombine.low %v193_v51, %v193_v51 }
  0x19   : > { %1058 = vmatpush3.bf16.msra.mxu1 %v1130_v19  ;;  %1007 = vmatprep.subr.bf16.mxu0 %v1131_v20 }
  0x1a   : > { %1059 = vmatprep.subr.bf16.mxu1 %v1132_v21 }
  0x1c   : > { %1008 = vmatpush3.bf16.msra.mxu0 %v1133_v22 }
  0x1d   : > { %1060 = vmatpush3.bf16.msra.mxu1 %v1134_v23  ;;  %1009 = vmatprep.subr.bf16.mxu0 %v1135_v24 }
  0x1e   : > { %1061 = vmatprep.subr.bf16.mxu1 %v1136_v25 }
  0x20   : > { %1010 = vmatpush3.bf16.msra.mxu0 %v1137_v26 }
  0x21   : > { %1062 = vmatpush3.bf16.msra.mxu1 %v1138_v27  ;;  %1011 = vmatprep.subr.bf16.mxu0 %v1139_v28 }
  0x22   : > { %1063 = vmatprep.subr.bf16.mxu1 %v1140_v29 }
  0x24   : > { %1012 = vmatpush3.bf16.msra.mxu0 %v1141_v30 }
  0x25   : > { %1064 = vmatpush3.bf16.msra.mxu1 %v1142_v31 }
  0x27   : > { %604 = vmatmul.mubr.bf16.vlgmr.msra.gmra.mrb[0].mxu0 %v1143_v32 }
  0x28   : > { %684 = vmatmul.mubr.bf16.vlgmr.msra.gmra.mrb[0].mxu1 %v1146_v34  ;;  %611 = vmatprep.mubr.bf16.mxu0 %v1149_v36 }
  0x29   : > { %691 = vmatprep.mubr.bf16.mxu1 %v1151_v37 }
  0x2f   : > { %612 = vmatmul.mubr.bf16.gmra.mrb[4].mxu0 %v1153_v38 }
  0x30   : > { %692 = vmatmul.mubr.bf16.gmra.mrb[4].mxu1 %v1154_v39  ;;  %619 = vmatprep.mubr.bf16.mxu0 %v1155_v40 }
  0x31   : > { %699 = vmatprep.mubr.bf16.mxu1 %v1157_v41 }
  0x37   : > { %620 = vmatmul.mubr.bf16.gmra.mrb[8].mxu0 %v1159_v42 }
  0x38   : > { %700 = vmatmul.mubr.bf16.gmra.mrb[8].mxu1 %v1160_v43  ;;  %627 = vmatprep.mubr.bf16.mxu0 %v1161_v44 }
  0x39   : > { %707 = vmatprep.mubr.bf16.mxu1 %v1163_v45 }
  0x3f   : > { %628 = vmatmul.mubr.bf16.gmra.mrb[12].mxu0 %v1165_v46 }
  0x40   : > { %708 = vmatmul.mubr.bf16.gmra.mrb[12].mxu1 %v1166_v47  ;;  %635 = vmatprep.mubr.bf16.mxu0 %v1167_v48 }
  0x41   : > { %715 = vmatprep.mubr.bf16.mxu1 %v1169_v49 }
  0x47   : > { %636 = vmatmul.mubr.bf16.gmra.mrb[16].mxu0 %v1171_v52 }
  0x48   : > { %716 = vmatmul.mubr.bf16.gmra.mrb[16].mxu1 %v1172_v53  ;;  %643 = vmatprep.mubr.bf16.mxu0 %v909_v54 }
  0x49   : > { %723 = vmatprep.mubr.bf16.mxu1 %v911_v55 }
  0x4f   : > { %644 = vmatmul.mubr.bf16.gmra.mrb[20].mxu0 %v908_v56 }
  0x50   : > { %724 = vmatmul.mubr.bf16.gmra.mrb[20].mxu1 %v910_v57 }
  0xfa   : > { %v1013_v58 = vpop.f32.mrb[0].mxu0 }
  0xfb   : > { %v1065_v59 = vpop.f32.mrb[0].mxu1  ;;  %v1014_v61 = vpop.f32.mrb[1].mxu0 }
  0xfc   : > { %v1015_v62 = vadd.f32 %v1014_v61, %v1013_v58  ;;  %v1066_v63 = vpop.f32.mrb[1].mxu1  ;;  %v1016_v0 = vpop.f32.mrb[2].mxu0 }
  0xfd   : > { %v1067_v1 = vadd.f32 %v1066_v63, %v1065_v59  ;;  %v1068_v2 = vpop.f32.mrb[2].mxu1  ;;  %v1017_v3 = vpop.f32.mrb[3].mxu0 }
  0xfe   : > { %v606_v4 = vadd.f32 %v1015_v62, %v1346_v60  ;;  %v1018_v5 = vadd.f32 %v1017_v3, %v1016_v0  ;;  %v1069_v6 = vpop.f32.mrb[3].mxu1 }
  0xff   : > { %v1070_v7 = vadd.f32 %v1069_v6, %v1068_v2 }
 0x100   : > { %v686_v8 = vadd.f32 %v1067_v1, %v606_v4  ;;  %v609_v9 = vadd.f32 %v1018_v5, %v1346_v60 }
 0x102   : > { %v742_v10 = vmul.f32 0.01, %v686_v8  ;;  %v689_v11 = vadd.f32 %v1070_v7, %v609_v9  ;;  %v1019_v12 = vpop.f32.mrb[4].mxu0  ;;  %vm731_vm0 = vcmp.ge.f32.partialorder %v686_v8, 0.0 }
 0x103   : > { %v1071_v13 = vpop.f32.mrb[4].mxu1  ;;  %v1020_v14 = vpop.f32.mrb[5].mxu0 }
 0x104   : > { %vm732_vm1 = vcmp.ge.f32.partialorder %v689_v11, 0.0  ;;  %v743_v15 = vmul.f32 0.01, %v689_v11  ;;  %v1021_v16 = vadd.f32 %v1020_v14, %v1019_v12  ;;  %v1072_v17 = vpop.f32.mrb[5].mxu1  ;;  %v1022_v18 = vpop.f32.mrb[6].mxu0  ;;  %v753_v22 = vsel %vm731_vm0, %v686_v8, %v742_v10 }
 0x105   : > { %v1073_v19 = vadd.f32 %v1072_v17, %v1071_v13  ;;  %v1074_v20 = vpop.f32.mrb[6].mxu1  ;;  %v1023_v21 = vpop.f32.mrb[7].mxu0 }
 0x106   : > { %v754_v23 = vsel %vm732_vm1, %v689_v11, %v743_v15  ;;  %v614_v24 = vadd.f32 %v1021_v16, %v1346_v60  ;;  %v1024_v25 = vadd.f32 %v1023_v21, %v1022_v18  ;;  %v1075_v26 = vpop.f32.mrb[7].mxu1 }
 0x107   : > { %v971_v27 = vpack.c.bf16 %v754_v23, %v753_v22  ;;  %v1076_v28 = vadd.f32 %v1075_v26, %v1074_v20 }
 0x108   : > { %v694_v29 = vadd.f32 %v1073_v19, %v614_v24  ;;  %v617_v30 = vadd.f32 %v1024_v25, %v1346_v60 }
 0x109   : > { %972 = vst [vmem:[%s1354_s10] sm:$0xff] %v971_v27  }
 0x10a   : > { %v744_v31 = vmul.f32 0.01, %v694_v29  ;;  %v697_v32 = vadd.f32 %v1076_v28, %v617_v30  ;;  %v1025_v33 = vpop.f32.mrb[8].mxu0  ;;  %vm733_vm2 = vcmp.ge.f32.partialorder %v694_v29, 0.0 }
 0x10b   : > { %v1077_v34 = vpop.f32.mrb[8].mxu1  ;;  %v1026_v35 = vpop.f32.mrb[9].mxu0 }
 0x10c   : > { %vm734_vm3 = vcmp.ge.f32.partialorder %v697_v32, 0.0  ;;  %v745_v36 = vmul.f32 0.01, %v697_v32  ;;  %v1027_v37 = vadd.f32 %v1026_v35, %v1025_v33  ;;  %v1078_v38 = vpop.f32.mrb[9].mxu1  ;;  %v1028_v39 = vpop.f32.mrb[10].mxu0  ;;  %v755_v43 = vsel %vm733_vm2, %v694_v29, %v744_v31 }
 0x10d   : > { %v1079_v40 = vadd.f32 %v1078_v38, %v1077_v34  ;;  %v1080_v41 = vpop.f32.mrb[10].mxu1  ;;  %v1029_v42 = vpop.f32.mrb[11].mxu0 }
 0x10e   : > { %v756_v44 = vsel %vm734_vm3, %v697_v32, %v745_v36  ;;  %v622_v45 = vadd.f32 %v1027_v37, %v1346_v60  ;;  %v1030_v46 = vadd.f32 %v1029_v42, %v1028_v39  ;;  %v1081_v47 = vpop.f32.mrb[11].mxu1 }
 0x10f   : > { %v976_v48 = vpack.c.bf16 %v756_v44, %v755_v43  ;;  %v1082_v49 = vadd.f32 %v1081_v47, %v1080_v41 }
 0x110   : > { %v702_v50 = vadd.f32 %v1079_v40, %v622_v45  ;;  %v625_v51 = vadd.f32 %v1030_v46, %v1346_v60 }
 0x111   : > { %993 = vst [vmem:[%s1354_s10 + $0x8] sm:$0xff] %v976_v48  }
 0x112   : > { %v746_v52 = vmul.f32 0.01, %v702_v50  ;;  %v705_v53 = vadd.f32 %v1082_v49, %v625_v51  ;;  %v1031_v54 = vpop.f32.mrb[12].mxu0  ;;  %vm735_vm4 = vcmp.ge.f32.partialorder %v702_v50, 0.0  ;;  %v822_v51 = vld [vmem:[%s1354_s10 + $0x28] sm:$0x1] }
 0x113   : > { %v1083_v55 = vpop.f32.mrb[12].mxu1  ;;  %v1032_v56 = vpop.f32.mrb[13].mxu0 }
 0x114   : > { %vm736_vm5 = vcmp.ge.f32.partialorder %v705_v53, 0.0  ;;  %v747_v57 = vmul.f32 0.01, %v705_v53  ;;  %v1033_v58 = vadd.f32 %v1032_v56, %v1031_v54  ;;  %v1084_v59 = vpop.f32.mrb[13].mxu1  ;;  %v1034_v61 = vpop.f32.mrb[14].mxu0  ;;  %v757_v1 = vsel %vm735_vm4, %v702_v50, %v746_v52 }
 0x115   : > { %v1085_v62 = vadd.f32 %v1084_v59, %v1083_v55  ;;  %v1086_v63 = vpop.f32.mrb[14].mxu1  ;;  %v1035_v0 = vpop.f32.mrb[15].mxu0 }
 0x116   : > { %v758_v2 = vsel %vm736_vm5, %v705_v53, %v747_v57  ;;  %v630_v3 = vadd.f32 %v1033_v58, %v1346_v60  ;;  %v1036_v4 = vadd.f32 %v1035_v0, %v1034_v61  ;;  %v1087_v5 = vpop.f32.mrb[15].mxu1 }
 0x117   : > { %v981_v6 = vpack.c.bf16 %v758_v2, %v757_v1  ;;  %v1088_v7 = vadd.f32 %v1087_v5, %v1086_v63 }
 0x118   : > { %v710_v8 = vadd.f32 %v1085_v62, %v630_v3  ;;  %v633_v9 = vadd.f32 %v1036_v4, %v1346_v60 }
 0x119   : > { %994 = vst [vmem:[%s1354_s10 + $0x10] sm:$0xff] %v981_v6  }
 0x11a   : > { %v748_v10 = vmul.f32 0.01, %v710_v8  ;;  %v713_v11 = vadd.f32 %v1088_v7, %v633_v9  ;;  %v1037_v12 = vpop.f32.mrb[16].mxu0  ;;  %vm737_vm6 = vcmp.ge.f32.partialorder %v710_v8, 0.0 }
 0x11b   : > { %v1089_v13 = vpop.f32.mrb[16].mxu1  ;;  %v1038_v14 = vpop.f32.mrb[17].mxu0 }
 0x11c   : > { %vm738_vm7 = vcmp.ge.f32.partialorder %v713_v11, 0.0  ;;  %v749_v15 = vmul.f32 0.01, %v713_v11  ;;  %v1039_v16 = vadd.f32 %v1038_v14, %v1037_v12  ;;  %v1090_v17 = vpop.f32.mrb[17].mxu1  ;;  %v1040_v18 = vpop.f32.mrb[18].mxu0  ;;  %v759_v22 = vsel %vm737_vm6, %v710_v8, %v748_v10 }
 0x11d   : > { %v1091_v19 = vadd.f32 %v1090_v17, %v1089_v13  ;;  %v1092_v20 = vpop.f32.mrb[18].mxu1  ;;  %v1041_v21 = vpop.f32.mrb[19].mxu0 }
 0x11e   : > { %v760_v23 = vsel %vm738_vm7, %v713_v11, %v749_v15  ;;  %v638_v24 = vadd.f32 %v1039_v16, %v1346_v60  ;;  %v1042_v25 = vadd.f32 %v1041_v21, %v1040_v18  ;;  %v1093_v26 = vpop.f32.mrb[19].mxu1 }
 0x11f   : > { %v986_v27 = vpack.c.bf16 %v760_v23, %v759_v22  ;;  %v1094_v28 = vadd.f32 %v1093_v26, %v1092_v20 }
 0x120   : > { %v718_v29 = vadd.f32 %v1091_v19, %v638_v24  ;;  %v641_v30 = vadd.f32 %v1042_v25, %v1346_v60 }
 0x121   : > { %995 = vst [vmem:[%s1354_s10 + $0x18] sm:$0xff] %v986_v27  }
 0x122   : > { %v750_v31 = vmul.f32 0.01, %v718_v29  ;;  %v721_v32 = vadd.f32 %v1094_v28, %v641_v30  ;;  %v1043_v33 = vpop.f32.mrb[20].mxu0  ;;  %vm739_vm8 = vcmp.ge.f32.partialorder %v718_v29, 0.0 }
 0x123   : > { %v1095_v34 = vpop.f32.mrb[20].mxu1  ;;  %v1044_v35 = vpop.f32.mrb[21].mxu0 }
 0x124   : > { %vm740_vm9 = vcmp.ge.f32.partialorder %v721_v32, 0.0  ;;  %v751_v36 = vmul.f32 0.01, %v721_v32  ;;  %v1045_v37 = vadd.f32 %v1044_v35, %v1043_v33  ;;  %v1096_v38 = vpop.f32.mrb[21].mxu1  ;;  %v1046_v39 = vpop.f32.mrb[22].mxu0  ;;  %v761_v43 = vsel %vm739_vm8, %v718_v29, %v750_v31 }
 0x125   : > { %v1097_v40 = vadd.f32 %v1096_v38, %v1095_v34  ;;  %v1098_v41 = vpop.f32.mrb[22].mxu1  ;;  %v1047_v42 = vpop.f32.mrb[23].mxu0 }
 0x126   : > { %v762_v44 = vsel %vm740_vm9, %v721_v32, %v751_v36  ;;  %v646_v45 = vadd.f32 %v1045_v37, %v1346_v60  ;;  %v1099_v46 = vpop.f32.mrb[23].mxu1 }
 0x127   : > { %v991_v47 = vpack.c.bf16 %v762_v44, %v761_v43 }
 0x128   : > { %v726_v48 = vadd.f32 %v1097_v40, %v646_v45 }
 0x129   : > { %996 = vst [vmem:[%s1354_s10 + $0x20] sm:$0xff] %v991_v47  }
 0x12a   : > { %vm741_vm12 = vcmp.ge.f32.partialorder %v726_v48, 0.0  ;;  %v752_v49 = vmul.f32 0.01, %v726_v48 }
 0x12c   : > { %v763_v50 = vsel %vm741_vm12, %v726_v48, %v752_v49 }
 0x12d   : > { %v967_v52 = vpack.c.bf16 %v763_v50, %v763_v50 }
 0x12f   : > { %v823_v53 = vsel %vm821_vm13, %v967_v52, %v822_v51 }
 0x130   : > { %824 = vst [vmem:[%s1354_s10 + $0x28] sm:$0x1] %v823_v53 }
 0x131 PF: > { %s13_s12 = sadd.s32 1, %s1183_s12  }
 0x132   : > { %p10_p4 = scmp.ge.s32.totalorder %s13_s12, 4  }
 0x134   :  { %12 = sbr.rel (!%p10_p4) target bundleno = 1 (0x1), region = 62 }

// kernel: iqn_forward.6
= control target key start
LH: loop header
LB: loop body
LE: loop exit
PB: predicated region body
PF: predicated region fallthrough
CT: control target
= control target key end

     0   :  { %s1150_s12 = smov 0   ;;  %s1318_s0 = inlined_call_operand.vmem [shape: bf16[2,49,576], index: 0, kind: input, shape index: {}]   ;;  %s1319_s1 = inlined_call_operand.vmem [shape: bf16[576,128], index: 1, kind: input, shape index: {}]   ;;  %s1320_s2 = inlined_call_operand.vmem [shape: f32[1,128], index: 2, kind: input, shape index: {}]   ;;  %s1321_s3 = inlined_call_operand.vmem [shape: f32[2,49,128], index: 3, kind: output, shape index: {}]  }
   0x1 LB: > { %s868_s13 = sadd.s32 4294967295, %s1128_s12   ;;  %p872_p0 = scmp.ge.s32.totalorder %s1128_s12, 1  ;;  %s1128_s12 = sphi %s1150_s12, %s13_s12  }
   0x2   : > { %p137_p1 = scmp.lt.s32.totalorder %s1128_s12, 3 }
   0x4   : > { %p138_p2 = pnand %p872_p0, %p137_p1 }
   0x5   : > { %v1060_v0 = vld [vmem:[%s1319_s1 + $0x40] sm:$0xff] (!%p138_p2)   ;;  %v1064_v4 = vld [vmem:[%s1319_s1 + $0x48] sm:$0xff] (!%p138_p2)   ;;  %v1068_v8 = vld [vmem:[%s1319_s1 + $0x50] sm:$0xff] (!%p138_p2)   ;;  %p161_p3 = scmp.lt.s32.totalorder (!%p138_p2), %s868_s13, 1  ;;  %vm580_vm0 = vcmask (!%p138_p2), 523264  }
   0x6   : > { %141 = sbr.rel (%p138_p2) target bundleno = 295 (0x127), region = 32  ;;  %v1061_v1 = vld [vmem:[%s1319_s1 + $0xc0] sm:$0xff] (!%p138_p2)   ;;  %938 = vmatprep.subr.bf16.mxu0 (!%p138_p2), %v1060_v0  ;;  %v1065_v5 = vld [vmem:[%s1319_s1 + $0xc8] sm:$0xff] (!%p138_p2)   ;;  %v1069_v9 = vld [vmem:[%s1319_s1 + $0xd0] sm:$0xff] (!%p138_p2)  }
   0x7   : > { %v1062_v2 = vld [vmem:[%s1319_s1] sm:$0xff] (!%p138_p2)   ;;  %978 = vmatprep.subr.bf16.mxu1 (!%p138_p2), %v1061_v1  ;;  %v1066_v6 = vld [vmem:[%s1319_s1 + $0x8] sm:$0xff] (!%p138_p2)   ;;  %v1070_v10 = vld [vmem:[%s1319_s1 + $0x10] sm:$0xff] (!%p138_p2)  }
   0x8   : > { %v1063_v3 = vld [vmem:[%s1319_s1 + $0x80] sm:$0xff] (!%p138_p2)   ;;  %939 = vmatpush3.bf16.msra.mxu0 (!%p138_p2), %v1062_v2  ;;  %v1067_v7 = vld [vmem:[%s1319_s1 + $0x88] sm:$0xff] (!%p138_p2)   ;;  %v1071_v11 = vld [vmem:[%s1319_s1 + $0x90] sm:$0xff] (!%p138_p2)  }
   0x9   : > { %979 = vmatpush3.bf16.msra.mxu1 (!%p138_p2), %v1063_v3  ;;  %940 = vmatprep.subr.bf16.mxu0 (!%p138_p2), %v1064_v4  ;;  %v1072_v12 = vld [vmem:[%s1319_s1 + $0x58] sm:$0xff] (!%p138_p2)   ;;  %v1076_v16 = vld [vmem:[%s1319_s1 + $0x60] sm:$0xff] (!%p138_p2)   ;;  %v1080_v20 = vld [vmem:[%s1319_s1 + $0x68] sm:$0xff] (!%p138_p2)  }
   0xa   : > { %980 = vmatprep.subr.bf16.mxu1 (!%p138_p2), %v1065_v5  ;;  %v1073_v13 = vld [vmem:[%s1319_s1 + $0xd8] sm:$0xff] (!%p138_p2)   ;;  %v1077_v17 = vld [vmem:[%s1319_s1 + $0xe0] sm:$0xff] (!%p138_p2)   ;;  %v1081_v21 = vld [vmem:[%s1319_s1 + $0xe8] sm:$0xff] (!%p138_p2)  }
   0xb   : > { %v1074_v14 = vld [vmem:[%s1319_s1 + $0x18] sm:$0xff] (!%p138_p2)   ;;  %v1078_v18 = vld [vmem:[%s1319_s1 + $0x20] sm:$0xff] (!%p138_p2)   ;;  %v1082_v22 = vld [vmem:[%s1319_s1 + $0x28] sm:$0xff] (!%p138_p2)  }
   0xc   : > { %941 = vmatpush3.bf16.msra.mxu0 (!%p138_p2), %v1066_v6  ;;  %v1075_v15 = vld [vmem:[%s1319_s1 + $0x98] sm:$0xff] (!%p138_p2)   ;;  %v1079_v19 = vld [vmem:[%s1319_s1 + $0xa0] sm:$0xff] (!%p138_p2)   ;;  %v1083_v23 = vld [vmem:[%s1319_s1 + $0xa8] sm:$0xff] (!%p138_p2)  }
   0xd   : > { %981 = vmatpush3.bf16.msra.mxu1 %v1067_v7  ;;  %942 = vmatprep.subr.bf16.mxu0 %v1068_v8  ;;  %s1323_s13 = smov (!%p161_p3, %s868_s13), 1  ;;  %v1084_v24 = vld [vmem:[%s1319_s1 + $0x70] sm:$0xff]   ;;  %v1088_v28 = vld [vmem:[%s1319_s1 + $0x78] sm:$0xff]   ;;  %v1098_v36 = vld [vmem:[%s1319_s1 + $0x100] sm:$0xff]  }
   0xe   : > { %982 = vmatprep.subr.bf16.mxu1 %v1069_v9  ;;  %v1085_v25 = vld [vmem:[%s1319_s1 + $0xf0] sm:$0xff]   ;;  %s1050_s16 = smul.u32 140, %s1323_s13  ;;  %v1089_v29 = vld [vmem:[%s1319_s1 + $0xf8] sm:$0xff]   ;;  %v1105_v39 = vld [vmem:[%s1319_s1 + $0x108] sm:$0xff]  }
   0xf   : > { %v1086_v26 = vld [vmem:[%s1319_s1 + $0x30] sm:$0xff]   ;;  %v1090_v30 = vld [vmem:[%s1319_s1 + $0x38] sm:$0xff]   ;;  %v875_v60 = vld [vmem:[%s1320_s2] ss:$0 sm:$0xff]  ;;  %s1051_s17 = smul.u32 56, %s1323_s13 }
  0x10   : > { %943 = vmatpush3.bf16.msra.mxu0 %v1070_v10  ;;  %v1087_v27 = vld [vmem:[%s1319_s1 + $0xb0] sm:$0xff]   ;;  %s1258_s27 = scalar_lea.vmem %s1318_s0, %s1050_s16  ;;  %v1091_v31 = vld [vmem:[%s1319_s1 + $0xb8] sm:$0xff]  }
  0x11   : > { %983 = vmatpush3.bf16.msra.mxu1 %v1071_v11  ;;  %944 = vmatprep.subr.bf16.mxu0 %v1072_v12  ;;  %v1092_v32 = vld [vmem:[%s1258_s27] ss:$20 sps:$4 sm:$0xff]   ;;  %v1094_v33 = vld [vmem:[%s1258_s27 + $0x4] ss:$20 sps:$4 sm:$0xff]   ;;  %v1095_v34 = vld [vmem:[%s1258_s27 + $0x8] ss:$20 sps:$4 sm:$0xff]   ;;  %s1305_s20 = scalar_lea.vmem %s1321_s3, %s1051_s17 }
  0x12   : > { %984 = vmatprep.subr.bf16.mxu1 %v1073_v13  ;;  %v1097_v35 = vld [vmem:[%s1258_s27 + $0xc] ss:$20 sps:$4 sm:$0xff]   ;;  %625 = vmatprep.mubr.bf16.mxu0 %v1094_v33  ;;  %v1101_v38 = vld [vmem:[%s1258_s27 + $0x34] ss:$20 sps:$4 sm:$0xff]   ;;  %v1104_v41 = vld [vmem:[%s1258_s27 + $0x30] ss:$20 sps:$4 sm:$0xff]  }
  0x13   : > { %689 = vmatprep.mubr.bf16.mxu1 %v1097_v35  ;;  %v1099_v37 = vld [vmem:[%s1258_s27 + $0x2c] ss:$20 sps:$4 sm:$0xff]   ;;  %v1103_v40 = vld [vmem:[%s1258_s27 + $0x28] ss:$20 sps:$4 sm:$0xff]   ;;  %v1112_v44 = vld [vmem:[%s1319_s1 + $0x110] sm:$0xff]  }
  0x14   : > { %945 = vmatpush3.bf16.msra.mxu0 %v1074_v14  ;;  %v1106_v42 = vld [vmem:[%s1258_s27 + $0x54] ss:$20 sps:$4 sm:$0xff]   ;;  %v1108_v43 = vld [vmem:[%s1258_s27 + $0x5c] ss:$20 sps:$4 sm:$0xff]   ;;  %v191_v47 = vld [vmem:[%s1258_s27 + $0x80] sm:$0x11] }
  0x15   : > { %985 = vmatpush3.bf16.msra.mxu1 %v1075_v15  ;;  %946 = vmatprep.subr.bf16.mxu0 %v1076_v16  ;;  %v1117_v45 = vld [vmem:[%s1319_s1 + $0x118] sm:$0xff]   ;;  %v1110_v48 = vld [vmem:[%s1258_s27 + $0x50] ss:$20 sps:$4 sm:$0xff]   ;;  %v894_v51 = vcombine.high %v191_v47, %v191_v47  ;;  %v893_v53 = vcombine.low %v191_v47, %v191_v47  ;;  %v1119_v55 = vld [vmem:[%s1258_s27 + $0x60] ss:$20 sps:$4 sm:$0xff]  }
  0x16   : > { %986 = vmatprep.subr.bf16.mxu1 %v1077_v17  ;;  %v190_v46 = vld [vmem:[%s1258_s27 + $0x78] sm:$0x11]  ;;  %v1118_v54 = vld [vmem:[%s1258_s27 + $0x10] ss:$20 sps:$4 sm:$0xff]  }
  0x17   : > { %v1111_v49 = vld [vmem:[%s1258_s27 + $0x58] ss:$20 sps:$4 sm:$0xff]   ;;  %v892_v50 = vcombine.high %v190_v46, %v190_v46  ;;  %v891_v52 = vcombine.low %v190_v46, %v190_v46  ;;  %v1121_v57 = vld [vmem:[%s1258_s27 + $0x88] ss:$0 sps:$4 sm:$0x11]  }
  0x18   : > { %947 = vmatpush3.bf16.msra.mxu0 %v1078_v18  ;;  %v1120_v56 = vld [vmem:[%s1258_s27 + $0x38] ss:$20 sps:$4 sm:$0xff]  }
  0x19   : > { %987 = vmatpush3.bf16.msra.mxu1 %v1079_v19  ;;  %948 = vmatprep.subr.bf16.mxu0 %v1080_v20 }
  0x1a   : > { %988 = vmatprep.subr.bf16.mxu1 %v1081_v21 }
  0x1c   : > { %949 = vmatpush3.bf16.msra.mxu0 %v1082_v22 }
  0x1d   : > { %989 = vmatpush3.bf16.msra.mxu1 %v1083_v23  ;;  %950 = vmatprep.subr.bf16.mxu0 %v1084_v24 }
  0x1e   : > { %990 = vmatprep.subr.bf16.mxu1 %v1085_v25 }
  0x20   : > { %951 = vmatpush3.bf16.msra.mxu0 %v1086_v26 }
  0x21   : > { %991 = vmatpush3.bf16.msra.mxu1 %v1087_v27  ;;  %952 = vmatprep.subr.bf16.mxu0 %v1088_v28 }
  0x22   : > { %992 = vmatprep.subr.bf16.mxu1 %v1089_v29 }
  0x24   : > { %953 = vmatpush3.bf16.msra.mxu0 %v1090_v30 }
  0x25   : > { %993 = vmatpush3.bf16.msra.mxu1 %v1091_v31  ;;  %1026 = vmatprep.subr.bf16.mxu0 %v1098_v36 }
  0x26   : > { %1042 = vmatprep.subr.bf16.mxu1 %v1098_v36 }
  0x27   : > { %626 = vmatmul.mubr.bf16.vlgmr.msra.gmra.mrb[0].mxu0 %v1092_v32 }
  0x28   : > { %690 = vmatmul.mubr.bf16.vlgmr.msra.gmra.mrb[0].mxu1 %v1095_v34  ;;  %1027 = vmatpush3.bf16.msra.mxu0 %v1098_v36 }
  0x29   : > { %1046 = vmatpush3.bf16.msra.mxu1 %v1098_v36  ;;  %633 = vmatprep.mubr.bf16.mxu0 %v1099_v37 }
  0x2a   : > { %697 = vmatprep.mubr.bf16.mxu1 %v1101_v38  ;;  %1028 = vmatprep.subr.bf16.mxu0 %v1105_v39 }
  0x2b   : > { %1043 = vmatprep.subr.bf16.mxu1 %v1105_v39 }
  0x2c   : > { %1029 = vmatpush3.bf16.msra.mxu0 %v1105_v39 }
  0x2d   : > { %1047 = vmatpush3.bf16.msra.mxu1 %v1105_v39  ;;  %1030 = vmatprep.subr.bf16.mxu0 %v1112_v44 }
  0x2e   : > { %1044 = vmatprep.subr.bf16.mxu1 %v1112_v44 }
  0x2f   : > { %634 = vmatmul.mubr.bf16.gmra.mrb[4].mxu0 %v1103_v40 }
  0x30   : > { %698 = vmatmul.mubr.bf16.gmra.mrb[4].mxu1 %v1104_v41  ;;  %641 = vmatprep.mubr.bf16.mxu0 %v1106_v42 }
  0x31   : > { %705 = vmatprep.mubr.bf16.mxu1 %v1108_v43  ;;  %1031 = vmatpush3.bf16.msra.mxu0 %v1112_v44 }
  0x32   : > { %1048 = vmatpush3.bf16.msra.mxu1 %v1112_v44  ;;  %1032 = vmatprep.subr.bf16.mxu0 %v1117_v45 }
  0x33   : > { %1045 = vmatprep.subr.bf16.mxu1 %v1117_v45 }
  0x35   : > { %1033 = vmatpush3.bf16.msra.mxu0 %v1117_v45 }
  0x36   : > { %1049 = vmatpush3.bf16.msra.mxu1 %v1117_v45 }
  0x37   : > { %642 = vmatmul.mubr.bf16.gmra.mrb[8].mxu0 %v1110_v48 }
  0x38   : > { %706 = vmatmul.mubr.bf16.gmra.mrb[8].mxu1 %v1111_v49  ;;  %649 = vmatprep.mubr.bf16.mxu0 %v892_v50 }
  0x39   : > { %713 = vmatprep.mubr.bf16.mxu1 %v894_v51 }
  0x3f   : > { %650 = vmatmul.mubr.bf16.gmra.mrb[12].mxu0 %v891_v52 }
  0x40   : > { %714 = vmatmul.mubr.bf16.gmra.mrb[12].mxu1 %v893_v53  ;;  %1034 = vmatprep.mubr.msk.bf16.mxu0 %vm580_vm0, %v1118_v54 }
  0x41   : > { %1038 = vmatprep.mubr.msk.bf16.mxu1 %vm580_vm0, %v1119_v55 }
  0x47   : > { %1035 = vmatmul.mubr.msk.bf16.vlgmr.msra.gmra.mrb[16].mxu0 %vm580_vm0, %v1120_v56 }
  0x48   : > { %1039 = vmatmul.mubr.msk.bf16.vlgmr.msra.gmra.mrb[16].mxu1 %vm580_vm0, %v1121_v57 }
  0xfa   : > { %v954_v58 = vpop.f32.mrb[0].mxu0 }
  0xfb   : > { %v994_v59 = vpop.f32.mrb[0].mxu1  ;;  %v955_v61 = vpop.f32.mrb[1].mxu0 }
  0xfc   : > { %v956_v62 = vadd.f32 %v955_v61, %v954_v58  ;;  %v995_v63 = vpop.f32.mrb[1].mxu1  ;;  %v957_v0 = vpop.f32.mrb[2].mxu0 }
  0xfd   : > { %v996_v1 = vadd.f32 %v995_v63, %v994_v59  ;;  %v997_v2 = vpop.f32.mrb[2].mxu1  ;;  %v958_v3 = vpop.f32.mrb[3].mxu0 }
  0xfe   : > { %v628_v4 = vadd.f32 %v956_v62, %v875_v60  ;;  %v959_v5 = vadd.f32 %v958_v3, %v957_v0  ;;  %v998_v6 = vpop.f32.mrb[3].mxu1 }
  0xff   : > { %v999_v7 = vadd.f32 %v998_v6, %v997_v2 }
 0x100   : > { %v631_v8 = vadd.f32 %v959_v5, %v875_v60  ;;  %v692_v9 = vadd.f32 %v996_v1, %v628_v4 }
 0x102   : > { %v960_v10 = vpop.f32.mrb[4].mxu0  ;;  %v1299_v11 = vadd.f32 %v999_v7, %v631_v8 }
 0x103   : > { %v1000_v12 = vpop.f32.mrb[4].mxu1  ;;  %v961_v13 = vpop.f32.mrb[5].mxu0 }
 0x104   : > { %v962_v14 = vadd.f32 %v961_v13, %v960_v10  ;;  %v1001_v15 = vpop.f32.mrb[5].mxu1  ;;  %v963_v16 = vpop.f32.mrb[6].mxu0 }
 0x105   : > { %v1002_v17 = vadd.f32 %v1001_v15, %v1000_v12  ;;  %v1003_v18 = vpop.f32.mrb[6].mxu1  ;;  %v964_v19 = vpop.f32.mrb[7].mxu0 }
 0x106   : > { %v636_v20 = vadd.f32 %v962_v14, %v875_v60  ;;  %v965_v21 = vadd.f32 %v964_v19, %v963_v16  ;;  %v1004_v22 = vpop.f32.mrb[7].mxu1 }
 0x107   : > { %v1005_v23 = vadd.f32 %v1004_v22, %v1003_v18 }
 0x108   : > { %v639_v24 = vadd.f32 %v965_v21, %v875_v60  ;;  %v700_v25 = vadd.f32 %v1002_v17, %v636_v20 }
 0x10a   : > { %v966_v26 = vpop.f32.mrb[8].mxu0  ;;  %v703_v27 = vadd.f32 %v1005_v23, %v639_v24 }
 0x10b   : > { %v1006_v28 = vpop.f32.mrb[8].mxu1  ;;  %v967_v29 = vpop.f32.mrb[9].mxu0 }
 0x10c   : > { %v968_v30 = vadd.f32 %v967_v29, %v966_v26  ;;  %v1007_v31 = vpop.f32.mrb[9].mxu1  ;;  %v969_v32 = vpop.f32.mrb[10].mxu0 }
 0x10d   : > { %v1008_v33 = vadd.f32 %v1007_v31, %v1006_v28  ;;  %v1009_v34 = vpop.f32.mrb[10].mxu1  ;;  %v970_v35 = vpop.f32.mrb[11].mxu0 }
 0x10e   : > { %v644_v36 = vadd.f32 %v968_v30, %v875_v60  ;;  %v971_v37 = vadd.f32 %v970_v35, %v969_v32  ;;  %v1010_v38 = vpop.f32.mrb[11].mxu1 }
 0x10f   : > { %v1011_v39 = vadd.f32 %v1010_v38, %v1009_v34 }
 0x110   : > { %v647_v40 = vadd.f32 %v971_v37, %v875_v60  ;;  %v708_v41 = vadd.f32 %v1008_v33, %v644_v36 }
 0x112   : > { %v972_v42 = vpop.f32.mrb[12].mxu0  ;;  %v711_v43 = vadd.f32 %v1011_v39, %v647_v40 }
 0x113   : > { %v1012_v44 = vpop.f32.mrb[12].mxu1  ;;  %v973_v45 = vpop.f32.mrb[13].mxu0 }
 0x114   : > { %v974_v46 = vadd.f32 %v973_v45, %v972_v42  ;;  %v1013_v47 = vpop.f32.mrb[13].mxu1  ;;  %v975_v48 = vpop.f32.mrb[14].mxu0 }
 0x115   : > { %v1014_v49 = vadd.f32 %v1013_v47, %v1012_v44  ;;  %v1015_v50 = vpop.f32.mrb[14].mxu1  ;;  %v976_v51 = vpop.f32.mrb[15].mxu0 }
 0x116   : > { %v652_v52 = vadd.f32 %v974_v46, %v875_v60  ;;  %v1016_v53 = vpop.f32.mrb[15].mxu1 }
 0x118   : > { %v716_v54 = vadd.f32 %v1014_v49, %v652_v52 }
 0x11a   : > { %v1036_v55 = vpop.f32.mrb[16].mxu0 }
 0x11b   : > { %v764_v56 = vadd.f32 %v1036_v55, %v700_v25  ;;  %v1040_v57 = vpop.f32.mrb[16].mxu1  ;;  %v755_v58 = vpop.f32.mrb[17].mxu0 }
 0x11c   : > { %v780_v59 = vadd.f32 %v1040_v57, %v716_v54  ;;  %v756_v61 = vadd.f32 %v755_v58, %v692_v9  ;;  %v771_v62 = vpop.f32.mrb[17].mxu1  ;;  %v1037_v63 = vpop.f32.mrb[18].mxu0 }
 0x11d   : > { %vm787_vm1 = vcmp.ge.f32.partialorder %v764_v56, 0.0  ;;  %v794_v0 = vmul.f32 0.01, %v764_v56  ;;  %v772_v60 = vadd.f32 %v771_v62, %v708_v41  ;;  %v767_v1 = vadd.f32 %v1037_v63, %v703_v27  ;;  %v1041_v2 = vpop.f32.mrb[18].mxu1  ;;  %v758_v3 = vpop.f32.mrb[19].mxu0 }
 0x11e   : > { %vm791_vm2 = vcmp.ge.f32.partialorder %v780_v59, 0.0  ;;  %v798_v4 = vmul.f32 0.01, %v780_v59  ;;  %vm785_vm3 = vcmp.ge.f32.partialorder %v756_v61, 0.0  ;;  %v792_v5 = vmul.f32 0.01, %v756_v61 }
 0x11f   : > { %v801_v6 = vsel %vm787_vm1, %v764_v56, %v794_v0  ;;  %vm789_vm4 = vcmp.ge.f32.partialorder %v772_v60, 0.0  ;;  %v796_v7 = vmul.f32 0.01, %v772_v60  ;;  %vm788_vm5 = vcmp.ge.f32.partialorder %v767_v1, 0.0  ;;  %v774_v8 = vpop.f32.mrb[19].mxu1 }
 0x120   : > { %808 = vst [vmem:[%s1305_s20 + $0x10] sm:$0xff] %v801_v6  ;;  %v805_v9 = vsel %vm791_vm2, %v780_v59, %v798_v4  ;;  %v799_v10 = vsel %vm785_vm3, %v756_v61, %v792_v5  ;;  %v795_v12 = vmul.f32 0.01, %v767_v1  ;;  %v759_v13 = vadd.f32 %v758_v3, %v1299_v11 }
 0x121   : > { %812 = vst [vmem:[%s1305_s20 + $0x30] sm:$0x1] %v805_v9  ;;  %806 = vst [vmem:[%s1305_s20] sm:$0xff] %v799_v10  ;;  %v803_v14 = vsel %vm789_vm4, %v772_v60, %v796_v7  ;;  %v775_v15 = vadd.f32 %v774_v8, %v711_v43 }
 0x122   : > { %810 = vst [vmem:[%s1305_s20 + $0x20] sm:$0xff] %v803_v14  ;;  %v802_v16 = vsel %vm788_vm5, %v767_v1, %v795_v12  ;;  %vm786_vm6 = vcmp.ge.f32.partialorder %v759_v13, 0.0  ;;  %v793_v17 = vmul.f32 0.01, %v759_v13 }
 0x123   : > { %809 = vst [vmem:[%s1305_s20 + $0x18] sm:$0xff] %v802_v16  ;;  %vm790_vm7 = vcmp.ge.f32.partialorder %v775_v15, 0.0  ;;  %v797_v18 = vmul.f32 0.01, %v775_v15 }
 0x124   : > { %v800_v19 = vsel %vm786_vm6, %v759_v13, %v793_v17 }
 0x125   : > { %807 = vst [vmem:[%s1305_s20 + $0x8] sm:$0xff] %v800_v19  ;;  %v804_v20 = vsel %vm790_vm7, %v775_v15, %v797_v18 }
 0x126   : > { %811 = vst [vmem:[%s1305_s20 + $0x28] sm:$0xff] %v804_v20 }
 0x127 PF: > { %s13_s12 = sadd.s32 1, %s1128_s12  }
 0x128   : > { %p10_p4 = scmp.ge.s32.totalorder %s13_s12, 4  }
 0x12a   :  { %12 = sbr.rel (!%p10_p4) target bundleno = 1 (0x1), region = 62 }

// kernel: iqn_forward.7
= control target key start
LH: loop header
LB: loop body
LE: loop exit
PB: predicated region body
PF: predicated region fallthrough
CT: control target
= control target key end

     0   :  { %v23469_v0 = vmov 0   ;;  %v27_v21 = vlaneseq  ;;  %v16844_v46 = vmov 683565275   ;;  %v16845_v49 = vmov 2475754826   ;;  %s23461_s1 = inlined_call_operand.vmem [shape: f32[16,1], index: 1, kind: input, shape index: {}]   ;;  %s23462_s2 = inlined_call_operand.vmem [shape: bf16[64,3136], index: 2, kind: input, shape index: {}]   ;;  %s23463_s4 = inlined_call_operand.vmem [shape: bf16[3136,1024], index: 4, kind: input, shape index: {}]   ;;  %s23464_s0 = inlined_call_operand.vmem [shape: f32[2,3136], index: 0, kind: input, shape index: {}]   ;;  %s23465_s3 = inlined_call_operand.vmem [shape: f32[1,3136], index: 3, kind: input, shape index: {}]   ;;  %s23466_s5 = inlined_call_operand.vmem [shape: f32[1,1024], index: 5, kind: input, shape index: {}]   ;;  %s23467_s6 = inlined_call_operand.vmem [shape: bf16[1024,128], index: 6, kind: input, shape index: {}]   ;;  %s23468_s7 = inlined_call_operand.vmem [shape: f32[1,16,128], index: 7, kind: output, shape index: {}]  }
   0x1   :  { %16621 = vset.pattern.permute.xlu0 %v23469_v0  ;;  %v31_v1 = vld [vmem:[%s23461_s1] sm:$0xff]  ;;  %1029 = vmatprep.mubr.bf16.mxu0 %v23469_v0  ;;  %v32_v2 = vld [vmem:[%s23461_s1 + $0x8] sm:$0xff]  ;;  %v16630_v8 = vld [vmem:[%s23462_s2 + $0xd4] ss:$100 sps:$4 sm:$0xff]   ;;  %v16846_v51 = vmov 2131351028  }
   0x2   :  { %35 = vperm.xlu0 %16621, %v31_v1   ;;  %1072 = vmatprep.mubr.bf16.mxu1 %v23469_v0  ;;  %v16622_v3 = vld [vmem:[%s23462_s2 + $0x4] ss:$100 sps:$4 sm:$0xff]   ;;  %v16624_v4 = vld [vmem:[%s23462_s2 + $0xc] ss:$100 sps:$4 sm:$0xff]   ;;  %v16634_v11 = vld [vmem:[%s23462_s2 + $0x194] ss:$100 sps:$4 sm:$0xff]  }
   0x3   :  { %997 = vmatprep.subr.bf16.mxu0 %v16622_v3  ;;  %v16626_v5 = vld [vmem:[%s23462_s2] ss:$100 sps:$4 sm:$0xff]   ;;  %v16627_v6 = vld [vmem:[%s23462_s2 + $0x8] ss:$100 sps:$4 sm:$0xff]   ;;  %1040 = vmatprep.subr.bf16.mxu1 %v16624_v4  ;;  %v16633_v10 = vld [vmem:[%s23462_s2 + $0xd0] ss:$100 sps:$4 sm:$0xff]  }
   0x4   :  { %998 = vmatpush1.bf16.msra.mxu0 %v16626_v5  ;;  %1041 = vmatpush1.bf16.msra.mxu1 %v16627_v6  ;;  %v16628_v7 = vld [vmem:[%s23462_s2 + $0xcc] ss:$100 sps:$4 sm:$0xff]   ;;  %v16636_v12 = vld [vmem:[%s23462_s2 + $0x19c] ss:$100 sps:$4 sm:$0xff]   ;;  %v16642_v16 = vld [vmem:[%s23462_s2 + $0x264] ss:$100 sps:$4 sm:$0xff]  }
   0x5   :  { %v16632_v9 = vld [vmem:[%s23462_s2 + $0xc8] ss:$100 sps:$4 sm:$0xff]   ;;  %999 = vmatprep.subr.bf16.mxu0 %v16628_v7  ;;  %1042 = vmatprep.subr.bf16.mxu1 %v16630_v8  ;;  %v16638_v13 = vld [vmem:[%s23462_s2 + $0x190] ss:$100 sps:$4 sm:$0xff]   ;;  %v16639_v14 = vld [vmem:[%s23462_s2 + $0x198] ss:$100 sps:$4 sm:$0xff]  }
   0x6   :  { %40 = vperm.xlu0 %16621, %v32_v2   ;;  %v16640_v15 = vld [vmem:[%s23462_s2 + $0x25c] ss:$100 sps:$4 sm:$0xff]   ;;  %v16648_v19 = vld [vmem:[%s23462_s2 + $0x14] ss:$100 sps:$4 sm:$0xff]   ;;  %v28_v22 = vand.u32 127, %v27_v21 }
   0x7   :  { %v16644_v17 = vld [vmem:[%s23462_s2 + $0x258] ss:$100 sps:$4 sm:$0xff]   ;;  %v16645_v18 = vld [vmem:[%s23462_s2 + $0x260] ss:$100 sps:$4 sm:$0xff]   ;;  %v16847_v53 = vmov 2102212464  }
   0x8   :  { %1000 = vmatpush1.bf16.msra.mxu0 %v16632_v9  ;;  %1043 = vmatpush1.bf16.msra.mxu1 %v16633_v10  ;;  %v16651_v20 = vld [vmem:[%s23462_s2 + $0x1c] ss:$100 sps:$4 sm:$0xff]   ;;  %v29_v23 = vcvt.s32.f32 %v28_v22  ;;  %v16848_v55 = vmov 920167782   ;;  %v16849_v62 = vmov 1326507024  }
   0x9   :  { %1001 = vmatprep.subr.bf16.mxu0 %v16634_v11  ;;  %1044 = vmatprep.subr.bf16.mxu1 %v16636_v12 }
   0xa   :  { %v30_v24 = vmul.f32 3.1415927, %v29_v23 }
   0xc   :  { %1002 = vmatpush1.bf16.msra.mxu0 %v16638_v13  ;;  %1045 = vmatpush1.bf16.msra.mxu1 %v16639_v14 }
   0xd   :  { %1003 = vmatprep.subr.bf16.mxu0 %v16640_v15  ;;  %1046 = vmatprep.subr.bf16.mxu1 %v16642_v16 }
  0x10   :  { %1004 = vmatpush1.bf16.msra.mxu0 %v16644_v17  ;;  %1047 = vmatpush1.bf16.msra.mxu1 %v16645_v18 }
  0x11   :  { %1083 = vmatprep.subr.bf16.mxu0 %v16648_v19  ;;  %1126 = vmatprep.subr.bf16.mxu1 %v16651_v20 }
  0x81   :  { %v36_v25 = vpop.permute.xlu0 %35 }
  0x82   :  { %v16956_v26 = vmul.f32 %v36_v25, %v30_v24 }
  0x84   :  { %v45_v27 = vand.u32 2147483647, %v16956_v26  ;;  %v48_v28 = vand.u32 2139095040, %v16956_v26  ;;  %vm47_vm14 = vcmp.lt.s32.totalorder %v16956_v26, 0 }
  0x85   :  { %v41_v29 = vpop.permute.xlu0 %40 }
  0x86   :  { %v49_v30 = vshrl.u32 %v48_v28, 23  ;;  %v52_v31 = vand.u32 8388607, %v45_v27  ;;  %v16962_v32 = vmul.f32 %v41_v29, %v30_v24  ;;  %vm17014_vm15 = vcmp.le.f32.partialorder %v45_v27, 0.7853982 }
  0x88   :  { %v14526_v33 = vadd.s32 4294967169, %v49_v30  ;;  %v151_v34 = vand.u32 2139095040, %v16962_v32  ;;  %v53_v35 = vor.u32 8388608, %v52_v31  ;;  %v148_v37 = vand.u32 2147483647, %v16962_v32 }
  0x8a   :  { %v55_v36 = vadd.s32 1, %v14526_v33  ;;  %v152_v38 = vshrl.u32 %v151_v34, 23  ;;  %v16966_v43 = vshll.u32 %v53_v35, 8  ;;  %v155_v44 = vand.u32 8388607, %v148_v37 }
  0x8c   :  { %vm56_vm0 = vcmp.gt.s32.totalorder %v55_v36, 0  ;;  %v14530_v40 = vadd.s32 4294967169, %v152_v38  ;;  %v156_v14 = vor.u32 8388608, %v155_v44 }
  0x8d   :  { %v57_v39 = vsel %vm56_vm0, %v55_v36, 0  ;;  %vm150_vm0 = vcmp.lt.s32.totalorder %v16962_v32, 0 }
  0x8e   :  { %v58_v41 = vshrl.u32 %v57_v39, 5  ;;  %v59_v42 = vand.u32 31, %v57_v39  ;;  %v158_v48 = vadd.s32 1, %v14530_v40  ;;  %v196_v30 = vshll.u32 %v156_v14, 8 }
  0x90   :  { %v60_v45 = vsub.s32 32, %v59_v42  ;;  %v62_v47 = vshll.u32 %v16844_v46, %v59_v42  ;;  %v65_v50 = vshll.u32 %v16845_v49, %v59_v42  ;;  %v68_v52 = vshll.u32 %v16846_v51, %v59_v42 }
  0x91   :  { %v71_v54 = vshll.u32 %v16847_v53, %v59_v42  ;;  %v74_v56 = vshll.u32 %v16848_v55, %v59_v42  ;;  %vm77_vm1 = vcmp.lt.s32.totalorder %v58_v41, 1  ;;  %vm79_vm2 = vcmp.lt.s32.totalorder %v58_v41, 3 }
  0x92   :  { %v63_v57 = vshrl.u32 %v16845_v49, %v60_v45  ;;  %v66_v58 = vshrl.u32 %v16846_v51, %v60_v45  ;;  %v69_v59 = vshrl.u32 %v16847_v53, %v60_v45  ;;  %v61_v60 = vshrl.u32 %v16844_v46, %v60_v45 }
  0x93   :  { %v72_v61 = vshrl.u32 %v16848_v55, %v60_v45  ;;  %v75_v63 = vshrl.u32 %v16849_v62, %v60_v45  ;;  %vm159_vm3 = vcmp.gt.s32.totalorder %v158_v48, 0  ;;  %vm80_vm4 = vcmp.lt.s32.totalorder %v58_v41, 4 }
  0x94   :  { %v64_v1 = vor.u32 %v63_v57, %v62_v47  ;;  %v67_v2 = vor.u32 %v66_v58, %v65_v50  ;;  %v70_v3 = vor.u32 %v69_v59, %v68_v52  ;;  %v160_v6 = vsel %vm159_vm3, %v158_v48, 0 }
  0x95   :  { %v73_v4 = vor.u32 %v72_v61, %v71_v54  ;;  %v76_v5 = vor.u32 %v75_v63, %v74_v56  ;;  %vm78_vm5 = vcmp.lt.s32.totalorder %v58_v41, 2  ;;  %v162_v17 = vand.u32 31, %v160_v6 }
  0x96   :  { %v81_v7 = vsel %vm77_vm1, %v61_v60, %v64_v1  ;;  %v82_v8 = vsel %vm80_vm4, %v70_v3, 2102212464  ;;  %v85_v9 = vsel %vm77_vm1, %v64_v1, %v67_v2  ;;  %v89_v10 = vsel %vm77_vm1, %v67_v2, %v70_v3 }
  0x97   :  { %v83_v11 = vsel %vm79_vm2, %v67_v2, %v82_v8  ;;  %v86_v12 = vsel %vm80_vm4, %v73_v4, 920167782  ;;  %v90_v13 = vsel %vm80_vm4, %v76_v5, 1326507024  ;;  %v161_v28 = vshrl.u32 %v160_v6, 5 }
  0x98   :  { %v87_v15 = vsel %vm79_vm2, %v70_v3, %v86_v12  ;;  %v91_v16 = vsel %vm79_vm2, %v73_v4, %v90_v13  ;;  %v84_v18 = vsel %vm78_vm5, %v81_v7, %v83_v11  ;;  %v163_v29 = vsub.s32 32, %v162_v17 }
  0x99   :  { %v88_v19 = vsel %vm78_vm5, %v85_v9, %v87_v15  ;;  %v92_v20 = vsel %vm78_vm5, %v89_v10, %v91_v16  ;;  %v100_v31 = vmul.u32 %v16966_v43, %v84_v18  ;;  %v165_v33 = vshll.u32 %v16844_v46, %v162_v17 }
  0x9a   :  { %v16979_v22 = vmul.u32.u64.low %v16966_v43, %v92_v20  ;;  %v16980_v23 = vmul.u32.u64.high %v16966_v43, %v92_v20, %v16979_v22  ;;  %v16983_v24 = vmul.u32.u64.low %v16966_v43, %v88_v19  ;;  %v16984_v25 = vmul.u32.u64.high %v16966_v43, %v88_v19, %v16983_v24 }
  0x9b   :  { %v168_v34 = vshll.u32 %v16845_v49, %v162_v17  ;;  %v171_v35 = vshll.u32 %v16846_v51, %v162_v17  ;;  %v166_v36 = vshrl.u32 %v16845_v49, %v163_v29  ;;  %v169_v38 = vshrl.u32 %v16846_v51, %v163_v29 }
  0x9c   :  { %v172_v39 = vshrl.u32 %v16847_v53, %v163_v29  ;;  %v174_v40 = vshll.u32 %v16847_v53, %v162_v17  ;;  %vm102_vm6 = vc.u32 %v16980_v23, %v16983_v24  ;;  %v103_v41 = vadd.s32 1, %v16984_v25 }
  0x9d   :  { %v175_v42 = vshrl.u32 %v16848_v55, %v163_v29  ;;  %v177_v44 = vshll.u32 %v16848_v55, %v162_v17  ;;  %v167_v45 = vor.u32 %v166_v36, %v165_v33  ;;  %v170_v47 = vor.u32 %v169_v38, %v168_v34 }
  0x9e   :  { %v173_v48 = vor.u32 %v172_v39, %v171_v35  ;;  %v178_v50 = vshrl.u32 %v16849_v62, %v163_v29  ;;  %v104_v43 = vsel %vm102_vm6, %v103_v41, %v16984_v25  ;;  %vm180_vm7 = vcmp.lt.s32.totalorder %v161_v28, 1 }
  0x9f   :  { %v176_v52 = vor.u32 %v175_v42, %v174_v40  ;;  %vm183_vm8 = vcmp.lt.s32.totalorder %v161_v28, 4  ;;  %v105_v49 = vadd.s32 %v104_v43, %v100_v31  ;;  %vm182_vm9 = vcmp.lt.s32.totalorder %v161_v28, 3 }
  0xa0   :  { %v179_v51 = vor.u32 %v178_v50, %v177_v44  ;;  %v185_v53 = vsel %vm183_vm8, %v173_v48, 2102212464  ;;  %v164_v54 = vshrl.u32 %v16844_v46, %v163_v29  ;;  %v188_v56 = vsel %vm180_vm7, %v167_v45, %v170_v47 }
  0xa1   :  { %v189_v57 = vsel %vm183_vm8, %v176_v52, 920167782  ;;  %v192_v58 = vsel %vm180_vm7, %v170_v47, %v173_v48  ;;  %v106_v59 = vadd.s32 536870912, %v105_v49  ;;  %vm181_vm10 = vcmp.lt.s32.totalorder %v161_v28, 2 }
  0xa2   :  { %v190_v55 = vsel %vm182_vm9, %v173_v48, %v189_v57  ;;  %v193_v60 = vsel %vm183_vm8, %v179_v51, 1326507024  ;;  %v184_v61 = vsel %vm180_vm7, %v164_v54, %v167_v45  ;;  %v186_v62 = vsel %vm182_vm9, %v170_v47, %v185_v53  ;;  %v16690_v54 = vld [vmem:[%s23462_s2 + $0x27c] ss:$100 sps:$4 sm:$0xff]  }
  0xa3   :  { %v191_v63 = vsel %vm181_vm10, %v188_v56, %v190_v55  ;;  %v194_v1 = vsel %vm182_vm9, %v176_v52, %v193_v60  ;;  %v16994_v2 = vshrl.u32 %v106_v59, 30  ;;  %v187_v8 = vsel %vm181_vm10, %v184_v61, %v186_v62 }
  0xa4   :  { %v195_v3 = vsel %vm181_vm10, %v192_v58, %v194_v1  ;;  %v16996_v4 = vmul.u32.u64.low %v196_v30, %v191_v63  ;;  %v16997_v5 = vmul.u32.u64.high %v196_v30, %v191_v63, %v16996_v4  ;;  %v203_v11 = vmul.u32 %v196_v30, %v187_v8 }
  0xa5   :  { %v16999_v6 = vmul.u32.u64.low %v196_v30, %v195_v3  ;;  %v17000_v7 = vmul.u32.u64.high %v196_v30, %v195_v3, %v16999_v6  ;;  %v108_v46 = vshll.u32 %v16994_v2, 30  ;;  %v101_v28 = vadd.s32 %v16983_v24, %v16980_v23 }
  0xa6   :  { %v206_v10 = vadd.s32 1, %v16997_v5  ;;  %v131_v62 = vsub.s32 4, %v16994_v2  ;;  %vm149_vm1 = vcmp.le.f32.partialorder %v148_v37, 0.7853982  ;;  %vm137_vm8 = vweird.f32 %v16956_v26 }
  0xa7   :  { %v109_v9 = vsub.s32 %v105_v49, %v108_v46  ;;  %vm205_vm11 = vc.u32 %v17000_v7, %v16996_v4  ;;  %v204_v50 = vadd.s32 %v16996_v4, %v17000_v7  ;;  %vm240_vm9 = vweird.f32 %v16962_v32 }
  0xa8   :  { %v207_v13 = vsel %vm205_vm11, %v206_v10, %v16997_v5  ;;  %v132_v3 = vsel %vm47_vm14, %v131_v62, %v16994_v2  ;;  %vm993_vm10 = vcmask 523264   ;;  %v16702_v62 = vld [vmem:[%s23462_s2 + $0xfc] ss:$100 sps:$4 sm:$0xff]   ;;  %vm16851_vm11 = vmmov 0  }
  0xa9   :  { %v111_v12 = vsub.s32 0, %v109_v9  ;;  %v208_v14 = vadd.s32 %v207_v13, %v203_v11  ;;  %v134_v6 = vsel %vm17014_vm15, 0, %v132_v3  ;;  %v16708_v3 = vld [vmem:[%s23462_s2 + $0x1c4] ss:$100 sps:$4 sm:$0xff]  }
  0xaa   :  { %v138_v8 = vand.u32 3, %v134_v6  ;;  %v16709_v6 = vld [vmem:[%s23462_s2 + $0x1c8] ss:$100 sps:$4 sm:$0xff]  }
  0xab   :  { %v14527_v15 = vmin.u32 %v111_v12, %v109_v9  ;;  %v209_v16 = vadd.s32 536870912, %v208_v14 }
  0xac   :  { %vm140_vm2 = vcmp.eq.s32.totalorder %v138_v8, 0  ;;  %vm143_vm3 = vcmp.eq.s32.totalorder %v138_v8, 2  ;;  %vm139_vm4 = vcmp.lt.s32.totalorder %v138_v8, 2  ;;  %v16712_v8 = vld [vmem:[%s23462_s2 + $0x288] ss:$100 sps:$4 sm:$0xff]  }
  0xad   :  { %v113_v17 = vclz %v14527_v15  ;;  %v210_v18 = vshrl.u32 %v209_v16, 30 }
  0xaf   :  { %v14528_v19 = vadd.s32 4294967294, %v113_v17  ;;  %v211_v20 = vshll.u32 %v210_v18, 30  ;;  %v234_v1 = vsub.s32 4, %v210_v18 }
  0xb1   :  { %vm14529_vm12 = vcmp.lt.s32.totalorder %v14528_v19, 0  ;;  %v212_v25 = vsub.s32 %v208_v14, %v211_v20  ;;  %v235_v7 = vsel %vm150_vm0, %v234_v1, %v210_v18  ;;  %v16703_v1 = vld [vmem:[%s23462_s2 + $0x100] ss:$100 sps:$4 sm:$0xff]  }
  0xb2   :  { %v116_v22 = vsel %vm14529_vm12, 0, %v14528_v19 }
  0xb3   :  { %v117_v29 = vsub.s32 32, %v116_v22  ;;  %v121_v30 = vsub.s32 4294967266, %v116_v22  ;;  %v214_v31 = vsub.s32 0, %v212_v25  ;;  %v118_v33 = vshll.u32 %v109_v9, %v116_v22  ;;  %v16646_v22 = vld [vmem:[%s23462_s2 + $0x10] ss:$100 sps:$4 sm:$0xff]  }
  0xb4   :  { %v237_v9 = vsel %vm149_vm1, 0, %v235_v7  ;;  %v16714_v7 = vld [vmem:[%s23462_s2 + $0x28c] ss:$100 sps:$4 sm:$0xff]  }
  0xb5   :  { %v119_v34 = vshrl.u32 %v101_v28, %v117_v29  ;;  %v122_v35 = vadd.s32 127, %v121_v30  ;;  %v14531_v36 = vmin.u32 %v214_v31, %v212_v25  ;;  %v241_v11 = vand.u32 3, %v237_v9  ;;  %v16649_v29 = vld [vmem:[%s23462_s2 + $0x18] ss:$100 sps:$4 sm:$0xff]   ;;  %v16715_v9 = vld [vmem:[%s23462_s2 + $0x290] ss:$100 sps:$4 sm:$0xff]  }
  0xb6   :  { %v16652_v31 = vld [vmem:[%s23462_s2 + $0xd8] ss:$100 sps:$4 sm:$0xff]  }
  0xb7   :  { %v120_v38 = vor.u32 %v119_v34, %v118_v33  ;;  %v123_v39 = vshll.u32 %v122_v35, 23  ;;  %v216_v40 = vclz %v14531_v36  ;;  %vm246_vm5 = vcmp.eq.s32.totalorder %v241_v11, 2  ;;  %v16655_v33 = vld [vmem:[%s23462_s2 + $0xe0] ss:$100 sps:$4 sm:$0xff]   ;;  %v16663_v35 = vld [vmem:[%s23462_s2 + $0x1ac] ss:$100 sps:$4 sm:$0xff]  }
  0xb8   :  { %vm243_vm6 = vcmp.eq.s32.totalorder %v241_v11, 0  ;;  %vm242_vm7 = vcmp.lt.s32.totalorder %v241_v11, 2  ;;  %v16660_v34 = vld [vmem:[%s23462_s2 + $0x1a4] ss:$100 sps:$4 sm:$0xff]  }
  0xb9   :  { %v124_v41 = vor.u32 4788187, %v123_v39  ;;  %v14532_v42 = vadd.s32 4294967294, %v216_v40  ;;  %v127_v45 = vcvt.s32.f32 %v120_v38  ;;  %v16658_v36 = vld [vmem:[%s23462_s2 + $0x1a0] ss:$100 sps:$4 sm:$0xff]  }
  0xba   :  { %v16661_v38 = vld [vmem:[%s23462_s2 + $0x1a8] ss:$100 sps:$4 sm:$0xff]   ;;  %v16669_v40 = vld [vmem:[%s23462_s2 + $0x274] ss:$100 sps:$4 sm:$0xff]   ;;  %v16718_v11 = vld [vmem:[%s23462_s2 + $0x40] ss:$100 sps:$4 sm:$0xff]  }
  0xbb   :  { %v125_v44 = vand.u32 2147483647, %v124_v41  ;;  %vm14533_vm13 = vcmp.lt.s32.totalorder %v14532_v42, 0  ;;  %v16666_v39 = vld [vmem:[%s23462_s2 + $0x26c] ss:$100 sps:$4 sm:$0xff]  }
  0xbc   :  { %v219_v48 = vsel %vm14533_vm13, 0, %v14532_v42  ;;  %v16664_v41 = vld [vmem:[%s23462_s2 + $0x268] ss:$100 sps:$4 sm:$0xff]   ;;  %v16667_v42 = vld [vmem:[%s23462_s2 + $0x270] ss:$100 sps:$4 sm:$0xff]  }
  0xbd   :  { %v128_v47 = vmul.f32 %v127_v45, %v125_v44  ;;  %v220_v23 = vsub.s32 32, %v219_v48  ;;  %v224_v24 = vsub.s32 4294967266, %v219_v48  ;;  %v221_v52 = vshll.u32 %v212_v25, %v219_v48  ;;  %v16672_v44 = vld [vmem:[%s23462_s2 + $0x24] ss:$100 sps:$4 sm:$0xff]   ;;  %v16675_v45 = vld [vmem:[%s23462_s2 + $0x2c] ss:$100 sps:$4 sm:$0xff]  }
  0xbe   :  { %v16673_v48 = vld [vmem:[%s23462_s2 + $0x28] ss:$100 sps:$4 sm:$0xff]  }
  0xbf   :  { %v129_v43 = vxor.u32 2147483648, %v128_v47  ;;  %v222_v49 = vshrl.u32 %v204_v50, %v220_v23  ;;  %v225_v51 = vadd.s32 127, %v224_v24  ;;  %v16678_v50 = vld [vmem:[%s23462_s2 + $0xec] ss:$100 sps:$4 sm:$0xff]   ;;  %v16681_v23 = vld [vmem:[%s23462_s2 + $0xf4] ss:$100 sps:$4 sm:$0xff]  }
  0xc0   :  { %v16676_v24 = vld [vmem:[%s23462_s2 + $0xe8] ss:$100 sps:$4 sm:$0xff]  }
  0xc1   :  { %v130_v53 = vsel %vm47_vm14, %v129_v43, %v128_v47  ;;  %v223_v56 = vor.u32 %v222_v49, %v221_v52  ;;  %v226_v57 = vshll.u32 %v225_v51, 23  ;;  %v16670_v47 = vld [vmem:[%s23462_s2 + $0x20] ss:$100 sps:$4 sm:$0xff]   ;;  %v16679_v43 = vld [vmem:[%s23462_s2 + $0xf0] ss:$100 sps:$4 sm:$0xff]  }
  0xc2   :  { %v133_v58 = vsel %vm17014_vm15, %v16956_v26, %v130_v53  ;;  %v16654_v26 = vld [vmem:[%s23462_s2 + $0xdc] ss:$100 sps:$4 sm:$0xff]   ;;  %v16684_v52 = vld [vmem:[%s23462_s2 + $0x1b4] ss:$100 sps:$4 sm:$0xff]  }
  0xc3   :  { %v227_v59 = vor.u32 4788187, %v226_v57  ;;  %16834 = vcosq.f32 %v133_v58  ;;  %v230_v60 = vcvt.s32.f32 %v223_v56  ;;  %v16687_v49 = vld [vmem:[%s23462_s2 + $0x1bc] ss:$100 sps:$4 sm:$0xff]   ;;  %v16682_v51 = vld [vmem:[%s23462_s2 + $0x1b0] ss:$100 sps:$4 sm:$0xff]  }
  0xc4   :  { %16836 = vsinq.f32 %v133_v58  ;;  %v16685_v53 = vld [vmem:[%s23462_s2 + $0x1b8] ss:$100 sps:$4 sm:$0xff]   ;;  %v16693_v56 = vld [vmem:[%s23462_s2 + $0x284] ss:$100 sps:$4 sm:$0xff]  }
  0xc5   :  { %v228_v55 = vand.u32 2147483647, %v227_v59  ;;  %v16688_v57 = vld [vmem:[%s23462_s2 + $0x278] ss:$100 sps:$4 sm:$0xff]   ;;  %v16691_v58 = vld [vmem:[%s23462_s2 + $0x280] ss:$100 sps:$4 sm:$0xff]  }
  0xc6   :  { %v16696_v59 = vld [vmem:[%s23462_s2 + $0x34] ss:$100 sps:$4 sm:$0xff]  }
  0xc7   :  { %v231_v61 = vmul.f32 %v230_v60, %v228_v55  ;;  %v16699_v55 = vld [vmem:[%s23462_s2 + $0x3c] ss:$100 sps:$4 sm:$0xff]   ;;  %v16694_v60 = vld [vmem:[%s23462_s2 + $0x30] ss:$100 sps:$4 sm:$0xff]  }
  0xc9   :  { %v232_v63 = vxor.u32 2147483648, %v231_v61 }
  0xcb   :  { %v233_v27 = vsel %vm150_vm0, %v232_v63, %v231_v61  ;;  %v16697_v61 = vld [vmem:[%s23462_s2 + $0x38] ss:$100 sps:$4 sm:$0xff]   ;;  %v16705_v63 = vld [vmem:[%s23462_s2 + $0x104] ss:$100 sps:$4 sm:$0xff]  }
  0xcc   :  { %v236_v4 = vsel %vm149_vm1, %v16962_v32, %v233_v27  ;;  %v16657_v32 = vld [vmem:[%s23462_s2 + $0xe4] ss:$100 sps:$4 sm:$0xff]   ;;  %v16700_v27 = vld [vmem:[%s23462_s2 + $0xf8] ss:$100 sps:$4 sm:$0xff]  }
  0xcd   :  { %16838 = vcosq.f32 %v236_v4  ;;  %v16835_v5 = vpop.eup %16834 }
  0xce   :  { %16840 = vsinq.f32 %v236_v4  ;;  %v16837_v46 = vpop.eup %16836  ;;  %v144_v37 = vxor.u32 2147483648, %v16835_v5  ;;  %v16711_v4 = vld [vmem:[%s23462_s2 + $0x1cc] ss:$100 sps:$4 sm:$0xff]  }
  0xcf   :  { %v141_v10 = vxor.u32 2147483648, %v16837_v46 }
  0xd0   :  { %v145_v2 = vsel %vm143_vm3, %v144_v37, %v16837_v46  ;;  %v16717_v46 = vld [vmem:[%s23462_s2 + $0x294] ss:$100 sps:$4 sm:$0xff]   ;;  %v16723_v37 = vld [vmem:[%s23462_s2 + $0x4c] ss:$100 sps:$4 sm:$0xff]  }
  0xd1   :  { %v142_v13 = vsel %vm140_vm2, %v16835_v5, %v141_v10  ;;  %v16706_v5 = vld [vmem:[%s23462_s2 + $0x1c0] ss:$100 sps:$4 sm:$0xff]  }
  0xd2   :  { %v146_v17 = vsel %vm139_vm4, %v142_v13, %v145_v2  ;;  %v16720_v10 = vld [vmem:[%s23462_s2 + $0x44] ss:$100 sps:$4 sm:$0xff]   ;;  %v16726_v13 = vld [vmem:[%s23462_s2 + $0x10c] ss:$100 sps:$4 sm:$0xff]   ;;  %v16729_v2 = vld [vmem:[%s23462_s2 + $0x114] ss:$100 sps:$4 sm:$0xff]  }
  0xd3   :  { %v147_v25 = vsel %vm137_vm8, nan, %v146_v17  ;;  %v16735_v17 = vld [vmem:[%s23462_s2 + $0x1dc] ss:$100 sps:$4 sm:$0xff]  }
  0xd7   :  { %v16839_v12 = vpop.eup %16838 }
  0xd8   :  { %v16841_v14 = vpop.eup %16840  ;;  %v247_v15 = vxor.u32 2147483648, %v16839_v12 }
  0xd9   :  { %v244_v16 = vxor.u32 2147483648, %v16841_v14 }
  0xda   :  { %v248_v19 = vsel %vm246_vm5, %v247_v15, %v16841_v14  ;;  %v16724_v14 = vld [vmem:[%s23462_s2 + $0x108] ss:$100 sps:$4 sm:$0xff]   ;;  %v16727_v15 = vld [vmem:[%s23462_s2 + $0x110] ss:$100 sps:$4 sm:$0xff]  }
  0xdb   :  { %v245_v18 = vsel %vm243_vm6, %v16839_v12, %v244_v16  ;;  %v16721_v12 = vld [vmem:[%s23462_s2 + $0x48] ss:$100 sps:$4 sm:$0xff]   ;;  %v16732_v16 = vld [vmem:[%s23462_s2 + $0x1d4] ss:$100 sps:$4 sm:$0xff]  }
  0xdc   :  { %v249_v20 = vsel %vm242_vm7, %v245_v18, %v248_v19  ;;  %v16730_v19 = vld [vmem:[%s23462_s2 + $0x1d0] ss:$100 sps:$4 sm:$0xff]   ;;  %v16733_v18 = vld [vmem:[%s23462_s2 + $0x1d8] ss:$100 sps:$4 sm:$0xff]  }
  0xdd   :  { %v250_v28 = vsel %vm240_vm9, nan, %v249_v20  ;;  %v16738_v20 = vld [vmem:[%s23462_s2 + $0x29c] ss:$100 sps:$4 sm:$0xff]  }
  0xde   :  { %v17039_v30 = vpack.c.bf16 %v250_v28, %v147_v25  ;;  %v16736_v25 = vld [vmem:[%s23462_s2 + $0x298] ss:$100 sps:$4 sm:$0xff]   ;;  %v16739_v28 = vld [vmem:[%s23462_s2 + $0x2a0] ss:$100 sps:$4 sm:$0xff]  }
  0xe0   :  { %14635 = vmatmul.mubr.msk.bf16.vlgmr.msra.gmra.mrb[0].mxu0 %vm993_vm10, %v17039_v30  ;;  %14636 = vmatmul.mubr.msk.bf16.vlgmr.msra.gmra.mrb[0].mxu1 %vm993_vm10, %v17039_v30 }
  0xe1   :  { %1084 = vmatpush1.bf16.msra.mxu0 %v16646_v22  ;;  %1127 = vmatpush1.bf16.msra.mxu1 %v16649_v29  ;;  %v16741_v22 = vld [vmem:[%s23462_s2 + $0x2a4] ss:$100 sps:$4 sm:$0xff]   ;;  %v16744_v29 = vld [vmem:[%s23462_s2 + $0x54] ss:$100 sps:$4 sm:$0xff]  }
  0xe2   :  { %1085 = vmatprep.subr.bf16.mxu0 %v16654_v26  ;;  %1128 = vmatprep.subr.bf16.mxu1 %v16657_v32  ;;  %v16747_v26 = vld [vmem:[%s23462_s2 + $0x5c] ss:$100 sps:$4 sm:$0xff]   ;;  %v16742_v32 = vld [vmem:[%s23462_s2 + $0x50] ss:$100 sps:$4 sm:$0xff]  }
  0xe3   :  { %1115 = vmatprep.mubr.bf16.mxu0 %v23469_v0  ;;  %1158 = vmatprep.mubr.bf16.mxu1 %v23469_v0 }
  0xe5   :  { %1086 = vmatpush1.bf16.msra.mxu0 %v16652_v31  ;;  %1129 = vmatpush1.bf16.msra.mxu1 %v16655_v33  ;;  %v16745_v31 = vld [vmem:[%s23462_s2 + $0x58] ss:$100 sps:$4 sm:$0xff]  }
  0xe6   :  { %1087 = vmatprep.subr.bf16.mxu0 %v16660_v34  ;;  %1130 = vmatprep.subr.bf16.mxu1 %v16663_v35  ;;  %v16750_v33 = vld [vmem:[%s23462_s2 + $0x11c] ss:$100 sps:$4 sm:$0xff]   ;;  %v16753_v34 = vld [vmem:[%s23462_s2 + $0x124] ss:$100 sps:$4 sm:$0xff]  }
  0xe7   :  { %v16748_v35 = vld [vmem:[%s23462_s2 + $0x118] ss:$100 sps:$4 sm:$0xff]  }
  0xe9   :  { %1088 = vmatpush1.bf16.msra.mxu0 %v16658_v36  ;;  %1131 = vmatpush1.bf16.msra.mxu1 %v16661_v38  ;;  %v16751_v36 = vld [vmem:[%s23462_s2 + $0x120] ss:$100 sps:$4 sm:$0xff]  }
  0xea   :  { %1089 = vmatprep.subr.bf16.mxu0 %v16666_v39  ;;  %1132 = vmatprep.subr.bf16.mxu1 %v16669_v40  ;;  %v16756_v38 = vld [vmem:[%s23462_s2 + $0x1e4] ss:$100 sps:$4 sm:$0xff]   ;;  %v16759_v39 = vld [vmem:[%s23462_s2 + $0x1ec] ss:$100 sps:$4 sm:$0xff]  }
  0xeb   :  { %v16754_v40 = vld [vmem:[%s23462_s2 + $0x1e0] ss:$100 sps:$4 sm:$0xff]  }
  0xed   :  { %1090 = vmatpush1.bf16.msra.mxu0 %v16664_v41  ;;  %1133 = vmatpush1.bf16.msra.mxu1 %v16667_v42  ;;  %v16757_v41 = vld [vmem:[%s23462_s2 + $0x1e8] ss:$100 sps:$4 sm:$0xff]  }
  0xee   :  { %1169 = vmatprep.subr.bf16.mxu0 %v16672_v44  ;;  %1212 = vmatprep.subr.bf16.mxu1 %v16675_v45  ;;  %v16762_v42 = vld [vmem:[%s23462_s2 + $0x2ac] ss:$100 sps:$4 sm:$0xff]   ;;  %v16765_v44 = vld [vmem:[%s23462_s2 + $0x2b4] ss:$100 sps:$4 sm:$0xff]   ;;  %v2099_v45 = vld [vmem:[%s23463_s4] sm:$0xff] }
  0xf0   :  { %14637 = vmatmul.mubr.msk.bf16.vlgmr.msra.gmra.mrb[4].mxu0 %vm993_vm10, %v17039_v30  ;;  %14638 = vmatmul.mubr.msk.bf16.vlgmr.msra.gmra.mrb[4].mxu1 %vm993_vm10, %v17039_v30 }
  0xf1   :  { %1170 = vmatpush1.bf16.msra.mxu0 %v16670_v47  ;;  %1213 = vmatpush1.bf16.msra.mxu1 %v16673_v48  ;;  %v2103_v47 = vld [vmem:[%s23463_s4 + $0x20] sm:$0xff]  ;;  %v16760_v48 = vld [vmem:[%s23462_s2 + $0x2a8] ss:$100 sps:$4 sm:$0xff]  }
  0xf2   :  { %1171 = vmatprep.subr.bf16.mxu0 %v16678_v50  ;;  %1214 = vmatprep.subr.bf16.mxu1 %v16681_v23  ;;  %v16763_v50 = vld [vmem:[%s23462_s2 + $0x2b0] ss:$100 sps:$4 sm:$0xff]   ;;  %v14656_v23 = vcombine.high %v2099_v45, %v2103_v47 }
  0xf3   :  { %1201 = vmatprep.mubr.bf16.mxu0 %v23469_v0  ;;  %1244 = vmatprep.mubr.bf16.mxu1 %v23469_v0 }
  0xf5   :  { %1172 = vmatpush1.bf16.msra.mxu0 %v16676_v24  ;;  %1215 = vmatpush1.bf16.msra.mxu1 %v16679_v43  ;;  %v2107_v24 = vld [vmem:[%s23463_s4 + $0x40] sm:$0xff] }
  0xf6   :  { %1173 = vmatprep.subr.bf16.mxu0 %v16684_v52  ;;  %1216 = vmatprep.subr.bf16.mxu1 %v16687_v49  ;;  %v2111_v43 = vld [vmem:[%s23463_s4 + $0x60] sm:$0xff]  ;;  %v16850_v49 = vmov 0.0  }
  0xf7   :  { %v16766_v52 = vld [vmem:[%s23462_s2 + $0x60] ss:$100 sps:$4 sm:$0xff]  }
  0xf9   :  { %1174 = vmatpush1.bf16.msra.mxu0 %v16682_v51  ;;  %1217 = vmatpush1.bf16.msra.mxu1 %v16685_v53  ;;  %v14655_v51 = vcombine.low %v2099_v45, %v2103_v47  ;;  %v14664_v53 = vcombine.high %v2107_v24, %v2111_v43  ;;  %v2167_v45 = vld [vmem:[%s23463_s4 + $0x220] sm:$0xff] }
  0xfa   :  { %1175 = vmatprep.subr.bf16.mxu0 %v16690_v54  ;;  %1218 = vmatprep.subr.bf16.mxu1 %v16693_v56  ;;  %v2115_v54 = vld [vmem:[%s23463_s4 + $0x80] sm:$0xff] }
  0xfb   :  { %v2119_v56 = vld [vmem:[%s23463_s4 + $0xa0] sm:$0xff] }
  0xfd   :  { %1176 = vmatpush1.bf16.msra.mxu0 %v16688_v57  ;;  %1219 = vmatpush1.bf16.msra.mxu1 %v16691_v58  ;;  %v16767_v57 = vld [vmem:[%s23462_s2 + $0x128] ss:$100 sps:$4 sm:$0xff]   ;;  %v14663_v58 = vcombine.low %v2107_v24, %v2111_v43 }
  0xfe   :  { %1255 = vmatprep.subr.bf16.mxu0 %v16696_v59  ;;  %1298 = vmatprep.subr.bf16.mxu1 %v16699_v55  ;;  %v14672_v59 = vcombine.high %v2115_v54, %v2119_v56  ;;  %v2123_v55 = vld [vmem:[%s23463_s4 + $0xc0] sm:$0xff]  ;;  %v2144_v24 = vld [vmem:[%s23463_s4 + $0x168] sm:$0xff] }
 0x100   :  { %14639 = vmatmul.mubr.msk.bf16.vlgmr.msra.gmra.mrb[8].mxu0 %vm993_vm10, %v17039_v30  ;;  %14640 = vmatmul.mubr.msk.bf16.vlgmr.msra.gmra.mrb[8].mxu1 %vm993_vm10, %v17039_v30 }
 0x101   :  { %1256 = vmatpush1.bf16.msra.mxu0 %v16694_v60  ;;  %1299 = vmatpush1.bf16.msra.mxu1 %v16697_v61  ;;  %v2127_v60 = vld [vmem:[%s23463_s4 + $0xe0] sm:$0xff]  ;;  %v16768_v61 = vld [vmem:[%s23462_s2 + $0x1f0] ss:$100 sps:$4 sm:$0xff]  }
 0x102   :  { %1257 = vmatprep.subr.bf16.mxu0 %v16702_v62  ;;  %1300 = vmatprep.subr.bf16.mxu1 %v16705_v63  ;;  %v14671_v62 = vcombine.low %v2115_v54, %v2119_v56  ;;  %v2100_v63 = vld [vmem:[%s23463_s4 + $0x8] sm:$0xff] }
 0x103   :  { %1287 = vmatprep.mubr.bf16.mxu0 %v23469_v0  ;;  %1330 = vmatprep.mubr.bf16.mxu1 %v23469_v0  ;;  %v2148_v56 = vld [vmem:[%s23463_s4 + $0x188] sm:$0xff] }
 0x105   :  { %1258 = vmatpush1.bf16.msra.mxu0 %v16700_v27  ;;  %1301 = vmatpush1.bf16.msra.mxu1 %v16703_v1  ;;  %v2104_v27 = vld [vmem:[%s23463_s4 + $0x28] sm:$0xff]  ;;  %v14680_v1 = vcombine.high %v2123_v55, %v2127_v60 }
 0x106   :  { %1259 = vmatprep.subr.bf16.mxu0 %v16708_v3  ;;  %1302 = vmatprep.subr.bf16.mxu1 %v16711_v4  ;;  %v2131_v3 = vld [vmem:[%s23463_s4 + $0x100] sm:$0xff] }
 0x107   :  { %v2135_v4 = vld [vmem:[%s23463_s4 + $0x120] sm:$0xff] }
 0x109   :  { %1260 = vmatpush1.bf16.msra.mxu0 %v16706_v5  ;;  %1303 = vmatpush1.bf16.msra.mxu1 %v16709_v6  ;;  %v16769_v5 = vld [vmem:[%s23462_s2 + $0x2b8] ss:$100 sps:$4 sm:$0xff]   ;;  %v14658_v6 = vcombine.high %v2100_v63, %v2104_v27 }
 0x10a   :  { %1261 = vmatprep.subr.bf16.mxu0 %v16714_v7  ;;  %1304 = vmatprep.subr.bf16.mxu1 %v16717_v46  ;;  %v14679_v7 = vcombine.low %v2123_v55, %v2127_v60  ;;  %v2108_v46 = vld [vmem:[%s23463_s4 + $0x48] sm:$0xff]  ;;  %v2183_v55 = vld [vmem:[%s23463_s4 + $0x2a0] sm:$0xff] }
 0x10d   :  { %1262 = vmatpush1.bf16.msra.mxu0 %v16712_v8  ;;  %1305 = vmatpush1.bf16.msra.mxu1 %v16715_v9  ;;  %v2112_v8 = vld [vmem:[%s23463_s4 + $0x68] sm:$0xff]  ;;  %v14688_v9 = vcombine.high %v2131_v3, %v2135_v4 }
 0x10e   :  { %1341 = vmatprep.subr.bf16.mxu0 %v16720_v10  ;;  %1384 = vmatprep.subr.bf16.mxu1 %v16723_v37  ;;  %v2139_v10 = vld [vmem:[%s23463_s4 + $0x140] sm:$0xff] }
 0x10f   :  { %v2143_v37 = vld [vmem:[%s23463_s4 + $0x160] sm:$0xff] }
 0x110   :  { %14641 = vmatmul.mubr.msk.bf16.vlgmr.msra.gmra.mrb[12].mxu0 %vm993_vm10, %v17039_v30  ;;  %14642 = vmatmul.mubr.msk.bf16.vlgmr.msra.gmra.mrb[12].mxu1 %vm993_vm10, %v17039_v30 }
 0x111   :  { %1342 = vmatpush1.bf16.msra.mxu0 %v16718_v11  ;;  %1385 = vmatpush1.bf16.msra.mxu1 %v16721_v12  ;;  %v14657_v11 = vcombine.low %v2100_v63, %v2104_v27  ;;  %v14666_v12 = vcombine.high %v2108_v46, %v2112_v8  ;;  %v2156_v63 = vld [vmem:[%s23463_s4 + $0x1c8] sm:$0xff] }
 0x112   :  { %1343 = vmatprep.subr.bf16.mxu0 %v16726_v13  ;;  %1386 = vmatprep.subr.bf16.mxu1 %v16729_v2  ;;  %v14687_v13 = vcombine.low %v2131_v3, %v2135_v4  ;;  %v2116_v2 = vld [vmem:[%s23463_s4 + $0x88] sm:$0xff]  ;;  %v2187_v3 = vld [vmem:[%s23463_s4 + $0x2c0] sm:$0xff] }
 0x113   :  { %1373 = vmatprep.mubr.bf16.mxu0 %v23469_v0  ;;  %1416 = vmatprep.mubr.bf16.mxu1 %v23469_v0  ;;  %v2160_v27 = vld [vmem:[%s23463_s4 + $0x1e8] sm:$0xff]  ;;  %v2191_v4 = vld [vmem:[%s23463_s4 + $0x2e0] sm:$0xff] }
 0x115   :  { %1344 = vmatpush1.bf16.msra.mxu0 %v16724_v14  ;;  %1387 = vmatpush1.bf16.msra.mxu1 %v16727_v15  ;;  %v2120_v14 = vld [vmem:[%s23463_s4 + $0xa8] sm:$0xff]  ;;  %v14696_v15 = vcombine.high %v2139_v10, %v2143_v37 }
 0x116   :  { %1345 = vmatprep.subr.bf16.mxu0 %v16732_v16  ;;  %1388 = vmatprep.subr.bf16.mxu1 %v16735_v17  ;;  %v2147_v16 = vld [vmem:[%s23463_s4 + $0x180] sm:$0xff] }
 0x117   :  { %v2151_v17 = vld [vmem:[%s23463_s4 + $0x1a0] sm:$0xff] }
 0x119   :  { %1346 = vmatpush1.bf16.msra.mxu0 %v16730_v19  ;;  %1389 = vmatpush1.bf16.msra.mxu1 %v16733_v18  ;;  %v14665_v19 = vcombine.low %v2108_v46, %v2112_v8  ;;  %v14674_v18 = vcombine.high %v2116_v2, %v2120_v14  ;;  %v2164_v46 = vld [vmem:[%s23463_s4 + $0x208] sm:$0xff] }
 0x11a   :  { %1347 = vmatprep.subr.bf16.mxu0 %v16738_v20  ;;  %1390 = vmatprep.subr.bf16.mxu1 %v16741_v22  ;;  %v14695_v20 = vcombine.low %v2139_v10, %v2143_v37  ;;  %v17380_v22 = vld [vmem:[%s23463_s4 + $0x400] sm:$0xff]  ;;  %v2168_v8 = vld [vmem:[%s23463_s4 + $0x228] sm:$0xff] }
 0x11b   :  { %v2195_v10 = vld [vmem:[%s23463_s4 + $0x300] sm:$0xff] }
 0x11c   :  { %v2199_v37 = vld [vmem:[%s23463_s4 + $0x320] sm:$0xff] }
 0x11d   :  { %1348 = vmatpush1.bf16.msra.mxu0 %v16736_v25  ;;  %1391 = vmatpush1.bf16.msra.mxu1 %v16739_v28  ;;  %v17390_v25 = vld [vmem:[%s23463_s4 + $0x408] sm:$0xff] }
 0x11e   :  { %1427 = vmatprep.subr.bf16.mxu0 %v16744_v29  ;;  %1470 = vmatprep.subr.bf16.mxu1 %v16747_v26  ;;  %v2124_v28 = vld [vmem:[%s23463_s4 + $0xc8] sm:$0xff]  ;;  %v14704_v26 = vcombine.high %v2147_v16, %v2151_v17 }
 0x11f   :  { %v2128_v29 = vld [vmem:[%s23463_s4 + $0xe8] sm:$0xff] }
 0x120   :  { %14643 = vmatmul.mubr.msk.bf16.vlgmr.msra.gmra.mrb[16].mxu0 %vm993_vm10, %v17039_v30  ;;  %14644 = vmatmul.mubr.msk.bf16.vlgmr.msra.gmra.mrb[16].mxu1 %vm993_vm10, %v17039_v30  ;;  %v14681_v47 = vcombine.low %v2124_v28, %v2128_v29 }
 0x121   :  { %1428 = vmatpush1.bf16.msra.mxu0 %v16742_v32  ;;  %1471 = vmatpush1.bf16.msra.mxu1 %v16745_v31  ;;  %v17401_v32 = vld [vmem:[%s23463_s4 + $0x428] sm:$0xff]  ;;  %v2155_v31 = vld [vmem:[%s23463_s4 + $0x1c0] sm:$0xff] }
 0x122   :  { %1429 = vmatprep.subr.bf16.mxu0 %v16750_v33  ;;  %1472 = vmatprep.subr.bf16.mxu1 %v16753_v34  ;;  %v2159_v33 = vld [vmem:[%s23463_s4 + $0x1e0] sm:$0xff] }
 0x123   :  { %1459 = vmatprep.mubr.bf16.mxu0 %v23469_v0  ;;  %1502 = vmatprep.mubr.bf16.mxu1 %v23469_v0  ;;  %v17719_v0 = vld [vmem:[%s23463_s4 + $0x528] sm:$0xff] }
 0x124   :  { %23534 = vst [vmem:[#allocation4_spill] sm:$0xff] %v17719_v0 }
 0x125   :  { %1430 = vmatpush1.bf16.msra.mxu0 %v16748_v35  ;;  %1473 = vmatpush1.bf16.msra.mxu1 %v16751_v36  ;;  %v14673_v36 = vcombine.low %v2116_v2, %v2120_v14  ;;  %v2172_v2 = vld [vmem:[%s23463_s4 + $0x248] sm:$0xff] }
 0x126   :  { %1431 = vmatprep.subr.bf16.mxu0 %v16756_v38  ;;  %1474 = vmatprep.subr.bf16.mxu1 %v16759_v39  ;;  %v14682_v38 = vcombine.high %v2124_v28, %v2128_v29  ;;  %v14703_v39 = vcombine.low %v2147_v16, %v2151_v17  ;;  %v2176_v14 = vld [vmem:[%s23463_s4 + $0x268] sm:$0xff]  ;;  %v2203_v16 = vld [vmem:[%s23463_s4 + $0x340] sm:$0xff] }
 0x127   :  { %v2207_v17 = vld [vmem:[%s23463_s4 + $0x360] sm:$0xff]  ;;  %v2180_v28 = vld [vmem:[%s23463_s4 + $0x288] sm:$0xff] }
 0x128   :  { %v2184_v29 = vld [vmem:[%s23463_s4 + $0x2a8] sm:$0xff] }
 0x129   :  { %1432 = vmatpush1.bf16.msra.mxu0 %v16754_v40  ;;  %1475 = vmatpush1.bf16.msra.mxu1 %v16757_v41  ;;  %v2132_v40 = vld [vmem:[%s23463_s4 + $0x108] sm:$0xff] }
 0x12a   :  { %1433 = vmatprep.subr.bf16.mxu0 %v16762_v42  ;;  %1476 = vmatprep.subr.bf16.mxu1 %v16765_v44  ;;  %v2136_v41 = vld [vmem:[%s23463_s4 + $0x128] sm:$0xff]  ;;  %v14712_v42 = vcombine.high %v2155_v31, %v2159_v33  ;;  %v2163_v44 = vld [vmem:[%s23463_s4 + $0x200] sm:$0xff] }
 0x12b   :  { %v14720_v43 = vcombine.high %v2163_v44, %v2167_v45  ;;  %v14719_v54 = vcombine.low %v2163_v44, %v2167_v45  ;;  %v2219_v44 = vld [vmem:[%s23463_s4 + $0x3c0] sm:$0xff]  ;;  %v17804_v35 = vld [vmem:[%s23463_s4 + $0x5a8] sm:$0xff] }
 0x12c   :  { %v2223_v45 = vld [vmem:[%s23463_s4 + $0x3e0] sm:$0xff]  ;;  %23546 = vst [vmem:[#allocation16_spill] sm:$0xff] %v17804_v35 }
 0x12d   :  { %1434 = vmatpush1.bf16.msra.mxu0 %v16760_v48  ;;  %1477 = vmatpush1.bf16.msra.mxu1 %v16763_v50  ;;  %v14690_v48 = vcombine.high %v2132_v40, %v2136_v41  ;;  %v14711_v50 = vcombine.low %v2155_v31, %v2159_v33  ;;  %v2211_v31 = vld [vmem:[%s23463_s4 + $0x380] sm:$0xff] }
 0x12e   :  { %16384 = vmatprep.subr.bf16.mxu0 %v16850_v49  ;;  %11552 = vmatprep.subr.bf16.mxu1 %v14656_v23  ;;  %v2140_v23 = vld [vmem:[%s23463_s4 + $0x148] sm:$0xff]  ;;  %v2215_v33 = vld [vmem:[%s23463_s4 + $0x3a0] sm:$0xff] }
 0x12f   :  { %v14697_v60 = vcombine.low %v2140_v23, %v2144_v24 }
 0x130   :  { %14645 = vmatmul.mubr.msk.bf16.vlgmr.msra.gmra.mrb[20].mxu0 %vm993_vm10, %v17039_v30  ;;  %14646 = vmatmul.mubr.msk.bf16.vlgmr.msra.gmra.mrb[20].mxu1 %vm993_vm10, %v17039_v30 }
 0x131   :  { %16385 = vmatpush3.bf16.msra.mxu0 %v16766_v52  ;;  %16392 = vmatprep.mubr.msk.bf16.mxu0 %vm16851_vm11, %v16850_v49  ;;  %v2171_v52 = vld [vmem:[%s23463_s4 + $0x240] sm:$0xff] }
 0x132   :  { %16386 = vmatprep.subr.bf16.mxu0 %v16850_v49  ;;  %11553 = vmatpush1.bf16.msra.mxu1 %v14655_v51  ;;  %v14689_v51 = vcombine.low %v2132_v40, %v2136_v41  ;;  %v2188_v40 = vld [vmem:[%s23463_s4 + $0x2c8] sm:$0xff] }
 0x133   :  { %11554 = vmatprep.subr.bf16.mxu1 %v14664_v53  ;;  %v14698_v53 = vcombine.high %v2140_v23, %v2144_v24  ;;  %v2192_v41 = vld [vmem:[%s23463_s4 + $0x2e8] sm:$0xff] }
 0x134   :  { %v2196_v23 = vld [vmem:[%s23463_s4 + $0x308] sm:$0xff] }
 0x135   :  { %16387 = vmatpush3.bf16.msra.mxu0 %v16767_v57  ;;  %v2152_v57 = vld [vmem:[%s23463_s4 + $0x1a8] sm:$0xff] }
 0x136   :  { %16388 = vmatprep.subr.bf16.mxu0 %v16850_v49  ;;  %11555 = vmatpush1.bf16.msra.mxu1 %v14663_v58  ;;  %v2200_v24 = vld [vmem:[%s23463_s4 + $0x328] sm:$0xff] }
 0x137   :  { %11556 = vmatprep.subr.bf16.mxu1 %v14672_v59  ;;  %v2179_v59 = vld [vmem:[%s23463_s4 + $0x280] sm:$0xff] }
 0x139   :  { %16389 = vmatpush3.bf16.msra.mxu0 %v16768_v61  ;;  %v14706_v61 = vcombine.high %v2148_v56, %v2152_v57 }
 0x13a   :  { %16390 = vmatprep.subr.bf16.mxu0 %v16850_v49  ;;  %11557 = vmatpush1.bf16.msra.mxu1 %v14671_v62  ;;  %v2175_v49 = vld [vmem:[%s23463_s4 + $0x260] sm:$0xff] }
 0x13b   :  { %11558 = vmatprep.subr.bf16.mxu1 %v14680_v1  ;;  %v14728_v58 = vcombine.high %v2171_v52, %v2175_v49  ;;  %v14727_v62 = vcombine.low %v2171_v52, %v2175_v49  ;;  %v14736_v1 = vcombine.high %v2179_v59, %v2183_v55  ;;  %v14745_v52 = vcombine.low %v2188_v40, %v2192_v41 }
 0x13c   :  { %v14754_v49 = vcombine.high %v2196_v23, %v2200_v24 }
 0x13d   :  { %16391 = vmatpush3.bf16.msra.mxu0 %v16769_v5  ;;  %v14705_v5 = vcombine.low %v2148_v56, %v2152_v57  ;;  %v14753_v57 = vcombine.low %v2196_v23, %v2200_v24  ;;  %v17794_v23 = vld [vmem:[%s23463_s4 + $0x5a0] sm:$0xff] }
 0x13e   :  { %12111 = vmatprep.subr.bf16.mxu0 %v14658_v6  ;;  %11559 = vmatpush1.bf16.msra.mxu1 %v14679_v7  ;;  %v14714_v6 = vcombine.high %v2156_v63, %v2160_v27  ;;  %v14735_v7 = vcombine.low %v2179_v59, %v2183_v55  ;;  %v2212_v59 = vld [vmem:[%s23463_s4 + $0x388] sm:$0xff]  ;;  %23544 = vst [vmem:[#allocation14_spill] sm:$0xff] %v17794_v23 }
 0x13f   :  { %11560 = vmatprep.subr.bf16.mxu1 %v14688_v9  ;;  %v14744_v9 = vcombine.high %v2187_v3, %v2191_v4  ;;  %v2216_v55 = vld [vmem:[%s23463_s4 + $0x3a8] sm:$0xff] }
 0x140   :  { %16393 = vmatmul.mubr.msk.bf16.vlgmr.msra.gmra.mrb[24].mxu0 %vm993_vm10, %v17039_v30  ;;  %v17385_v30 = vld [vmem:[%s23463_s4 + $0x420] sm:$0xff] }
 0x141   :  { %12112 = vmatpush1.bf16.msra.mxu0 %v14657_v11  ;;  %v14713_v11 = vcombine.low %v2156_v63, %v2160_v27  ;;  %v14784_v56 = vcombine.high %v17380_v22, %v17385_v30  ;;  %v2224_v63 = vld [vmem:[%s23463_s4 + $0x3e8] sm:$0xff]  ;;  %v14769_v27 = vcombine.low %v2212_v59, %v2216_v55 }
 0x142   :  { %12113 = vmatprep.subr.bf16.mxu0 %v14666_v12  ;;  %11561 = vmatpush1.bf16.msra.mxu1 %v14687_v13  ;;  %v14722_v12 = vcombine.high %v2164_v46, %v2168_v8  ;;  %v14743_v13 = vcombine.low %v2187_v3, %v2191_v4  ;;  %v14786_v4 = vcombine.high %v17390_v25, %v17401_v32 }
 0x143   :  { %11562 = vmatprep.subr.bf16.mxu1 %v14696_v15  ;;  %v14752_v15 = vcombine.high %v2195_v10, %v2199_v37 }
 0x145   :  { %12114 = vmatpush1.bf16.msra.mxu0 %v14665_v19  ;;  %v14721_v19 = vcombine.low %v2164_v46, %v2168_v8 }
 0x146   :  { %12115 = vmatprep.subr.bf16.mxu0 %v14674_v18  ;;  %11563 = vmatpush1.bf16.msra.mxu1 %v14695_v20  ;;  %v14730_v18 = vcombine.high %v2172_v2, %v2176_v14  ;;  %v14751_v20 = vcombine.low %v2195_v10, %v2199_v37 }
 0x147   :  { %11564 = vmatprep.subr.bf16.mxu1 %v14704_v26  ;;  %v14760_v26 = vcombine.high %v2203_v16, %v2207_v17 }
 0x149   :  { %12116 = vmatpush1.bf16.msra.mxu0 %v14673_v36  ;;  %v14729_v36 = vcombine.low %v2172_v2, %v2176_v14 }
 0x14a   :  { %12117 = vmatprep.subr.bf16.mxu0 %v14682_v38  ;;  %11565 = vmatpush1.bf16.msra.mxu1 %v14703_v39  ;;  %v14738_v38 = vcombine.high %v2180_v28, %v2184_v29  ;;  %v14759_v39 = vcombine.low %v2203_v16, %v2207_v17 }
 0x14b   :  { %11566 = vmatprep.subr.bf16.mxu1 %v14712_v42  ;;  %v14768_v42 = vcombine.high %v2211_v31, %v2215_v33 }
 0x14d   :  { %12118 = vmatpush1.bf16.msra.mxu0 %v14681_v47  ;;  %v14737_v47 = vcombine.low %v2180_v28, %v2184_v29  ;;  %v17586_v28 = vld [vmem:[%s23463_s4 + $0x440] sm:$0xff] }
 0x14e   :  { %12119 = vmatprep.subr.bf16.mxu0 %v14690_v48  ;;  %11567 = vmatpush1.bf16.msra.mxu1 %v14711_v50  ;;  %v14746_v48 = vcombine.high %v2188_v40, %v2192_v41  ;;  %v14767_v50 = vcombine.low %v2211_v31, %v2215_v33  ;;  %v17591_v29 = vld [vmem:[%s23463_s4 + $0x460] sm:$0xff] }
 0x14f   :  { %11568 = vmatprep.subr.bf16.mxu1 %v14720_v43  ;;  %v14776_v43 = vcombine.high %v2219_v44, %v2223_v45  ;;  %v17614_v40 = vld [vmem:[%s23463_s4 + $0x480] sm:$0xff] }
 0x150   :  { %v17844_v41 = vld [vmem:[%s23463_s4 + $0x5e0] sm:$0xff] }
 0x151   :  { %12120 = vmatpush1.bf16.msra.mxu0 %v14689_v51  ;;  %v14775_v51 = vcombine.low %v2219_v44, %v2223_v45 }
 0x152   :  { %12121 = vmatprep.subr.bf16.mxu0 %v14698_v53  ;;  %11569 = vmatpush1.bf16.msra.mxu1 %v14719_v54  ;;  %v2204_v53 = vld [vmem:[%s23463_s4 + $0x348] sm:$0xff] }
 0x153   :  { %11570 = vmatprep.subr.bf16.mxu1 %v14728_v58  ;;  %v2208_v54 = vld [vmem:[%s23463_s4 + $0x368] sm:$0xff] }
 0x154   :  { %v14762_v58 = vcombine.high %v2204_v53, %v2208_v54 }
 0x155   :  { %12122 = vmatpush1.bf16.msra.mxu0 %v14697_v60  ;;  %v14761_v60 = vcombine.low %v2204_v53, %v2208_v54  ;;  %v17664_v53 = vld [vmem:[%s23463_s4 + $0x4c8] sm:$0xff] }
 0x156   :  { %12123 = vmatprep.subr.bf16.mxu0 %v14706_v61  ;;  %11571 = vmatpush1.bf16.msra.mxu1 %v14727_v62  ;;  %v14770_v61 = vcombine.high %v2212_v59, %v2216_v55  ;;  %v2220_v62 = vld [vmem:[%s23463_s4 + $0x3c8] sm:$0xff]  ;;  %v17682_v55 = vld [vmem:[%s23463_s4 + $0x500] sm:$0xff] }
 0x157   :  { %11572 = vmatprep.subr.bf16.mxu1 %v14736_v1  ;;  %v14778_v1 = vcombine.high %v2220_v62, %v2224_v63  ;;  %v14777_v3 = vcombine.low %v2220_v62, %v2224_v63  ;;  %v17677_v59 = vld [vmem:[%s23463_s4 + $0x4e8] sm:$0xff]  ;;  %v17750_v63 = vld [vmem:[%s23463_s4 + $0x560] sm:$0xff] }
 0x158   :  { %23536 = vst [vmem:[#allocation6_spill] sm:$0xff] %v17750_v63 }
 0x159   :  { %12124 = vmatpush1.bf16.msra.mxu0 %v14705_v5  ;;  %v365_v5 = vshrl.u32 %v27_v21, 7 }
 0x15a   :  { %12125 = vmatprep.subr.bf16.mxu0 %v14714_v6  ;;  %11573 = vmatpush1.bf16.msra.mxu1 %v14735_v7  ;;  %v14648_v6 = vld.sshfl [vmem:[%s23464_s0] sm:$0xff pattern:$0x75316420]  ;;  %v14649_v7 = vld.sshfl [vmem:[%s23464_s0 + $0x8] sm:$0xff pattern:$0x75316420] }
 0x15b   :  { %11574 = vmatprep.subr.bf16.mxu1 %v14744_v9  ;;  %v17544_v46 = vsub.s32 0, %v365_v5  ;;  %v17546_v8 = vsub.s32 2, %v365_v5  ;;  %v356_v9 = vld [vmem:[%s23465_s3] sm:$0xff]  ;;  %v17551_v10 = vcombine.low %v14648_v6, %v14649_v7  ;;  %v17553_v37 = vsub.s32 1, %v365_v5 }
 0x15c   :  { %v17555_v21 = vsub.s32 3, %v365_v5  ;;  %v17571_v16 = vsub.s32 7, %v365_v5 }
 0x15d   :  { %12126 = vmatpush1.bf16.msra.mxu0 %v14713_v11  ;;  %v17557_v11 = vcombine.high %v14648_v6, %v14649_v7  ;;  %v17564_v2 = vrot.slane %v356_v9, %v17544_v46  ;;  %v17567_v14 = vrot.slane %v356_v9, %v17546_v8  ;;  %v17755_v7 = vld [vmem:[%s23463_s4 + $0x548] sm:$0xff] }
 0x15e   :  { %12127 = vmatprep.subr.bf16.mxu0 %v14722_v12  ;;  %11575 = vmatpush1.bf16.msra.mxu1 %v14743_v13  ;;  %v17559_v12 = vsub.s32 4, %v365_v5  ;;  %v17561_v13 = vsub.s32 6, %v365_v5  ;;  %23537 = vst [vmem:[#allocation7_spill] sm:$0xff] %v17755_v7 }
 0x15f   :  { %11576 = vmatprep.subr.bf16.mxu1 %v14752_v15  ;;  %v17569_v15 = vsub.s32 5, %v365_v5  ;;  %v17724_v5 = vld [vmem:[%s23465_s3 + $0x8] sm:$0xff] }
 0x160   :  { %v17621_v44 = vrot.slane %v356_v9, %v17559_v12  ;;  %v17624_v45 = vrot.slane %v356_v9, %v17561_v13  ;;  %v17779_v54 = vrot.slane %v17724_v5, %v17546_v8  ;;  %v17787_v6 = vrot.slane %v17724_v5, %v17555_v21 }
 0x161   :  { %12128 = vmatpush1.bf16.msra.mxu0 %v14721_v19  ;;  %v17644_v24 = vrot.slane %v356_v9, %v17569_v15  ;;  %v17849_v19 = vld [vmem:[%s23463_s4 + $0x5c8] sm:$0xff] }
 0x162   :  { %12129 = vmatprep.subr.bf16.mxu0 %v14730_v18  ;;  %11577 = vmatpush1.bf16.msra.mxu1 %v14751_v20  ;;  %v17578_v18 = vrot.slane %v356_v9, %v17553_v37  ;;  %v17581_v20 = vrot.slane %v356_v9, %v17555_v21  ;;  %23541 = vst [vmem:[#allocation11_spill] sm:$0xff] %v17779_v54  ;;  %23543 = vst [vmem:[#allocation13_spill] sm:$0xff] %v17787_v6 }
 0x163   :  { %11578 = vmatprep.subr.bf16.mxu1 %v14760_v26  ;;  %v17833_v26 = vld [vmem:[%s23463_s4 + $0x5c0] sm:$0xff] }
 0x165   :  { %12130 = vmatpush1.bf16.msra.mxu0 %v14729_v36 }
 0x166   :  { %12131 = vmatprep.subr.bf16.mxu0 %v14738_v38  ;;  %11579 = vmatpush1.bf16.msra.mxu1 %v14759_v39  ;;  %v17604_v38 = vld [vmem:[%s23463_s4 + $0x448] sm:$0xff] }
 0x167   :  { %11580 = vmatprep.subr.bf16.mxu1 %v14768_v42  ;;  %v17609_v39 = vld [vmem:[%s23463_s4 + $0x468] sm:$0xff] }
 0x169   :  { %12132 = vmatpush1.bf16.msra.mxu0 %v14737_v47  ;;  %v17629_v47 = vld [vmem:[%s23463_s4 + $0x4a0] sm:$0xff] }
 0x16a   :  { %12133 = vmatprep.subr.bf16.mxu0 %v14746_v48  ;;  %11581 = vmatpush1.bf16.msra.mxu1 %v14767_v50  ;;  %v17634_v48 = vld [vmem:[%s23463_s4 + $0x488] sm:$0xff] }
 0x16b   :  { %11582 = vmatprep.subr.bf16.mxu1 %v14776_v43  ;;  %v17639_v50 = vld [vmem:[%s23463_s4 + $0x4a8] sm:$0xff]  ;;  %v17647_v43 = vrot.slane %v356_v9, %v17571_v16 }
 0x16c   :  { %v17714_v9 = vld [vmem:[%s23463_s4 + $0x508] sm:$0xff] }
 0x16d   :  { %12134 = vmatpush1.bf16.msra.mxu0 %v14745_v52  ;;  %23533 = vst [vmem:[#allocation3_spill] sm:$0xff] %v17714_v9  ;;  %v17799_v52 = vld [vmem:[%s23463_s4 + $0x588] sm:$0xff] }
 0x16e   :  { %12135 = vmatprep.subr.bf16.mxu0 %v14754_v49  ;;  %11583 = vmatpush1.bf16.msra.mxu1 %v14775_v51  ;;  %v17654_v49 = vld [vmem:[%s23463_s4 + $0x4c0] sm:$0xff]  ;;  %23545 = vst [vmem:[#allocation15_spill] sm:$0xff] %v17799_v52  ;;  %v23547_v52 = vrot.slane %v17551_v10, %v17546_v8 }
 0x16f   :  { %11595 = vmatprep.subr.bf16.mxu1 %v14784_v56  ;;  %v17659_v51 = vld [vmem:[%s23463_s4 + $0x4e0] sm:$0xff] }
 0x171   :  { %12136 = vmatpush1.bf16.msra.mxu0 %v14753_v57  ;;  %v17760_v57 = vld [vmem:[%s23463_s4 + $0x568] sm:$0xff] }
 0x172   :  { %12137 = vmatprep.subr.bf16.mxu0 %v14762_v58  ;;  %23538 = vst [vmem:[#allocation8_spill] sm:$0xff] %v17760_v57  ;;  %v17775_v58 = vld [vmem:[%s23463_s4 + $0x580] sm:$0xff] }
 0x173   :  { %23540 = vst [vmem:[#allocation10_spill] sm:$0xff] %v17775_v58  ;;  %v17865_v58 = vld [vmem:[%s23463_s4 + $0x600] sm:$0xff] }
 0x174   :  { %v17870_v57 = vld [vmem:[%s23463_s4 + $0x620] sm:$0xff] }
 0x175   :  { %12138 = vmatpush1.bf16.msra.mxu0 %v14761_v60  ;;  %v17687_v60 = vld [vmem:[%s23463_s4 + $0x520] sm:$0xff] }
 0x176   :  { %12139 = vmatprep.subr.bf16.mxu0 %v14770_v61  ;;  %23532 = vst [vmem:[#allocation2_spill] sm:$0xff] %v17687_v60  ;;  %v17770_v61 = vrot.slane %v17724_v5, %v17544_v46 }
 0x178   :  { %23539 = vst [vmem:[#allocation9_spill] sm:$0xff] %v17770_v61 }
 0x179   :  { %12140 = vmatpush1.bf16.msra.mxu0 %v14769_v27  ;;  %v17737_v27 = vld [vmem:[%s23463_s4 + $0x540] sm:$0xff] }
 0x17a   :  { %12141 = vmatprep.subr.bf16.mxu0 %v14778_v1  ;;  %v14650_v1 = vld.sshfl [vmem:[%s23464_s0 + $0x10] sm:$0xff pattern:$0x75316420]  ;;  %23535 = vst [vmem:[#allocation5_spill] sm:$0xff] %v17737_v27 }
 0x17d   :  { %12142 = vmatpush1.bf16.msra.mxu0 %v14777_v3  ;;  %v14651_v3 = vld.sshfl [vmem:[%s23464_s0 + $0x18] sm:$0xff pattern:$0x75316420] }
 0x17e   :  { %12154 = vmatprep.subr.bf16.mxu0 %v14786_v4  ;;  %v17745_v56 = vcombine.low %v14650_v1, %v14651_v3  ;;  %v17783_v4 = vrot.slane %v17724_v5, %v17553_v37  ;;  %v17789_v62 = vcombine.high %v14650_v1, %v14651_v3 }
 0x180   :  { %23542 = vst [vmem:[#allocation12_spill] sm:$0xff] %v17783_v4 }
 0x1b3   :  { %v1031_v36 = vpop.f32.mrb[0].mxu0  ;;  %v1074_v1 = vpop.f32.mrb[0].mxu1 }
 0x1b4   :  { %v1032_v34 = vadd.f32 %v1031_v36, %v17564_v2  ;;  %v1075_v33 = vadd.f32 %v1074_v1, %v17567_v14  ;;  %v1033_v17 = vpop.f32.mrb[1].mxu0  ;;  %v1076_v3 = vpop.f32.mrb[1].mxu1  ;;  %v17854_v36 = vld [vmem:[%s23463_s4 + $0x5e8] sm:$0xff] }
 0x1b5   :  { %v1034_v1 = vadd.f32 %v1033_v17, %v17578_v18  ;;  %v1077_v42 = vadd.f32 %v1076_v3, %v17581_v20  ;;  %v1035_v31 = vpop.f32.mrb[2].mxu0  ;;  %v1078_v35 = vpop.f32.mrb[2].mxu1 }
 0x1b6   :  { %vm1554_vm12 = vcmp.ge.f32.partialorder %v1032_v34, 0.0  ;;  %v1604_v17 = vmul.f32 0.01, %v1032_v34  ;;  %vm1556_vm13 = vcmp.ge.f32.partialorder %v1075_v33, 0.0  ;;  %v1606_v3 = vmul.f32 0.01, %v1075_v33 }
 0x1b7   :  { %v1605_v6 = vmul.f32 0.01, %v1034_v1  ;;  %v1036_v4 = vadd.f32 %v1035_v31, %v17564_v2  ;;  %v1079_v54 = vadd.f32 %v1078_v35, %v17567_v14  ;;  %v1037_v61 = vpop.f32.mrb[3].mxu0  ;;  %v1080_v0 = vpop.f32.mrb[3].mxu1  ;;  %vm1555_vm14 = vcmp.ge.f32.partialorder %v1034_v1, 0.0 }
 0x1b8   :  { %v1656_v27 = vsel %vm1556_vm13, %v1075_v33, %v1606_v3  ;;  %v1654_v9 = vsel %vm1554_vm12, %v1032_v34, %v1604_v17  ;;  %vm1557_vm15 = vcmp.ge.f32.partialorder %v1077_v42, 0.0  ;;  %v1607_v23 = vmul.f32 0.01, %v1077_v42  ;;  %v17897_v17 = vld [vmem:[%s23463_s4 + $0x608] sm:$0xff] }
 0x1b9   :  { %v2026_v60 = vmul.f32 %v23547_v52, %v1656_v27  ;;  %vm1579_vm0 = vcmp.ge.f32.partialorder %v1036_v4, 0.0  ;;  %v1629_v33 = vmul.f32 0.01, %v1036_v4  ;;  %vm1581_vm1 = vcmp.ge.f32.partialorder %v1079_v54, 0.0 }
 0x1ba   :  { %v1631_v3 = vmul.f32 0.01, %v1079_v54  ;;  %v1038_v2 = vadd.f32 %v1037_v61, %v17578_v18  ;;  %v1081_v35 = vadd.f32 %v1080_v0, %v17581_v20  ;;  %v23548_v34 = vrot.slane %v17551_v10, %v17544_v46  ;;  %v17902_v18 = vld [vmem:[%s23463_s4 + $0x628] sm:$0xff] }
 0x1bb   :  { %v1655_v31 = vsel %vm1555_vm14, %v1034_v1, %v1605_v6  ;;  %v1679_v52 = vsel %vm1579_vm0, %v1036_v4, %v1629_v33  ;;  %v23549_v0 = vrot.slane %v17557_v11, %v17544_v46  ;;  %v1657_v6 = vsel %vm1557_vm15, %v1077_v42, %v1607_v23 }
 0x1bc   :  { %v2024_v14 = vmul.f32 %v23548_v34, %v1654_v9  ;;  %v1681_v61 = vsel %vm1581_vm1, %v1079_v54, %v1631_v3  ;;  %vm1580_vm2 = vcmp.ge.f32.partialorder %v1038_v2, 0.0  ;;  %v1630_v4 = vmul.f32 0.01, %v1038_v2 }
 0x1bd   :  { %v2049_v20 = vmul.f32 %v23549_v0, %v1679_v52  ;;  %v23550_v9 = vrot.slane %v17557_v11, %v17546_v8  ;;  %vm1582_vm3 = vcmp.ge.f32.partialorder %v1081_v35, 0.0  ;;  %v1632_v33 = vmul.f32 0.01, %v1081_v35 }
 0x1be   :  { %v1680_v34 = vsel %vm1580_vm2, %v1038_v2, %v1630_v4  ;;  %v23552_v54 = vrot.slane %v17551_v10, %v17553_v37  ;;  %v23553_v42 = vrot.slane %v17557_v11, %v17553_v37  ;;  %v17926_v2 = vld [vmem:[%s23463_s4 + $0x640] sm:$0xff]  ;;  %v23558_v4 = vrot.slane %v17557_v11, %v17555_v21 }
 0x1bf   :  { %v2051_v1 = vmul.f32 %v23550_v9, %v1681_v61  ;;  %v17911_v7 = vpack.c.bf16 %v2049_v20, %v2024_v14  ;;  %v1682_v0 = vsel %vm1582_vm3, %v1081_v35, %v1632_v33  ;;  %23554 = vst [vmem:[#allocation18_spill] sm:$0xff] %v17926_v2  ;;  %v17931_v14 = vld [vmem:[%s23463_s4 + $0x660] sm:$0xff]  ;;  %v17943_v9 = vrot.slane %v17724_v5, %v17559_v12 }
 0x1c0   :  { %v2025_v3 = vmul.f32 %v23552_v54, %v1655_v31  ;;  %v2050_v23 = vmul.f32 %v23553_v42, %v1680_v34  ;;  %23555 = vst [vmem:[#allocation19_spill] sm:$0xff] %v17931_v14  ;;  %v23557_v31 = vrot.slane %v17551_v10, %v17555_v21  ;;  %v2052_v35 = vmul.f32 %v23558_v4, %v1682_v0  ;;  %v17964_v54 = vld [vmem:[%s23463_s4 + $0x648] sm:$0xff] }
 0x1c1   :  { %23551 = vst [vmem:[#allocation17_spill] sm:$0xff] %v17911_v7  ;;  %v17933_v20 = vpack.c.bf16 %v2051_v1, %v2026_v60  ;;  %v17947_v33 = vrot.slane %v17724_v5, %v17561_v13  ;;  %v17959_v1 = vrot.slane %v17724_v5, %v17571_v16  ;;  %v23565_v14 = vrot.slane %v17551_v10, %v17561_v13 }
 0x1c2   :  { %v2027_v61 = vmul.f32 %v23557_v31, %v1657_v6  ;;  %v17949_v34 = vpack.c.bf16 %v2050_v23, %v2025_v3  ;;  %v17955_v6 = vrot.slane %v17724_v5, %v17569_v15  ;;  %v17969_v3 = vld [vmem:[%s23463_s4 + $0x668] sm:$0xff] }
 0x1c3   :  { %23556 = vst [vmem:[#allocation20_spill] sm:$0xff] %v17933_v20  ;;  %v1117_v42 = vpop.f32.mrb[4].mxu0  ;;  %v1160_v23 = vpop.f32.mrb[4].mxu1 }
 0x1c4   :  { %23559 = vst [vmem:[#allocation21_spill] sm:$0xff] %v17949_v34  ;;  %v17971_v0 = vpack.c.bf16 %v2052_v35, %v2027_v61  ;;  %11584 = vmatprep.mubr.bf16.mxu1 %v17949_v34  ;;  %12143 = vmatprep.mubr.bf16.mxu0 %v17949_v34  ;;  %v1118_v60 = vadd.f32 %v1117_v42, %v17621_v44  ;;  %v1119_v52 = vpop.f32.mrb[5].mxu0  ;;  %v1162_v61 = vpop.f32.mrb[5].mxu1 }
 0x1c5   :  { %v1161_v27 = vadd.f32 %v1160_v23, %v17624_v45  ;;  %11585 = vmatmul.mubr.bf16.vlgmr.msra.gmra.mrb[24].mxu1 %v17911_v7  ;;  %12144 = vmatmul.mubr.bf16.vlgmr.msra.gmra.mrb[28].mxu0 %v17911_v7  ;;  %v1120_v5 = vadd.f32 %v1119_v52, %v17644_v24  ;;  %v1163_v31 = vadd.f32 %v1162_v61, %v17647_v43  ;;  %v1121_v4 = vpop.f32.mrb[6].mxu0  ;;  %v1164_v63 = vpop.f32.mrb[6].mxu1 }
 0x1c6   :  { %23560 = vst [vmem:[#allocation22_spill] sm:$0xff] %v17971_v0  ;;  %v23561_v23 = vcombine.low %v17380_v22, %v17385_v30  ;;  %v23562_v35 = vcombine.low %v17390_v25, %v17401_v32  ;;  %vm1558_vm4 = vcmp.ge.f32.partialorder %v1118_v60, 0.0  ;;  %v1608_v34 = vmul.f32 0.01, %v1118_v60  ;;  %11627 = vmatprep.mubr.bf16.mxu1 %v17971_v0  ;;  %12186 = vmatprep.mubr.bf16.mxu0 %v17971_v0  ;;  %v1123_v32 = vpop.f32.mrb[7].mxu0 }
 0x1c7   :  { %vm1560_vm5 = vcmp.ge.f32.partialorder %v1161_v27, 0.0  ;;  %v1610_v7 = vmul.f32 0.01, %v1161_v27  ;;  %vm1559_vm6 = vcmp.ge.f32.partialorder %v1120_v5, 0.0  ;;  %v1609_v52 = vmul.f32 0.01, %v1120_v5 }
 0x1c8   :  { %11596 = vmatpush1.bf16.msra.mxu1 %v23561_v23  ;;  %12155 = vmatpush1.bf16.msra.mxu0 %v23562_v35  ;;  %vm1561_vm7 = vcmp.ge.f32.partialorder %v1163_v31, 0.0  ;;  %v1611_v61 = vmul.f32 0.01, %v1163_v31  ;;  %v1658_v42 = vsel %vm1558_vm4, %v1118_v60, %v1608_v34  ;;  %v1122_v22 = vadd.f32 %v1121_v4, %v17621_v44  ;;  %v1166_v35 = vpop.f32.mrb[7].mxu1 }
 0x1c9   :  { %v1660_v20 = vsel %vm1560_vm5, %v1161_v27, %v1610_v7  ;;  %v1165_v30 = vadd.f32 %v1164_v63, %v17624_v45  ;;  %v23563_v25 = vcombine.high %v17586_v28, %v17591_v29  ;;  %v23564_v23 = vrot.slane %v17551_v10, %v17559_v12 }
 0x1ca   :  { %v18010_v2 = vmul.f32 %v23565_v14, %v1660_v20  ;;  %v1659_v7 = vsel %vm1559_vm6, %v1120_v5, %v1609_v52  ;;  %v1661_v27 = vsel %vm1561_vm7, %v1163_v31, %v1611_v61  ;;  %v23566_v44 = vcombine.high %v17604_v38, %v17609_v39 }
 0x1cb   :  { %11597 = vmatprep.subr.bf16.mxu1 %v23563_v25  ;;  %v2028_v0 = vmul.f32 %v23564_v23, %v1658_v42  ;;  %v23567_v45 = vrot.slane %v17551_v10, %v17569_v15  ;;  %v23568_v34 = vrot.slane %v17551_v10, %v17571_v16  ;;  %vm1583_vm8 = vcmp.ge.f32.partialorder %v1122_v22, 0.0  ;;  %v18062_v23 = vld [vmem:[%s23463_s4 + $0x6a8] sm:$0xff] }
 0x1cc   :  { %12156 = vmatprep.subr.bf16.mxu0 %v23566_v44  ;;  %v1633_v4 = vmul.f32 0.01, %v1122_v22  ;;  %v23569_v14 = vcombine.low %v17586_v28, %v17591_v29  ;;  %v23570_v20 = vcombine.low %v17604_v38, %v17609_v39  ;;  %vm1585_vm9 = vcmp.ge.f32.partialorder %v1165_v30, 0.0  ;;  %v18038_v28 = vld [vmem:[%s23463_s4 + $0x680] sm:$0xff] }
 0x1cd   :  { %v2029_v63 = vmul.f32 %v23567_v45, %v1659_v7  ;;  %v2031_v60 = vmul.f32 %v23568_v34, %v1661_v27  ;;  %v1635_v31 = vmul.f32 0.01, %v1165_v30  ;;  %v1124_v5 = vadd.f32 %v1123_v32, %v17644_v24  ;;  %v18043_v29 = vld [vmem:[%s23463_s4 + $0x6a0] sm:$0xff] }
 0x1ce   :  { %11598 = vmatpush1.bf16.msra.mxu1 %v23569_v14  ;;  %12157 = vmatpush1.bf16.msra.mxu0 %v23570_v20  ;;  %v1167_v42 = vadd.f32 %v1166_v35, %v17647_v43  ;;  %v23571_v10 = vcombine.high %v17614_v40, %v17629_v47  ;;  %v23572_v52 = vcombine.high %v17634_v48, %v17639_v50 }
 0x1cf   :  { %v1683_v38 = vsel %vm1583_vm8, %v1122_v22, %v1633_v4  ;;  %v23573_v61 = vrot.slane %v17557_v11, %v17559_v12  ;;  %v1685_v32 = vsel %vm1585_vm9, %v1165_v30, %v1635_v31  ;;  %vm1584_vm11 = vcmp.ge.f32.partialorder %v1124_v5, 0.0  ;;  %v18057_v22 = vld [vmem:[%s23463_s4 + $0x688] sm:$0xff] }
 0x1d0   :  { %11599 = vmatprep.subr.bf16.mxu1 %v23571_v10  ;;  %12158 = vmatprep.subr.bf16.mxu0 %v23572_v52  ;;  %v1634_v35 = vmul.f32 0.01, %v1124_v5  ;;  %v23574_v7 = vrot.slane %v17557_v11, %v17561_v13  ;;  %vm1586_vm12 = vcmp.ge.f32.partialorder %v1167_v42, 0.0  ;;  %v1636_v44 = vmul.f32 0.01, %v1167_v42 }
 0x1d1   :  { %v2053_v25 = vmul.f32 %v23573_v61, %v1683_v38  ;;  %v23575_v30 = vcombine.low %v17614_v40, %v17629_v47  ;;  %v23576_v45 = vcombine.low %v17634_v48, %v17639_v50  ;;  %v23577_v14 = vcombine.high %v17654_v49, %v17659_v51  ;;  %v18088_v47 = vld [vmem:[%s23463_s4 + $0x6c0] sm:$0xff]  ;;  %v18107_v61 = vld [vmem:[%s23463_s4 + $0x6c8] sm:$0xff] }
 0x1d2   :  { %v18067_v27 = vmul.f32 %v23574_v7, %v1685_v32  ;;  %v1684_v4 = vsel %vm1584_vm11, %v1124_v5, %v1634_v35  ;;  %v23578_v20 = vcombine.high %v17664_v53, %v17677_v59  ;;  %v18093_v48 = vld [vmem:[%s23463_s4 + $0x6e0] sm:$0xff]  ;;  %v23580_v31 = vrot.slane %v17557_v11, %v17569_v15  ;;  %23581 = vst [vmem:[#allocation24_spill] sm:$0xff] %v18107_v61  ;;  %v23600_v35 = vld [vmem:[#allocation12_spill] sm:$0xff]  ;;  %v23601_v7 = vld [vmem:[#allocation13_spill] sm:$0xff] }
 0x1d3   :  { %11600 = vmatpush1.bf16.msra.mxu1 %v23575_v30  ;;  %12159 = vmatpush1.bf16.msra.mxu0 %v23576_v45  ;;  %v18095_v50 = vpack.c.bf16 %v2053_v25, %v2028_v0  ;;  %v1686_v10 = vsel %vm1586_vm12, %v1167_v42, %v1636_v44  ;;  %v18112_v0 = vld [vmem:[%s23463_s4 + $0x6e8] sm:$0xff]  ;;  %v23583_v25 = vrot.slane %v17557_v11, %v17571_v16  ;;  %v18126_v44 = vld [vmem:[%s23463_s4 + $0x700] sm:$0xff] }
 0x1d4   :  { %11601 = vmatprep.subr.bf16.mxu1 %v23577_v14  ;;  %12160 = vmatprep.subr.bf16.mxu0 %v23578_v20  ;;  %v2054_v5 = vmul.f32 %v23580_v31, %v1684_v4  ;;  %23582 = vst [vmem:[#allocation25_spill] sm:$0xff] %v18112_v0  ;;  %23584 = vst [vmem:[#allocation26_spill] sm:$0xff] %v18126_v44  ;;  %v18131_v30 = vld [vmem:[%s23463_s4 + $0x720] sm:$0xff]  ;;  %v23586_v11 = vcombine.low %v17654_v49, %v17659_v51  ;;  %v18146_v20 = vld [vmem:[%s23463_s4 + $0x708] sm:$0xff] }
 0x1d5   :  { %23579 = vst [vmem:[#allocation23_spill] sm:$0xff] %v18095_v50  ;;  %v2056_v42 = vmul.f32 %v23583_v25, %v1686_v10  ;;  %23585 = vst [vmem:[#allocation27_spill] sm:$0xff] %v18131_v30  ;;  %v23587_v45 = vcombine.low %v17664_v53, %v17677_v59  ;;  %v18151_v49 = vld [vmem:[%s23463_s4 + $0x728] sm:$0xff]  ;;  %v23591_v53 = vld [vmem:[#allocation2_spill] sm:$0xff] }
 0x1d6   :  { %23588 = vst [vmem:[#allocation28_spill] sm:$0xff] %v18146_v20  ;;  %23589 = vst [vmem:[#allocation29_spill] sm:$0xff] %v18151_v49  ;;  %v18153_v51 = vpack.c.bf16 %v2054_v5, %v2029_v63  ;;  %v23592_v59 = vcombine.high %v17682_v55, %v23591_v53  ;;  %v23593_v31 = vld [vmem:[#allocation3_spill] sm:$0xff]  ;;  %v23594_v10 = vld [vmem:[#allocation4_spill] sm:$0xff] }
 0x1d7   :  { %11602 = vmatpush1.bf16.msra.mxu1 %v23586_v11  ;;  %12161 = vmatpush1.bf16.msra.mxu0 %v23587_v45  ;;  %v23595_v25 = vcombine.high %v23593_v31, %v23594_v10  ;;  %v1203_v11 = vpop.f32.mrb[8].mxu0  ;;  %v1246_v45 = vpop.f32.mrb[8].mxu1  ;;  %v18168_v63 = vld [vmem:[%s23465_s3 + $0x10] sm:$0xff]  ;;  %v18170_v5 = vpack.c.bf16 %v2056_v42, %v2031_v60  ;;  %v23599_v14 = vld [vmem:[#allocation11_spill] sm:$0xff]  ;;  %v23606_v42 = vld [vmem:[#allocation5_spill] sm:$0xff] }
 0x1d8   :  { %23590 = vst [vmem:[#allocation30_spill] sm:$0xff] %v18153_v51  ;;  %11603 = vmatprep.subr.bf16.mxu1 %v23592_v59  ;;  %23596 = vst [vmem:[#allocation2_spill] sm:$0xff] %v18168_v63  ;;  %v23598_v59 = vld [vmem:[#allocation9_spill] sm:$0xff]  ;;  %v1247_v38 = vadd.f32 %v1246_v45, %v23599_v14  ;;  %v1248_v52 = vpop.f32.mrb[9].mxu1  ;;  %v23603_v45 = vcombine.low %v23593_v31, %v23594_v10  ;;  %v18196_v60 = vrot.slane %v18168_v63, %v17546_v8  ;;  %v23607_v4 = vld [vmem:[#allocation6_spill] sm:$0xff] }
 0x1d9   :  { %12162 = vmatprep.subr.bf16.mxu0 %v23595_v25  ;;  %23597 = vst [vmem:[#allocation3_spill] sm:$0xff] %v18170_v5  ;;  %v1204_v32 = vadd.f32 %v1203_v11, %v23598_v59  ;;  %v1205_v25 = vpop.f32.mrb[9].mxu0  ;;  %v1249_v34 = vadd.f32 %v1248_v52, %v23601_v7  ;;  %v1250_v43 = vpop.f32.mrb[10].mxu1  ;;  %v23602_v11 = vcombine.low %v17682_v55, %v23591_v53  ;;  %v23609_v53 = vld [vmem:[#allocation7_spill] sm:$0xff]  ;;  %v23618_v30 = vld [vmem:[#allocation10_spill] sm:$0xff] }
 0x1da   :  { %v1206_v24 = vadd.f32 %v1205_v25, %v23600_v35  ;;  %v1207_v39 = vpop.f32.mrb[10].mxu0  ;;  %vm1564_vm13 = vcmp.ge.f32.partialorder %v1247_v38, 0.0  ;;  %v1614_v25 = vmul.f32 0.01, %v1247_v38  ;;  %v18192_v52 = vrot.slane %v18168_v63, %v17544_v46  ;;  %23605 = vst [vmem:[#allocation9_spill] sm:$0xff] %v18196_v60  ;;  %v1252_v60 = vpop.f32.mrb[11].mxu1 }
 0x1db   :  { %11604 = vmatpush1.bf16.msra.mxu1 %v23602_v11  ;;  %12163 = vmatpush1.bf16.msra.mxu0 %v23603_v45  ;;  %vm1565_vm14 = vcmp.ge.f32.partialorder %v1249_v34, 0.0  ;;  %v1615_v40 = vmul.f32 0.01, %v1249_v34  ;;  %v23608_v55 = vcombine.high %v23606_v42, %v23607_v4  ;;  %v23610_v11 = vld [vmem:[#allocation8_spill] sm:$0xff]  ;;  %v18211_v45 = vrot.slane %v18168_v63, %v17553_v37  ;;  %v23619_v44 = vld [vmem:[#allocation14_spill] sm:$0xff] }
 0x1dc   :  { %23604 = vst [vmem:[#allocation4_spill] sm:$0xff] %v18192_v52  ;;  %v23611_v31 = vcombine.high %v23609_v53, %v23610_v11  ;;  %v18207_v10 = vld.sshfl [vmem:[%s23464_s0 + $0x20] sm:$0xff pattern:$0x75316420]  ;;  %v18215_v5 = vrot.slane %v18168_v63, %v17555_v21  ;;  %vm1562_vm15 = vcmp.ge.f32.partialorder %v1204_v32, 0.0  ;;  %v1664_v50 = vsel %vm1564_vm13, %v1247_v38, %v1614_v25 }
 0x1dd   :  { %11605 = vmatprep.subr.bf16.mxu1 %v23608_v55  ;;  %23612 = vst [vmem:[#allocation11_spill] sm:$0xff] %v18211_v45  ;;  %v1208_v55 = vadd.f32 %v1207_v39, %v23598_v59  ;;  %v1251_v51 = vadd.f32 %v1250_v43, %v23599_v14  ;;  %v18222_v52 = vld.sshfl [vmem:[%s23464_s0 + $0x28] sm:$0xff pattern:$0x75316420]  ;;  %v1612_v49 = vmul.f32 0.01, %v1204_v32  ;;  %v23614_v45 = vrot.slane %v17745_v56, %v17546_v8 }
 0x1de   :  { %12164 = vmatprep.subr.bf16.mxu0 %v23611_v31  ;;  %23613 = vst [vmem:[#allocation12_spill] sm:$0xff] %v18215_v5  ;;  %v1209_v31 = vpop.f32.mrb[11].mxu0  ;;  %v1613_v63 = vmul.f32 0.01, %v1206_v24  ;;  %v1665_v5 = vsel %vm1565_vm14, %v1249_v34, %v1615_v40  ;;  %v18231_v39 = vld [vmem:[%s23463_s4 + $0x740] sm:$0xff]  ;;  %vm1563_vm0 = vcmp.ge.f32.partialorder %v1206_v24, 0.0  ;;  %v23615_v38 = vrot.slane %v17745_v56, %v17555_v21 }
 0x1df   :  { %v2034_v20 = vmul.f32 %v23614_v45, %v1664_v50  ;;  %v18236_v43 = vld [vmem:[%s23463_s4 + $0x760] sm:$0xff]  ;;  %vm1587_vm1 = vcmp.ge.f32.partialorder %v1208_v55, 0.0  ;;  %v1637_v50 = vmul.f32 0.01, %v1208_v55  ;;  %v23616_v34 = vcombine.low %v23606_v42, %v23607_v4 }
 0x1e0   :  { %v2035_v14 = vmul.f32 %v23615_v38, %v1665_v5  ;;  %v23617_v40 = vcombine.low %v23609_v53, %v23610_v11  ;;  %vm1589_vm2 = vcmp.ge.f32.partialorder %v1251_v51, 0.0  ;;  %v1639_v59 = vmul.f32 0.01, %v1251_v51  ;;  %v23621_v5 = vld [vmem:[#allocation15_spill] sm:$0xff]  ;;  %v23622_v38 = vld [vmem:[#allocation16_spill] sm:$0xff] }
 0x1e1   :  { %11606 = vmatpush1.bf16.msra.mxu1 %v23616_v34  ;;  %v1210_v25 = vadd.f32 %v1209_v31, %v23600_v35  ;;  %v1253_v45 = vadd.f32 %v1252_v60, %v23601_v7  ;;  %v23620_v0 = vcombine.high %v23618_v30, %v23619_v44  ;;  %v23623_v61 = vcombine.high %v23621_v5, %v23622_v38  ;;  %v18266_v7 = vld [vmem:[%s23463_s4 + $0x748] sm:$0xff] }
 0x1e2   :  { %12165 = vmatpush1.bf16.msra.mxu0 %v23617_v40  ;;  %v1687_v4 = vsel %vm1587_vm1, %v1208_v55, %v1637_v50  ;;  %v18257_v42 = vcombine.low %v18207_v10, %v18222_v52  ;;  %v14888_v35 = vcombine.high %v18231_v39, %v18236_v43  ;;  %v1689_v60 = vsel %vm1589_vm2, %v1251_v51, %v1639_v59 }
 0x1e3   :  { %11607 = vmatprep.subr.bf16.mxu1 %v23620_v0  ;;  %12166 = vmatprep.subr.bf16.mxu0 %v23623_v61  ;;  %v18271_v61 = vld [vmem:[%s23463_s4 + $0x768] sm:$0xff]  ;;  %v1663_v0 = vsel %vm1563_vm0, %v1206_v24, %v1613_v63  ;;  %vm1588_vm3 = vcmp.ge.f32.partialorder %v1210_v25, 0.0  ;;  %v1638_v11 = vmul.f32 0.01, %v1210_v25  ;;  %v1662_v55 = vsel %vm1562_vm15, %v1204_v32, %v1612_v49 }
 0x1e4   :  { %v23624_v31 = vrot.slane %v17789_v62, %v17546_v8  ;;  %vm1590_vm4 = vcmp.ge.f32.partialorder %v1253_v45, 0.0  ;;  %v1640_v34 = vmul.f32 0.01, %v1253_v45  ;;  %v23625_v40 = vcombine.low %v23618_v30, %v23619_v44 }
 0x1e5   :  { %v23626_v53 = vcombine.low %v23621_v5, %v23622_v38  ;;  %v23627_v24 = vrot.slane %v17789_v62, %v17544_v46  ;;  %v1688_v63 = vsel %vm1588_vm3, %v1210_v25, %v1638_v11  ;;  %v23628_v32 = vcombine.high %v17833_v26, %v17844_v41 }
 0x1e6   :  { %v2059_v50 = vmul.f32 %v23624_v31, %v1689_v60  ;;  %11608 = vmatpush1.bf16.msra.mxu1 %v23625_v40  ;;  %v23629_v49 = vcombine.high %v17849_v19, %v17854_v36  ;;  %v23630_v30 = vrot.slane %v17745_v56, %v17553_v37  ;;  %v23631_v5 = vrot.slane %v17789_v62, %v17553_v37 }
 0x1e7   :  { %12167 = vmatpush1.bf16.msra.mxu0 %v23626_v53  ;;  %v2057_v51 = vmul.f32 %v23627_v24, %v1687_v4  ;;  %11609 = vmatprep.subr.bf16.mxu1 %v23628_v32  ;;  %v1690_v25 = vsel %vm1590_vm4, %v1253_v45, %v1640_v34  ;;  %v14890_v4 = vcombine.high %v18266_v7, %v18271_v61  ;;  %v18324_v24 = vld [vmem:[%s23463_s4 + $0x780] sm:$0xff]  ;;  %v1289_v32 = vpop.f32.mrb[12].mxu0 }
 0x1e8   :  { %12168 = vmatprep.subr.bf16.mxu0 %v23629_v49  ;;  %v2033_v59 = vmul.f32 %v23630_v30, %v1663_v0  ;;  %v2058_v38 = vmul.f32 %v23631_v5, %v1688_v63  ;;  %v23632_v53 = vrot.slane %v17745_v56, %v17544_v46  ;;  %v23633_v11 = vrot.slane %v17789_v62, %v17555_v21  ;;  %v18329_v63 = vld [vmem:[%s23463_s4 + $0x7a0] sm:$0xff]  ;;  %v1332_v49 = vpop.f32.mrb[12].mxu1 }
 0x1e9   :  { %v1849_v0 = vrot.slane %v18257_v42, %v17546_v8  ;;  %v23634_v45 = vcombine.low %v17833_v26, %v17844_v41  ;;  %v23635_v34 = vcombine.low %v17849_v19, %v17854_v36  ;;  %v18333_v26 = vpack.c.bf16 %v18067_v27, %v18010_v2 }
 0x1ea   :  { %v2032_v60 = vmul.f32 %v23632_v53, %v1662_v55  ;;  %v2060_v31 = vmul.f32 %v23633_v11, %v1690_v25  ;;  %v18335_v41 = vpack.c.bf16 %v2058_v38, %v2033_v59  ;;  %v23636_v19 = vcombine.high %v17865_v58, %v17870_v57  ;;  %v1291_v59 = vpop.f32.mrb[13].mxu0  ;;  %v1334_v38 = vpop.f32.mrb[13].mxu1 }
 0x1eb   :  { %11610 = vmatpush1.bf16.msra.mxu1 %v23634_v45  ;;  %12169 = vmatpush1.bf16.msra.mxu0 %v23635_v34  ;;  %v23637_v36 = vcombine.high %v17897_v17, %v17902_v18  ;;  %v18347_v25 = vpack.c.bf16 %v2059_v50, %v2034_v20  ;;  %v1290_v2 = vadd.f32 %v1289_v32, %v17943_v9  ;;  %v1336_v20 = vpop.f32.mrb[14].mxu1  ;;  %v23640_v32 = vld [vmem:[#allocation18_spill] sm:$0xff] }
 0x1ec   :  { %11611 = vmatprep.subr.bf16.mxu1 %v23636_v19  ;;  %v18343_v30 = vpack.c.bf16 %v2057_v51, %v2032_v60  ;;  %v18345_v5 = vpack.c.bf16 %v2060_v31, %v2035_v14  ;;  %v1333_v27 = vadd.f32 %v1332_v49, %v17947_v33  ;;  %v18355_v11 = vcombine.high %v18207_v10, %v18222_v52  ;;  %v1293_v60 = vpop.f32.mrb[14].mxu0  ;;  %v23641_v49 = vld [vmem:[#allocation19_spill] sm:$0xff] }
 0x1ed   :  { %12170 = vmatprep.subr.bf16.mxu0 %v23637_v36  ;;  %v1292_v51 = vadd.f32 %v1291_v59, %v17955_v6  ;;  %v1335_v14 = vadd.f32 %v1334_v38, %v17959_v1  ;;  %v23638_v45 = vcombine.low %v17865_v58, %v17870_v57  ;;  %v23639_v52 = vcombine.low %v17897_v17, %v17902_v18 }
 0x1ee   :  { %vm1566_vm5 = vcmp.ge.f32.partialorder %v1290_v2, 0.0  ;;  %v1616_v10 = vmul.f32 0.01, %v1290_v2  ;;  %vm1568_vm6 = vcmp.ge.f32.partialorder %v1333_v27, 0.0  ;;  %v1618_v34 = vmul.f32 0.01, %v1333_v27 }
 0x1ef   :  { %11612 = vmatpush1.bf16.msra.mxu1 %v23638_v45  ;;  %12171 = vmatpush1.bf16.msra.mxu0 %v23639_v52  ;;  %vm1567_vm7 = vcmp.ge.f32.partialorder %v1292_v51, 0.0  ;;  %v1617_v19 = vmul.f32 0.01, %v1292_v51  ;;  %vm1569_vm8 = vcmp.ge.f32.partialorder %v1335_v14, 0.0  ;;  %v1619_v36 = vmul.f32 0.01, %v1335_v14 }
 0x1f0   :  { %v23642_v59 = vcombine.high %v23640_v32, %v23641_v49  ;;  %v23643_v57 = vcombine.high %v17964_v54, %v17969_v3  ;;  %v1666_v58 = vsel %vm1566_vm5, %v1290_v2, %v1616_v10  ;;  %v1668_v38 = vsel %vm1568_vm6, %v1333_v27, %v1618_v34  ;;  %v1295_v45 = vpop.f32.mrb[15].mxu0  ;;  %v1338_v52 = vpop.f32.mrb[15].mxu1  ;;  %v18388_v2 = vld [vmem:[%s23463_s4 + $0x788] sm:$0xff] }
 0x1f1   :  { %v1294_v17 = vadd.f32 %v1293_v60, %v17943_v9  ;;  %v1337_v18 = vadd.f32 %v1336_v20, %v17947_v33  ;;  %v23644_v55 = vrot.slane %v17745_v56, %v17559_v12  ;;  %v23645_v50 = vrot.slane %v17745_v56, %v17561_v13  ;;  %v18393_v9 = vld [vmem:[%s23463_s4 + $0x7a8] sm:$0xff] }
 0x1f2   :  { %11613 = vmatprep.subr.bf16.mxu1 %v23642_v59  ;;  %12172 = vmatprep.subr.bf16.mxu0 %v23643_v57  ;;  %v1667_v31 = vsel %vm1567_vm7, %v1292_v51, %v1617_v19  ;;  %v1669_v44 = vsel %vm1569_vm8, %v1335_v14, %v1619_v36  ;;  %v23646_v33 = vrot.slane %v17745_v56, %v17569_v15  ;;  %v18432_v57 = vld [vmem:[%s23463_s4 + $0x7e0] sm:$0xff] }
 0x1f3   :  { %v2036_v40 = vmul.f32 %v23644_v55, %v1666_v58  ;;  %v18383_v59 = vmul.f32 %v23645_v50, %v1668_v38  ;;  %v23647_v27 = vrot.slane %v17745_v56, %v17571_v16  ;;  %vm1591_vm9 = vcmp.ge.f32.partialorder %v1294_v17, 0.0  ;;  %v18437_v58 = vld [vmem:[%s23463_s4 + $0x7c8] sm:$0xff] }
 0x1f4   :  { %v2037_v55 = vmul.f32 %v23646_v33, %v1667_v31  ;;  %v1641_v51 = vmul.f32 0.01, %v1294_v17  ;;  %v23648_v14 = vcombine.low %v23640_v32, %v23641_v49  ;;  %v23649_v20 = vcombine.low %v17964_v54, %v17969_v3  ;;  %v18427_v49 = vld [vmem:[%s23463_s4 + $0x7c0] sm:$0xff] }
 0x1f5   :  { %v2039_v60 = vmul.f32 %v23647_v27, %v1669_v44  ;;  %vm1593_vm11 = vcmp.ge.f32.partialorder %v1337_v18, 0.0  ;;  %v1643_v50 = vmul.f32 0.01, %v1337_v18  ;;  %v1296_v10 = vadd.f32 %v1295_v45, %v17955_v6  ;;  %v18453_v27 = vld [vmem:[%s23463_s4 + $0x7e8] sm:$0xff] }
 0x1f6   :  { %11614 = vmatpush1.bf16.msra.mxu1 %v23648_v14  ;;  %12173 = vmatpush1.bf16.msra.mxu0 %v23649_v20  ;;  %v1339_v31 = vadd.f32 %v1338_v52, %v17959_v1  ;;  %v23650_v56 = vcombine.high %v18038_v28, %v18043_v29  ;;  %v23651_v44 = vcombine.high %v18057_v22, %v18062_v23  ;;  %v23658_v14 = vld [vmem:[#allocation25_spill] sm:$0xff] }
 0x1f7   :  { %v1691_v34 = vsel %vm1591_vm9, %v1294_v17, %v1641_v51  ;;  %v23652_v1 = vrot.slane %v17789_v62, %v17559_v12  ;;  %v1693_v36 = vsel %vm1593_vm11, %v1337_v18, %v1643_v50  ;;  %vm1592_vm12 = vcmp.ge.f32.partialorder %v1296_v10, 0.0  ;;  %v18458_v51 = vld [vmem:[%s23463_s4 + $0x800] sm:$0xff] }
 0x1f8   :  { %11615 = vmatprep.subr.bf16.mxu1 %v23650_v56  ;;  %12174 = vmatprep.subr.bf16.mxu0 %v23651_v44  ;;  %v1642_v32 = vmul.f32 0.01, %v1296_v10  ;;  %v23653_v38 = vrot.slane %v17789_v62, %v17561_v13  ;;  %vm1594_vm13 = vcmp.ge.f32.partialorder %v1339_v31, 0.0  ;;  %v1644_v18 = vmul.f32 0.01, %v1339_v31  ;;  %v23668_v56 = vld [vmem:[#allocation29_spill] sm:$0xff] }
 0x1f9   :  { %v2061_v3 = vmul.f32 %v23652_v1, %v1691_v34  ;;  %v23654_v45 = vcombine.low %v18038_v28, %v18043_v29  ;;  %v23655_v52 = vcombine.low %v18057_v22, %v18062_v23  ;;  %v18463_v28 = vld [vmem:[%s23463_s4 + $0x820] sm:$0xff]  ;;  %v23656_v22 = vcombine.high %v18088_v47, %v18093_v48  ;;  %v23657_v23 = vld [vmem:[#allocation24_spill] sm:$0xff] }
 0x1fa   :  { %v2063_v17 = vmul.f32 %v23653_v38, %v1693_v36  ;;  %v1692_v29 = vsel %vm1592_vm12, %v1296_v10, %v1642_v32  ;;  %v23659_v20 = vcombine.high %v23657_v23, %v23658_v14  ;;  %v23660_v44 = vrot.slane %v17789_v62, %v17569_v15  ;;  %v18485_v32 = vld [vmem:[%s23463_s4 + $0x808] sm:$0xff] }
 0x1fb   :  { %11616 = vmatpush1.bf16.msra.mxu1 %v23654_v45  ;;  %12175 = vmatpush1.bf16.msra.mxu0 %v23655_v52  ;;  %v1694_v1 = vsel %vm1594_vm13, %v1339_v31, %v1644_v18  ;;  %v18490_v38 = vld [vmem:[%s23463_s4 + $0x828] sm:$0xff]  ;;  %v23661_v45 = vrot.slane %v17789_v62, %v17571_v16 }
 0x1fc   :  { %11617 = vmatprep.subr.bf16.mxu1 %v23656_v22  ;;  %12176 = vmatprep.subr.bf16.mxu0 %v23659_v20  ;;  %v2062_v34 = vmul.f32 %v23660_v44, %v1692_v29  ;;  %v23662_v22 = vcombine.low %v18088_v47, %v18093_v48  ;;  %v23663_v20 = vcombine.low %v23657_v23, %v23658_v14  ;;  %v23665_v18 = vld [vmem:[#allocation27_spill] sm:$0xff]  ;;  %v23667_v29 = vld [vmem:[#allocation28_spill] sm:$0xff]  ;;  %v1375_v47 = vpop.f32.mrb[16].mxu0  ;;  %v1418_v48 = vpop.f32.mrb[16].mxu1 }
 0x1fd   :  { %v2064_v31 = vmul.f32 %v23661_v45, %v1694_v1  ;;  %v18511_v1 = vpack.c.bf16 %v2061_v3, %v2036_v40  ;;  %v23664_v45 = vld [vmem:[#allocation26_spill] sm:$0xff]  ;;  %v23669_v50 = vcombine.high %v23667_v29, %v23668_v56  ;;  %v23671_v40 = vld [vmem:[#allocation4_spill] sm:$0xff]  ;;  %v23677_v19 = vcombine.low %v23667_v29, %v23668_v56 }
 0x1fe   :  { %v18509_v44 = vpack.c.bf16 %v2062_v34, %v2037_v55  ;;  %v23666_v10 = vcombine.high %v23664_v45, %v23665_v18  ;;  %v18524_v55 = vpack.c.bf16 %v2063_v17, %v18383_v59  ;;  %v1376_v3 = vadd.f32 %v1375_v47, %v23671_v40  ;;  %v23672_v34 = vld [vmem:[#allocation9_spill] sm:$0xff]  ;;  %v18542_v59 = vld [vmem:[%s23463_s4 + $0x860] sm:$0xff]  ;;  %v23674_v17 = vld [vmem:[#allocation11_spill] sm:$0xff] }
 0x1ff   :  { %11618 = vmatpush1.bf16.msra.mxu1 %v23662_v22  ;;  %12177 = vmatpush1.bf16.msra.mxu0 %v23663_v20  ;;  %v18521_v14 = vpack.c.bf16 %v2064_v31, %v2039_v60  ;;  %v1419_v22 = vadd.f32 %v1418_v48, %v23672_v34  ;;  %v1377_v20 = vpop.f32.mrb[17].mxu0  ;;  %v18537_v60 = vld [vmem:[%s23463_s4 + $0x840] sm:$0xff]  ;;  %v23675_v47 = vld [vmem:[#allocation12_spill] sm:$0xff]  ;;  %v23676_v33 = vcombine.low %v23664_v45, %v23665_v18 }
 0x200   :  { %11619 = vmatprep.subr.bf16.mxu1 %v23666_v10  ;;  %12178 = vmatprep.subr.bf16.mxu0 %v23669_v50  ;;  %23670 = vst [vmem:[#allocation13_spill] sm:$0xff] %v18524_v55  ;;  %v1420_v10 = vpop.f32.mrb[17].mxu1  ;;  %v23673_v50 = vld [vmem:[#allocation2_spill] sm:$0xff]  ;;  %v1378_v31 = vadd.f32 %v1377_v20, %v23674_v17  ;;  %v1379_v23 = vpop.f32.mrb[18].mxu0  ;;  %v1620_v56 = vmul.f32 0.01, %v1376_v3 }
 0x201   :  { %v18532_v52 = vrot.slane %v23673_v50, %v17559_v12  ;;  %v1421_v48 = vadd.f32 %v1420_v10, %v23675_v47  ;;  %v1422_v62 = vpop.f32.mrb[18].mxu1  ;;  %v18550_v54 = vrot.slane %v23673_v50, %v17561_v13  ;;  %vm1572_vm14 = vcmp.ge.f32.partialorder %v1419_v22, 0.0 }
 0x202   :  { %v1622_v20 = vmul.f32 0.01, %v1419_v22  ;;  %v18560_v10 = vrot.slane %v23673_v50, %v17569_v15  ;;  %v18564_v36 = vrot.slane %v23673_v50, %v17571_v16  ;;  %v1380_v29 = vadd.f32 %v1379_v23, %v23671_v40  ;;  %v1381_v50 = vpop.f32.mrb[19].mxu0  ;;  %v1424_v53 = vpop.f32.mrb[19].mxu1 }
 0x203   :  { %11620 = vmatpush1.bf16.msra.mxu1 %v23676_v33  ;;  %12179 = vmatpush1.bf16.msra.mxu0 %v23677_v19  ;;  %vm1573_vm15 = vcmp.ge.f32.partialorder %v1421_v48, 0.0  ;;  %v1623_v6 = vmul.f32 0.01, %v1421_v48  ;;  %v1423_v45 = vadd.f32 %v1422_v62, %v23672_v34  ;;  %vm1570_vm0 = vcmp.ge.f32.partialorder %v1376_v3, 0.0 }
 0x204   :  { %11621 = vmatprep.subr.bf16.mxu1 %v14888_v35  ;;  %12180 = vmatprep.subr.bf16.mxu0 %v14890_v4  ;;  %v1672_v18 = vsel %vm1572_vm14, %v1419_v22, %v1622_v20  ;;  %v1621_v4 = vmul.f32 0.01, %v1378_v31  ;;  %vm1571_vm1 = vcmp.ge.f32.partialorder %v1378_v31, 0.0  ;;  %v23678_v19 = vrot.slane %v18257_v42, %v17555_v21 }
 0x205   :  { %v2042_v35 = vmul.f32 %v1849_v0, %v1672_v18  ;;  %v1673_v55 = vsel %vm1573_vm15, %v1421_v48, %v1623_v6  ;;  %vm1595_vm2 = vcmp.ge.f32.partialorder %v1380_v29, 0.0  ;;  %v1645_v22 = vmul.f32 0.01, %v1380_v29 }
 0x206   :  { %v2043_v33 = vmul.f32 %v23678_v19, %v1673_v55  ;;  %v23679_v23 = vcombine.low %v18231_v39, %v18236_v43  ;;  %v23680_v62 = vcombine.low %v18266_v7, %v18271_v61  ;;  %vm1597_vm3 = vcmp.ge.f32.partialorder %v1423_v45, 0.0 }
 0x207   :  { %v1647_v40 = vmul.f32 0.01, %v1423_v45  ;;  %v1382_v0 = vadd.f32 %v1381_v50, %v23674_v17  ;;  %v1425_v6 = vadd.f32 %v1424_v53, %v23675_v47  ;;  %v23681_v34 = vcombine.high %v18324_v24, %v18329_v63  ;;  %v18606_v53 = vld [vmem:[%s23463_s4 + $0x848] sm:$0xff] }
 0x208   :  { %11622 = vmatpush1.bf16.msra.mxu1 %v23679_v23  ;;  %12181 = vmatpush1.bf16.msra.mxu0 %v23680_v62  ;;  %v23682_v55 = vcombine.high %v18388_v2, %v18393_v9  ;;  %v1670_v39 = vsel %vm1570_vm0, %v1376_v3, %v1620_v56  ;;  %v1695_v43 = vsel %vm1595_vm2, %v1380_v29, %v1645_v22  ;;  %v18611_v17 = vld [vmem:[%s23463_s4 + $0x868] sm:$0xff] }
 0x209   :  { %11623 = vmatprep.subr.bf16.mxu1 %v23681_v34  ;;  %v1861_v7 = vrot.slane %v18257_v42, %v17569_v15  ;;  %v1671_v47 = vsel %vm1571_vm1, %v1378_v31, %v1621_v4  ;;  %v1697_v3 = vsel %vm1597_vm3, %v1423_v45, %v1647_v40  ;;  %vm1596_vm4 = vcmp.ge.f32.partialorder %v1382_v0, 0.0  ;;  %v18629_v45 = vld [vmem:[%s23463_s4 + $0x880] sm:$0xff] }
 0x20a   :  { %12182 = vmatprep.subr.bf16.mxu0 %v23682_v55  ;;  %v1646_v48 = vmul.f32 0.01, %v1382_v0  ;;  %v23683_v20 = vrot.slane %v18355_v11, %v17544_v46  ;;  %v23684_v56 = vrot.slane %v18355_v11, %v17546_v8  ;;  %vm1598_vm5 = vcmp.ge.f32.partialorder %v1425_v6, 0.0  ;;  %v18634_v4 = vld [vmem:[%s23463_s4 + $0x8a0] sm:$0xff] }
 0x20b   :  { %v1648_v29 = vmul.f32 0.01, %v1425_v6  ;;  %v23685_v50 = vcombine.low %v18324_v24, %v18329_v63  ;;  %v23686_v31 = vcombine.low %v18388_v2, %v18393_v9  ;;  %v23687_v23 = vcombine.high %v18427_v49, %v18432_v57 }
 0x20c   :  { %v2065_v19 = vmul.f32 %v23683_v20, %v1695_v43  ;;  %v2067_v18 = vmul.f32 %v23684_v56, %v1697_v3  ;;  %v1696_v22 = vsel %vm1596_vm4, %v1382_v0, %v1646_v48  ;;  %v23688_v24 = vcombine.high %v18437_v58, %v18453_v27 }
 0x20d   :  { %11624 = vmatpush1.bf16.msra.mxu1 %v23685_v50  ;;  %12183 = vmatpush1.bf16.msra.mxu0 %v23686_v31  ;;  %v1869_v63 = vrot.slane %v18257_v42, %v17571_v16  ;;  %v23689_v9 = vrot.slane %v18257_v42, %v17544_v46  ;;  %v23690_v40 = vrot.slane %v18257_v42, %v17553_v37 }
 0x20e   :  { %11625 = vmatprep.subr.bf16.mxu1 %v23687_v23  ;;  %12184 = vmatprep.subr.bf16.mxu0 %v23688_v24  ;;  %v23691_v34 = vrot.slane %v18355_v11, %v17553_v37  ;;  %v1698_v43 = vsel %vm1598_vm5, %v1425_v6, %v1648_v29  ;;  %v23692_v3 = vrot.slane %v18355_v11, %v17555_v21  ;;  %v18672_v6 = vld [vmem:[%s23463_s4 + $0x8a8] sm:$0xff]  ;;  %v18690_v23 = vld [vmem:[%s23463_s4 + $0x8e0] sm:$0xff] }
 0x20f   :  { %v2040_v62 = vmul.f32 %v23689_v9, %v1670_v39  ;;  %v2041_v0 = vmul.f32 %v23690_v40, %v1671_v47  ;;  %v14922_v56 = vcombine.high %v18606_v53, %v18611_v17  ;;  %v18667_v47 = vld [vmem:[%s23463_s4 + $0x888] sm:$0xff]  ;;  %v23693_v29 = vcombine.low %v18427_v49, %v18432_v57  ;;  %v1504_v9 = vpop.f32.mrb[20].mxu1 }
 0x210   :  { %v2066_v55 = vmul.f32 %v23691_v34, %v1696_v22  ;;  %v2068_v48 = vmul.f32 %v23692_v3, %v1698_v43  ;;  %v23694_v50 = vcombine.low %v18437_v58, %v18453_v27  ;;  %v18685_v22 = vld [vmem:[%s23463_s4 + $0x8c0] sm:$0xff]  ;;  %v23695_v57 = vcombine.high %v18458_v51, %v18463_v28  ;;  %v1461_v27 = vpop.f32.mrb[20].mxu0 }
 0x211   :  { %11626 = vmatpush1.bf16.msra.mxu1 %v23693_v29  ;;  %v18694_v49 = vpack.c.bf16 %v2065_v19, %v2040_v62  ;;  %v23696_v58 = vcombine.high %v18485_v32, %v18490_v38  ;;  %v18706_v43 = vpack.c.bf16 %v2067_v18, %v2042_v35  ;;  %v1462_v19 = vadd.f32 %v1461_v27, %v18532_v52  ;;  %v23699_v27 = vld [vmem:[#allocation30_spill] sm:$0xff] }
 0x212   :  { %12185 = vmatpush1.bf16.msra.mxu0 %v23694_v50  ;;  %v18692_v24 = vpack.c.bf16 %v2066_v55, %v2041_v0  ;;  %11638 = vmatprep.subr.bf16.mxu1 %v23695_v57  ;;  %v18704_v34 = vpack.c.bf16 %v2068_v48, %v2043_v33  ;;  %v1505_v62 = vadd.f32 %v1504_v9, %v18550_v54  ;;  %v1463_v0 = vpop.f32.mrb[21].mxu0  ;;  %v1506_v55 = vpop.f32.mrb[21].mxu1  ;;  %v23697_v50 = vld [vmem:[#allocation20_spill] sm:$0xff] }
 0x213   :  { %12197 = vmatprep.subr.bf16.mxu0 %v23696_v58  ;;  %v14930_v29 = vcombine.high %v18667_v47, %v18672_v6  ;;  %v1464_v33 = vadd.f32 %v1463_v0, %v18560_v10  ;;  %v1507_v35 = vadd.f32 %v1506_v55, %v18564_v36  ;;  %v1465_v18 = vpop.f32.mrb[22].mxu0  ;;  %v1508_v48 = vpop.f32.mrb[22].mxu1  ;;  %v14936_v57 = vcombine.high %v18685_v22, %v18690_v23 }
 0x214   :  { %11628 = vmatmul.mubr.bf16.vlgmr.msra.gmra.mrb[24].mxu1 %v23697_v50  ;;  %v23698_v58 = vcombine.low %v18458_v51, %v18463_v28  ;;  %vm1574_vm6 = vcmp.ge.f32.partialorder %v1462_v19, 0.0  ;;  %v1624_v9 = vmul.f32 0.01, %v1462_v19  ;;  %vm1576_vm7 = vcmp.ge.f32.partialorder %v1505_v62, 0.0  ;;  %v1467_v39 = vpop.f32.mrb[23].mxu0  ;;  %v1510_v2 = vpop.f32.mrb[23].mxu1 }
 0x215   :  { %12187 = vmatmul.mubr.bf16.vlgmr.msra.gmra.mrb[28].mxu0 %v23697_v50  ;;  %11670 = vmatprep.mubr.bf16.mxu1 %v23699_v27  ;;  %v1626_v3 = vmul.f32 0.01, %v1505_v62  ;;  %v23700_v0 = vcombine.low %v18485_v32, %v18490_v38  ;;  %vm1575_vm8 = vcmp.ge.f32.partialorder %v1464_v33, 0.0  ;;  %v1625_v55 = vmul.f32 0.01, %v1464_v33 }
 0x216   :  { %11639 = vmatpush1.bf16.msra.mxu1 %v23698_v58  ;;  %12229 = vmatprep.mubr.bf16.mxu0 %v23699_v27  ;;  %vm1577_vm9 = vcmp.ge.f32.partialorder %v1507_v35, 0.0  ;;  %v1627_v40 = vmul.f32 0.01, %v1507_v35  ;;  %v1674_v31 = vsel %vm1574_vm6, %v1462_v19, %v1624_v9  ;;  %v1466_v51 = vadd.f32 %v1465_v18, %v18532_v52  ;;  %v2384_v52 = vld [vmem:[%s23463_s4 + $0x8e8] sm:$0xff] }
 0x217   :  { %12198 = vmatpush1.bf16.msra.mxu0 %v23700_v0  ;;  %v1676_v20 = vsel %vm1576_vm7, %v1505_v62, %v1626_v3  ;;  %v1509_v28 = vadd.f32 %v1508_v48, %v18550_v54  ;;  %v23701_v58 = vcombine.high %v18537_v60, %v18542_v59  ;;  %v23702_v32 = vrot.slane %v18257_v42, %v17559_v12  ;;  %v2380_v54 = vld [vmem:[%s23463_s4 + $0x8c8] sm:$0xff] }
 0x218   :  { %v23703_v0 = vrot.slane %v18257_v42, %v17561_v13  ;;  %v1675_v19 = vsel %vm1575_vm8, %v1464_v33, %v1625_v55  ;;  %v1677_v62 = vsel %vm1577_vm9, %v1507_v35, %v1627_v40  ;;  %12199 = vmatprep.subr.bf16.mxu0 %v14922_v56  ;;  %vm1599_vm11 = vcmp.ge.f32.partialorder %v1466_v51, 0.0  ;;  %v2392_v48 = vld [vmem:[%s23463_s4 + $0x928] sm:$0xff] }
 0x219   :  { %11640 = vmatprep.subr.bf16.mxu1 %v23701_v58  ;;  %v2044_v38 = vmul.f32 %v23702_v32, %v1674_v31  ;;  %v2045_v31 = vmul.f32 %v1861_v7, %v1675_v19  ;;  %v1649_v3 = vmul.f32 0.01, %v1466_v51  ;;  %v23704_v56 = vcombine.low %v18537_v60, %v18542_v59 }
 0x21a   :  { %v18739_v61 = vmul.f32 %v23703_v0, %v1676_v20  ;;  %v2047_v20 = vmul.f32 %v1869_v63, %v1677_v62  ;;  %vm1601_vm12 = vcmp.ge.f32.partialorder %v1509_v28, 0.0  ;;  %v1651_v40 = vmul.f32 0.01, %v1509_v28 }
 0x21b   :  { %11641 = vmatpush1.bf16.msra.mxu1 %v23704_v56  ;;  %v1468_v33 = vadd.f32 %v1467_v39, %v18560_v10  ;;  %v1511_v35 = vadd.f32 %v1510_v2, %v18564_v36  ;;  %v23705_v18 = vcombine.low %v18606_v53, %v18611_v17  ;;  %v23706_v42 = vcombine.high %v18629_v45, %v18634_v4  ;;  %v2387_v36 = vld [vmem:[%s23463_s4 + $0x900] sm:$0xff] }
 0x21c   :  { %v1699_v7 = vsel %vm1599_vm11, %v1466_v51, %v1649_v3  ;;  %v1961_v63 = vrot.slane %v18355_v11, %v17569_v15  ;;  %v1969_v60 = vrot.slane %v18355_v11, %v17571_v16  ;;  %v14938_v59 = vcombine.high %v2380_v54, %v2384_v52  ;;  %v2391_v10 = vld [vmem:[%s23463_s4 + $0x920] sm:$0xff] }
 0x21d   :  { %12200 = vmatpush1.bf16.msra.mxu0 %v23705_v18  ;;  %11642 = vmatprep.subr.bf16.mxu1 %v23706_v42  ;;  %v23707_v53 = vrot.slane %v18355_v11, %v17559_v12  ;;  %v1701_v2 = vsel %vm1601_vm12, %v1509_v28, %v1651_v40  ;;  %vm1600_vm13 = vcmp.ge.f32.partialorder %v1468_v33, 0.0  ;;  %v1650_v39 = vmul.f32 0.01, %v1468_v33 }
 0x21e   :  { %12201 = vmatprep.subr.bf16.mxu0 %v14930_v29  ;;  %v2388_v29 = vld [vmem:[%s23463_s4 + $0x908] sm:$0xff]  ;;  %v23708_v9 = vrot.slane %v18355_v11, %v17561_v13  ;;  %vm1602_vm14 = vcmp.ge.f32.partialorder %v1511_v35, 0.0  ;;  %v1652_v51 = vmul.f32 0.01, %v1511_v35  ;;  %v23709_v58 = vcombine.low %v18629_v45, %v18634_v4  ;;  %v2395_v11 = vld [vmem:[%s23463_s4 + $0x940] sm:$0xff] }
 0x21f   :  { %v2069_v17 = vmul.f32 %v23707_v53, %v1699_v7  ;;  %v14935_v28 = vcombine.low %v18685_v22, %v18690_v23  ;;  %v1700_v32 = vsel %vm1600_vm13, %v1468_v33, %v1650_v39  ;;  %v23710_v0 = vcombine.low %v18667_v47, %v18672_v6  ;;  %v2399_v45 = vld [vmem:[%s23463_s4 + $0x960] sm:$0xff]  ;;  %v14654_v47 = vld.sshfl [vmem:[%s23464_s0 + $0x30] sm:$0x11 pattern:$0x75316420]  ;;  %v1547_v33 = vpop.f32.mrb[24].mxu0 }
 0x220   :  { %v2071_v55 = vmul.f32 %v23708_v9, %v1701_v2  ;;  %11643 = vmatpush1.bf16.msra.mxu1 %v23709_v58  ;;  %v14937_v19 = vcombine.low %v2380_v54, %v2384_v52  ;;  %v14944_v62 = vcombine.high %v2387_v36, %v2391_v10  ;;  %v2070_v4 = vmul.f32 %v1961_v63, %v1700_v32  ;;  %v14534_v23 = vld [vmem:[%s23465_s3 + $0x18] ss:$0 sm:$0xff]  ;;  %v2400_v54 = vld [vmem:[%s23463_s4 + $0x968] sm:$0xff]  ;;  %v16394_v63 = vpop.f32.mrb[25].mxu0 }
 0x221   :  { %12202 = vmatpush1.bf16.msra.mxu0 %v23710_v0  ;;  %11644 = vmatprep.subr.bf16.mxu1 %v14936_v57  ;;  %v1702_v3 = vsel %vm1602_vm14, %v1511_v35, %v1652_v51  ;;  %v14946_v22 = vcombine.high %v2388_v29, %v2392_v48  ;;  %v2396_v57 = vld [vmem:[%s23463_s4 + $0x948] sm:$0xff]  ;;  %v14943_v52 = vcombine.low %v2387_v36, %v2391_v10  ;;  %v2407_v36 = vld [vmem:[%s23463_s4 + $0x9a0] sm:$0xff] }
 0x222   :  { %12203 = vmatprep.subr.bf16.mxu0 %v14938_v59  ;;  %v2072_v6 = vmul.f32 %v1969_v60, %v1702_v3  ;;  %v14945_v56 = vcombine.low %v2388_v29, %v2392_v48  ;;  %v14952_v40 = vcombine.high %v2395_v11, %v2399_v45  ;;  %v1773_v35 = vcombine.high %v14654_v47, %v14654_v47  ;;  %v2403_v59 = vld [vmem:[%s23463_s4 + $0x980] sm:$0xff] }
 0x223   :  { %v18812_v18 = vpack.c.bf16 %v2070_v4, %v2045_v31  ;;  %v18814_v42 = vpack.c.bf16 %v2069_v17, %v2044_v38  ;;  %v1548_v7 = vadd.f32 %v14534_v23, %v1547_v33  ;;  %v14954_v60 = vcombine.high %v2396_v57, %v2400_v54  ;;  %v1550_v31 = vpop.f32.mrb[26].mxu0  ;;  %v2404_v38 = vld [vmem:[%s23463_s4 + $0x988] sm:$0xff]  ;;  %v2427_v63 = vld [vmem:[%s23463_s4 + $0xa40] sm:$0xff] }
 0x224   :  { %11645 = vmatpush1.bf16.msra.mxu1 %v14935_v28  ;;  %v18822_v10 = vpack.c.bf16 %v2072_v6, %v2047_v20  ;;  %v1873_v53 = vrot.slane %v14654_v47, %v17544_v46  ;;  %v2408_v17 = vld [vmem:[%s23463_s4 + $0x9a8] sm:$0xff]  ;;  %v18832_v2 = vpack.c.bf16 %v2071_v55, %v18739_v61  ;;  %v1551_v29 = vadd.f32 %v14534_v23, %v1550_v31  ;;  %v16395_v48 = vpop.f32.mrb[27].mxu0  ;;  %v2411_v61 = vld [vmem:[%s23463_s4 + $0x9c0] sm:$0xff] }
 0x225   :  { %12204 = vmatpush1.bf16.msra.mxu0 %v14937_v19  ;;  %11646 = vmatprep.subr.bf16.mxu1 %v14944_v62  ;;  %vm1578_vm15 = vcmp.ge.f32.partialorder %v1548_v7, 0.0  ;;  %v1628_v39 = vmul.f32 0.01, %v1548_v7  ;;  %v14951_v20 = vcombine.low %v2395_v11, %v2399_v45  ;;  %v1973_v9 = vrot.slane %v1773_v35, %v17544_v46  ;;  %v2415_v55 = vld [vmem:[%s23463_s4 + $0x9e0] sm:$0xff]  ;;  %v2412_v19 = vld [vmem:[%s23463_s4 + $0x9c8] sm:$0xff] }
 0x226   :  { %12205 = vmatprep.subr.bf16.mxu0 %v14946_v22  ;;  %v14953_v51 = vcombine.low %v2396_v57, %v2400_v54  ;;  %v14960_v58 = vcombine.high %v2403_v59, %v2407_v36  ;;  %vm1603_vm0 = vcmp.ge.f32.partialorder %v1551_v29, 0.0  ;;  %v1653_v32 = vmul.f32 0.01, %v1551_v29  ;;  %v2416_v62 = vld [vmem:[%s23463_s4 + $0x9e8] sm:$0xff]  ;;  %v2419_v23 = vld [vmem:[%s23463_s4 + $0xa00] sm:$0xff] }
 0x227   :  { %v1678_v28 = vsel %vm1578_vm15, %v1548_v7, %v1628_v39  ;;  %v14962_v0 = vcombine.high %v2404_v38, %v2408_v17  ;;  %v14959_v45 = vcombine.low %v2403_v59, %v2407_v36  ;;  %v14961_v4 = vcombine.low %v2404_v38, %v2408_v17  ;;  %v2423_v57 = vld [vmem:[%s23463_s4 + $0xa20] sm:$0xff]  ;;  %v2428_v59 = vld [vmem:[%s23463_s4 + $0xa48] sm:$0xff] }
 0x228   :  { %11647 = vmatpush1.bf16.msra.mxu1 %v14943_v52  ;;  %v1703_v11 = vsel %vm1603_vm0, %v1551_v29, %v1653_v32  ;;  %v2048_v3 = vmul.f32 %v1873_v53, %v1678_v28  ;;  %v14968_v47 = vcombine.high %v2411_v61, %v2415_v55  ;;  %v14970_v6 = vcombine.high %v2412_v19, %v2416_v62  ;;  %v2420_v52 = vld [vmem:[%s23463_s4 + $0xa08] sm:$0xff]  ;;  %v2435_v39 = vld [vmem:[%s23463_s4 + $0xa80] sm:$0xff] }
 0x229   :  { %12206 = vmatpush1.bf16.msra.mxu0 %v14945_v56  ;;  %11648 = vmatprep.subr.bf16.mxu1 %v14952_v40  ;;  %v2073_v22 = vmul.f32 %v1973_v9, %v1703_v11  ;;  %v2424_v56 = vld [vmem:[%s23463_s4 + $0xa28] sm:$0xff]  ;;  %v14967_v40 = vcombine.low %v2411_v61, %v2415_v55  ;;  %v14969_v33 = vcombine.low %v2412_v19, %v2416_v62  ;;  %v2439_v29 = vld [vmem:[%s23463_s4 + $0xaa0] sm:$0xff] }
 0x22a   :  { %12207 = vmatprep.subr.bf16.mxu0 %v14954_v60  ;;  %v14976_v35 = vcombine.high %v2419_v23, %v2423_v57  ;;  %v14978_v7 = vcombine.high %v2420_v52, %v2424_v56  ;;  %v2431_v60 = vld [vmem:[%s23463_s4 + $0xa60] sm:$0xff]  ;;  %v2432_v36 = vld [vmem:[%s23463_s4 + $0xa68] sm:$0xff]  ;;  %v14975_v53 = vcombine.low %v2419_v23, %v2423_v57  ;;  %v14977_v31 = vcombine.low %v2420_v52, %v2424_v56 }
 0x22b   :  { %v18853_v54 = vpack.c.bf16 %v2073_v22, %v2048_v3  ;;  %v14984_v38 = vcombine.high %v2427_v63, %v2431_v60  ;;  %v14986_v17 = vcombine.high %v2428_v59, %v2432_v36  ;;  %v2440_v48 = vld [vmem:[%s23463_s4 + $0xaa8] sm:$0xff]  ;;  %v14983_v9 = vcombine.low %v2427_v63, %v2431_v60  ;;  %v2443_v32 = vld [vmem:[%s23463_s4 + $0xac0] sm:$0xff] }
 0x22c   :  { %11649 = vmatpush1.bf16.msra.mxu1 %v14951_v20  ;;  %v2436_v20 = vld [vmem:[%s23463_s4 + $0xa88] sm:$0xff]  ;;  %v14991_v19 = vcombine.low %v2435_v39, %v2439_v29  ;;  %v2455_v3 = vld [vmem:[%s23463_s4 + $0xb20] sm:$0xff] }
 0x22d   :  { %12208 = vmatpush1.bf16.msra.mxu0 %v14953_v51  ;;  %11650 = vmatprep.subr.bf16.mxu1 %v14960_v58  ;;  %v14985_v51 = vcombine.low %v2428_v59, %v2432_v36  ;;  %v14992_v58 = vcombine.high %v2435_v39, %v2439_v29  ;;  %v14994_v28 = vcombine.high %v2436_v20, %v2440_v48  ;;  %v2444_v61 = vld [vmem:[%s23463_s4 + $0xac8] sm:$0xff]  ;;  %v2459_v56 = vld [vmem:[%s23463_s4 + $0xb40] sm:$0xff] }
 0x22e   :  { %12209 = vmatprep.subr.bf16.mxu0 %v14962_v0  ;;  %v2447_v0 = vld [vmem:[%s23463_s4 + $0xae0] sm:$0xff]  ;;  %v2448_v55 = vld [vmem:[%s23463_s4 + $0xae8] sm:$0xff]  ;;  %v14993_v62 = vcombine.low %v2436_v20, %v2440_v48 }
 0x22f   :  { %v15000_v11 = vcombine.high %v2443_v32, %v2447_v0  ;;  %v2452_v22 = vld [vmem:[%s23463_s4 + $0xb08] sm:$0xff]  ;;  %v15001_v23 = vcombine.low %v2444_v61, %v2448_v55  ;;  %v2467_v36 = vld [vmem:[%s23463_s4 + $0xb80] sm:$0xff] }
 0x230   :  { %11651 = vmatpush1.bf16.msra.mxu1 %v14959_v45  ;;  %v15002_v45 = vcombine.high %v2444_v61, %v2448_v55  ;;  %v2475_v48 = vld [vmem:[%s23463_s4 + $0xbc0] sm:$0xff] }
 0x231   :  { %12210 = vmatpush1.bf16.msra.mxu0 %v14961_v4  ;;  %11652 = vmatprep.subr.bf16.mxu1 %v14968_v47  ;;  %v2451_v4 = vld [vmem:[%s23463_s4 + $0xb00] sm:$0xff]  ;;  %v2456_v47 = vld [vmem:[%s23463_s4 + $0xb28] sm:$0xff] }
 0x232   :  { %12211 = vmatprep.subr.bf16.mxu0 %v14970_v6  ;;  %v14999_v6 = vcombine.low %v2443_v32, %v2447_v0  ;;  %v15008_v57 = vcombine.high %v2451_v4, %v2455_v3  ;;  %v15010_v52 = vcombine.high %v2452_v22, %v2456_v47  ;;  %v15009_v63 = vcombine.low %v2452_v22, %v2456_v47  ;;  %v2483_v55 = vld [vmem:[%s23463_s4 + $0xc00] sm:$0xff] }
 0x233   :  { %v2491_v47 = vld [vmem:[%s23463_s4 + $0xc40] sm:$0xff] }
 0x234   :  { %11653 = vmatpush1.bf16.msra.mxu1 %v14967_v40  ;;  %v2463_v40 = vld [vmem:[%s23463_s4 + $0xb60] sm:$0xff] }
 0x235   :  { %12212 = vmatpush1.bf16.msra.mxu0 %v14969_v33  ;;  %11654 = vmatprep.subr.bf16.mxu1 %v14976_v35  ;;  %v2460_v33 = vld [vmem:[%s23463_s4 + $0xb48] sm:$0xff]  ;;  %v15016_v60 = vcombine.high %v2459_v56, %v2463_v40 }
 0x236   :  { %12213 = vmatprep.subr.bf16.mxu0 %v14978_v7  ;;  %v2464_v35 = vld [vmem:[%s23463_s4 + $0xb68] sm:$0xff]  ;;  %v15007_v7 = vcombine.low %v2451_v4, %v2455_v3 }
 0x237   :  { %v15018_v59 = vcombine.high %v2460_v33, %v2464_v35  ;;  %v15017_v39 = vcombine.low %v2460_v33, %v2464_v35  ;;  %v2499_v33 = vld [vmem:[%s23463_s4 + $0xc80] sm:$0xff] }
 0x238   :  { %11655 = vmatpush1.bf16.msra.mxu1 %v14975_v53  ;;  %v2471_v53 = vld [vmem:[%s23463_s4 + $0xba0] sm:$0xff] }
 0x239   :  { %12214 = vmatpush1.bf16.msra.mxu0 %v14977_v31  ;;  %11656 = vmatprep.subr.bf16.mxu1 %v14984_v38  ;;  %v2468_v31 = vld [vmem:[%s23463_s4 + $0xb88] sm:$0xff]  ;;  %v15024_v29 = vcombine.high %v2467_v36, %v2471_v53  ;;  %v2503_v35 = vld [vmem:[%s23463_s4 + $0xca0] sm:$0xff] }
 0x23a   :  { %12215 = vmatprep.subr.bf16.mxu0 %v14986_v17  ;;  %v2472_v38 = vld [vmem:[%s23463_s4 + $0xba8] sm:$0xff]  ;;  %v15015_v17 = vcombine.low %v2459_v56, %v2463_v40 }
 0x23b   :  { %v15026_v20 = vcombine.high %v2468_v31, %v2472_v38  ;;  %v15025_v32 = vcombine.low %v2468_v31, %v2472_v38  ;;  %v15056_v38 = vcombine.high %v2499_v33, %v2503_v35 }
 0x23c   :  { %11657 = vmatpush1.bf16.msra.mxu1 %v14983_v9  ;;  %v2479_v9 = vld [vmem:[%s23463_s4 + $0xbe0] sm:$0xff] }
 0x23d   :  { %12216 = vmatpush1.bf16.msra.mxu0 %v14985_v51  ;;  %11658 = vmatprep.subr.bf16.mxu1 %v14992_v58  ;;  %v2476_v51 = vld [vmem:[%s23463_s4 + $0xbc8] sm:$0xff]  ;;  %v15032_v0 = vcombine.high %v2475_v48, %v2479_v9 }
 0x23e   :  { %12217 = vmatprep.subr.bf16.mxu0 %v14994_v28  ;;  %v2480_v58 = vld [vmem:[%s23463_s4 + $0xbe8] sm:$0xff]  ;;  %v15023_v28 = vcombine.low %v2467_v36, %v2471_v53 }
 0x23f   :  { %v15034_v61 = vcombine.high %v2476_v51, %v2480_v58  ;;  %v15033_v4 = vcombine.low %v2476_v51, %v2480_v58  ;;  %v23712_v53 = vld [vmem:[#allocation3_spill] sm:$0xff] }
 0x240   :  { %11659 = vmatpush1.bf16.msra.mxu1 %v14991_v19  ;;  %v2487_v19 = vld [vmem:[%s23463_s4 + $0xc20] sm:$0xff] }
 0x241   :  { %12218 = vmatpush1.bf16.msra.mxu0 %v14993_v62  ;;  %11660 = vmatprep.subr.bf16.mxu1 %v15000_v11  ;;  %v2484_v62 = vld [vmem:[%s23463_s4 + $0xc08] sm:$0xff]  ;;  %v15040_v3 = vcombine.high %v2483_v55, %v2487_v19 }
 0x242   :  { %12219 = vmatprep.subr.bf16.mxu0 %v15002_v45  ;;  %v2488_v11 = vld [vmem:[%s23463_s4 + $0xc28] sm:$0xff]  ;;  %v15031_v45 = vcombine.low %v2475_v48, %v2479_v9  ;;  %v15055_v9 = vcombine.low %v2499_v33, %v2503_v35 }
 0x243   :  { %v15042_v22 = vcombine.high %v2484_v62, %v2488_v11  ;;  %v15041_v56 = vcombine.low %v2484_v62, %v2488_v11  ;;  %v2512_v48 = vld [vmem:[%s23463_s4 + $0xce8] sm:$0xff] }
 0x244   :  { %11661 = vmatpush1.bf16.msra.mxu1 %v14999_v6  ;;  %v2495_v6 = vld [vmem:[%s23463_s4 + $0xc60] sm:$0xff]  ;;  %v2532_v33 = vld [vmem:[%s23463_s4 + $0xd88] sm:$0xff] }
 0x245   :  { %12220 = vmatpush1.bf16.msra.mxu0 %v15001_v23  ;;  %11662 = vmatprep.subr.bf16.mxu1 %v15008_v57  ;;  %v15039_v23 = vcombine.low %v2483_v55, %v2487_v19  ;;  %v2492_v57 = vld [vmem:[%s23463_s4 + $0xc48] sm:$0xff]  ;;  %v15048_v40 = vcombine.high %v2491_v47, %v2495_v6  ;;  %v15047_v36 = vcombine.low %v2491_v47, %v2495_v6 }
 0x246   :  { %12221 = vmatprep.subr.bf16.mxu0 %v15010_v52  ;;  %v2496_v52 = vld [vmem:[%s23463_s4 + $0xc68] sm:$0xff] }
 0x247   :  { %v15049_v31 = vcombine.low %v2492_v57, %v2496_v52  ;;  %v2520_v55 = vld [vmem:[%s23463_s4 + $0xd28] sm:$0xff] }
 0x248   :  { %11663 = vmatpush1.bf16.msra.mxu1 %v15007_v7  ;;  %v23711_v7 = vld [vmem:[#allocation23_spill] sm:$0xff] }
 0x249   :  { %12222 = vmatpush1.bf16.msra.mxu0 %v15009_v63  ;;  %11664 = vmatprep.subr.bf16.mxu1 %v15016_v60  ;;  %v15050_v63 = vcombine.high %v2492_v57, %v2496_v52  ;;  %v2500_v60 = vld [vmem:[%s23463_s4 + $0xc88] sm:$0xff] }
 0x24a   :  { %12223 = vmatprep.subr.bf16.mxu0 %v15018_v59  ;;  %v2504_v59 = vld [vmem:[%s23463_s4 + $0xca8] sm:$0xff] }
 0x24b   :  { %v15057_v51 = vcombine.low %v2500_v60, %v2504_v59  ;;  %v2528_v47 = vld [vmem:[%s23463_s4 + $0xd68] sm:$0xff] }
 0x24c   :  { %11665 = vmatpush1.bf16.msra.mxu1 %v15015_v17  ;;  %v15058_v17 = vcombine.high %v2500_v60, %v2504_v59  ;;  %v2536_v35 = vld [vmem:[%s23463_s4 + $0xda8] sm:$0xff] }
 0x24d   :  { %12224 = vmatpush1.bf16.msra.mxu0 %v15017_v39  ;;  %11666 = vmatprep.subr.bf16.mxu1 %v15024_v29  ;;  %v2507_v39 = vld [vmem:[%s23463_s4 + $0xcc0] sm:$0xff] }
 0x24e   :  { %12225 = vmatprep.subr.bf16.mxu0 %v15026_v20  ;;  %v2511_v29 = vld [vmem:[%s23463_s4 + $0xce0] sm:$0xff]  ;;  %v2508_v20 = vld [vmem:[%s23463_s4 + $0xcc8] sm:$0xff] }
 0x24f   :  { %v15064_v58 = vcombine.high %v2507_v39, %v2511_v29  ;;  %v15063_v19 = vcombine.low %v2507_v39, %v2511_v29  ;;  %v15065_v62 = vcombine.low %v2508_v20, %v2512_v48  ;;  %v2544_v39 = vld [vmem:[%s23463_s4 + $0xde8] sm:$0xff] }
 0x250   :  { %11667 = vmatpush1.bf16.msra.mxu1 %v15023_v28  ;;  %v15066_v28 = vcombine.high %v2508_v20, %v2512_v48  ;;  %v15089_v20 = vcombine.low %v2532_v33, %v2536_v35 }
 0x251   :  { %12226 = vmatpush1.bf16.msra.mxu0 %v15025_v32  ;;  %11668 = vmatprep.subr.bf16.mxu1 %v15032_v0  ;;  %v2515_v32 = vld [vmem:[%s23463_s4 + $0xd00] sm:$0xff] }
 0x252   :  { %12227 = vmatprep.subr.bf16.mxu0 %v15034_v61  ;;  %v2519_v0 = vld [vmem:[%s23463_s4 + $0xd20] sm:$0xff]  ;;  %v2516_v61 = vld [vmem:[%s23463_s4 + $0xd08] sm:$0xff] }
 0x253   :  { %v15072_v11 = vcombine.high %v2515_v32, %v2519_v0  ;;  %v15071_v6 = vcombine.low %v2515_v32, %v2519_v0  ;;  %v2552_v32 = vld [vmem:[%s23463_s4 + $0xe28] sm:$0xff] }
 0x254   :  { %11669 = vmatpush1.bf16.msra.mxu1 %v15031_v45  ;;  %v15074_v45 = vcombine.high %v2516_v61, %v2520_v55 }
 0x255   :  { %12228 = vmatpush1.bf16.msra.mxu0 %v15033_v4  ;;  %11681 = vmatprep.subr.bf16.mxu1 %v15040_v3  ;;  %v2523_v4 = vld [vmem:[%s23463_s4 + $0xd40] sm:$0xff] }
 0x256   :  { %12240 = vmatprep.subr.bf16.mxu0 %v15042_v22  ;;  %v2527_v3 = vld [vmem:[%s23463_s4 + $0xd60] sm:$0xff]  ;;  %v2524_v22 = vld [vmem:[%s23463_s4 + $0xd48] sm:$0xff] }
 0x257   :  { %11671 = vmatmul.mubr.bf16.vlgmr.msra.gmra.mrb[24].mxu1 %v23711_v7  ;;  %v15080_v57 = vcombine.high %v2523_v4, %v2527_v3  ;;  %v15082_v52 = vcombine.high %v2524_v22, %v2528_v47  ;;  %v15081_v60 = vcombine.low %v2524_v22, %v2528_v47 }
 0x258   :  { %12230 = vmatmul.mubr.bf16.vlgmr.msra.gmra.mrb[28].mxu0 %v23711_v7  ;;  %11682 = vmatpush1.bf16.msra.mxu1 %v15039_v23  ;;  %v15073_v23 = vcombine.low %v2516_v61, %v2520_v55 }
 0x259   :  { %11713 = vmatprep.mubr.bf16.mxu1 %v23712_v53  ;;  %12241 = vmatpush1.bf16.msra.mxu0 %v15041_v56  ;;  %v2531_v56 = vld [vmem:[%s23463_s4 + $0xd80] sm:$0xff] }
 0x25a   :  { %12272 = vmatprep.mubr.bf16.mxu0 %v23712_v53  ;;  %11683 = vmatprep.subr.bf16.mxu1 %v15048_v40  ;;  %v2535_v40 = vld [vmem:[%s23463_s4 + $0xda0] sm:$0xff] }
 0x25b   :  { %12242 = vmatprep.subr.bf16.mxu0 %v15050_v63  ;;  %v15079_v63 = vcombine.low %v2523_v4, %v2527_v3  ;;  %v15088_v59 = vcombine.high %v2531_v56, %v2535_v40  ;;  %v15087_v29 = vcombine.low %v2531_v56, %v2535_v40  ;;  %v2560_v4 = vld [vmem:[%s23463_s4 + $0xe68] sm:$0xff] }
 0x25c   :  { %11684 = vmatpush1.bf16.msra.mxu1 %v15047_v36  ;;  %v15090_v36 = vcombine.high %v2532_v33, %v2536_v35  ;;  %v2568_v56 = vld [vmem:[%s23463_s4 + $0xea8] sm:$0xff] }
 0x25d   :  { %12243 = vmatpush1.bf16.msra.mxu0 %v15049_v31  ;;  %11685 = vmatprep.subr.bf16.mxu1 %v15056_v38  ;;  %v2539_v31 = vld [vmem:[%s23463_s4 + $0xdc0] sm:$0xff] }
 0x25e   :  { %12244 = vmatprep.subr.bf16.mxu0 %v15058_v17  ;;  %v2543_v38 = vld [vmem:[%s23463_s4 + $0xde0] sm:$0xff]  ;;  %v2540_v17 = vld [vmem:[%s23463_s4 + $0xdc8] sm:$0xff] }
 0x25f   :  { %v15096_v48 = vcombine.high %v2539_v31, %v2543_v38  ;;  %v15095_v0 = vcombine.low %v2539_v31, %v2543_v38  ;;  %v15097_v61 = vcombine.low %v2540_v17, %v2544_v39  ;;  %v2576_v31 = vld [vmem:[%s23463_s4 + $0xee8] sm:$0xff] }
 0x260   :  { %11686 = vmatpush1.bf16.msra.mxu1 %v15055_v9  ;;  %v15098_v9 = vcombine.high %v2540_v17, %v2544_v39 }
 0x261   :  { %12245 = vmatpush1.bf16.msra.mxu0 %v15057_v51  ;;  %11687 = vmatprep.subr.bf16.mxu1 %v15064_v58  ;;  %v2547_v51 = vld [vmem:[%s23463_s4 + $0xe00] sm:$0xff] }
 0x262   :  { %12246 = vmatprep.subr.bf16.mxu0 %v15066_v28  ;;  %v2551_v58 = vld [vmem:[%s23463_s4 + $0xe20] sm:$0xff]  ;;  %v2548_v28 = vld [vmem:[%s23463_s4 + $0xe08] sm:$0xff] }
 0x263   :  { %v15104_v55 = vcombine.high %v2547_v51, %v2551_v58  ;;  %v15103_v3 = vcombine.low %v2547_v51, %v2551_v58  ;;  %v15105_v22 = vcombine.low %v2548_v28, %v2552_v32  ;;  %v2584_v51 = vld [vmem:[%s23463_s4 + $0xf28] sm:$0xff] }
 0x264   :  { %11688 = vmatpush1.bf16.msra.mxu1 %v15063_v19  ;;  %v15106_v19 = vcombine.high %v2548_v28, %v2552_v32 }
 0x265   :  { %12247 = vmatpush1.bf16.msra.mxu0 %v15065_v62  ;;  %11689 = vmatprep.subr.bf16.mxu1 %v15072_v11  ;;  %v2555_v62 = vld [vmem:[%s23463_s4 + $0xe40] sm:$0xff] }
 0x266   :  { %12248 = vmatprep.subr.bf16.mxu0 %v15074_v45  ;;  %v2559_v11 = vld [vmem:[%s23463_s4 + $0xe60] sm:$0xff]  ;;  %v2556_v45 = vld [vmem:[%s23463_s4 + $0xe48] sm:$0xff] }
 0x267   :  { %v15112_v47 = vcombine.high %v2555_v62, %v2559_v11  ;;  %v15111_v40 = vcombine.low %v2555_v62, %v2559_v11  ;;  %v15113_v33 = vcombine.low %v2556_v45, %v2560_v4  ;;  %v2592_v62 = vld [vmem:[%s23463_s4 + $0xf68] sm:$0xff] }
 0x268   :  { %11690 = vmatpush1.bf16.msra.mxu1 %v15071_v6  ;;  %v15114_v6 = vcombine.high %v2556_v45, %v2560_v4 }
 0x269   :  { %12249 = vmatpush1.bf16.msra.mxu0 %v15073_v23  ;;  %11691 = vmatprep.subr.bf16.mxu1 %v15080_v57  ;;  %v2563_v23 = vld [vmem:[%s23463_s4 + $0xe80] sm:$0xff] }
 0x26a   :  { %12250 = vmatprep.subr.bf16.mxu0 %v15082_v52  ;;  %v2567_v57 = vld [vmem:[%s23463_s4 + $0xea0] sm:$0xff]  ;;  %v2564_v52 = vld [vmem:[%s23463_s4 + $0xe88] sm:$0xff] }
 0x26b   :  { %v15120_v35 = vcombine.high %v2563_v23, %v2567_v57  ;;  %v15119_v38 = vcombine.low %v2563_v23, %v2567_v57  ;;  %v15121_v17 = vcombine.low %v2564_v52, %v2568_v56  ;;  %v2600_v23 = vld [vmem:[%s23463_s4 + $0xfa8] sm:$0xff] }
 0x26c   :  { %11692 = vmatpush1.bf16.msra.mxu1 %v15079_v63  ;;  %v15122_v63 = vcombine.high %v2564_v52, %v2568_v56 }
 0x26d   :  { %12251 = vmatpush1.bf16.msra.mxu0 %v15081_v60  ;;  %11693 = vmatprep.subr.bf16.mxu1 %v15088_v59  ;;  %v2571_v60 = vld [vmem:[%s23463_s4 + $0xec0] sm:$0xff] }
 0x26e   :  { %12252 = vmatprep.subr.bf16.mxu0 %v15090_v36  ;;  %v2575_v59 = vld [vmem:[%s23463_s4 + $0xee0] sm:$0xff]  ;;  %v2572_v36 = vld [vmem:[%s23463_s4 + $0xec8] sm:$0xff] }
 0x26f   :  { %v15128_v39 = vcombine.high %v2571_v60, %v2575_v59  ;;  %v15127_v58 = vcombine.low %v2571_v60, %v2575_v59  ;;  %v15129_v28 = vcombine.low %v2572_v36, %v2576_v31  ;;  %v2608_v60 = vld [vmem:[%s23463_s4 + $0xfe8] sm:$0xff] }
 0x270   :  { %11694 = vmatpush1.bf16.msra.mxu1 %v15087_v29  ;;  %v15130_v29 = vcombine.high %v2572_v36, %v2576_v31 }
 0x271   :  { %12253 = vmatpush1.bf16.msra.mxu0 %v15089_v20  ;;  %11695 = vmatprep.subr.bf16.mxu1 %v15096_v48  ;;  %v2579_v20 = vld [vmem:[%s23463_s4 + $0xf00] sm:$0xff] }
 0x272   :  { %12254 = vmatprep.subr.bf16.mxu0 %v15098_v9  ;;  %v2583_v48 = vld [vmem:[%s23463_s4 + $0xf20] sm:$0xff]  ;;  %v2580_v9 = vld [vmem:[%s23463_s4 + $0xf08] sm:$0xff] }
 0x273   :  { %v15136_v32 = vcombine.high %v2579_v20, %v2583_v48  ;;  %v15135_v11 = vcombine.low %v2579_v20, %v2583_v48  ;;  %v15137_v45 = vcombine.low %v2580_v9, %v2584_v51  ;;  %v2616_v20 = vld [vmem:[%s23463_s4 + $0x1028] sm:$0xff] }
 0x274   :  { %11696 = vmatpush1.bf16.msra.mxu1 %v15095_v0  ;;  %v15138_v0 = vcombine.high %v2580_v9, %v2584_v51 }
 0x275   :  { %12255 = vmatpush1.bf16.msra.mxu0 %v15097_v61  ;;  %11697 = vmatprep.subr.bf16.mxu1 %v15104_v55  ;;  %v2587_v61 = vld [vmem:[%s23463_s4 + $0xf40] sm:$0xff] }
 0x276   :  { %12256 = vmatprep.subr.bf16.mxu0 %v15106_v19  ;;  %v2591_v55 = vld [vmem:[%s23463_s4 + $0xf60] sm:$0xff]  ;;  %v2588_v19 = vld [vmem:[%s23463_s4 + $0xf48] sm:$0xff] }
 0x277   :  { %v15144_v4 = vcombine.high %v2587_v61, %v2591_v55  ;;  %v15143_v57 = vcombine.low %v2587_v61, %v2591_v55  ;;  %v15145_v52 = vcombine.low %v2588_v19, %v2592_v62  ;;  %v2620_v61 = vld [vmem:[%s23463_s4 + $0x1048] sm:$0xff] }
 0x278   :  { %11698 = vmatpush1.bf16.msra.mxu1 %v15103_v3  ;;  %v15146_v3 = vcombine.high %v2588_v19, %v2592_v62  ;;  %v2624_v55 = vld [vmem:[%s23463_s4 + $0x1068] sm:$0xff] }
 0x279   :  { %12257 = vmatpush1.bf16.msra.mxu0 %v15105_v22  ;;  %11699 = vmatprep.subr.bf16.mxu1 %v15112_v47  ;;  %v2595_v22 = vld [vmem:[%s23463_s4 + $0xf80] sm:$0xff] }
 0x27a   :  { %12258 = vmatprep.subr.bf16.mxu0 %v15114_v6  ;;  %v2599_v47 = vld [vmem:[%s23463_s4 + $0xfa0] sm:$0xff]  ;;  %v2596_v6 = vld [vmem:[%s23463_s4 + $0xf88] sm:$0xff] }
 0x27b   :  { %v15152_v56 = vcombine.high %v2595_v22, %v2599_v47  ;;  %v15151_v59 = vcombine.low %v2595_v22, %v2599_v47  ;;  %v15153_v36 = vcombine.low %v2596_v6, %v2600_v23  ;;  %v2632_v22 = vld [vmem:[%s23463_s4 + $0x10a8] sm:$0xff] }
 0x27c   :  { %11700 = vmatpush1.bf16.msra.mxu1 %v15111_v40  ;;  %v15154_v40 = vcombine.high %v2596_v6, %v2600_v23  ;;  %v15177_v6 = vcombine.low %v2620_v61, %v2624_v55 }
 0x27d   :  { %12259 = vmatpush1.bf16.msra.mxu0 %v15113_v33  ;;  %11701 = vmatprep.subr.bf16.mxu1 %v15120_v35  ;;  %v2603_v33 = vld [vmem:[%s23463_s4 + $0xfc0] sm:$0xff] }
 0x27e   :  { %12260 = vmatprep.subr.bf16.mxu0 %v15122_v63  ;;  %v2607_v35 = vld [vmem:[%s23463_s4 + $0xfe0] sm:$0xff]  ;;  %v2604_v63 = vld [vmem:[%s23463_s4 + $0xfc8] sm:$0xff] }
 0x27f   :  { %v15160_v31 = vcombine.high %v2603_v33, %v2607_v35  ;;  %v15159_v48 = vcombine.low %v2603_v33, %v2607_v35  ;;  %v15161_v9 = vcombine.low %v2604_v63, %v2608_v60  ;;  %v2640_v33 = vld [vmem:[%s23463_s4 + $0x10e8] sm:$0xff] }
 0x280   :  { %11702 = vmatpush1.bf16.msra.mxu1 %v15119_v38  ;;  %v15162_v38 = vcombine.high %v2604_v63, %v2608_v60 }
 0x281   :  { %12261 = vmatpush1.bf16.msra.mxu0 %v15121_v17  ;;  %11703 = vmatprep.subr.bf16.mxu1 %v15128_v39  ;;  %v2611_v17 = vld [vmem:[%s23463_s4 + $0x1000] sm:$0xff] }
 0x282   :  { %12262 = vmatprep.subr.bf16.mxu0 %v15130_v29  ;;  %v2615_v39 = vld [vmem:[%s23463_s4 + $0x1020] sm:$0xff]  ;;  %v2612_v29 = vld [vmem:[%s23463_s4 + $0x1008] sm:$0xff] }
 0x283   :  { %v15168_v51 = vcombine.high %v2611_v17, %v2615_v39  ;;  %v15169_v19 = vcombine.low %v2612_v29, %v2616_v20 }
 0x284   :  { %11704 = vmatpush1.bf16.msra.mxu1 %v15127_v58  ;;  %v15170_v58 = vcombine.high %v2612_v29, %v2616_v20 }
 0x285   :  { %12263 = vmatpush1.bf16.msra.mxu0 %v15129_v28  ;;  %11705 = vmatprep.subr.bf16.mxu1 %v15136_v32  ;;  %v2619_v28 = vld [vmem:[%s23463_s4 + $0x1040] sm:$0xff] }
 0x286   :  { %12264 = vmatprep.subr.bf16.mxu0 %v15138_v0  ;;  %v2623_v32 = vld [vmem:[%s23463_s4 + $0x1060] sm:$0xff]  ;;  %v15167_v0 = vcombine.low %v2611_v17, %v2615_v39  ;;  %v2648_v17 = vld [vmem:[%s23463_s4 + $0x1128] sm:$0xff] }
 0x287   :  { %v15176_v62 = vcombine.high %v2619_v28, %v2623_v32  ;;  %v15175_v47 = vcombine.low %v2619_v28, %v2623_v32  ;;  %v2656_v28 = vld [vmem:[%s23463_s4 + $0x1168] sm:$0xff] }
 0x288   :  { %11706 = vmatpush1.bf16.msra.mxu1 %v15135_v11  ;;  %v2627_v11 = vld [vmem:[%s23463_s4 + $0x1080] sm:$0xff] }
 0x289   :  { %12265 = vmatpush1.bf16.msra.mxu0 %v15137_v45  ;;  %11707 = vmatprep.subr.bf16.mxu1 %v15144_v4  ;;  %v2631_v45 = vld [vmem:[%s23463_s4 + $0x10a0] sm:$0xff]  ;;  %v15178_v4 = vcombine.high %v2620_v61, %v2624_v55 }
 0x28a   :  { %12266 = vmatprep.subr.bf16.mxu0 %v15146_v3  ;;  %v2628_v3 = vld [vmem:[%s23463_s4 + $0x1088] sm:$0xff]  ;;  %v15184_v23 = vcombine.high %v2627_v11, %v2631_v45  ;;  %v15183_v35 = vcombine.low %v2627_v11, %v2631_v45 }
 0x28b   :  { %v15185_v63 = vcombine.low %v2628_v3, %v2632_v22  ;;  %v2660_v11 = vld [vmem:[%s23463_s4 + $0x1188] sm:$0xff] }
 0x28c   :  { %11708 = vmatpush1.bf16.msra.mxu1 %v15143_v57  ;;  %v15186_v57 = vcombine.high %v2628_v3, %v2632_v22  ;;  %v2664_v45 = vld [vmem:[%s23463_s4 + $0x11a8] sm:$0xff] }
 0x28d   :  { %12267 = vmatpush1.bf16.msra.mxu0 %v15145_v52  ;;  %11709 = vmatprep.subr.bf16.mxu1 %v15152_v56  ;;  %v2635_v52 = vld [vmem:[%s23463_s4 + $0x10c0] sm:$0xff] }
 0x28e   :  { %12268 = vmatprep.subr.bf16.mxu0 %v15154_v40  ;;  %v2639_v56 = vld [vmem:[%s23463_s4 + $0x10e0] sm:$0xff]  ;;  %v2636_v40 = vld [vmem:[%s23463_s4 + $0x10c8] sm:$0xff] }
 0x28f   :  { %v15192_v60 = vcombine.high %v2635_v52, %v2639_v56  ;;  %v15191_v39 = vcombine.low %v2635_v52, %v2639_v56  ;;  %v15193_v29 = vcombine.low %v2636_v40, %v2640_v33  ;;  %v2672_v52 = vld [vmem:[%s23463_s4 + $0x11e8] sm:$0xff] }
 0x290   :  { %11710 = vmatpush1.bf16.msra.mxu1 %v15151_v59  ;;  %v15194_v59 = vcombine.high %v2636_v40, %v2640_v33  ;;  %v15217_v40 = vcombine.low %v2660_v11, %v2664_v45 }
 0x291   :  { %12269 = vmatpush1.bf16.msra.mxu0 %v15153_v36  ;;  %11711 = vmatprep.subr.bf16.mxu1 %v15160_v31  ;;  %v2643_v36 = vld [vmem:[%s23463_s4 + $0x1100] sm:$0xff] }
 0x292   :  { %12270 = vmatprep.subr.bf16.mxu0 %v15162_v38  ;;  %v2647_v31 = vld [vmem:[%s23463_s4 + $0x1120] sm:$0xff]  ;;  %v2644_v38 = vld [vmem:[%s23463_s4 + $0x1108] sm:$0xff] }
 0x293   :  { %v15200_v20 = vcombine.high %v2643_v36, %v2647_v31  ;;  %v15199_v32 = vcombine.low %v2643_v36, %v2647_v31  ;;  %v2680_v36 = vld [vmem:[%s23463_s4 + $0x1228] sm:$0xff] }
 0x294   :  { %11712 = vmatpush1.bf16.msra.mxu1 %v15159_v48  ;;  %v15202_v48 = vcombine.high %v2644_v38, %v2648_v17 }
 0x295   :  { %12271 = vmatpush1.bf16.msra.mxu0 %v15161_v9  ;;  %11724 = vmatprep.subr.bf16.mxu1 %v15168_v51  ;;  %v2651_v9 = vld [vmem:[%s23463_s4 + $0x1140] sm:$0xff] }
 0x296   :  { %12283 = vmatprep.subr.bf16.mxu0 %v15170_v58  ;;  %v2655_v51 = vld [vmem:[%s23463_s4 + $0x1160] sm:$0xff]  ;;  %v2652_v58 = vld [vmem:[%s23463_s4 + $0x1148] sm:$0xff] }
 0x297   :  { %11714 = vmatmul.mubr.bf16.vlgmr.msra.gmra.mrb[24].mxu1 %v18333_v26  ;;  %v15208_v61 = vcombine.high %v2651_v9, %v2655_v51  ;;  %v15210_v55 = vcombine.high %v2652_v58, %v2656_v28  ;;  %v15209_v3 = vcombine.low %v2652_v58, %v2656_v28 }
 0x298   :  { %12273 = vmatmul.mubr.bf16.vlgmr.msra.gmra.mrb[28].mxu0 %v18333_v26  ;;  %11725 = vmatpush1.bf16.msra.mxu1 %v15167_v0  ;;  %v15201_v0 = vcombine.low %v2644_v38, %v2648_v17 }
 0x299   :  { %11756 = vmatprep.mubr.bf16.mxu1 %v18335_v41  ;;  %12284 = vmatpush1.bf16.msra.mxu0 %v15169_v19  ;;  %v2659_v19 = vld [vmem:[%s23463_s4 + $0x1180] sm:$0xff] }
 0x29a   :  { %12315 = vmatprep.mubr.bf16.mxu0 %v18335_v41  ;;  %11726 = vmatprep.subr.bf16.mxu1 %v15176_v62  ;;  %v2663_v62 = vld [vmem:[%s23463_s4 + $0x11a0] sm:$0xff] }
 0x29b   :  { %12285 = vmatprep.subr.bf16.mxu0 %v15178_v4  ;;  %v15207_v4 = vcombine.low %v2651_v9, %v2655_v51  ;;  %v15216_v22 = vcombine.high %v2659_v19, %v2663_v62  ;;  %v15215_v56 = vcombine.low %v2659_v19, %v2663_v62  ;;  %v2688_v9 = vld [vmem:[%s23463_s4 + $0x1268] sm:$0xff] }
 0x29c   :  { %11727 = vmatpush1.bf16.msra.mxu1 %v15175_v47  ;;  %v15218_v47 = vcombine.high %v2660_v11, %v2664_v45  ;;  %v2696_v19 = vld [vmem:[%s23463_s4 + $0x12a8] sm:$0xff] }
 0x29d   :  { %12286 = vmatpush1.bf16.msra.mxu0 %v15177_v6  ;;  %11728 = vmatprep.subr.bf16.mxu1 %v15184_v23  ;;  %v2667_v6 = vld [vmem:[%s23463_s4 + $0x11c0] sm:$0xff] }
 0x29e   :  { %12287 = vmatprep.subr.bf16.mxu0 %v15186_v57  ;;  %v2671_v23 = vld [vmem:[%s23463_s4 + $0x11e0] sm:$0xff]  ;;  %v2668_v57 = vld [vmem:[%s23463_s4 + $0x11c8] sm:$0xff] }
 0x29f   :  { %v15224_v33 = vcombine.high %v2667_v6, %v2671_v23  ;;  %v15223_v31 = vcombine.low %v2667_v6, %v2671_v23  ;;  %v15225_v38 = vcombine.low %v2668_v57, %v2672_v52  ;;  %v2704_v6 = vld [vmem:[%s23463_s4 + $0x12e8] sm:$0xff] }
 0x2a0   :  { %11729 = vmatpush1.bf16.msra.mxu1 %v15183_v35  ;;  %v15226_v35 = vcombine.high %v2668_v57, %v2672_v52 }
 0x2a1   :  { %12288 = vmatpush1.bf16.msra.mxu0 %v15185_v63  ;;  %11730 = vmatprep.subr.bf16.mxu1 %v15192_v60  ;;  %v2675_v63 = vld [vmem:[%s23463_s4 + $0x1200] sm:$0xff] }
 0x2a2   :  { %12289 = vmatprep.subr.bf16.mxu0 %v15194_v59  ;;  %v2679_v60 = vld [vmem:[%s23463_s4 + $0x1220] sm:$0xff]  ;;  %v2676_v59 = vld [vmem:[%s23463_s4 + $0x1208] sm:$0xff] }
 0x2a3   :  { %v15232_v17 = vcombine.high %v2675_v63, %v2679_v60  ;;  %v15231_v51 = vcombine.low %v2675_v63, %v2679_v60  ;;  %v15233_v58 = vcombine.low %v2676_v59, %v2680_v36  ;;  %v2712_v63 = vld [vmem:[%s23463_s4 + $0x1328] sm:$0xff] }
 0x2a4   :  { %11731 = vmatpush1.bf16.msra.mxu1 %v15191_v39  ;;  %v15234_v39 = vcombine.high %v2676_v59, %v2680_v36 }
 0x2a5   :  { %12290 = vmatpush1.bf16.msra.mxu0 %v15193_v29  ;;  %11732 = vmatprep.subr.bf16.mxu1 %v15200_v20  ;;  %v2683_v29 = vld [vmem:[%s23463_s4 + $0x1240] sm:$0xff] }
 0x2a6   :  { %12291 = vmatprep.subr.bf16.mxu0 %v15202_v48  ;;  %v2687_v20 = vld [vmem:[%s23463_s4 + $0x1260] sm:$0xff]  ;;  %v2684_v48 = vld [vmem:[%s23463_s4 + $0x1248] sm:$0xff] }
 0x2a7   :  { %v15240_v28 = vcombine.high %v2683_v29, %v2687_v20  ;;  %v15239_v62 = vcombine.low %v2683_v29, %v2687_v20  ;;  %v15241_v11 = vcombine.low %v2684_v48, %v2688_v9  ;;  %v2720_v29 = vld [vmem:[%s23463_s4 + $0x1368] sm:$0xff] }
 0x2a8   :  { %11733 = vmatpush1.bf16.msra.mxu1 %v15199_v32  ;;  %v15242_v32 = vcombine.high %v2684_v48, %v2688_v9 }
 0x2a9   :  { %12292 = vmatpush1.bf16.msra.mxu0 %v15201_v0  ;;  %11734 = vmatprep.subr.bf16.mxu1 %v15208_v61  ;;  %v2691_v0 = vld [vmem:[%s23463_s4 + $0x1280] sm:$0xff] }
 0x2aa   :  { %12293 = vmatprep.subr.bf16.mxu0 %v15210_v55  ;;  %v2695_v61 = vld [vmem:[%s23463_s4 + $0x12a0] sm:$0xff]  ;;  %v2692_v55 = vld [vmem:[%s23463_s4 + $0x1288] sm:$0xff] }
 0x2ab   :  { %v15248_v45 = vcombine.high %v2691_v0, %v2695_v61  ;;  %v15247_v23 = vcombine.low %v2691_v0, %v2695_v61  ;;  %v15249_v57 = vcombine.low %v2692_v55, %v2696_v19  ;;  %v2728_v0 = vld [vmem:[%s23463_s4 + $0x13a8] sm:$0xff] }
 0x2ac   :  { %11735 = vmatpush1.bf16.msra.mxu1 %v15207_v4  ;;  %v15250_v4 = vcombine.high %v2692_v55, %v2696_v19 }
 0x2ad   :  { %12294 = vmatpush1.bf16.msra.mxu0 %v15209_v3  ;;  %11736 = vmatprep.subr.bf16.mxu1 %v15216_v22  ;;  %v2699_v3 = vld [vmem:[%s23463_s4 + $0x12c0] sm:$0xff] }
 0x2ae   :  { %12295 = vmatprep.subr.bf16.mxu0 %v15218_v47  ;;  %v2703_v22 = vld [vmem:[%s23463_s4 + $0x12e0] sm:$0xff]  ;;  %v2700_v47 = vld [vmem:[%s23463_s4 + $0x12c8] sm:$0xff] }
 0x2af   :  { %v15256_v52 = vcombine.high %v2699_v3, %v2703_v22  ;;  %v15255_v60 = vcombine.low %v2699_v3, %v2703_v22  ;;  %v15257_v59 = vcombine.low %v2700_v47, %v2704_v6  ;;  %v2736_v3 = vld [vmem:[%s23463_s4 + $0x13e8] sm:$0xff] }
 0x2b0   :  { %11737 = vmatpush1.bf16.msra.mxu1 %v15215_v56  ;;  %v15258_v56 = vcombine.high %v2700_v47, %v2704_v6 }
 0x2b1   :  { %12296 = vmatpush1.bf16.msra.mxu0 %v15217_v40  ;;  %11738 = vmatprep.subr.bf16.mxu1 %v15224_v33  ;;  %v2707_v40 = vld [vmem:[%s23463_s4 + $0x1300] sm:$0xff] }
 0x2b2   :  { %12297 = vmatprep.subr.bf16.mxu0 %v15226_v35  ;;  %v2711_v33 = vld [vmem:[%s23463_s4 + $0x1320] sm:$0xff]  ;;  %v2708_v35 = vld [vmem:[%s23463_s4 + $0x1308] sm:$0xff] }
 0x2b3   :  { %v15264_v36 = vcombine.high %v2707_v40, %v2711_v33  ;;  %v15263_v20 = vcombine.low %v2707_v40, %v2711_v33  ;;  %v15265_v48 = vcombine.low %v2708_v35, %v2712_v63  ;;  %v2744_v40 = vld [vmem:[%s23463_s4 + $0x1428] sm:$0xff] }
 0x2b4   :  { %11739 = vmatpush1.bf16.msra.mxu1 %v15223_v31  ;;  %v15266_v31 = vcombine.high %v2708_v35, %v2712_v63 }
 0x2b5   :  { %12298 = vmatpush1.bf16.msra.mxu0 %v15225_v38  ;;  %11740 = vmatprep.subr.bf16.mxu1 %v15232_v17  ;;  %v2715_v38 = vld [vmem:[%s23463_s4 + $0x1340] sm:$0xff] }
 0x2b6   :  { %12299 = vmatprep.subr.bf16.mxu0 %v15234_v39  ;;  %v2719_v17 = vld [vmem:[%s23463_s4 + $0x1360] sm:$0xff]  ;;  %v2716_v39 = vld [vmem:[%s23463_s4 + $0x1348] sm:$0xff] }
 0x2b7   :  { %v15272_v9 = vcombine.high %v2715_v38, %v2719_v17  ;;  %v15271_v61 = vcombine.low %v2715_v38, %v2719_v17  ;;  %v15273_v55 = vcombine.low %v2716_v39, %v2720_v29  ;;  %v2748_v38 = vld [vmem:[%s23463_s4 + $0x1448] sm:$0xff] }
 0x2b8   :  { %11741 = vmatpush1.bf16.msra.mxu1 %v15231_v51  ;;  %v15274_v51 = vcombine.high %v2716_v39, %v2720_v29  ;;  %v2752_v17 = vld [vmem:[%s23463_s4 + $0x1468] sm:$0xff] }
 0x2b9   :  { %12300 = vmatpush1.bf16.msra.mxu0 %v15233_v58  ;;  %11742 = vmatprep.subr.bf16.mxu1 %v15240_v28  ;;  %v2723_v58 = vld [vmem:[%s23463_s4 + $0x1380] sm:$0xff] }
 0x2ba   :  { %12301 = vmatprep.subr.bf16.mxu0 %v15242_v32  ;;  %v2727_v28 = vld [vmem:[%s23463_s4 + $0x13a0] sm:$0xff]  ;;  %v2724_v32 = vld [vmem:[%s23463_s4 + $0x1388] sm:$0xff] }
 0x2bb   :  { %v15280_v19 = vcombine.high %v2723_v58, %v2727_v28  ;;  %v15279_v22 = vcombine.low %v2723_v58, %v2727_v28  ;;  %v15281_v47 = vcombine.low %v2724_v32, %v2728_v0  ;;  %v2760_v58 = vld [vmem:[%s23463_s4 + $0x14a8] sm:$0xff] }
 0x2bc   :  { %11743 = vmatpush1.bf16.msra.mxu1 %v15239_v62  ;;  %v15282_v62 = vcombine.high %v2724_v32, %v2728_v0  ;;  %v15305_v32 = vcombine.low %v2748_v38, %v2752_v17 }
 0x2bd   :  { %12302 = vmatpush1.bf16.msra.mxu0 %v15241_v11  ;;  %11744 = vmatprep.subr.bf16.mxu1 %v15248_v45  ;;  %v2731_v11 = vld [vmem:[%s23463_s4 + $0x13c0] sm:$0xff] }
 0x2be   :  { %12303 = vmatprep.subr.bf16.mxu0 %v15250_v4  ;;  %v2735_v45 = vld [vmem:[%s23463_s4 + $0x13e0] sm:$0xff]  ;;  %v2732_v4 = vld [vmem:[%s23463_s4 + $0x13c8] sm:$0xff] }
 0x2bf   :  { %v15288_v6 = vcombine.high %v2731_v11, %v2735_v45  ;;  %v15287_v33 = vcombine.low %v2731_v11, %v2735_v45  ;;  %v15289_v35 = vcombine.low %v2732_v4, %v2736_v3  ;;  %v2768_v11 = vld [vmem:[%s23463_s4 + $0x14e8] sm:$0xff] }
 0x2c0   :  { %11745 = vmatpush1.bf16.msra.mxu1 %v15247_v23  ;;  %v15290_v23 = vcombine.high %v2732_v4, %v2736_v3 }
 0x2c1   :  { %12304 = vmatpush1.bf16.msra.mxu0 %v15249_v57  ;;  %11746 = vmatprep.subr.bf16.mxu1 %v15256_v52  ;;  %v2739_v57 = vld [vmem:[%s23463_s4 + $0x1400] sm:$0xff] }
 0x2c2   :  { %12305 = vmatprep.subr.bf16.mxu0 %v15258_v56  ;;  %v2743_v52 = vld [vmem:[%s23463_s4 + $0x1420] sm:$0xff]  ;;  %v2740_v56 = vld [vmem:[%s23463_s4 + $0x1408] sm:$0xff] }
 0x2c3   :  { %v15296_v63 = vcombine.high %v2739_v57, %v2743_v52  ;;  %v15297_v39 = vcombine.low %v2740_v56, %v2744_v40 }
 0x2c4   :  { %11747 = vmatpush1.bf16.msra.mxu1 %v15255_v60  ;;  %v15298_v60 = vcombine.high %v2740_v56, %v2744_v40 }
 0x2c5   :  { %12306 = vmatpush1.bf16.msra.mxu0 %v15257_v59  ;;  %11748 = vmatprep.subr.bf16.mxu1 %v15264_v36  ;;  %v2747_v59 = vld [vmem:[%s23463_s4 + $0x1440] sm:$0xff] }
 0x2c6   :  { %12307 = vmatprep.subr.bf16.mxu0 %v15266_v31  ;;  %v2751_v36 = vld [vmem:[%s23463_s4 + $0x1460] sm:$0xff]  ;;  %v15295_v31 = vcombine.low %v2739_v57, %v2743_v52  ;;  %v2776_v57 = vld [vmem:[%s23463_s4 + $0x1528] sm:$0xff] }
 0x2c7   :  { %v15304_v29 = vcombine.high %v2747_v59, %v2751_v36  ;;  %v15303_v28 = vcombine.low %v2747_v59, %v2751_v36  ;;  %v2784_v59 = vld [vmem:[%s23463_s4 + $0x1568] sm:$0xff] }
 0x2c8   :  { %11749 = vmatpush1.bf16.msra.mxu1 %v15263_v20  ;;  %v2755_v20 = vld [vmem:[%s23463_s4 + $0x1480] sm:$0xff] }
 0x2c9   :  { %12308 = vmatpush1.bf16.msra.mxu0 %v15265_v48  ;;  %11750 = vmatprep.subr.bf16.mxu1 %v15272_v9  ;;  %v2759_v48 = vld [vmem:[%s23463_s4 + $0x14a0] sm:$0xff]  ;;  %v15306_v9 = vcombine.high %v2748_v38, %v2752_v17 }
 0x2ca   :  { %12309 = vmatprep.subr.bf16.mxu0 %v15274_v51  ;;  %v2756_v51 = vld [vmem:[%s23463_s4 + $0x1488] sm:$0xff]  ;;  %v15312_v0 = vcombine.high %v2755_v20, %v2759_v48  ;;  %v15311_v45 = vcombine.low %v2755_v20, %v2759_v48 }
 0x2cb   :  { %v15313_v4 = vcombine.low %v2756_v51, %v2760_v58  ;;  %v2788_v20 = vld [vmem:[%s23463_s4 + $0x1588] sm:$0xff] }
 0x2cc   :  { %11751 = vmatpush1.bf16.msra.mxu1 %v15271_v61  ;;  %v15314_v61 = vcombine.high %v2756_v51, %v2760_v58  ;;  %v2792_v48 = vld [vmem:[%s23463_s4 + $0x15a8] sm:$0xff] }
 0x2cd   :  { %12310 = vmatpush1.bf16.msra.mxu0 %v15273_v55  ;;  %11752 = vmatprep.subr.bf16.mxu1 %v15280_v19  ;;  %v2763_v55 = vld [vmem:[%s23463_s4 + $0x14c0] sm:$0xff] }
 0x2ce   :  { %12311 = vmatprep.subr.bf16.mxu0 %v15282_v62  ;;  %v2767_v19 = vld [vmem:[%s23463_s4 + $0x14e0] sm:$0xff]  ;;  %v2764_v62 = vld [vmem:[%s23463_s4 + $0x14c8] sm:$0xff] }
 0x2cf   :  { %v15320_v3 = vcombine.high %v2763_v55, %v2767_v19  ;;  %v15319_v52 = vcombine.low %v2763_v55, %v2767_v19  ;;  %v15321_v56 = vcombine.low %v2764_v62, %v2768_v11  ;;  %v2800_v55 = vld [vmem:[%s23463_s4 + $0x15e8] sm:$0xff] }
 0x2d0   :  { %11753 = vmatpush1.bf16.msra.mxu1 %v15279_v22  ;;  %v15322_v22 = vcombine.high %v2764_v62, %v2768_v11  ;;  %v15345_v62 = vcombine.low %v2788_v20, %v2792_v48 }
 0x2d1   :  { %12312 = vmatpush1.bf16.msra.mxu0 %v15281_v47  ;;  %11754 = vmatprep.subr.bf16.mxu1 %v15288_v6  ;;  %v2771_v47 = vld [vmem:[%s23463_s4 + $0x1500] sm:$0xff] }
 0x2d2   :  { %12313 = vmatprep.subr.bf16.mxu0 %v15290_v23  ;;  %v2775_v6 = vld [vmem:[%s23463_s4 + $0x1520] sm:$0xff]  ;;  %v2772_v23 = vld [vmem:[%s23463_s4 + $0x1508] sm:$0xff] }
 0x2d3   :  { %v15328_v40 = vcombine.high %v2771_v47, %v2775_v6  ;;  %v15327_v36 = vcombine.low %v2771_v47, %v2775_v6  ;;  %v2808_v47 = vld [vmem:[%s23463_s4 + $0x1628] sm:$0xff] }
 0x2d4   :  { %11755 = vmatpush1.bf16.msra.mxu1 %v15287_v33  ;;  %v15330_v33 = vcombine.high %v2772_v23, %v2776_v57 }
 0x2d5   :  { %12314 = vmatpush1.bf16.msra.mxu0 %v15289_v35  ;;  %11767 = vmatprep.subr.bf16.mxu1 %v15296_v63  ;;  %v2779_v35 = vld [vmem:[%s23463_s4 + $0x1540] sm:$0xff] }
 0x2d6   :  { %12326 = vmatprep.subr.bf16.mxu0 %v15298_v60  ;;  %v2783_v63 = vld [vmem:[%s23463_s4 + $0x1560] sm:$0xff]  ;;  %v2780_v60 = vld [vmem:[%s23463_s4 + $0x1548] sm:$0xff] }
 0x2d7   :  { %11757 = vmatmul.mubr.bf16.vlgmr.msra.gmra.mrb[24].mxu1 %v18343_v30  ;;  %v15336_v38 = vcombine.high %v2779_v35, %v2783_v63  ;;  %v15338_v17 = vcombine.high %v2780_v60, %v2784_v59  ;;  %v15337_v51 = vcombine.low %v2780_v60, %v2784_v59 }
 0x2d8   :  { %12316 = vmatmul.mubr.bf16.vlgmr.msra.gmra.mrb[28].mxu0 %v18343_v30  ;;  %11768 = vmatpush1.bf16.msra.mxu1 %v15295_v31  ;;  %v15329_v31 = vcombine.low %v2772_v23, %v2776_v57 }
 0x2d9   :  { %11799 = vmatprep.mubr.bf16.mxu1 %v18345_v5  ;;  %12327 = vmatpush1.bf16.msra.mxu0 %v15297_v39  ;;  %v2787_v39 = vld [vmem:[%s23463_s4 + $0x1580] sm:$0xff] }
 0x2da   :  { %12358 = vmatprep.mubr.bf16.mxu0 %v18345_v5  ;;  %11769 = vmatprep.subr.bf16.mxu1 %v15304_v29  ;;  %v2791_v29 = vld [vmem:[%s23463_s4 + $0x15a0] sm:$0xff] }
 0x2db   :  { %12328 = vmatprep.subr.bf16.mxu0 %v15306_v9  ;;  %v15335_v9 = vcombine.low %v2779_v35, %v2783_v63  ;;  %v15344_v58 = vcombine.high %v2787_v39, %v2791_v29  ;;  %v15343_v19 = vcombine.low %v2787_v39, %v2791_v29  ;;  %v2816_v35 = vld [vmem:[%s23463_s4 + $0x1668] sm:$0xff] }
 0x2dc   :  { %11770 = vmatpush1.bf16.msra.mxu1 %v15303_v28  ;;  %v15346_v28 = vcombine.high %v2788_v20, %v2792_v48  ;;  %v2824_v39 = vld [vmem:[%s23463_s4 + $0x16a8] sm:$0xff] }
 0x2dd   :  { %12329 = vmatpush1.bf16.msra.mxu0 %v15305_v32  ;;  %11771 = vmatprep.subr.bf16.mxu1 %v15312_v0  ;;  %v2795_v32 = vld [vmem:[%s23463_s4 + $0x15c0] sm:$0xff] }
 0x2de   :  { %12330 = vmatprep.subr.bf16.mxu0 %v15314_v61  ;;  %v2799_v0 = vld [vmem:[%s23463_s4 + $0x15e0] sm:$0xff]  ;;  %v2796_v61 = vld [vmem:[%s23463_s4 + $0x15c8] sm:$0xff] }
 0x2df   :  { %v15352_v11 = vcombine.high %v2795_v32, %v2799_v0  ;;  %v15351_v6 = vcombine.low %v2795_v32, %v2799_v0  ;;  %v15353_v23 = vcombine.low %v2796_v61, %v2800_v55  ;;  %v2832_v32 = vld [vmem:[%s23463_s4 + $0x16e8] sm:$0xff] }
 0x2e0   :  { %11772 = vmatpush1.bf16.msra.mxu1 %v15311_v45  ;;  %v15354_v45 = vcombine.high %v2796_v61, %v2800_v55 }
 0x2e1   :  { %12331 = vmatpush1.bf16.msra.mxu0 %v15313_v4  ;;  %11773 = vmatprep.subr.bf16.mxu1 %v15320_v3  ;;  %v2803_v4 = vld [vmem:[%s23463_s4 + $0x1600] sm:$0xff] }
 0x2e2   :  { %12332 = vmatprep.subr.bf16.mxu0 %v15322_v22  ;;  %v2807_v3 = vld [vmem:[%s23463_s4 + $0x1620] sm:$0xff]  ;;  %v2804_v22 = vld [vmem:[%s23463_s4 + $0x1608] sm:$0xff] }
 0x2e3   :  { %v15360_v57 = vcombine.high %v2803_v4, %v2807_v3  ;;  %v15359_v63 = vcombine.low %v2803_v4, %v2807_v3  ;;  %v15361_v60 = vcombine.low %v2804_v22, %v2808_v47  ;;  %v2840_v4 = vld [vmem:[%s23463_s4 + $0x1728] sm:$0xff] }
 0x2e4   :  { %11774 = vmatpush1.bf16.msra.mxu1 %v15319_v52  ;;  %v15362_v52 = vcombine.high %v2804_v22, %v2808_v47 }
 0x2e5   :  { %12333 = vmatpush1.bf16.msra.mxu0 %v15321_v56  ;;  %11775 = vmatprep.subr.bf16.mxu1 %v15328_v40  ;;  %v2811_v56 = vld [vmem:[%s23463_s4 + $0x1640] sm:$0xff] }
 0x2e6   :  { %12334 = vmatprep.subr.bf16.mxu0 %v15330_v33  ;;  %v2815_v40 = vld [vmem:[%s23463_s4 + $0x1660] sm:$0xff]  ;;  %v2812_v33 = vld [vmem:[%s23463_s4 + $0x1648] sm:$0xff] }
 0x2e7   :  { %v15368_v59 = vcombine.high %v2811_v56, %v2815_v40  ;;  %v15367_v29 = vcombine.low %v2811_v56, %v2815_v40  ;;  %v15369_v20 = vcombine.low %v2812_v33, %v2816_v35  ;;  %v2848_v56 = vld [vmem:[%s23463_s4 + $0x1768] sm:$0xff] }
 0x2e8   :  { %11776 = vmatpush1.bf16.msra.mxu1 %v15327_v36  ;;  %v15370_v36 = vcombine.high %v2812_v33, %v2816_v35 }
 0x2e9   :  { %12335 = vmatpush1.bf16.msra.mxu0 %v15329_v31  ;;  %11777 = vmatprep.subr.bf16.mxu1 %v15336_v38  ;;  %v2819_v31 = vld [vmem:[%s23463_s4 + $0x1680] sm:$0xff] }
 0x2ea   :  { %12336 = vmatprep.subr.bf16.mxu0 %v15338_v17  ;;  %v2823_v38 = vld [vmem:[%s23463_s4 + $0x16a0] sm:$0xff]  ;;  %v2820_v17 = vld [vmem:[%s23463_s4 + $0x1688] sm:$0xff] }
 0x2eb   :  { %v15376_v48 = vcombine.high %v2819_v31, %v2823_v38  ;;  %v15375_v0 = vcombine.low %v2819_v31, %v2823_v38  ;;  %v15377_v61 = vcombine.low %v2820_v17, %v2824_v39  ;;  %v2856_v31 = vld [vmem:[%s23463_s4 + $0x17a8] sm:$0xff] }
 0x2ec   :  { %11778 = vmatpush1.bf16.msra.mxu1 %v15335_v9  ;;  %v15378_v9 = vcombine.high %v2820_v17, %v2824_v39 }
 0x2ed   :  { %12337 = vmatpush1.bf16.msra.mxu0 %v15337_v51  ;;  %11779 = vmatprep.subr.bf16.mxu1 %v15344_v58  ;;  %v2827_v51 = vld [vmem:[%s23463_s4 + $0x16c0] sm:$0xff] }
 0x2ee   :  { %12338 = vmatprep.subr.bf16.mxu0 %v15346_v28  ;;  %v2831_v58 = vld [vmem:[%s23463_s4 + $0x16e0] sm:$0xff]  ;;  %v2828_v28 = vld [vmem:[%s23463_s4 + $0x16c8] sm:$0xff] }
 0x2ef   :  { %v15384_v55 = vcombine.high %v2827_v51, %v2831_v58  ;;  %v15383_v3 = vcombine.low %v2827_v51, %v2831_v58  ;;  %v15385_v22 = vcombine.low %v2828_v28, %v2832_v32  ;;  %v2864_v51 = vld [vmem:[%s23463_s4 + $0x17e8] sm:$0xff] }
 0x2f0   :  { %11780 = vmatpush1.bf16.msra.mxu1 %v15343_v19  ;;  %v15386_v19 = vcombine.high %v2828_v28, %v2832_v32 }
 0x2f1   :  { %12339 = vmatpush1.bf16.msra.mxu0 %v15345_v62  ;;  %11781 = vmatprep.subr.bf16.mxu1 %v15352_v11  ;;  %v2835_v62 = vld [vmem:[%s23463_s4 + $0x1700] sm:$0xff] }
 0x2f2   :  { %12340 = vmatprep.subr.bf16.mxu0 %v15354_v45  ;;  %v2839_v11 = vld [vmem:[%s23463_s4 + $0x1720] sm:$0xff]  ;;  %v2836_v45 = vld [vmem:[%s23463_s4 + $0x1708] sm:$0xff] }
 0x2f3   :  { %v15392_v47 = vcombine.high %v2835_v62, %v2839_v11  ;;  %v15391_v40 = vcombine.low %v2835_v62, %v2839_v11  ;;  %v15393_v33 = vcombine.low %v2836_v45, %v2840_v4  ;;  %v2872_v62 = vld [vmem:[%s23463_s4 + $0x1828] sm:$0xff] }
 0x2f4   :  { %11782 = vmatpush1.bf16.msra.mxu1 %v15351_v6  ;;  %v15394_v6 = vcombine.high %v2836_v45, %v2840_v4 }
 0x2f5   :  { %12341 = vmatpush1.bf16.msra.mxu0 %v15353_v23  ;;  %11783 = vmatprep.subr.bf16.mxu1 %v15360_v57  ;;  %v2843_v23 = vld [vmem:[%s23463_s4 + $0x1740] sm:$0xff] }
 0x2f6   :  { %12342 = vmatprep.subr.bf16.mxu0 %v15362_v52  ;;  %v2847_v57 = vld [vmem:[%s23463_s4 + $0x1760] sm:$0xff]  ;;  %v2844_v52 = vld [vmem:[%s23463_s4 + $0x1748] sm:$0xff] }
 0x2f7   :  { %v15400_v35 = vcombine.high %v2843_v23, %v2847_v57  ;;  %v15399_v38 = vcombine.low %v2843_v23, %v2847_v57  ;;  %v15401_v17 = vcombine.low %v2844_v52, %v2848_v56  ;;  %v2876_v23 = vld [vmem:[%s23463_s4 + $0x1848] sm:$0xff] }
 0x2f8   :  { %11784 = vmatpush1.bf16.msra.mxu1 %v15359_v63  ;;  %v15402_v63 = vcombine.high %v2844_v52, %v2848_v56  ;;  %v2880_v57 = vld [vmem:[%s23463_s4 + $0x1868] sm:$0xff] }
 0x2f9   :  { %12343 = vmatpush1.bf16.msra.mxu0 %v15361_v60  ;;  %11785 = vmatprep.subr.bf16.mxu1 %v15368_v59  ;;  %v2851_v60 = vld [vmem:[%s23463_s4 + $0x1780] sm:$0xff] }
 0x2fa   :  { %12344 = vmatprep.subr.bf16.mxu0 %v15370_v36  ;;  %v2855_v59 = vld [vmem:[%s23463_s4 + $0x17a0] sm:$0xff]  ;;  %v2852_v36 = vld [vmem:[%s23463_s4 + $0x1788] sm:$0xff] }
 0x2fb   :  { %v15408_v39 = vcombine.high %v2851_v60, %v2855_v59  ;;  %v15407_v58 = vcombine.low %v2851_v60, %v2855_v59  ;;  %v15409_v28 = vcombine.low %v2852_v36, %v2856_v31  ;;  %v2888_v60 = vld [vmem:[%s23463_s4 + $0x18a8] sm:$0xff] }
 0x2fc   :  { %11786 = vmatpush1.bf16.msra.mxu1 %v15367_v29  ;;  %v15410_v29 = vcombine.high %v2852_v36, %v2856_v31  ;;  %v15433_v36 = vcombine.low %v2876_v23, %v2880_v57 }
 0x2fd   :  { %12345 = vmatpush1.bf16.msra.mxu0 %v15369_v20  ;;  %11787 = vmatprep.subr.bf16.mxu1 %v15376_v48  ;;  %v2859_v20 = vld [vmem:[%s23463_s4 + $0x17c0] sm:$0xff] }
 0x2fe   :  { %12346 = vmatprep.subr.bf16.mxu0 %v15378_v9  ;;  %v2863_v48 = vld [vmem:[%s23463_s4 + $0x17e0] sm:$0xff]  ;;  %v2860_v9 = vld [vmem:[%s23463_s4 + $0x17c8] sm:$0xff] }
 0x2ff   :  { %v15416_v32 = vcombine.high %v2859_v20, %v2863_v48  ;;  %v15415_v11 = vcombine.low %v2859_v20, %v2863_v48  ;;  %v15417_v45 = vcombine.low %v2860_v9, %v2864_v51  ;;  %v2896_v20 = vld [vmem:[%s23463_s4 + $0x18e8] sm:$0xff] }
 0x300   :  { %11788 = vmatpush1.bf16.msra.mxu1 %v15375_v0  ;;  %v15418_v0 = vcombine.high %v2860_v9, %v2864_v51 }
 0x301   :  { %12347 = vmatpush1.bf16.msra.mxu0 %v15377_v61  ;;  %11789 = vmatprep.subr.bf16.mxu1 %v15384_v55  ;;  %v2867_v61 = vld [vmem:[%s23463_s4 + $0x1800] sm:$0xff] }
 0x302   :  { %12348 = vmatprep.subr.bf16.mxu0 %v15386_v19  ;;  %v2871_v55 = vld [vmem:[%s23463_s4 + $0x1820] sm:$0xff]  ;;  %v2868_v19 = vld [vmem:[%s23463_s4 + $0x1808] sm:$0xff] }
 0x303   :  { %v15424_v4 = vcombine.high %v2867_v61, %v2871_v55  ;;  %v15425_v52 = vcombine.low %v2868_v19, %v2872_v62 }
 0x304   :  { %11790 = vmatpush1.bf16.msra.mxu1 %v15383_v3  ;;  %v15426_v3 = vcombine.high %v2868_v19, %v2872_v62 }
 0x305   :  { %12349 = vmatpush1.bf16.msra.mxu0 %v15385_v22  ;;  %11791 = vmatprep.subr.bf16.mxu1 %v15392_v47  ;;  %v2875_v22 = vld [vmem:[%s23463_s4 + $0x1840] sm:$0xff] }
 0x306   :  { %12350 = vmatprep.subr.bf16.mxu0 %v15394_v6  ;;  %v2879_v47 = vld [vmem:[%s23463_s4 + $0x1860] sm:$0xff]  ;;  %v15423_v6 = vcombine.low %v2867_v61, %v2871_v55  ;;  %v2904_v61 = vld [vmem:[%s23463_s4 + $0x1928] sm:$0xff] }
 0x307   :  { %v15432_v56 = vcombine.high %v2875_v22, %v2879_v47  ;;  %v15431_v59 = vcombine.low %v2875_v22, %v2879_v47  ;;  %v2912_v22 = vld [vmem:[%s23463_s4 + $0x1968] sm:$0xff] }
 0x308   :  { %11792 = vmatpush1.bf16.msra.mxu1 %v15391_v40  ;;  %v2883_v40 = vld [vmem:[%s23463_s4 + $0x1880] sm:$0xff] }
 0x309   :  { %12351 = vmatpush1.bf16.msra.mxu0 %v15393_v33  ;;  %11793 = vmatprep.subr.bf16.mxu1 %v15400_v35  ;;  %v2887_v33 = vld [vmem:[%s23463_s4 + $0x18a0] sm:$0xff]  ;;  %v15434_v35 = vcombine.high %v2876_v23, %v2880_v57 }
 0x30a   :  { %12352 = vmatprep.subr.bf16.mxu0 %v15402_v63  ;;  %v2884_v63 = vld [vmem:[%s23463_s4 + $0x1888] sm:$0xff]  ;;  %v15440_v31 = vcombine.high %v2883_v40, %v2887_v33  ;;  %v15439_v48 = vcombine.low %v2883_v40, %v2887_v33 }
 0x30b   :  { %v15441_v9 = vcombine.low %v2884_v63, %v2888_v60  ;;  %v2916_v40 = vld [vmem:[%s23463_s4 + $0x1988] sm:$0xff] }
 0x30c   :  { %11794 = vmatpush1.bf16.msra.mxu1 %v15399_v38  ;;  %v15442_v38 = vcombine.high %v2884_v63, %v2888_v60  ;;  %v2920_v33 = vld [vmem:[%s23463_s4 + $0x19a8] sm:$0xff] }
 0x30d   :  { %12353 = vmatpush1.bf16.msra.mxu0 %v15401_v17  ;;  %11795 = vmatprep.subr.bf16.mxu1 %v15408_v39  ;;  %v2891_v17 = vld [vmem:[%s23463_s4 + $0x18c0] sm:$0xff] }
 0x30e   :  { %12354 = vmatprep.subr.bf16.mxu0 %v15410_v29  ;;  %v2895_v39 = vld [vmem:[%s23463_s4 + $0x18e0] sm:$0xff]  ;;  %v2892_v29 = vld [vmem:[%s23463_s4 + $0x18c8] sm:$0xff] }
 0x30f   :  { %v15448_v51 = vcombine.high %v2891_v17, %v2895_v39  ;;  %v15447_v55 = vcombine.low %v2891_v17, %v2895_v39  ;;  %v15449_v19 = vcombine.low %v2892_v29, %v2896_v20  ;;  %v2928_v17 = vld [vmem:[%s23463_s4 + $0x19e8] sm:$0xff] }
 0x310   :  { %11796 = vmatpush1.bf16.msra.mxu1 %v15407_v58  ;;  %v15450_v58 = vcombine.high %v2892_v29, %v2896_v20  ;;  %v15473_v29 = vcombine.low %v2916_v40, %v2920_v33 }
 0x311   :  { %12355 = vmatpush1.bf16.msra.mxu0 %v15409_v28  ;;  %11797 = vmatprep.subr.bf16.mxu1 %v15416_v32  ;;  %v2899_v28 = vld [vmem:[%s23463_s4 + $0x1900] sm:$0xff] }
 0x312   :  { %12356 = vmatprep.subr.bf16.mxu0 %v15418_v0  ;;  %v2903_v32 = vld [vmem:[%s23463_s4 + $0x1920] sm:$0xff]  ;;  %v2900_v0 = vld [vmem:[%s23463_s4 + $0x1908] sm:$0xff] }
 0x313   :  { %v15456_v62 = vcombine.high %v2899_v28, %v2903_v32  ;;  %v15455_v47 = vcombine.low %v2899_v28, %v2903_v32  ;;  %v2936_v28 = vld [vmem:[%s23463_s4 + $0x1a28] sm:$0xff] }
 0x314   :  { %11798 = vmatpush1.bf16.msra.mxu1 %v15415_v11  ;;  %v15458_v11 = vcombine.high %v2900_v0, %v2904_v61 }
 0x315   :  { %12357 = vmatpush1.bf16.msra.mxu0 %v15417_v45  ;;  %11810 = vmatprep.subr.bf16.mxu1 %v15424_v4  ;;  %v2907_v45 = vld [vmem:[%s23463_s4 + $0x1940] sm:$0xff] }
 0x316   :  { %12369 = vmatprep.subr.bf16.mxu0 %v15426_v3  ;;  %v2911_v4 = vld [vmem:[%s23463_s4 + $0x1960] sm:$0xff]  ;;  %v2908_v3 = vld [vmem:[%s23463_s4 + $0x1948] sm:$0xff] }
 0x317   :  { %11800 = vmatmul.mubr.bf16.vlgmr.msra.gmra.mrb[24].mxu1 %v18347_v25  ;;  %v15464_v23 = vcombine.high %v2907_v45, %v2911_v4  ;;  %v15466_v57 = vcombine.high %v2908_v3, %v2912_v22  ;;  %v15465_v63 = vcombine.low %v2908_v3, %v2912_v22 }
 0x318   :  { %12359 = vmatmul.mubr.bf16.vlgmr.msra.gmra.mrb[28].mxu0 %v18347_v25  ;;  %11811 = vmatpush1.bf16.msra.mxu1 %v15423_v6  ;;  %v15457_v6 = vcombine.low %v2900_v0, %v2904_v61 }
 0x319   :  { %11842 = vmatprep.mubr.bf16.mxu1 %v18509_v44  ;;  %12370 = vmatpush1.bf16.msra.mxu0 %v15425_v52  ;;  %v2915_v52 = vld [vmem:[%s23463_s4 + $0x1980] sm:$0xff] }
 0x31a   :  { %12401 = vmatprep.mubr.bf16.mxu0 %v18509_v44  ;;  %11812 = vmatprep.subr.bf16.mxu1 %v15432_v56  ;;  %v2919_v56 = vld [vmem:[%s23463_s4 + $0x19a0] sm:$0xff] }
 0x31b   :  { %12371 = vmatprep.subr.bf16.mxu0 %v15434_v35  ;;  %v15463_v35 = vcombine.low %v2907_v45, %v2911_v4  ;;  %v15472_v60 = vcombine.high %v2915_v52, %v2919_v56  ;;  %v15471_v39 = vcombine.low %v2915_v52, %v2919_v56  ;;  %v2944_v45 = vld [vmem:[%s23463_s4 + $0x1a68] sm:$0xff] }
 0x31c   :  { %11813 = vmatpush1.bf16.msra.mxu1 %v15431_v59  ;;  %v15474_v59 = vcombine.high %v2916_v40, %v2920_v33  ;;  %v2952_v52 = vld [vmem:[%s23463_s4 + $0x1aa8] sm:$0xff] }
 0x31d   :  { %12372 = vmatpush1.bf16.msra.mxu0 %v15433_v36  ;;  %11814 = vmatprep.subr.bf16.mxu1 %v15440_v31  ;;  %v2923_v36 = vld [vmem:[%s23463_s4 + $0x19c0] sm:$0xff] }
 0x31e   :  { %12373 = vmatprep.subr.bf16.mxu0 %v15442_v38  ;;  %v2927_v31 = vld [vmem:[%s23463_s4 + $0x19e0] sm:$0xff]  ;;  %v2924_v38 = vld [vmem:[%s23463_s4 + $0x19c8] sm:$0xff] }
 0x31f   :  { %v15480_v20 = vcombine.high %v2923_v36, %v2927_v31  ;;  %v15479_v32 = vcombine.low %v2923_v36, %v2927_v31  ;;  %v15481_v0 = vcombine.low %v2924_v38, %v2928_v17  ;;  %v2960_v36 = vld [vmem:[%s23463_s4 + $0x1ae8] sm:$0xff] }
 0x320   :  { %11815 = vmatpush1.bf16.msra.mxu1 %v15439_v48  ;;  %v15482_v48 = vcombine.high %v2924_v38, %v2928_v17 }
 0x321   :  { %12374 = vmatpush1.bf16.msra.mxu0 %v15441_v9  ;;  %11816 = vmatprep.subr.bf16.mxu1 %v15448_v51  ;;  %v2931_v9 = vld [vmem:[%s23463_s4 + $0x1a00] sm:$0xff] }
 0x322   :  { %12375 = vmatprep.subr.bf16.mxu0 %v15450_v58  ;;  %v2935_v51 = vld [vmem:[%s23463_s4 + $0x1a20] sm:$0xff]  ;;  %v2932_v58 = vld [vmem:[%s23463_s4 + $0x1a08] sm:$0xff] }
 0x323   :  { %v15488_v61 = vcombine.high %v2931_v9, %v2935_v51  ;;  %v15487_v4 = vcombine.low %v2931_v9, %v2935_v51  ;;  %v15489_v3 = vcombine.low %v2932_v58, %v2936_v28  ;;  %v2968_v9 = vld [vmem:[%s23463_s4 + $0x1b28] sm:$0xff] }
 0x324   :  { %11817 = vmatpush1.bf16.msra.mxu1 %v15447_v55  ;;  %v15490_v55 = vcombine.high %v2932_v58, %v2936_v28 }
 0x325   :  { %12376 = vmatpush1.bf16.msra.mxu0 %v15449_v19  ;;  %11818 = vmatprep.subr.bf16.mxu1 %v15456_v62  ;;  %v2939_v19 = vld [vmem:[%s23463_s4 + $0x1a40] sm:$0xff] }
 0x326   :  { %12377 = vmatprep.subr.bf16.mxu0 %v15458_v11  ;;  %v2943_v62 = vld [vmem:[%s23463_s4 + $0x1a60] sm:$0xff]  ;;  %v2940_v11 = vld [vmem:[%s23463_s4 + $0x1a48] sm:$0xff] }
 0x327   :  { %v15496_v22 = vcombine.high %v2939_v19, %v2943_v62  ;;  %v15495_v56 = vcombine.low %v2939_v19, %v2943_v62  ;;  %v15497_v40 = vcombine.low %v2940_v11, %v2944_v45  ;;  %v2976_v19 = vld [vmem:[%s23463_s4 + $0x1b68] sm:$0xff] }
 0x328   :  { %11819 = vmatpush1.bf16.msra.mxu1 %v15455_v47  ;;  %v15498_v47 = vcombine.high %v2940_v11, %v2944_v45 }
 0x329   :  { %12378 = vmatpush1.bf16.msra.mxu0 %v15457_v6  ;;  %11820 = vmatprep.subr.bf16.mxu1 %v15464_v23  ;;  %v2947_v6 = vld [vmem:[%s23463_s4 + $0x1a80] sm:$0xff] }
 0x32a   :  { %12379 = vmatprep.subr.bf16.mxu0 %v15466_v57  ;;  %v2951_v23 = vld [vmem:[%s23463_s4 + $0x1aa0] sm:$0xff]  ;;  %v2948_v57 = vld [vmem:[%s23463_s4 + $0x1a88] sm:$0xff] }
 0x32b   :  { %v15504_v33 = vcombine.high %v2947_v6, %v2951_v23  ;;  %v15503_v31 = vcombine.low %v2947_v6, %v2951_v23  ;;  %v15505_v38 = vcombine.low %v2948_v57, %v2952_v52  ;;  %v2984_v6 = vld [vmem:[%s23463_s4 + $0x1ba8] sm:$0xff] }
 0x32c   :  { %11821 = vmatpush1.bf16.msra.mxu1 %v15463_v35  ;;  %v15506_v35 = vcombine.high %v2948_v57, %v2952_v52 }
 0x32d   :  { %12380 = vmatpush1.bf16.msra.mxu0 %v15465_v63  ;;  %11822 = vmatprep.subr.bf16.mxu1 %v15472_v60  ;;  %v2955_v63 = vld [vmem:[%s23463_s4 + $0x1ac0] sm:$0xff] }
 0x32e   :  { %12381 = vmatprep.subr.bf16.mxu0 %v15474_v59  ;;  %v2959_v60 = vld [vmem:[%s23463_s4 + $0x1ae0] sm:$0xff]  ;;  %v2956_v59 = vld [vmem:[%s23463_s4 + $0x1ac8] sm:$0xff] }
 0x32f   :  { %v15512_v17 = vcombine.high %v2955_v63, %v2959_v60  ;;  %v15511_v51 = vcombine.low %v2955_v63, %v2959_v60  ;;  %v15513_v58 = vcombine.low %v2956_v59, %v2960_v36  ;;  %v2992_v63 = vld [vmem:[%s23463_s4 + $0x1be8] sm:$0xff] }
 0x330   :  { %11823 = vmatpush1.bf16.msra.mxu1 %v15471_v39  ;;  %v15514_v39 = vcombine.high %v2956_v59, %v2960_v36 }
 0x331   :  { %12382 = vmatpush1.bf16.msra.mxu0 %v15473_v29  ;;  %11824 = vmatprep.subr.bf16.mxu1 %v15480_v20  ;;  %v2963_v29 = vld [vmem:[%s23463_s4 + $0x1b00] sm:$0xff] }
 0x332   :  { %12383 = vmatprep.subr.bf16.mxu0 %v15482_v48  ;;  %v2967_v20 = vld [vmem:[%s23463_s4 + $0x1b20] sm:$0xff]  ;;  %v2964_v48 = vld [vmem:[%s23463_s4 + $0x1b08] sm:$0xff] }
 0x333   :  { %v15520_v28 = vcombine.high %v2963_v29, %v2967_v20  ;;  %v15519_v62 = vcombine.low %v2963_v29, %v2967_v20  ;;  %v15521_v11 = vcombine.low %v2964_v48, %v2968_v9  ;;  %v3000_v29 = vld [vmem:[%s23463_s4 + $0x1c28] sm:$0xff] }
 0x334   :  { %11825 = vmatpush1.bf16.msra.mxu1 %v15479_v32  ;;  %v15522_v32 = vcombine.high %v2964_v48, %v2968_v9 }
 0x335   :  { %12384 = vmatpush1.bf16.msra.mxu0 %v15481_v0  ;;  %11826 = vmatprep.subr.bf16.mxu1 %v15488_v61  ;;  %v2971_v0 = vld [vmem:[%s23463_s4 + $0x1b40] sm:$0xff] }
 0x336   :  { %12385 = vmatprep.subr.bf16.mxu0 %v15490_v55  ;;  %v2975_v61 = vld [vmem:[%s23463_s4 + $0x1b60] sm:$0xff]  ;;  %v2972_v55 = vld [vmem:[%s23463_s4 + $0x1b48] sm:$0xff] }
 0x337   :  { %v15528_v45 = vcombine.high %v2971_v0, %v2975_v61  ;;  %v15527_v23 = vcombine.low %v2971_v0, %v2975_v61  ;;  %v15529_v57 = vcombine.low %v2972_v55, %v2976_v19  ;;  %v3004_v0 = vld [vmem:[%s23463_s4 + $0x1c48] sm:$0xff] }
 0x338   :  { %11827 = vmatpush1.bf16.msra.mxu1 %v15487_v4  ;;  %v15530_v4 = vcombine.high %v2972_v55, %v2976_v19  ;;  %v3008_v61 = vld [vmem:[%s23463_s4 + $0x1c68] sm:$0xff] }
 0x339   :  { %12386 = vmatpush1.bf16.msra.mxu0 %v15489_v3  ;;  %11828 = vmatprep.subr.bf16.mxu1 %v15496_v22  ;;  %v2979_v3 = vld [vmem:[%s23463_s4 + $0x1b80] sm:$0xff] }
 0x33a   :  { %12387 = vmatprep.subr.bf16.mxu0 %v15498_v47  ;;  %v2983_v22 = vld [vmem:[%s23463_s4 + $0x1ba0] sm:$0xff]  ;;  %v2980_v47 = vld [vmem:[%s23463_s4 + $0x1b88] sm:$0xff] }
 0x33b   :  { %v15536_v52 = vcombine.high %v2979_v3, %v2983_v22  ;;  %v15535_v60 = vcombine.low %v2979_v3, %v2983_v22  ;;  %v15537_v59 = vcombine.low %v2980_v47, %v2984_v6  ;;  %v3016_v3 = vld [vmem:[%s23463_s4 + $0x1ca8] sm:$0xff] }
 0x33c   :  { %11829 = vmatpush1.bf16.msra.mxu1 %v15495_v56  ;;  %v15538_v56 = vcombine.high %v2980_v47, %v2984_v6  ;;  %v15561_v47 = vcombine.low %v3004_v0, %v3008_v61 }
 0x33d   :  { %12388 = vmatpush1.bf16.msra.mxu0 %v15497_v40  ;;  %11830 = vmatprep.subr.bf16.mxu1 %v15504_v33  ;;  %v2987_v40 = vld [vmem:[%s23463_s4 + $0x1bc0] sm:$0xff] }
 0x33e   :  { %12389 = vmatprep.subr.bf16.mxu0 %v15506_v35  ;;  %v2991_v33 = vld [vmem:[%s23463_s4 + $0x1be0] sm:$0xff]  ;;  %v2988_v35 = vld [vmem:[%s23463_s4 + $0x1bc8] sm:$0xff] }
 0x33f   :  { %v15544_v36 = vcombine.high %v2987_v40, %v2991_v33  ;;  %v15543_v20 = vcombine.low %v2987_v40, %v2991_v33  ;;  %v15545_v48 = vcombine.low %v2988_v35, %v2992_v63  ;;  %v3024_v40 = vld [vmem:[%s23463_s4 + $0x1ce8] sm:$0xff] }
 0x340   :  { %11831 = vmatpush1.bf16.msra.mxu1 %v15503_v31  ;;  %v15546_v31 = vcombine.high %v2988_v35, %v2992_v63 }
 0x341   :  { %12390 = vmatpush1.bf16.msra.mxu0 %v15505_v38  ;;  %11832 = vmatprep.subr.bf16.mxu1 %v15512_v17  ;;  %v2995_v38 = vld [vmem:[%s23463_s4 + $0x1c00] sm:$0xff] }
 0x342   :  { %12391 = vmatprep.subr.bf16.mxu0 %v15514_v39  ;;  %v2999_v17 = vld [vmem:[%s23463_s4 + $0x1c20] sm:$0xff]  ;;  %v2996_v39 = vld [vmem:[%s23463_s4 + $0x1c08] sm:$0xff] }
 0x343   :  { %v15552_v9 = vcombine.high %v2995_v38, %v2999_v17  ;;  %v15553_v55 = vcombine.low %v2996_v39, %v3000_v29 }
 0x344   :  { %11833 = vmatpush1.bf16.msra.mxu1 %v15511_v51  ;;  %v15554_v51 = vcombine.high %v2996_v39, %v3000_v29 }
 0x345   :  { %12392 = vmatpush1.bf16.msra.mxu0 %v15513_v58  ;;  %11834 = vmatprep.subr.bf16.mxu1 %v15520_v28  ;;  %v3003_v58 = vld [vmem:[%s23463_s4 + $0x1c40] sm:$0xff] }
 0x346   :  { %12393 = vmatprep.subr.bf16.mxu0 %v15522_v32  ;;  %v3007_v28 = vld [vmem:[%s23463_s4 + $0x1c60] sm:$0xff]  ;;  %v15551_v32 = vcombine.low %v2995_v38, %v2999_v17  ;;  %v3032_v38 = vld [vmem:[%s23463_s4 + $0x1d28] sm:$0xff] }
 0x347   :  { %v15560_v19 = vcombine.high %v3003_v58, %v3007_v28  ;;  %v15559_v22 = vcombine.low %v3003_v58, %v3007_v28  ;;  %v3040_v58 = vld [vmem:[%s23463_s4 + $0x1d68] sm:$0xff] }
 0x348   :  { %11835 = vmatpush1.bf16.msra.mxu1 %v15519_v62  ;;  %v3011_v62 = vld [vmem:[%s23463_s4 + $0x1c80] sm:$0xff] }
 0x349   :  { %12394 = vmatpush1.bf16.msra.mxu0 %v15521_v11  ;;  %11836 = vmatprep.subr.bf16.mxu1 %v15528_v45  ;;  %v3015_v11 = vld [vmem:[%s23463_s4 + $0x1ca0] sm:$0xff]  ;;  %v15562_v45 = vcombine.high %v3004_v0, %v3008_v61 }
 0x34a   :  { %12395 = vmatprep.subr.bf16.mxu0 %v15530_v4  ;;  %v3012_v4 = vld [vmem:[%s23463_s4 + $0x1c88] sm:$0xff]  ;;  %v15568_v6 = vcombine.high %v3011_v62, %v3015_v11  ;;  %v15567_v33 = vcombine.low %v3011_v62, %v3015_v11 }
 0x34b   :  { %v15569_v35 = vcombine.low %v3012_v4, %v3016_v3  ;;  %v3044_v62 = vld [vmem:[%s23463_s4 + $0x1d88] sm:$0xff] }
 0x34c   :  { %11837 = vmatpush1.bf16.msra.mxu1 %v15527_v23  ;;  %v15570_v23 = vcombine.high %v3012_v4, %v3016_v3  ;;  %v3048_v11 = vld [vmem:[%s23463_s4 + $0x1da8] sm:$0xff] }
 0x34d   :  { %12396 = vmatpush1.bf16.msra.mxu0 %v15529_v57  ;;  %11838 = vmatprep.subr.bf16.mxu1 %v15536_v52  ;;  %v3019_v57 = vld [vmem:[%s23463_s4 + $0x1cc0] sm:$0xff] }
 0x34e   :  { %12397 = vmatprep.subr.bf16.mxu0 %v15538_v56  ;;  %v3023_v52 = vld [vmem:[%s23463_s4 + $0x1ce0] sm:$0xff]  ;;  %v3020_v56 = vld [vmem:[%s23463_s4 + $0x1cc8] sm:$0xff] }
 0x34f   :  { %v15576_v63 = vcombine.high %v3019_v57, %v3023_v52  ;;  %v15575_v17 = vcombine.low %v3019_v57, %v3023_v52  ;;  %v15577_v39 = vcombine.low %v3020_v56, %v3024_v40  ;;  %v3056_v57 = vld [vmem:[%s23463_s4 + $0x1de8] sm:$0xff] }
 0x350   :  { %11839 = vmatpush1.bf16.msra.mxu1 %v15535_v60  ;;  %v15578_v60 = vcombine.high %v3020_v56, %v3024_v40  ;;  %v15601_v56 = vcombine.low %v3044_v62, %v3048_v11 }
 0x351   :  { %12398 = vmatpush1.bf16.msra.mxu0 %v15537_v59  ;;  %11840 = vmatprep.subr.bf16.mxu1 %v15544_v36  ;;  %v3027_v59 = vld [vmem:[%s23463_s4 + $0x1d00] sm:$0xff] }
 0x352   :  { %12399 = vmatprep.subr.bf16.mxu0 %v15546_v31  ;;  %v3031_v36 = vld [vmem:[%s23463_s4 + $0x1d20] sm:$0xff]  ;;  %v3028_v31 = vld [vmem:[%s23463_s4 + $0x1d08] sm:$0xff] }
 0x353   :  { %v15584_v29 = vcombine.high %v3027_v59, %v3031_v36  ;;  %v15583_v28 = vcombine.low %v3027_v59, %v3031_v36  ;;  %v3064_v59 = vld [vmem:[%s23463_s4 + $0x1e28] sm:$0xff] }
 0x354   :  { %11841 = vmatpush1.bf16.msra.mxu1 %v15543_v20  ;;  %v15586_v20 = vcombine.high %v3028_v31, %v3032_v38 }
 0x355   :  { %12400 = vmatpush1.bf16.msra.mxu0 %v15545_v48  ;;  %11853 = vmatprep.subr.bf16.mxu1 %v15552_v9  ;;  %v3035_v48 = vld [vmem:[%s23463_s4 + $0x1d40] sm:$0xff] }
 0x356   :  { %12412 = vmatprep.subr.bf16.mxu0 %v15554_v51  ;;  %v3039_v9 = vld [vmem:[%s23463_s4 + $0x1d60] sm:$0xff]  ;;  %v3036_v51 = vld [vmem:[%s23463_s4 + $0x1d48] sm:$0xff] }
 0x357   :  { %11843 = vmatmul.mubr.bf16.vlgmr.msra.gmra.mrb[24].mxu1 %v18511_v1  ;;  %v15592_v0 = vcombine.high %v3035_v48, %v3039_v9  ;;  %v15594_v61 = vcombine.high %v3036_v51, %v3040_v58  ;;  %v15593_v4 = vcombine.low %v3036_v51, %v3040_v58 }
 0x358   :  { %12402 = vmatmul.mubr.bf16.vlgmr.msra.gmra.mrb[28].mxu0 %v18511_v1  ;;  %11854 = vmatpush1.bf16.msra.mxu1 %v15551_v32  ;;  %v15585_v32 = vcombine.low %v3028_v31, %v3032_v38 }
 0x359   :  { %11885 = vmatprep.mubr.bf16.mxu1 %v18521_v14  ;;  %12413 = vmatpush1.bf16.msra.mxu0 %v15553_v55  ;;  %v3043_v55 = vld [vmem:[%s23463_s4 + $0x1d80] sm:$0xff] }
 0x35a   :  { %12444 = vmatprep.mubr.bf16.mxu0 %v18521_v14  ;;  %11855 = vmatprep.subr.bf16.mxu1 %v15560_v19  ;;  %v3047_v19 = vld [vmem:[%s23463_s4 + $0x1da0] sm:$0xff] }
 0x35b   :  { %12414 = vmatprep.subr.bf16.mxu0 %v15562_v45  ;;  %v15591_v45 = vcombine.low %v3035_v48, %v3039_v9  ;;  %v15600_v3 = vcombine.high %v3043_v55, %v3047_v19  ;;  %v15599_v52 = vcombine.low %v3043_v55, %v3047_v19  ;;  %v3072_v48 = vld [vmem:[%s23463_s4 + $0x1e68] sm:$0xff] }
 0x35c   :  { %11856 = vmatpush1.bf16.msra.mxu1 %v15559_v22  ;;  %v15602_v22 = vcombine.high %v3044_v62, %v3048_v11  ;;  %v3080_v55 = vld [vmem:[%s23463_s4 + $0x1ea8] sm:$0xff] }
 0x35d   :  { %12415 = vmatpush1.bf16.msra.mxu0 %v15561_v47  ;;  %11857 = vmatprep.subr.bf16.mxu1 %v15568_v6  ;;  %v3051_v47 = vld [vmem:[%s23463_s4 + $0x1dc0] sm:$0xff] }
 0x35e   :  { %12416 = vmatprep.subr.bf16.mxu0 %v15570_v23  ;;  %v3055_v6 = vld [vmem:[%s23463_s4 + $0x1de0] sm:$0xff]  ;;  %v3052_v23 = vld [vmem:[%s23463_s4 + $0x1dc8] sm:$0xff] }
 0x35f   :  { %v15608_v40 = vcombine.high %v3051_v47, %v3055_v6  ;;  %v15607_v36 = vcombine.low %v3051_v47, %v3055_v6  ;;  %v15609_v31 = vcombine.low %v3052_v23, %v3056_v57  ;;  %v3088_v47 = vld [vmem:[%s23463_s4 + $0x1ee8] sm:$0xff] }
 0x360   :  { %11858 = vmatpush1.bf16.msra.mxu1 %v15567_v33  ;;  %v15610_v33 = vcombine.high %v3052_v23, %v3056_v57 }
 0x361   :  { %12417 = vmatpush1.bf16.msra.mxu0 %v15569_v35  ;;  %11859 = vmatprep.subr.bf16.mxu1 %v15576_v63  ;;  %v3059_v35 = vld [vmem:[%s23463_s4 + $0x1e00] sm:$0xff] }
 0x362   :  { %12418 = vmatprep.subr.bf16.mxu0 %v15578_v60  ;;  %v3063_v63 = vld [vmem:[%s23463_s4 + $0x1e20] sm:$0xff]  ;;  %v3060_v60 = vld [vmem:[%s23463_s4 + $0x1e08] sm:$0xff] }
 0x363   :  { %v15616_v38 = vcombine.high %v3059_v35, %v3063_v63  ;;  %v15615_v9 = vcombine.low %v3059_v35, %v3063_v63  ;;  %v15617_v51 = vcombine.low %v3060_v60, %v3064_v59  ;;  %v3096_v35 = vld [vmem:[%s23463_s4 + $0x1f28] sm:$0xff] }
 0x364   :  { %11860 = vmatpush1.bf16.msra.mxu1 %v15575_v17  ;;  %v15618_v17 = vcombine.high %v3060_v60, %v3064_v59 }
 0x365   :  { %12419 = vmatpush1.bf16.msra.mxu0 %v15577_v39  ;;  %11861 = vmatprep.subr.bf16.mxu1 %v15584_v29  ;;  %v3067_v39 = vld [vmem:[%s23463_s4 + $0x1e40] sm:$0xff] }
 0x366   :  { %12420 = vmatprep.subr.bf16.mxu0 %v15586_v20  ;;  %v3071_v29 = vld [vmem:[%s23463_s4 + $0x1e60] sm:$0xff]  ;;  %v3068_v20 = vld [vmem:[%s23463_s4 + $0x1e48] sm:$0xff] }
 0x367   :  { %v15624_v58 = vcombine.high %v3067_v39, %v3071_v29  ;;  %v15623_v19 = vcombine.low %v3067_v39, %v3071_v29  ;;  %v15625_v62 = vcombine.low %v3068_v20, %v3072_v48  ;;  %v3104_v39 = vld [vmem:[%s23463_s4 + $0x1f68] sm:$0xff] }
 0x368   :  { %11862 = vmatpush1.bf16.msra.mxu1 %v15583_v28  ;;  %v15626_v28 = vcombine.high %v3068_v20, %v3072_v48 }
 0x369   :  { %12421 = vmatpush1.bf16.msra.mxu0 %v15585_v32  ;;  %11863 = vmatprep.subr.bf16.mxu1 %v15592_v0  ;;  %v3075_v32 = vld [vmem:[%s23463_s4 + $0x1e80] sm:$0xff] }
 0x36a   :  { %12422 = vmatprep.subr.bf16.mxu0 %v15594_v61  ;;  %v3079_v0 = vld [vmem:[%s23463_s4 + $0x1ea0] sm:$0xff]  ;;  %v3076_v61 = vld [vmem:[%s23463_s4 + $0x1e88] sm:$0xff] }
 0x36b   :  { %v15632_v11 = vcombine.high %v3075_v32, %v3079_v0  ;;  %v15631_v6 = vcombine.low %v3075_v32, %v3079_v0  ;;  %v15633_v23 = vcombine.low %v3076_v61, %v3080_v55  ;;  %v3112_v32 = vld [vmem:[%s23463_s4 + $0x1fa8] sm:$0xff] }
 0x36c   :  { %11864 = vmatpush1.bf16.msra.mxu1 %v15591_v45  ;;  %v15634_v45 = vcombine.high %v3076_v61, %v3080_v55 }
 0x36d   :  { %12423 = vmatpush1.bf16.msra.mxu0 %v15593_v4  ;;  %11865 = vmatprep.subr.bf16.mxu1 %v15600_v3  ;;  %v3083_v4 = vld [vmem:[%s23463_s4 + $0x1ec0] sm:$0xff] }
 0x36e   :  { %12424 = vmatprep.subr.bf16.mxu0 %v15602_v22  ;;  %v3087_v3 = vld [vmem:[%s23463_s4 + $0x1ee0] sm:$0xff]  ;;  %v3084_v22 = vld [vmem:[%s23463_s4 + $0x1ec8] sm:$0xff] }
 0x36f   :  { %v15640_v57 = vcombine.high %v3083_v4, %v3087_v3  ;;  %v15639_v63 = vcombine.low %v3083_v4, %v3087_v3  ;;  %v15641_v60 = vcombine.low %v3084_v22, %v3088_v47  ;;  %v3120_v4 = vld [vmem:[%s23463_s4 + $0x1fe8] sm:$0xff] }
 0x370   :  { %11866 = vmatpush1.bf16.msra.mxu1 %v15599_v52  ;;  %v15642_v52 = vcombine.high %v3084_v22, %v3088_v47 }
 0x371   :  { %12425 = vmatpush1.bf16.msra.mxu0 %v15601_v56  ;;  %11867 = vmatprep.subr.bf16.mxu1 %v15608_v40  ;;  %v3091_v56 = vld [vmem:[%s23463_s4 + $0x1f00] sm:$0xff] }
 0x372   :  { %12426 = vmatprep.subr.bf16.mxu0 %v15610_v33  ;;  %v3095_v40 = vld [vmem:[%s23463_s4 + $0x1f20] sm:$0xff]  ;;  %v3092_v33 = vld [vmem:[%s23463_s4 + $0x1f08] sm:$0xff] }
 0x373   :  { %v15648_v59 = vcombine.high %v3091_v56, %v3095_v40  ;;  %v15647_v29 = vcombine.low %v3091_v56, %v3095_v40  ;;  %v15649_v20 = vcombine.low %v3092_v33, %v3096_v35  ;;  %v3128_v56 = vld [vmem:[%s23463_s4 + $0x2028] sm:$0xff] }
 0x374   :  { %11868 = vmatpush1.bf16.msra.mxu1 %v15607_v36  ;;  %v15650_v36 = vcombine.high %v3092_v33, %v3096_v35 }
 0x375   :  { %12427 = vmatpush1.bf16.msra.mxu0 %v15609_v31  ;;  %11869 = vmatprep.subr.bf16.mxu1 %v15616_v38  ;;  %v3099_v31 = vld [vmem:[%s23463_s4 + $0x1f40] sm:$0xff] }
 0x376   :  { %12428 = vmatprep.subr.bf16.mxu0 %v15618_v17  ;;  %v3103_v38 = vld [vmem:[%s23463_s4 + $0x1f60] sm:$0xff]  ;;  %v3100_v17 = vld [vmem:[%s23463_s4 + $0x1f48] sm:$0xff] }
 0x377   :  { %v15656_v48 = vcombine.high %v3099_v31, %v3103_v38  ;;  %v15655_v0 = vcombine.low %v3099_v31, %v3103_v38  ;;  %v15657_v61 = vcombine.low %v3100_v17, %v3104_v39  ;;  %v3132_v31 = vld [vmem:[%s23463_s4 + $0x2048] sm:$0xff] }
 0x378   :  { %11870 = vmatpush1.bf16.msra.mxu1 %v15615_v9  ;;  %v15658_v9 = vcombine.high %v3100_v17, %v3104_v39  ;;  %v3136_v38 = vld [vmem:[%s23463_s4 + $0x2068] sm:$0xff] }
 0x379   :  { %12429 = vmatpush1.bf16.msra.mxu0 %v15617_v51  ;;  %11871 = vmatprep.subr.bf16.mxu1 %v15624_v58  ;;  %v3107_v51 = vld [vmem:[%s23463_s4 + $0x1f80] sm:$0xff] }
 0x37a   :  { %12430 = vmatprep.subr.bf16.mxu0 %v15626_v28  ;;  %v3111_v58 = vld [vmem:[%s23463_s4 + $0x1fa0] sm:$0xff]  ;;  %v3108_v28 = vld [vmem:[%s23463_s4 + $0x1f88] sm:$0xff] }
 0x37b   :  { %v15664_v55 = vcombine.high %v3107_v51, %v3111_v58  ;;  %v15663_v3 = vcombine.low %v3107_v51, %v3111_v58  ;;  %v15665_v22 = vcombine.low %v3108_v28, %v3112_v32  ;;  %v3140_v51 = vld [vmem:[%s23463_s4 + $0x2088] sm:$0xff] }
 0x37c   :  { %11872 = vmatpush1.bf16.msra.mxu1 %v15623_v19  ;;  %v15666_v19 = vcombine.high %v3108_v28, %v3112_v32  ;;  %v3144_v58 = vld [vmem:[%s23463_s4 + $0x20a8] sm:$0xff]  ;;  %v15689_v32 = vcombine.low %v3132_v31, %v3136_v38 }
 0x37d   :  { %12431 = vmatpush1.bf16.msra.mxu0 %v15625_v62  ;;  %11873 = vmatprep.subr.bf16.mxu1 %v15632_v11  ;;  %v3115_v62 = vld [vmem:[%s23463_s4 + $0x1fc0] sm:$0xff] }
 0x37e   :  { %12432 = vmatprep.subr.bf16.mxu0 %v15634_v45  ;;  %v3119_v11 = vld [vmem:[%s23463_s4 + $0x1fe0] sm:$0xff]  ;;  %v3116_v45 = vld [vmem:[%s23463_s4 + $0x1fc8] sm:$0xff] }
 0x37f   :  { %v15672_v47 = vcombine.high %v3115_v62, %v3119_v11  ;;  %v15671_v40 = vcombine.low %v3115_v62, %v3119_v11  ;;  %v15673_v33 = vcombine.low %v3116_v45, %v3120_v4  ;;  %v3148_v62 = vld [vmem:[%s23463_s4 + $0x20c8] sm:$0xff] }
 0x380   :  { %11874 = vmatpush1.bf16.msra.mxu1 %v15631_v6  ;;  %v15674_v6 = vcombine.high %v3116_v45, %v3120_v4  ;;  %v3152_v11 = vld [vmem:[%s23463_s4 + $0x20e8] sm:$0xff]  ;;  %v15697_v4 = vcombine.low %v3140_v51, %v3144_v58 }
 0x381   :  { %12433 = vmatpush1.bf16.msra.mxu0 %v15633_v23  ;;  %11875 = vmatprep.subr.bf16.mxu1 %v15640_v57  ;;  %v3123_v23 = vld [vmem:[%s23463_s4 + $0x2000] sm:$0xff] }
 0x382   :  { %12434 = vmatprep.subr.bf16.mxu0 %v15642_v52  ;;  %v3127_v57 = vld [vmem:[%s23463_s4 + $0x2020] sm:$0xff]  ;;  %v3124_v52 = vld [vmem:[%s23463_s4 + $0x2008] sm:$0xff] }
 0x383   :  { %v15680_v35 = vcombine.high %v3123_v23, %v3127_v57  ;;  %v15681_v17 = vcombine.low %v3124_v52, %v3128_v56 }
 0x384   :  { %11876 = vmatpush1.bf16.msra.mxu1 %v15639_v63  ;;  %v15682_v63 = vcombine.high %v3124_v52, %v3128_v56  ;;  %v15705_v56 = vcombine.low %v3148_v62, %v3152_v11 }
 0x385   :  { %12435 = vmatpush1.bf16.msra.mxu0 %v15641_v60  ;;  %11877 = vmatprep.subr.bf16.mxu1 %v15648_v59  ;;  %v3131_v60 = vld [vmem:[%s23463_s4 + $0x2040] sm:$0xff] }
 0x386   :  { %12436 = vmatprep.subr.bf16.mxu0 %v15650_v36  ;;  %v3135_v59 = vld [vmem:[%s23463_s4 + $0x2060] sm:$0xff]  ;;  %v15679_v36 = vcombine.low %v3123_v23, %v3127_v57  ;;  %v3156_v23 = vld [vmem:[%s23463_s4 + $0x2108] sm:$0xff] }
 0x387   :  { %v15688_v39 = vcombine.high %v3131_v60, %v3135_v59  ;;  %v15687_v28 = vcombine.low %v3131_v60, %v3135_v59  ;;  %v3160_v57 = vld [vmem:[%s23463_s4 + $0x2128] sm:$0xff] }
 0x388   :  { %11878 = vmatpush1.bf16.msra.mxu1 %v15647_v29  ;;  %v3139_v29 = vld [vmem:[%s23463_s4 + $0x2080] sm:$0xff]  ;;  %v3164_v60 = vld [vmem:[%s23463_s4 + $0x2148] sm:$0xff] }
 0x389   :  { %12437 = vmatpush1.bf16.msra.mxu0 %v15649_v20  ;;  %11879 = vmatprep.subr.bf16.mxu1 %v15656_v48  ;;  %v3143_v20 = vld [vmem:[%s23463_s4 + $0x20a0] sm:$0xff]  ;;  %v23713_v48 = vld [vmem:[#allocation13_spill] sm:$0xff]  ;;  %v3168_v59 = vld [vmem:[%s23463_s4 + $0x2168] sm:$0xff] }
 0x38a   :  { %12438 = vmatprep.subr.bf16.mxu0 %v15658_v9  ;;  %v15690_v9 = vcombine.high %v3132_v31, %v3136_v38  ;;  %v15695_v45 = vcombine.low %v3139_v29, %v3143_v20  ;;  %v15713_v31 = vcombine.low %v3156_v23, %v3160_v57 }
 0x38c   :  { %11880 = vmatpush1.bf16.msra.mxu1 %v15655_v0  ;;  %v15696_v0 = vcombine.high %v3139_v29, %v3143_v20  ;;  %v3175_v29 = vld [vmem:[%s23463_s4 + $0x21a0] sm:$0xff]  ;;  %v3172_v20 = vld [vmem:[%s23463_s4 + $0x2188] sm:$0xff] }
 0x38d   :  { %12439 = vmatpush1.bf16.msra.mxu0 %v15657_v61  ;;  %11881 = vmatprep.subr.bf16.mxu1 %v15664_v55  ;;  %v15698_v61 = vcombine.high %v3140_v51, %v3144_v58  ;;  %v3147_v55 = vld [vmem:[%s23463_s4 + $0x20c0] sm:$0xff]  ;;  %v15721_v58 = vcombine.low %v3164_v60, %v3168_v59 }
 0x38e   :  { %12440 = vmatprep.subr.bf16.mxu0 %v15666_v19  ;;  %v3151_v19 = vld [vmem:[%s23463_s4 + $0x20e0] sm:$0xff] }
 0x38f   :  { %v15703_v52 = vcombine.low %v3147_v55, %v3151_v19 }
 0x390   :  { %11882 = vmatpush1.bf16.msra.mxu1 %v15663_v3  ;;  %v15704_v3 = vcombine.high %v3147_v55, %v3151_v19  ;;  %v3180_v55 = vld [vmem:[%s23463_s4 + $0x21c8] sm:$0xff] }
 0x391   :  { %12441 = vmatpush1.bf16.msra.mxu0 %v15665_v22  ;;  %11883 = vmatprep.subr.bf16.mxu1 %v15672_v47  ;;  %v15706_v22 = vcombine.high %v3148_v62, %v3152_v11  ;;  %v3155_v47 = vld [vmem:[%s23463_s4 + $0x2100] sm:$0xff]  ;;  %v3184_v19 = vld [vmem:[%s23463_s4 + $0x21e8] sm:$0xff] }
 0x392   :  { %12442 = vmatprep.subr.bf16.mxu0 %v15674_v6  ;;  %v3159_v6 = vld [vmem:[%s23463_s4 + $0x2120] sm:$0xff] }
 0x394   :  { %11884 = vmatpush1.bf16.msra.mxu1 %v15671_v40  ;;  %v15712_v40 = vcombine.high %v3155_v47, %v3159_v6 }
 0x395   :  { %12443 = vmatpush1.bf16.msra.mxu0 %v15673_v33  ;;  %11896 = vmatprep.subr.bf16.mxu1 %v15680_v35  ;;  %v15714_v33 = vcombine.high %v3156_v23, %v3160_v57  ;;  %v3163_v35 = vld [vmem:[%s23463_s4 + $0x2140] sm:$0xff]  ;;  %v15737_v57 = vcombine.low %v3180_v55, %v3184_v19 }
 0x396   :  { %12455 = vmatprep.subr.bf16.mxu0 %v15682_v63  ;;  %v3167_v63 = vld [vmem:[%s23463_s4 + $0x2160] sm:$0xff] }
 0x397   :  { %11886 = vmatmul.mubr.bf16.vlgmr.msra.gmra.mrb[24].mxu1 %v23713_v48  ;;  %v15720_v38 = vcombine.high %v3163_v35, %v3167_v63  ;;  %v15719_v51 = vcombine.low %v3163_v35, %v3167_v63  ;;  %v3196_v35 = vld [vmem:[%s23463_s4 + $0x2248] sm:$0xff] }
 0x398   :  { %12445 = vmatmul.mubr.bf16.vlgmr.msra.gmra.mrb[28].mxu0 %v23713_v48  ;;  %11897 = vmatpush1.bf16.msra.mxu1 %v15679_v36  ;;  %v15711_v36 = vcombine.low %v3155_v47, %v3159_v6  ;;  %v3188_v47 = vld [vmem:[%s23463_s4 + $0x2208] sm:$0xff] }
 0x399   :  { %11928 = vmatprep.mubr.bf16.mxu1 %v18692_v24  ;;  %12456 = vmatpush1.bf16.msra.mxu0 %v15681_v17  ;;  %v15722_v17 = vcombine.high %v3164_v60, %v3168_v59  ;;  %v3192_v6 = vld [vmem:[%s23463_s4 + $0x2228] sm:$0xff] }
 0x39a   :  { %12487 = vmatprep.mubr.bf16.mxu0 %v18692_v24  ;;  %11898 = vmatprep.subr.bf16.mxu1 %v15688_v39  ;;  %v3171_v39 = vld [vmem:[%s23463_s4 + $0x2180] sm:$0xff]  ;;  %v3200_v63 = vld [vmem:[%s23463_s4 + $0x2268] sm:$0xff]  ;;  %v15745_v59 = vcombine.low %v3188_v47, %v3192_v6 }
 0x39b   :  { %12457 = vmatprep.subr.bf16.mxu0 %v15690_v9  ;;  %v3176_v9 = vld [vmem:[%s23463_s4 + $0x21a8] sm:$0xff]  ;;  %v15727_v62 = vcombine.low %v3171_v39, %v3175_v29 }
 0x39c   :  { %11899 = vmatpush1.bf16.msra.mxu1 %v15687_v28  ;;  %v15728_v28 = vcombine.high %v3171_v39, %v3175_v29  ;;  %v15729_v11 = vcombine.low %v3172_v20, %v3176_v9  ;;  %v3204_v39 = vld [vmem:[%s23463_s4 + $0x2288] sm:$0xff] }
 0x39d   :  { %12458 = vmatpush1.bf16.msra.mxu0 %v15689_v32  ;;  %11900 = vmatprep.subr.bf16.mxu1 %v15696_v0  ;;  %v15730_v32 = vcombine.high %v3172_v20, %v3176_v9  ;;  %v3179_v0 = vld [vmem:[%s23463_s4 + $0x21c0] sm:$0xff]  ;;  %v3208_v29 = vld [vmem:[%s23463_s4 + $0x22a8] sm:$0xff]  ;;  %v15753_v9 = vcombine.low %v3196_v35, %v3200_v63 }
 0x39e   :  { %12459 = vmatprep.subr.bf16.mxu0 %v15698_v61  ;;  %v3183_v61 = vld [vmem:[%s23463_s4 + $0x21e0] sm:$0xff] }
 0x39f   :  { %v15735_v23 = vcombine.low %v3179_v0, %v3183_v61 }
 0x3a0   :  { %11901 = vmatpush1.bf16.msra.mxu1 %v15695_v45  ;;  %v15736_v45 = vcombine.high %v3179_v0, %v3183_v61  ;;  %v3212_v0 = vld [vmem:[%s23463_s4 + $0x22c8] sm:$0xff] }
 0x3a1   :  { %12460 = vmatpush1.bf16.msra.mxu0 %v15697_v4  ;;  %11902 = vmatprep.subr.bf16.mxu1 %v15704_v3  ;;  %v15738_v4 = vcombine.high %v3180_v55, %v3184_v19  ;;  %v3187_v3 = vld [vmem:[%s23463_s4 + $0x2200] sm:$0xff]  ;;  %v3216_v61 = vld [vmem:[%s23463_s4 + $0x22e8] sm:$0xff]  ;;  %v15761_v19 = vcombine.low %v3204_v39, %v3208_v29 }
 0x3a2   :  { %12461 = vmatprep.subr.bf16.mxu0 %v15706_v22  ;;  %v3191_v22 = vld [vmem:[%s23463_s4 + $0x2220] sm:$0xff] }
 0x3a3   :  { %v15743_v60 = vcombine.low %v3187_v3, %v3191_v22 }
 0x3a4   :  { %11903 = vmatpush1.bf16.msra.mxu1 %v15703_v52  ;;  %v15744_v52 = vcombine.high %v3187_v3, %v3191_v22  ;;  %v3220_v3 = vld [vmem:[%s23463_s4 + $0x2308] sm:$0xff] }
 0x3a5   :  { %12462 = vmatpush1.bf16.msra.mxu0 %v15705_v56  ;;  %11904 = vmatprep.subr.bf16.mxu1 %v15712_v40  ;;  %v15746_v56 = vcombine.high %v3188_v47, %v3192_v6  ;;  %v3195_v40 = vld [vmem:[%s23463_s4 + $0x2240] sm:$0xff]  ;;  %v3224_v22 = vld [vmem:[%s23463_s4 + $0x2328] sm:$0xff]  ;;  %v15769_v6 = vcombine.low %v3212_v0, %v3216_v61 }
 0x3a6   :  { %12463 = vmatprep.subr.bf16.mxu0 %v15714_v33  ;;  %v3199_v33 = vld [vmem:[%s23463_s4 + $0x2260] sm:$0xff] }
 0x3a7   :  { %v15751_v20 = vcombine.low %v3195_v40, %v3199_v33 }
 0x3a8   :  { %11905 = vmatpush1.bf16.msra.mxu1 %v15711_v36  ;;  %v15752_v36 = vcombine.high %v3195_v40, %v3199_v33  ;;  %v3228_v40 = vld [vmem:[%s23463_s4 + $0x2348] sm:$0xff] }
 0x3a9   :  { %12464 = vmatpush1.bf16.msra.mxu0 %v15713_v31  ;;  %11906 = vmatprep.subr.bf16.mxu1 %v15720_v38  ;;  %v15754_v31 = vcombine.high %v3196_v35, %v3200_v63  ;;  %v3203_v38 = vld [vmem:[%s23463_s4 + $0x2280] sm:$0xff]  ;;  %v3232_v33 = vld [vmem:[%s23463_s4 + $0x2368] sm:$0xff]  ;;  %v15777_v63 = vcombine.low %v3220_v3, %v3224_v22 }
 0x3aa   :  { %12465 = vmatprep.subr.bf16.mxu0 %v15722_v17  ;;  %v3207_v17 = vld [vmem:[%s23463_s4 + $0x22a0] sm:$0xff] }
 0x3ab   :  { %v15759_v55 = vcombine.low %v3203_v38, %v3207_v17 }
 0x3ac   :  { %11907 = vmatpush1.bf16.msra.mxu1 %v15719_v51  ;;  %v15760_v51 = vcombine.high %v3203_v38, %v3207_v17  ;;  %v3236_v38 = vld [vmem:[%s23463_s4 + $0x2388] sm:$0xff] }
 0x3ad   :  { %12466 = vmatpush1.bf16.msra.mxu0 %v15721_v58  ;;  %11908 = vmatprep.subr.bf16.mxu1 %v15728_v28  ;;  %v15762_v58 = vcombine.high %v3204_v39, %v3208_v29  ;;  %v3211_v28 = vld [vmem:[%s23463_s4 + $0x22c0] sm:$0xff]  ;;  %v3240_v17 = vld [vmem:[%s23463_s4 + $0x23a8] sm:$0xff]  ;;  %v15785_v29 = vcombine.low %v3228_v40, %v3232_v33 }
 0x3ae   :  { %12467 = vmatprep.subr.bf16.mxu0 %v15730_v32  ;;  %v3215_v32 = vld [vmem:[%s23463_s4 + $0x22e0] sm:$0xff] }
 0x3af   :  { %v15767_v47 = vcombine.low %v3211_v28, %v3215_v32 }
 0x3b0   :  { %11909 = vmatpush1.bf16.msra.mxu1 %v15727_v62  ;;  %v15768_v62 = vcombine.high %v3211_v28, %v3215_v32  ;;  %v3244_v28 = vld [vmem:[%s23463_s4 + $0x23c8] sm:$0xff] }
 0x3b1   :  { %12468 = vmatpush1.bf16.msra.mxu0 %v15729_v11  ;;  %11910 = vmatprep.subr.bf16.mxu1 %v15736_v45  ;;  %v15770_v11 = vcombine.high %v3212_v0, %v3216_v61  ;;  %v3219_v45 = vld [vmem:[%s23463_s4 + $0x2300] sm:$0xff]  ;;  %v3248_v32 = vld [vmem:[%s23463_s4 + $0x23e8] sm:$0xff]  ;;  %v15793_v61 = vcombine.low %v3236_v38, %v3240_v17 }
 0x3b2   :  { %12469 = vmatprep.subr.bf16.mxu0 %v15738_v4  ;;  %v3223_v4 = vld [vmem:[%s23463_s4 + $0x2320] sm:$0xff] }
 0x3b3   :  { %v15775_v35 = vcombine.low %v3219_v45, %v3223_v4 }
 0x3b4   :  { %11911 = vmatpush1.bf16.msra.mxu1 %v15735_v23  ;;  %v15776_v23 = vcombine.high %v3219_v45, %v3223_v4  ;;  %v3252_v45 = vld [vmem:[%s23463_s4 + $0x2408] sm:$0xff] }
 0x3b5   :  { %12470 = vmatpush1.bf16.msra.mxu0 %v15737_v57  ;;  %11912 = vmatprep.subr.bf16.mxu1 %v15744_v52  ;;  %v15778_v57 = vcombine.high %v3220_v3, %v3224_v22  ;;  %v3227_v52 = vld [vmem:[%s23463_s4 + $0x2340] sm:$0xff]  ;;  %v3256_v4 = vld [vmem:[%s23463_s4 + $0x2428] sm:$0xff]  ;;  %v15801_v22 = vcombine.low %v3244_v28, %v3248_v32 }
 0x3b6   :  { %12471 = vmatprep.subr.bf16.mxu0 %v15746_v56  ;;  %v3231_v56 = vld [vmem:[%s23463_s4 + $0x2360] sm:$0xff] }
 0x3b7   :  { %v15783_v39 = vcombine.low %v3227_v52, %v3231_v56 }
 0x3b8   :  { %11913 = vmatpush1.bf16.msra.mxu1 %v15743_v60  ;;  %v15784_v60 = vcombine.high %v3227_v52, %v3231_v56  ;;  %v3260_v56 = vld [vmem:[%s23463_s4 + $0x2448] sm:$0xff] }
 0x3b9   :  { %12472 = vmatpush1.bf16.msra.mxu0 %v15745_v59  ;;  %11914 = vmatprep.subr.bf16.mxu1 %v15752_v36  ;;  %v15786_v59 = vcombine.high %v3228_v40, %v3232_v33  ;;  %v3235_v36 = vld [vmem:[%s23463_s4 + $0x2380] sm:$0xff]  ;;  %v3264_v40 = vld [vmem:[%s23463_s4 + $0x2468] sm:$0xff]  ;;  %v15809_v33 = vcombine.low %v3252_v45, %v3256_v4 }
 0x3ba   :  { %12473 = vmatprep.subr.bf16.mxu0 %v15754_v31  ;;  %v3239_v31 = vld [vmem:[%s23463_s4 + $0x23a0] sm:$0xff] }
 0x3bb   :  { %v15791_v0 = vcombine.low %v3235_v36, %v3239_v31 }
 0x3bc   :  { %11915 = vmatpush1.bf16.msra.mxu1 %v15751_v20  ;;  %v15792_v20 = vcombine.high %v3235_v36, %v3239_v31  ;;  %v3268_v36 = vld [vmem:[%s23463_s4 + $0x2488] sm:$0xff] }
 0x3bd   :  { %12474 = vmatpush1.bf16.msra.mxu0 %v15753_v9  ;;  %11916 = vmatprep.subr.bf16.mxu1 %v15760_v51  ;;  %v15794_v9 = vcombine.high %v3236_v38, %v3240_v17  ;;  %v3243_v51 = vld [vmem:[%s23463_s4 + $0x23c0] sm:$0xff]  ;;  %v3272_v31 = vld [vmem:[%s23463_s4 + $0x24a8] sm:$0xff]  ;;  %v15817_v17 = vcombine.low %v3260_v56, %v3264_v40 }
 0x3be   :  { %12475 = vmatprep.subr.bf16.mxu0 %v15762_v58  ;;  %v3247_v58 = vld [vmem:[%s23463_s4 + $0x23e0] sm:$0xff] }
 0x3bf   :  { %v15799_v3 = vcombine.low %v3243_v51, %v3247_v58 }
 0x3c0   :  { %11917 = vmatpush1.bf16.msra.mxu1 %v15759_v55  ;;  %v15800_v55 = vcombine.high %v3243_v51, %v3247_v58  ;;  %v3276_v51 = vld [vmem:[%s23463_s4 + $0x24c8] sm:$0xff] }
 0x3c1   :  { %12476 = vmatpush1.bf16.msra.mxu0 %v15761_v19  ;;  %11918 = vmatprep.subr.bf16.mxu1 %v15768_v62  ;;  %v15802_v19 = vcombine.high %v3244_v28, %v3248_v32  ;;  %v3251_v62 = vld [vmem:[%s23463_s4 + $0x2400] sm:$0xff]  ;;  %v3280_v58 = vld [vmem:[%s23463_s4 + $0x24e8] sm:$0xff]  ;;  %v15825_v32 = vcombine.low %v3268_v36, %v3272_v31 }
 0x3c2   :  { %12477 = vmatprep.subr.bf16.mxu0 %v15770_v11  ;;  %v3255_v11 = vld [vmem:[%s23463_s4 + $0x2420] sm:$0xff] }
 0x3c3   :  { %v15807_v52 = vcombine.low %v3251_v62, %v3255_v11 }
 0x3c4   :  { %11919 = vmatpush1.bf16.msra.mxu1 %v15767_v47  ;;  %v15808_v47 = vcombine.high %v3251_v62, %v3255_v11  ;;  %v3284_v62 = vld [vmem:[%s23463_s4 + $0x2508] sm:$0xff] }
 0x3c5   :  { %12478 = vmatpush1.bf16.msra.mxu0 %v15769_v6  ;;  %11920 = vmatprep.subr.bf16.mxu1 %v15776_v23  ;;  %v15810_v6 = vcombine.high %v3252_v45, %v3256_v4  ;;  %v3259_v23 = vld [vmem:[%s23463_s4 + $0x2440] sm:$0xff]  ;;  %v3288_v11 = vld [vmem:[%s23463_s4 + $0x2528] sm:$0xff]  ;;  %v15833_v4 = vcombine.low %v3276_v51, %v3280_v58 }
 0x3c6   :  { %12479 = vmatprep.subr.bf16.mxu0 %v15778_v57  ;;  %v3263_v57 = vld [vmem:[%s23463_s4 + $0x2460] sm:$0xff] }
 0x3c7   :  { %v15815_v38 = vcombine.low %v3259_v23, %v3263_v57 }
 0x3c8   :  { %11921 = vmatpush1.bf16.msra.mxu1 %v15775_v35  ;;  %v15816_v35 = vcombine.high %v3259_v23, %v3263_v57  ;;  %v3292_v23 = vld [vmem:[%s23463_s4 + $0x2548] sm:$0xff] }
 0x3c9   :  { %12480 = vmatpush1.bf16.msra.mxu0 %v15777_v63  ;;  %11922 = vmatprep.subr.bf16.mxu1 %v15784_v60  ;;  %v3267_v63 = vld [vmem:[%s23463_s4 + $0x2480] sm:$0xff]  ;;  %v3296_v57 = vld [vmem:[%s23463_s4 + $0x2568] sm:$0xff] }
 0x3ca   :  { %12481 = vmatprep.subr.bf16.mxu0 %v15786_v59  ;;  %v3271_v60 = vld [vmem:[%s23463_s4 + $0x24a0] sm:$0xff]  ;;  %v15818_v59 = vcombine.high %v3260_v56, %v3264_v40  ;;  %v15841_v56 = vcombine.low %v3284_v62, %v3288_v11 }
 0x3cb   :  { %v15823_v28 = vcombine.low %v3267_v63, %v3271_v60 }
 0x3cc   :  { %11923 = vmatpush1.bf16.msra.mxu1 %v15783_v39  ;;  %v15824_v39 = vcombine.high %v3267_v63, %v3271_v60  ;;  %v3303_v63 = vld [vmem:[%s23463_s4 + $0x25a0] sm:$0xff]  ;;  %v3300_v60 = vld [vmem:[%s23463_s4 + $0x2588] sm:$0xff] }
 0x3cd   :  { %12482 = vmatpush1.bf16.msra.mxu0 %v15785_v29  ;;  %11924 = vmatprep.subr.bf16.mxu1 %v15792_v20  ;;  %v15826_v29 = vcombine.high %v3268_v36, %v3272_v31  ;;  %v3275_v20 = vld [vmem:[%s23463_s4 + $0x24c0] sm:$0xff]  ;;  %v15849_v31 = vcombine.low %v3292_v23, %v3296_v57 }
 0x3ce   :  { %12483 = vmatprep.subr.bf16.mxu0 %v15794_v9  ;;  %v3279_v9 = vld [vmem:[%s23463_s4 + $0x24e0] sm:$0xff] }
 0x3cf   :  { %v15831_v45 = vcombine.low %v3275_v20, %v3279_v9 }
 0x3d0   :  { %11925 = vmatpush1.bf16.msra.mxu1 %v15791_v0  ;;  %v15832_v0 = vcombine.high %v3275_v20, %v3279_v9  ;;  %v3308_v20 = vld [vmem:[%s23463_s4 + $0x25c8] sm:$0xff] }
 0x3d1   :  { %12484 = vmatpush1.bf16.msra.mxu0 %v15793_v61  ;;  %11926 = vmatprep.subr.bf16.mxu1 %v15800_v55  ;;  %v15834_v61 = vcombine.high %v3276_v51, %v3280_v58  ;;  %v3283_v55 = vld [vmem:[%s23463_s4 + $0x2500] sm:$0xff]  ;;  %v3312_v9 = vld [vmem:[%s23463_s4 + $0x25e8] sm:$0xff] }
 0x3d2   :  { %12485 = vmatprep.subr.bf16.mxu0 %v15802_v19  ;;  %v3287_v19 = vld [vmem:[%s23463_s4 + $0x2520] sm:$0xff] }
 0x3d4   :  { %11927 = vmatpush1.bf16.msra.mxu1 %v15799_v3  ;;  %v15840_v3 = vcombine.high %v3283_v55, %v3287_v19 }
 0x3d5   :  { %12486 = vmatpush1.bf16.msra.mxu0 %v15801_v22  ;;  %11939 = vmatprep.subr.bf16.mxu1 %v15808_v47  ;;  %v15842_v22 = vcombine.high %v3284_v62, %v3288_v11  ;;  %v3291_v47 = vld [vmem:[%s23463_s4 + $0x2540] sm:$0xff]  ;;  %v15865_v11 = vcombine.low %v3308_v20, %v3312_v9 }
 0x3d6   :  { %12498 = vmatprep.subr.bf16.mxu0 %v15810_v6  ;;  %v3295_v6 = vld [vmem:[%s23463_s4 + $0x2560] sm:$0xff] }
 0x3d7   :  { %11929 = vmatmul.mubr.bf16.vlgmr.msra.gmra.mrb[24].mxu1 %v18694_v49  ;;  %v15848_v40 = vcombine.high %v3291_v47, %v3295_v6  ;;  %v15847_v36 = vcombine.low %v3291_v47, %v3295_v6  ;;  %v3324_v47 = vld [vmem:[%s23463_s4 + $0x2648] sm:$0xff] }
 0x3d8   :  { %12488 = vmatmul.mubr.bf16.vlgmr.msra.gmra.mrb[28].mxu0 %v18694_v49  ;;  %11940 = vmatpush1.bf16.msra.mxu1 %v15807_v52  ;;  %v15839_v52 = vcombine.low %v3283_v55, %v3287_v19  ;;  %v3316_v55 = vld [vmem:[%s23463_s4 + $0x2608] sm:$0xff] }
 0x3d9   :  { %11971 = vmatprep.mubr.bf16.mxu1 %v18704_v34  ;;  %12499 = vmatpush1.bf16.msra.mxu0 %v15809_v33  ;;  %v15850_v33 = vcombine.high %v3292_v23, %v3296_v57  ;;  %v3320_v19 = vld [vmem:[%s23463_s4 + $0x2628] sm:$0xff] }
 0x3da   :  { %12530 = vmatprep.mubr.bf16.mxu0 %v18704_v34  ;;  %11941 = vmatprep.subr.bf16.mxu1 %v15816_v35  ;;  %v3299_v35 = vld [vmem:[%s23463_s4 + $0x2580] sm:$0xff]  ;;  %v3328_v6 = vld [vmem:[%s23463_s4 + $0x2668] sm:$0xff]  ;;  %v15873_v57 = vcombine.low %v3316_v55, %v3320_v19 }
 0x3db   :  { %12500 = vmatprep.subr.bf16.mxu0 %v15818_v59  ;;  %v3304_v59 = vld [vmem:[%s23463_s4 + $0x25a8] sm:$0xff]  ;;  %v15855_v51 = vcombine.low %v3299_v35, %v3303_v63 }
 0x3dc   :  { %11942 = vmatpush1.bf16.msra.mxu1 %v15815_v38  ;;  %v15856_v38 = vcombine.high %v3299_v35, %v3303_v63  ;;  %v15857_v58 = vcombine.low %v3300_v60, %v3304_v59  ;;  %v3332_v35 = vld [vmem:[%s23463_s4 + $0x2688] sm:$0xff] }
 0x3dd   :  { %12501 = vmatpush1.bf16.msra.mxu0 %v15817_v17  ;;  %11943 = vmatprep.subr.bf16.mxu1 %v15824_v39  ;;  %v15858_v17 = vcombine.high %v3300_v60, %v3304_v59  ;;  %v3307_v39 = vld [vmem:[%s23463_s4 + $0x25c0] sm:$0xff]  ;;  %v3336_v63 = vld [vmem:[%s23463_s4 + $0x26a8] sm:$0xff]  ;;  %v15881_v59 = vcombine.low %v3324_v47, %v3328_v6 }
 0x3de   :  { %12502 = vmatprep.subr.bf16.mxu0 %v15826_v29  ;;  %v3311_v29 = vld [vmem:[%s23463_s4 + $0x25e0] sm:$0xff] }
 0x3df   :  { %v15863_v62 = vcombine.low %v3307_v39, %v3311_v29 }
 0x3e0   :  { %11944 = vmatpush1.bf16.msra.mxu1 %v15823_v28  ;;  %v15864_v28 = vcombine.high %v3307_v39, %v3311_v29  ;;  %v3340_v39 = vld [vmem:[%s23463_s4 + $0x26c8] sm:$0xff] }
 0x3e1   :  { %12503 = vmatpush1.bf16.msra.mxu0 %v15825_v32  ;;  %11945 = vmatprep.subr.bf16.mxu1 %v15832_v0  ;;  %v15866_v32 = vcombine.high %v3308_v20, %v3312_v9  ;;  %v3315_v0 = vld [vmem:[%s23463_s4 + $0x2600] sm:$0xff]  ;;  %v3344_v29 = vld [vmem:[%s23463_s4 + $0x26e8] sm:$0xff]  ;;  %v15889_v9 = vcombine.low %v3332_v35, %v3336_v63 }
 0x3e2   :  { %12504 = vmatprep.subr.bf16.mxu0 %v15834_v61  ;;  %v3319_v61 = vld [vmem:[%s23463_s4 + $0x2620] sm:$0xff] }
 0x3e3   :  { %v15871_v23 = vcombine.low %v3315_v0, %v3319_v61 }
 0x3e4   :  { %11946 = vmatpush1.bf16.msra.mxu1 %v15831_v45  ;;  %v15872_v45 = vcombine.high %v3315_v0, %v3319_v61  ;;  %v3348_v0 = vld [vmem:[%s23463_s4 + $0x2708] sm:$0xff] }
 0x3e5   :  { %12505 = vmatpush1.bf16.msra.mxu0 %v15833_v4  ;;  %11947 = vmatprep.subr.bf16.mxu1 %v15840_v3  ;;  %v15874_v4 = vcombine.high %v3316_v55, %v3320_v19  ;;  %v3323_v3 = vld [vmem:[%s23463_s4 + $0x2640] sm:$0xff]  ;;  %v3352_v61 = vld [vmem:[%s23463_s4 + $0x2728] sm:$0xff]  ;;  %v15897_v19 = vcombine.low %v3340_v39, %v3344_v29 }
 0x3e6   :  { %12506 = vmatprep.subr.bf16.mxu0 %v15842_v22  ;;  %v3327_v22 = vld [vmem:[%s23463_s4 + $0x2660] sm:$0xff] }
 0x3e7   :  { %v15879_v60 = vcombine.low %v3323_v3, %v3327_v22 }
 0x3e8   :  { %11948 = vmatpush1.bf16.msra.mxu1 %v15839_v52  ;;  %v15880_v52 = vcombine.high %v3323_v3, %v3327_v22  ;;  %v3356_v3 = vld [vmem:[%s23463_s4 + $0x2748] sm:$0xff] }
 0x3e9   :  { %12507 = vmatpush1.bf16.msra.mxu0 %v15841_v56  ;;  %11949 = vmatprep.subr.bf16.mxu1 %v15848_v40  ;;  %v15882_v56 = vcombine.high %v3324_v47, %v3328_v6  ;;  %v3331_v40 = vld [vmem:[%s23463_s4 + $0x2680] sm:$0xff]  ;;  %v3360_v22 = vld [vmem:[%s23463_s4 + $0x2768] sm:$0xff]  ;;  %v15905_v6 = vcombine.low %v3348_v0, %v3352_v61 }
 0x3ea   :  { %12508 = vmatprep.subr.bf16.mxu0 %v15850_v33  ;;  %v3335_v33 = vld [vmem:[%s23463_s4 + $0x26a0] sm:$0xff] }
 0x3eb   :  { %v15887_v20 = vcombine.low %v3331_v40, %v3335_v33 }
 0x3ec   :  { %11950 = vmatpush1.bf16.msra.mxu1 %v15847_v36  ;;  %v15888_v36 = vcombine.high %v3331_v40, %v3335_v33  ;;  %v3364_v40 = vld [vmem:[%s23463_s4 + $0x2788] sm:$0xff] }
 0x3ed   :  { %12509 = vmatpush1.bf16.msra.mxu0 %v15849_v31  ;;  %11951 = vmatprep.subr.bf16.mxu1 %v15856_v38  ;;  %v15890_v31 = vcombine.high %v3332_v35, %v3336_v63  ;;  %v3339_v38 = vld [vmem:[%s23463_s4 + $0x26c0] sm:$0xff]  ;;  %v3368_v33 = vld [vmem:[%s23463_s4 + $0x27a8] sm:$0xff]  ;;  %v15913_v63 = vcombine.low %v3356_v3, %v3360_v22 }
 0x3ee   :  { %12510 = vmatprep.subr.bf16.mxu0 %v15858_v17  ;;  %v3343_v17 = vld [vmem:[%s23463_s4 + $0x26e0] sm:$0xff] }
 0x3ef   :  { %v15895_v55 = vcombine.low %v3339_v38, %v3343_v17 }
 0x3f0   :  { %11952 = vmatpush1.bf16.msra.mxu1 %v15855_v51  ;;  %v15896_v51 = vcombine.high %v3339_v38, %v3343_v17  ;;  %v3372_v38 = vld [vmem:[%s23463_s4 + $0x27c8] sm:$0xff] }
 0x3f1   :  { %12511 = vmatpush1.bf16.msra.mxu0 %v15857_v58  ;;  %11953 = vmatprep.subr.bf16.mxu1 %v15864_v28  ;;  %v15898_v58 = vcombine.high %v3340_v39, %v3344_v29  ;;  %v3347_v28 = vld [vmem:[%s23463_s4 + $0x2700] sm:$0xff]  ;;  %v3376_v17 = vld [vmem:[%s23463_s4 + $0x27e8] sm:$0xff]  ;;  %v15921_v29 = vcombine.low %v3364_v40, %v3368_v33 }
 0x3f2   :  { %12512 = vmatprep.subr.bf16.mxu0 %v15866_v32  ;;  %v3351_v32 = vld [vmem:[%s23463_s4 + $0x2720] sm:$0xff] }
 0x3f3   :  { %v15903_v47 = vcombine.low %v3347_v28, %v3351_v32 }
 0x3f4   :  { %11954 = vmatpush1.bf16.msra.mxu1 %v15863_v62  ;;  %v15904_v62 = vcombine.high %v3347_v28, %v3351_v32  ;;  %v3380_v28 = vld [vmem:[%s23463_s4 + $0x2808] sm:$0xff] }
 0x3f5   :  { %12513 = vmatpush1.bf16.msra.mxu0 %v15865_v11  ;;  %11955 = vmatprep.subr.bf16.mxu1 %v15872_v45  ;;  %v15906_v11 = vcombine.high %v3348_v0, %v3352_v61  ;;  %v3355_v45 = vld [vmem:[%s23463_s4 + $0x2740] sm:$0xff]  ;;  %v3384_v32 = vld [vmem:[%s23463_s4 + $0x2828] sm:$0xff]  ;;  %v15929_v61 = vcombine.low %v3372_v38, %v3376_v17 }
 0x3f6   :  { %12514 = vmatprep.subr.bf16.mxu0 %v15874_v4  ;;  %v3359_v4 = vld [vmem:[%s23463_s4 + $0x2760] sm:$0xff] }
 0x3f7   :  { %v15911_v35 = vcombine.low %v3355_v45, %v3359_v4 }
 0x3f8   :  { %11956 = vmatpush1.bf16.msra.mxu1 %v15871_v23  ;;  %v15912_v23 = vcombine.high %v3355_v45, %v3359_v4  ;;  %v3388_v4 = vld [vmem:[%s23463_s4 + $0x2848] sm:$0xff] }
 0x3f9   :  { %12515 = vmatpush1.bf16.msra.mxu0 %v15873_v57  ;;  %11957 = vmatprep.subr.bf16.mxu1 %v15880_v52  ;;  %v15914_v57 = vcombine.high %v3356_v3, %v3360_v22  ;;  %v3363_v52 = vld [vmem:[%s23463_s4 + $0x2780] sm:$0xff]  ;;  %v3392_v3 = vld [vmem:[%s23463_s4 + $0x2868] sm:$0xff]  ;;  %v15937_v22 = vcombine.low %v3380_v28, %v3384_v32 }
 0x3fa   :  { %12516 = vmatprep.subr.bf16.mxu0 %v15882_v56  ;;  %v3367_v56 = vld [vmem:[%s23463_s4 + $0x27a0] sm:$0xff] }
 0x3fb   :  { %v15919_v39 = vcombine.low %v3363_v52, %v3367_v56 }
 0x3fc   :  { %11958 = vmatpush1.bf16.msra.mxu1 %v15879_v60  ;;  %v15920_v60 = vcombine.high %v3363_v52, %v3367_v56  ;;  %v3396_v52 = vld [vmem:[%s23463_s4 + $0x2888] sm:$0xff] }
 0x3fd   :  { %12517 = vmatpush1.bf16.msra.mxu0 %v15881_v59  ;;  %11959 = vmatprep.subr.bf16.mxu1 %v15888_v36  ;;  %v15922_v59 = vcombine.high %v3364_v40, %v3368_v33  ;;  %v3371_v36 = vld [vmem:[%s23463_s4 + $0x27c0] sm:$0xff]  ;;  %v3400_v56 = vld [vmem:[%s23463_s4 + $0x28a8] sm:$0xff]  ;;  %v15945_v33 = vcombine.low %v3388_v4, %v3392_v3 }
 0x3fe   :  { %12518 = vmatprep.subr.bf16.mxu0 %v15890_v31  ;;  %v3375_v31 = vld [vmem:[%s23463_s4 + $0x27e0] sm:$0xff] }
 0x3ff   :  { %v15927_v0 = vcombine.low %v3371_v36, %v3375_v31 }
 0x400   :  { %11960 = vmatpush1.bf16.msra.mxu1 %v15887_v20  ;;  %v15928_v20 = vcombine.high %v3371_v36, %v3375_v31  ;;  %v3404_v36 = vld [vmem:[%s23463_s4 + $0x28c8] sm:$0xff] }
 0x401   :  { %12519 = vmatpush1.bf16.msra.mxu0 %v15889_v9  ;;  %11961 = vmatprep.subr.bf16.mxu1 %v15896_v51  ;;  %v15930_v9 = vcombine.high %v3372_v38, %v3376_v17  ;;  %v3379_v51 = vld [vmem:[%s23463_s4 + $0x2800] sm:$0xff]  ;;  %v3408_v31 = vld [vmem:[%s23463_s4 + $0x28e8] sm:$0xff]  ;;  %v15953_v17 = vcombine.low %v3396_v52, %v3400_v56 }
 0x402   :  { %12520 = vmatprep.subr.bf16.mxu0 %v15898_v58  ;;  %v3383_v58 = vld [vmem:[%s23463_s4 + $0x2820] sm:$0xff] }
 0x403   :  { %v15935_v45 = vcombine.low %v3379_v51, %v3383_v58 }
 0x404   :  { %11962 = vmatpush1.bf16.msra.mxu1 %v15895_v55  ;;  %v15936_v55 = vcombine.high %v3379_v51, %v3383_v58  ;;  %v3412_v51 = vld [vmem:[%s23463_s4 + $0x2908] sm:$0xff] }
 0x405   :  { %12521 = vmatpush1.bf16.msra.mxu0 %v15897_v19  ;;  %11963 = vmatprep.subr.bf16.mxu1 %v15904_v62  ;;  %v15938_v19 = vcombine.high %v3380_v28, %v3384_v32  ;;  %v3387_v62 = vld [vmem:[%s23463_s4 + $0x2840] sm:$0xff]  ;;  %v3416_v58 = vld [vmem:[%s23463_s4 + $0x2928] sm:$0xff]  ;;  %v15961_v32 = vcombine.low %v3404_v36, %v3408_v31 }
 0x406   :  { %12522 = vmatprep.subr.bf16.mxu0 %v15906_v11  ;;  %v3391_v11 = vld [vmem:[%s23463_s4 + $0x2860] sm:$0xff] }
 0x407   :  { %v15943_v40 = vcombine.low %v3387_v62, %v3391_v11 }
 0x408   :  { %11964 = vmatpush1.bf16.msra.mxu1 %v15903_v47  ;;  %v15944_v47 = vcombine.high %v3387_v62, %v3391_v11  ;;  %v3420_v62 = vld [vmem:[%s23463_s4 + $0x2948] sm:$0xff] }
 0x409   :  { %12523 = vmatpush1.bf16.msra.mxu0 %v15905_v6  ;;  %11965 = vmatprep.subr.bf16.mxu1 %v15912_v23  ;;  %v3395_v6 = vld [vmem:[%s23463_s4 + $0x2880] sm:$0xff]  ;;  %v3424_v11 = vld [vmem:[%s23463_s4 + $0x2968] sm:$0xff] }
 0x40a   :  { %12524 = vmatprep.subr.bf16.mxu0 %v15914_v57  ;;  %v3399_v23 = vld [vmem:[%s23463_s4 + $0x28a0] sm:$0xff]  ;;  %v15946_v57 = vcombine.high %v3388_v4, %v3392_v3  ;;  %v15969_v4 = vcombine.low %v3412_v51, %v3416_v58 }
 0x40b   :  { %v15951_v38 = vcombine.low %v3395_v6, %v3399_v23 }
 0x40c   :  { %11966 = vmatpush1.bf16.msra.mxu1 %v15911_v35  ;;  %v15952_v35 = vcombine.high %v3395_v6, %v3399_v23  ;;  %v3431_v6 = vld [vmem:[%s23463_s4 + $0x29a0] sm:$0xff]  ;;  %v3428_v23 = vld [vmem:[%s23463_s4 + $0x2988] sm:$0xff] }
 0x40d   :  { %12525 = vmatpush1.bf16.msra.mxu0 %v15913_v63  ;;  %11967 = vmatprep.subr.bf16.mxu1 %v15920_v60  ;;  %v15954_v63 = vcombine.high %v3396_v52, %v3400_v56  ;;  %v3403_v60 = vld [vmem:[%s23463_s4 + $0x28c0] sm:$0xff]  ;;  %v15977_v56 = vcombine.low %v3420_v62, %v3424_v11 }
 0x40e   :  { %12526 = vmatprep.subr.bf16.mxu0 %v15922_v59  ;;  %v3407_v59 = vld [vmem:[%s23463_s4 + $0x28e0] sm:$0xff] }
 0x40f   :  { %v15959_v28 = vcombine.low %v3403_v60, %v3407_v59 }
 0x410   :  { %11968 = vmatpush1.bf16.msra.mxu1 %v15919_v39  ;;  %v15960_v39 = vcombine.high %v3403_v60, %v3407_v59  ;;  %v3436_v60 = vld [vmem:[%s23463_s4 + $0x29c8] sm:$0xff] }
 0x411   :  { %12527 = vmatpush1.bf16.msra.mxu0 %v15921_v29  ;;  %11969 = vmatprep.subr.bf16.mxu1 %v15928_v20  ;;  %v15962_v29 = vcombine.high %v3404_v36, %v3408_v31  ;;  %v3411_v20 = vld [vmem:[%s23463_s4 + $0x2900] sm:$0xff]  ;;  %v3440_v59 = vld [vmem:[%s23463_s4 + $0x29e8] sm:$0xff] }
 0x412   :  { %12528 = vmatprep.subr.bf16.mxu0 %v15930_v9  ;;  %v3415_v9 = vld [vmem:[%s23463_s4 + $0x2920] sm:$0xff] }
 0x414   :  { %11970 = vmatpush1.bf16.msra.mxu1 %v15927_v0  ;;  %v15968_v0 = vcombine.high %v3411_v20, %v3415_v9 }
 0x415   :  { %12529 = vmatpush1.bf16.msra.mxu0 %v15929_v61  ;;  %11982 = vmatprep.subr.bf16.mxu1 %v15936_v55  ;;  %v15970_v61 = vcombine.high %v3412_v51, %v3416_v58  ;;  %v3419_v55 = vld [vmem:[%s23463_s4 + $0x2940] sm:$0xff]  ;;  %v15993_v58 = vcombine.low %v3436_v60, %v3440_v59 }
 0x416   :  { %12541 = vmatprep.subr.bf16.mxu0 %v15938_v19  ;;  %v3423_v19 = vld [vmem:[%s23463_s4 + $0x2960] sm:$0xff] }
 0x417   :  { %11972 = vmatmul.mubr.bf16.vlgmr.msra.gmra.mrb[24].mxu1 %v18706_v43  ;;  %v15976_v3 = vcombine.high %v3419_v55, %v3423_v19  ;;  %v15975_v52 = vcombine.low %v3419_v55, %v3423_v19  ;;  %v3452_v55 = vld [vmem:[%s23463_s4 + $0x2a48] sm:$0xff] }
 0x418   :  { %12531 = vmatmul.mubr.bf16.vlgmr.msra.gmra.mrb[28].mxu0 %v18706_v43  ;;  %11983 = vmatpush1.bf16.msra.mxu1 %v15935_v45  ;;  %v15967_v45 = vcombine.low %v3411_v20, %v3415_v9  ;;  %v3444_v20 = vld [vmem:[%s23463_s4 + $0x2a08] sm:$0xff] }
 0x419   :  { %12014 = vmatprep.mubr.bf16.mxu1 %v18812_v18  ;;  %12542 = vmatpush1.bf16.msra.mxu0 %v15937_v22  ;;  %v15978_v22 = vcombine.high %v3420_v62, %v3424_v11  ;;  %v3448_v9 = vld [vmem:[%s23463_s4 + $0x2a28] sm:$0xff] }
 0x41a   :  { %12573 = vmatprep.mubr.bf16.mxu0 %v18812_v18  ;;  %11984 = vmatprep.subr.bf16.mxu1 %v15944_v47  ;;  %v3427_v47 = vld [vmem:[%s23463_s4 + $0x2980] sm:$0xff]  ;;  %v3456_v19 = vld [vmem:[%s23463_s4 + $0x2a68] sm:$0xff]  ;;  %v16001_v11 = vcombine.low %v3444_v20, %v3448_v9 }
 0x41b   :  { %12543 = vmatprep.subr.bf16.mxu0 %v15946_v57  ;;  %v3432_v57 = vld [vmem:[%s23463_s4 + $0x29a8] sm:$0xff]  ;;  %v15983_v36 = vcombine.low %v3427_v47, %v3431_v6 }
 0x41c   :  { %11985 = vmatpush1.bf16.msra.mxu1 %v15943_v40  ;;  %v15984_v40 = vcombine.high %v3427_v47, %v3431_v6  ;;  %v15985_v31 = vcombine.low %v3428_v23, %v3432_v57  ;;  %v3460_v47 = vld [vmem:[%s23463_s4 + $0x2a88] sm:$0xff] }
 0x41d   :  { %12544 = vmatpush1.bf16.msra.mxu0 %v15945_v33  ;;  %11986 = vmatprep.subr.bf16.mxu1 %v15952_v35  ;;  %v15986_v33 = vcombine.high %v3428_v23, %v3432_v57  ;;  %v3435_v35 = vld [vmem:[%s23463_s4 + $0x29c0] sm:$0xff]  ;;  %v3464_v6 = vld [vmem:[%s23463_s4 + $0x2aa8] sm:$0xff]  ;;  %v16009_v57 = vcombine.low %v3452_v55, %v3456_v19 }
 0x41e   :  { %12545 = vmatprep.subr.bf16.mxu0 %v15954_v63  ;;  %v3439_v63 = vld [vmem:[%s23463_s4 + $0x29e0] sm:$0xff] }
 0x41f   :  { %v15991_v51 = vcombine.low %v3435_v35, %v3439_v63 }
 0x420   :  { %11987 = vmatpush1.bf16.msra.mxu1 %v15951_v38  ;;  %v15992_v38 = vcombine.high %v3435_v35, %v3439_v63  ;;  %v3468_v35 = vld [vmem:[%s23463_s4 + $0x2ac8] sm:$0xff] }
 0x421   :  { %12546 = vmatpush1.bf16.msra.mxu0 %v15953_v17  ;;  %11988 = vmatprep.subr.bf16.mxu1 %v15960_v39  ;;  %v15994_v17 = vcombine.high %v3436_v60, %v3440_v59  ;;  %v3443_v39 = vld [vmem:[%s23463_s4 + $0x2a00] sm:$0xff]  ;;  %v3472_v63 = vld [vmem:[%s23463_s4 + $0x2ae8] sm:$0xff]  ;;  %v16017_v59 = vcombine.low %v3460_v47, %v3464_v6 }
 0x422   :  { %12547 = vmatprep.subr.bf16.mxu0 %v15962_v29  ;;  %v3447_v29 = vld [vmem:[%s23463_s4 + $0x2a20] sm:$0xff] }
 0x423   :  { %v15999_v62 = vcombine.low %v3443_v39, %v3447_v29 }
 0x424   :  { %11989 = vmatpush1.bf16.msra.mxu1 %v15959_v28  ;;  %v16000_v28 = vcombine.high %v3443_v39, %v3447_v29  ;;  %v3476_v39 = vld [vmem:[%s23463_s4 + $0x2b08] sm:$0xff] }
 0x425   :  { %12548 = vmatpush1.bf16.msra.mxu0 %v15961_v32  ;;  %11990 = vmatprep.subr.bf16.mxu1 %v15968_v0  ;;  %v16002_v32 = vcombine.high %v3444_v20, %v3448_v9  ;;  %v3451_v0 = vld [vmem:[%s23463_s4 + $0x2a40] sm:$0xff]  ;;  %v3480_v29 = vld [vmem:[%s23463_s4 + $0x2b28] sm:$0xff]  ;;  %v16025_v9 = vcombine.low %v3468_v35, %v3472_v63 }
 0x426   :  { %12549 = vmatprep.subr.bf16.mxu0 %v15970_v61  ;;  %v3455_v61 = vld [vmem:[%s23463_s4 + $0x2a60] sm:$0xff] }
 0x427   :  { %v16007_v23 = vcombine.low %v3451_v0, %v3455_v61 }
 0x428   :  { %11991 = vmatpush1.bf16.msra.mxu1 %v15967_v45  ;;  %v16008_v45 = vcombine.high %v3451_v0, %v3455_v61  ;;  %v3484_v0 = vld [vmem:[%s23463_s4 + $0x2b48] sm:$0xff] }
 0x429   :  { %12550 = vmatpush1.bf16.msra.mxu0 %v15969_v4  ;;  %11992 = vmatprep.subr.bf16.mxu1 %v15976_v3  ;;  %v16010_v4 = vcombine.high %v3452_v55, %v3456_v19  ;;  %v3459_v3 = vld [vmem:[%s23463_s4 + $0x2a80] sm:$0xff]  ;;  %v3488_v61 = vld [vmem:[%s23463_s4 + $0x2b68] sm:$0xff]  ;;  %v16033_v19 = vcombine.low %v3476_v39, %v3480_v29 }
 0x42a   :  { %12551 = vmatprep.subr.bf16.mxu0 %v15978_v22  ;;  %v3463_v22 = vld [vmem:[%s23463_s4 + $0x2aa0] sm:$0xff] }
 0x42b   :  { %v16015_v60 = vcombine.low %v3459_v3, %v3463_v22 }
 0x42c   :  { %11993 = vmatpush1.bf16.msra.mxu1 %v15975_v52  ;;  %v16016_v52 = vcombine.high %v3459_v3, %v3463_v22  ;;  %v3492_v3 = vld [vmem:[%s23463_s4 + $0x2b88] sm:$0xff] }
 0x42d   :  { %12552 = vmatpush1.bf16.msra.mxu0 %v15977_v56  ;;  %11994 = vmatprep.subr.bf16.mxu1 %v15984_v40  ;;  %v16018_v56 = vcombine.high %v3460_v47, %v3464_v6  ;;  %v3467_v40 = vld [vmem:[%s23463_s4 + $0x2ac0] sm:$0xff]  ;;  %v3496_v22 = vld [vmem:[%s23463_s4 + $0x2ba8] sm:$0xff]  ;;  %v16041_v6 = vcombine.low %v3484_v0, %v3488_v61 }
 0x42e   :  { %12553 = vmatprep.subr.bf16.mxu0 %v15986_v33  ;;  %v3471_v33 = vld [vmem:[%s23463_s4 + $0x2ae0] sm:$0xff] }
 0x42f   :  { %v16023_v20 = vcombine.low %v3467_v40, %v3471_v33 }
 0x430   :  { %11995 = vmatpush1.bf16.msra.mxu1 %v15983_v36  ;;  %v16024_v36 = vcombine.high %v3467_v40, %v3471_v33  ;;  %v3500_v40 = vld [vmem:[%s23463_s4 + $0x2bc8] sm:$0xff] }
 0x431   :  { %12554 = vmatpush1.bf16.msra.mxu0 %v15985_v31  ;;  %11996 = vmatprep.subr.bf16.mxu1 %v15992_v38  ;;  %v16026_v31 = vcombine.high %v3468_v35, %v3472_v63  ;;  %v3475_v38 = vld [vmem:[%s23463_s4 + $0x2b00] sm:$0xff]  ;;  %v3504_v33 = vld [vmem:[%s23463_s4 + $0x2be8] sm:$0xff]  ;;  %v16049_v63 = vcombine.low %v3492_v3, %v3496_v22 }
 0x432   :  { %12555 = vmatprep.subr.bf16.mxu0 %v15994_v17  ;;  %v3479_v17 = vld [vmem:[%s23463_s4 + $0x2b20] sm:$0xff] }
 0x433   :  { %v16031_v55 = vcombine.low %v3475_v38, %v3479_v17 }
 0x434   :  { %11997 = vmatpush1.bf16.msra.mxu1 %v15991_v51  ;;  %v16032_v51 = vcombine.high %v3475_v38, %v3479_v17  ;;  %v3508_v38 = vld [vmem:[%s23463_s4 + $0x2c08] sm:$0xff] }
 0x435   :  { %12556 = vmatpush1.bf16.msra.mxu0 %v15993_v58  ;;  %11998 = vmatprep.subr.bf16.mxu1 %v16000_v28  ;;  %v16034_v58 = vcombine.high %v3476_v39, %v3480_v29  ;;  %v3483_v28 = vld [vmem:[%s23463_s4 + $0x2b40] sm:$0xff]  ;;  %v3512_v17 = vld [vmem:[%s23463_s4 + $0x2c28] sm:$0xff]  ;;  %v16057_v29 = vcombine.low %v3500_v40, %v3504_v33 }
 0x436   :  { %12557 = vmatprep.subr.bf16.mxu0 %v16002_v32  ;;  %v3487_v32 = vld [vmem:[%s23463_s4 + $0x2b60] sm:$0xff] }
 0x437   :  { %v16039_v47 = vcombine.low %v3483_v28, %v3487_v32 }
 0x438   :  { %11999 = vmatpush1.bf16.msra.mxu1 %v15999_v62  ;;  %v16040_v62 = vcombine.high %v3483_v28, %v3487_v32  ;;  %v3516_v32 = vld [vmem:[%s23463_s4 + $0x2c48] sm:$0xff] }
 0x439   :  { %12558 = vmatpush1.bf16.msra.mxu0 %v16001_v11  ;;  %12000 = vmatprep.subr.bf16.mxu1 %v16008_v45  ;;  %v16042_v11 = vcombine.high %v3484_v0, %v3488_v61  ;;  %v3491_v45 = vld [vmem:[%s23463_s4 + $0x2b80] sm:$0xff]  ;;  %v3520_v0 = vld [vmem:[%s23463_s4 + $0x2c68] sm:$0xff]  ;;  %v16065_v61 = vcombine.low %v3508_v38, %v3512_v17 }
 0x43a   :  { %12559 = vmatprep.subr.bf16.mxu0 %v16010_v4  ;;  %v3495_v4 = vld [vmem:[%s23463_s4 + $0x2ba0] sm:$0xff] }
 0x43b   :  { %v16047_v35 = vcombine.low %v3491_v45, %v3495_v4 }
 0x43c   :  { %12001 = vmatpush1.bf16.msra.mxu1 %v16007_v23  ;;  %v16048_v23 = vcombine.high %v3491_v45, %v3495_v4  ;;  %v3524_v45 = vld [vmem:[%s23463_s4 + $0x2c88] sm:$0xff] }
 0x43d   :  { %12560 = vmatpush1.bf16.msra.mxu0 %v16009_v57  ;;  %12002 = vmatprep.subr.bf16.mxu1 %v16016_v52  ;;  %v16050_v57 = vcombine.high %v3492_v3, %v3496_v22  ;;  %v3499_v52 = vld [vmem:[%s23463_s4 + $0x2bc0] sm:$0xff]  ;;  %v3528_v4 = vld [vmem:[%s23463_s4 + $0x2ca8] sm:$0xff]  ;;  %v16073_v22 = vcombine.low %v3516_v32, %v3520_v0 }
 0x43e   :  { %12561 = vmatprep.subr.bf16.mxu0 %v16018_v56  ;;  %v3503_v56 = vld [vmem:[%s23463_s4 + $0x2be0] sm:$0xff] }
 0x43f   :  { %v16055_v39 = vcombine.low %v3499_v52, %v3503_v56 }
 0x440   :  { %12003 = vmatpush1.bf16.msra.mxu1 %v16015_v60  ;;  %v16056_v60 = vcombine.high %v3499_v52, %v3503_v56  ;;  %v3532_v52 = vld [vmem:[%s23463_s4 + $0x2cc8] sm:$0xff] }
 0x441   :  { %12562 = vmatpush1.bf16.msra.mxu0 %v16017_v59  ;;  %12004 = vmatprep.subr.bf16.mxu1 %v16024_v36  ;;  %v16058_v59 = vcombine.high %v3500_v40, %v3504_v33  ;;  %v3507_v36 = vld [vmem:[%s23463_s4 + $0x2c00] sm:$0xff]  ;;  %v3536_v56 = vld [vmem:[%s23463_s4 + $0x2ce8] sm:$0xff]  ;;  %v16081_v33 = vcombine.low %v3524_v45, %v3528_v4 }
 0x442   :  { %12563 = vmatprep.subr.bf16.mxu0 %v16026_v31  ;;  %v3511_v31 = vld [vmem:[%s23463_s4 + $0x2c20] sm:$0xff] }
 0x443   :  { %v16063_v28 = vcombine.low %v3507_v36, %v3511_v31 }
 0x444   :  { %12005 = vmatpush1.bf16.msra.mxu1 %v16023_v20  ;;  %v16064_v20 = vcombine.high %v3507_v36, %v3511_v31  ;;  %v3540_v36 = vld [vmem:[%s23463_s4 + $0x2d08] sm:$0xff] }
 0x445   :  { %12564 = vmatpush1.bf16.msra.mxu0 %v16025_v9  ;;  %12006 = vmatprep.subr.bf16.mxu1 %v16032_v51  ;;  %v16066_v9 = vcombine.high %v3508_v38, %v3512_v17  ;;  %v3515_v51 = vld [vmem:[%s23463_s4 + $0x2c40] sm:$0xff]  ;;  %v3544_v31 = vld [vmem:[%s23463_s4 + $0x2d28] sm:$0xff]  ;;  %v16089_v17 = vcombine.low %v3532_v52, %v3536_v56 }
 0x446   :  { %12565 = vmatprep.subr.bf16.mxu0 %v16034_v58  ;;  %v3519_v58 = vld [vmem:[%s23463_s4 + $0x2c60] sm:$0xff] }
 0x447   :  { %v16071_v3 = vcombine.low %v3515_v51, %v3519_v58 }
 0x448   :  { %12007 = vmatpush1.bf16.msra.mxu1 %v16031_v55  ;;  %v16072_v55 = vcombine.high %v3515_v51, %v3519_v58  ;;  %v3548_v51 = vld [vmem:[%s23463_s4 + $0x2d48] sm:$0xff] }
 0x449   :  { %12566 = vmatpush1.bf16.msra.mxu0 %v16033_v19  ;;  %12008 = vmatprep.subr.bf16.mxu1 %v16040_v62  ;;  %v3523_v19 = vld [vmem:[%s23463_s4 + $0x2c80] sm:$0xff]  ;;  %v3552_v58 = vld [vmem:[%s23463_s4 + $0x2d68] sm:$0xff] }
 0x44a   :  { %12567 = vmatprep.subr.bf16.mxu0 %v16042_v11  ;;  %v3527_v62 = vld [vmem:[%s23463_s4 + $0x2ca0] sm:$0xff]  ;;  %v16074_v11 = vcombine.high %v3516_v32, %v3520_v0  ;;  %v16097_v32 = vcombine.low %v3540_v36, %v3544_v31 }
 0x44b   :  { %v16079_v40 = vcombine.low %v3523_v19, %v3527_v62 }
 0x44c   :  { %12009 = vmatpush1.bf16.msra.mxu1 %v16039_v47  ;;  %v16080_v47 = vcombine.high %v3523_v19, %v3527_v62  ;;  %v3559_v19 = vld [vmem:[%s23463_s4 + $0x2da0] sm:$0xff]  ;;  %v3556_v62 = vld [vmem:[%s23463_s4 + $0x2d88] sm:$0xff] }
 0x44d   :  { %12568 = vmatpush1.bf16.msra.mxu0 %v16041_v6  ;;  %12010 = vmatprep.subr.bf16.mxu1 %v16048_v23  ;;  %v16082_v6 = vcombine.high %v3524_v45, %v3528_v4  ;;  %v3531_v23 = vld [vmem:[%s23463_s4 + $0x2cc0] sm:$0xff]  ;;  %v16105_v4 = vcombine.low %v3548_v51, %v3552_v58 }
 0x44e   :  { %12569 = vmatprep.subr.bf16.mxu0 %v16050_v57  ;;  %v3535_v57 = vld [vmem:[%s23463_s4 + $0x2ce0] sm:$0xff] }
 0x44f   :  { %v16087_v38 = vcombine.low %v3531_v23, %v3535_v57 }
 0x450   :  { %12011 = vmatpush1.bf16.msra.mxu1 %v16047_v35  ;;  %v16088_v35 = vcombine.high %v3531_v23, %v3535_v57  ;;  %v3564_v23 = vld [vmem:[%s23463_s4 + $0x2dc8] sm:$0xff] }
 0x451   :  { %12570 = vmatpush1.bf16.msra.mxu0 %v16049_v63  ;;  %12012 = vmatprep.subr.bf16.mxu1 %v16056_v60  ;;  %v16090_v63 = vcombine.high %v3532_v52, %v3536_v56  ;;  %v3539_v60 = vld [vmem:[%s23463_s4 + $0x2d00] sm:$0xff]  ;;  %v3568_v57 = vld [vmem:[%s23463_s4 + $0x2de8] sm:$0xff] }
 0x452   :  { %12571 = vmatprep.subr.bf16.mxu0 %v16058_v59  ;;  %v3543_v59 = vld [vmem:[%s23463_s4 + $0x2d20] sm:$0xff] }
 0x454   :  { %12013 = vmatpush1.bf16.msra.mxu1 %v16055_v39  ;;  %v16096_v39 = vcombine.high %v3539_v60, %v3543_v59 }
 0x455   :  { %12572 = vmatpush1.bf16.msra.mxu0 %v16057_v29  ;;  %12025 = vmatprep.subr.bf16.mxu1 %v16064_v20  ;;  %v16098_v29 = vcombine.high %v3540_v36, %v3544_v31  ;;  %v3547_v20 = vld [vmem:[%s23463_s4 + $0x2d40] sm:$0xff]  ;;  %v16121_v31 = vcombine.low %v3564_v23, %v3568_v57 }
 0x456   :  { %12584 = vmatprep.subr.bf16.mxu0 %v16066_v9  ;;  %v3551_v9 = vld [vmem:[%s23463_s4 + $0x2d60] sm:$0xff] }
 0x457   :  { %12015 = vmatmul.mubr.bf16.vlgmr.msra.gmra.mrb[24].mxu1 %v18814_v42  ;;  %v16104_v0 = vcombine.high %v3547_v20, %v3551_v9  ;;  %v16103_v45 = vcombine.low %v3547_v20, %v3551_v9  ;;  %v3580_v20 = vld [vmem:[%s23463_s4 + $0x2e48] sm:$0xff] }
 0x458   :  { %12574 = vmatmul.mubr.bf16.vlgmr.msra.gmra.mrb[28].mxu0 %v18814_v42  ;;  %12026 = vmatpush1.bf16.msra.mxu1 %v16063_v28  ;;  %v16095_v28 = vcombine.low %v3539_v60, %v3543_v59  ;;  %v3572_v60 = vld [vmem:[%s23463_s4 + $0x2e08] sm:$0xff] }
 0x459   :  { %12057 = vmatprep.mubr.bf16.mxu1 %v18822_v10  ;;  %12585 = vmatpush1.bf16.msra.mxu0 %v16065_v61  ;;  %v16106_v61 = vcombine.high %v3548_v51, %v3552_v58  ;;  %v3576_v59 = vld [vmem:[%s23463_s4 + $0x2e28] sm:$0xff] }
 0x45a   :  { %12616 = vmatprep.mubr.bf16.mxu0 %v18822_v10  ;;  %12027 = vmatprep.subr.bf16.mxu1 %v16072_v55  ;;  %v3555_v55 = vld [vmem:[%s23463_s4 + $0x2d80] sm:$0xff]  ;;  %v3584_v9 = vld [vmem:[%s23463_s4 + $0x2e68] sm:$0xff]  ;;  %v16129_v58 = vcombine.low %v3572_v60, %v3576_v59 }
 0x45b   :  { %12586 = vmatprep.subr.bf16.mxu0 %v16074_v11  ;;  %v3560_v11 = vld [vmem:[%s23463_s4 + $0x2da8] sm:$0xff]  ;;  %v16111_v52 = vcombine.low %v3555_v55, %v3559_v19 }
 0x45c   :  { %12028 = vmatpush1.bf16.msra.mxu1 %v16071_v3  ;;  %v16112_v3 = vcombine.high %v3555_v55, %v3559_v19  ;;  %v16113_v56 = vcombine.low %v3556_v62, %v3560_v11  ;;  %v3588_v55 = vld [vmem:[%s23463_s4 + $0x2e88] sm:$0xff] }
 0x45d   :  { %12587 = vmatpush1.bf16.msra.mxu0 %v16073_v22  ;;  %12029 = vmatprep.subr.bf16.mxu1 %v16080_v47  ;;  %v16114_v22 = vcombine.high %v3556_v62, %v3560_v11  ;;  %v3563_v47 = vld [vmem:[%s23463_s4 + $0x2dc0] sm:$0xff]  ;;  %v3592_v19 = vld [vmem:[%s23463_s4 + $0x2ea8] sm:$0xff]  ;;  %v16137_v11 = vcombine.low %v3580_v20, %v3584_v9 }
 0x45e   :  { %12588 = vmatprep.subr.bf16.mxu0 %v16082_v6  ;;  %v3567_v6 = vld [vmem:[%s23463_s4 + $0x2de0] sm:$0xff] }
 0x45f   :  { %v16119_v36 = vcombine.low %v3563_v47, %v3567_v6 }
 0x460   :  { %12030 = vmatpush1.bf16.msra.mxu1 %v16079_v40  ;;  %v16120_v40 = vcombine.high %v3563_v47, %v3567_v6  ;;  %v3596_v47 = vld [vmem:[%s23463_s4 + $0x2ec8] sm:$0xff] }
 0x461   :  { %12589 = vmatpush1.bf16.msra.mxu0 %v16081_v33  ;;  %12031 = vmatprep.subr.bf16.mxu1 %v16088_v35  ;;  %v16122_v33 = vcombine.high %v3564_v23, %v3568_v57  ;;  %v3571_v35 = vld [vmem:[%s23463_s4 + $0x2e00] sm:$0xff]  ;;  %v3600_v6 = vld [vmem:[%s23463_s4 + $0x2ee8] sm:$0xff]  ;;  %v16145_v57 = vcombine.low %v3588_v55, %v3592_v19 }
 0x462   :  { %12590 = vmatprep.subr.bf16.mxu0 %v16090_v63  ;;  %v3575_v63 = vld [vmem:[%s23463_s4 + $0x2e20] sm:$0xff] }
 0x463   :  { %v16127_v51 = vcombine.low %v3571_v35, %v3575_v63 }
 0x464   :  { %12032 = vmatpush1.bf16.msra.mxu1 %v16087_v38  ;;  %v16128_v38 = vcombine.high %v3571_v35, %v3575_v63  ;;  %v3604_v35 = vld [vmem:[%s23463_s4 + $0x2f08] sm:$0xff] }
 0x465   :  { %12591 = vmatpush1.bf16.msra.mxu0 %v16089_v17  ;;  %12033 = vmatprep.subr.bf16.mxu1 %v16096_v39  ;;  %v16130_v17 = vcombine.high %v3572_v60, %v3576_v59  ;;  %v3579_v39 = vld [vmem:[%s23463_s4 + $0x2e40] sm:$0xff]  ;;  %v3608_v63 = vld [vmem:[%s23463_s4 + $0x2f28] sm:$0xff]  ;;  %v16153_v59 = vcombine.low %v3596_v47, %v3600_v6 }
 0x466   :  { %12592 = vmatprep.subr.bf16.mxu0 %v16098_v29  ;;  %v3583_v29 = vld [vmem:[%s23463_s4 + $0x2e60] sm:$0xff] }
 0x467   :  { %v16135_v62 = vcombine.low %v3579_v39, %v3583_v29 }
 0x468   :  { %12034 = vmatpush1.bf16.msra.mxu1 %v16095_v28  ;;  %v16136_v28 = vcombine.high %v3579_v39, %v3583_v29  ;;  %v3612_v39 = vld [vmem:[%s23463_s4 + $0x2f48] sm:$0xff] }
 0x469   :  { %12593 = vmatpush1.bf16.msra.mxu0 %v16097_v32  ;;  %12035 = vmatprep.subr.bf16.mxu1 %v16104_v0  ;;  %v16138_v32 = vcombine.high %v3580_v20, %v3584_v9  ;;  %v3587_v0 = vld [vmem:[%s23463_s4 + $0x2e80] sm:$0xff]  ;;  %v3616_v29 = vld [vmem:[%s23463_s4 + $0x2f68] sm:$0xff]  ;;  %v16161_v9 = vcombine.low %v3604_v35, %v3608_v63 }
 0x46a   :  { %12594 = vmatprep.subr.bf16.mxu0 %v16106_v61  ;;  %v3591_v61 = vld [vmem:[%s23463_s4 + $0x2ea0] sm:$0xff] }
 0x46b   :  { %v16143_v23 = vcombine.low %v3587_v0, %v3591_v61 }
 0x46c   :  { %12036 = vmatpush1.bf16.msra.mxu1 %v16103_v45  ;;  %v16144_v45 = vcombine.high %v3587_v0, %v3591_v61  ;;  %v3620_v0 = vld [vmem:[%s23463_s4 + $0x2f88] sm:$0xff] }
 0x46d   :  { %12595 = vmatpush1.bf16.msra.mxu0 %v16105_v4  ;;  %12037 = vmatprep.subr.bf16.mxu1 %v16112_v3  ;;  %v16146_v4 = vcombine.high %v3588_v55, %v3592_v19  ;;  %v3595_v3 = vld [vmem:[%s23463_s4 + $0x2ec0] sm:$0xff]  ;;  %v3624_v61 = vld [vmem:[%s23463_s4 + $0x2fa8] sm:$0xff]  ;;  %v16169_v19 = vcombine.low %v3612_v39, %v3616_v29 }
 0x46e   :  { %12596 = vmatprep.subr.bf16.mxu0 %v16114_v22  ;;  %v3599_v22 = vld [vmem:[%s23463_s4 + $0x2ee0] sm:$0xff] }
 0x46f   :  { %v16151_v60 = vcombine.low %v3595_v3, %v3599_v22 }
 0x470   :  { %12038 = vmatpush1.bf16.msra.mxu1 %v16111_v52  ;;  %v16152_v52 = vcombine.high %v3595_v3, %v3599_v22  ;;  %v3628_v3 = vld [vmem:[%s23463_s4 + $0x2fc8] sm:$0xff] }
 0x471   :  { %12597 = vmatpush1.bf16.msra.mxu0 %v16113_v56  ;;  %12039 = vmatprep.subr.bf16.mxu1 %v16120_v40  ;;  %v16154_v56 = vcombine.high %v3596_v47, %v3600_v6  ;;  %v3603_v40 = vld [vmem:[%s23463_s4 + $0x2f00] sm:$0xff]  ;;  %v3632_v22 = vld [vmem:[%s23463_s4 + $0x2fe8] sm:$0xff]  ;;  %v16177_v6 = vcombine.low %v3620_v0, %v3624_v61 }
 0x472   :  { %12598 = vmatprep.subr.bf16.mxu0 %v16122_v33  ;;  %v3607_v33 = vld [vmem:[%s23463_s4 + $0x2f20] sm:$0xff] }
 0x473   :  { %v16159_v20 = vcombine.low %v3603_v40, %v3607_v33 }
 0x474   :  { %12040 = vmatpush1.bf16.msra.mxu1 %v16119_v36  ;;  %v16160_v36 = vcombine.high %v3603_v40, %v3607_v33  ;;  %v3636_v40 = vld [vmem:[%s23463_s4 + $0x3008] sm:$0xff] }
 0x475   :  { %12599 = vmatpush1.bf16.msra.mxu0 %v16121_v31  ;;  %12041 = vmatprep.subr.bf16.mxu1 %v16128_v38  ;;  %v16162_v31 = vcombine.high %v3604_v35, %v3608_v63  ;;  %v3611_v38 = vld [vmem:[%s23463_s4 + $0x2f40] sm:$0xff]  ;;  %v3640_v33 = vld [vmem:[%s23463_s4 + $0x3028] sm:$0xff]  ;;  %v16185_v63 = vcombine.low %v3628_v3, %v3632_v22 }
 0x476   :  { %12600 = vmatprep.subr.bf16.mxu0 %v16130_v17  ;;  %v3615_v17 = vld [vmem:[%s23463_s4 + $0x2f60] sm:$0xff] }
 0x477   :  { %v16167_v55 = vcombine.low %v3611_v38, %v3615_v17 }
 0x478   :  { %12042 = vmatpush1.bf16.msra.mxu1 %v16127_v51  ;;  %v16168_v51 = vcombine.high %v3611_v38, %v3615_v17  ;;  %v3644_v38 = vld [vmem:[%s23463_s4 + $0x3048] sm:$0xff] }
 0x479   :  { %12601 = vmatpush1.bf16.msra.mxu0 %v16129_v58  ;;  %12043 = vmatprep.subr.bf16.mxu1 %v16136_v28  ;;  %v16170_v58 = vcombine.high %v3612_v39, %v3616_v29  ;;  %v3619_v28 = vld [vmem:[%s23463_s4 + $0x2f80] sm:$0xff]  ;;  %v3648_v17 = vld [vmem:[%s23463_s4 + $0x3068] sm:$0xff]  ;;  %v16193_v29 = vcombine.low %v3636_v40, %v3640_v33 }
 0x47a   :  { %12602 = vmatprep.subr.bf16.mxu0 %v16138_v32  ;;  %v3623_v32 = vld [vmem:[%s23463_s4 + $0x2fa0] sm:$0xff] }
 0x47b   :  { %v16175_v47 = vcombine.low %v3619_v28, %v3623_v32 }
 0x47c   :  { %12044 = vmatpush1.bf16.msra.mxu1 %v16135_v62  ;;  %v16176_v62 = vcombine.high %v3619_v28, %v3623_v32  ;;  %v3652_v28 = vld [vmem:[%s23463_s4 + $0x3088] sm:$0xff] }
 0x47d   :  { %12603 = vmatpush1.bf16.msra.mxu0 %v16137_v11  ;;  %12045 = vmatprep.subr.bf16.mxu1 %v16144_v45  ;;  %v16178_v11 = vcombine.high %v3620_v0, %v3624_v61  ;;  %v3627_v45 = vld [vmem:[%s23463_s4 + $0x2fc0] sm:$0xff]  ;;  %v3656_v32 = vld [vmem:[%s23463_s4 + $0x30a8] sm:$0xff]  ;;  %v16201_v61 = vcombine.low %v3644_v38, %v3648_v17 }
 0x47e   :  { %12604 = vmatprep.subr.bf16.mxu0 %v16146_v4  ;;  %v3631_v4 = vld [vmem:[%s23463_s4 + $0x2fe0] sm:$0xff] }
 0x47f   :  { %v16183_v35 = vcombine.low %v3627_v45, %v3631_v4 }
 0x480   :  { %12046 = vmatpush1.bf16.msra.mxu1 %v16143_v23  ;;  %v16184_v23 = vcombine.high %v3627_v45, %v3631_v4  ;;  %v23714_v45 = vmov 0   ;;  %v3660_v4 = vld [vmem:[%s23463_s4 + $0x30c8] sm:$0xff] }
 0x481   :  { %12605 = vmatpush1.bf16.msra.mxu0 %v16145_v57  ;;  %12047 = vmatprep.subr.bf16.mxu1 %v16152_v52  ;;  %v16186_v57 = vcombine.high %v3628_v3, %v3632_v22  ;;  %v3635_v52 = vld [vmem:[%s23463_s4 + $0x3000] sm:$0xff]  ;;  %v3664_v3 = vld [vmem:[%s23463_s4 + $0x30e8] sm:$0xff] }
 0x482   :  { %12606 = vmatprep.subr.bf16.mxu0 %v16154_v56  ;;  %v3639_v56 = vld [vmem:[%s23463_s4 + $0x3020] sm:$0xff] }
 0x483   :  { %v16191_v39 = vcombine.low %v3635_v52, %v3639_v56 }
 0x484   :  { %12048 = vmatpush1.bf16.msra.mxu1 %v16151_v60  ;;  %v16192_v60 = vcombine.high %v3635_v52, %v3639_v56  ;;  %v2105_v52 = vld [vmem:[%s23463_s4 + $0x30] sm:$0xff]  ;;  %v2102_v56 = vld [vmem:[%s23463_s4 + $0x18] sm:$0xff] }
 0x485   :  { %12607 = vmatpush1.bf16.msra.mxu0 %v16153_v59  ;;  %12049 = vmatprep.subr.bf16.mxu1 %v16160_v36  ;;  %v16194_v59 = vcombine.high %v3636_v40, %v3640_v33  ;;  %v3643_v36 = vld [vmem:[%s23463_s4 + $0x3040] sm:$0xff]  ;;  %v2106_v40 = vld [vmem:[%s23463_s4 + $0x38] sm:$0xff] }
 0x486   :  { %12608 = vmatprep.subr.bf16.mxu0 %v16162_v31  ;;  %v3647_v31 = vld [vmem:[%s23463_s4 + $0x3060] sm:$0xff] }
 0x487   :  { %v16199_v0 = vcombine.low %v3643_v36, %v3647_v31 }
 0x488   :  { %12050 = vmatpush1.bf16.msra.mxu1 %v16159_v20  ;;  %v16200_v20 = vcombine.high %v3643_v36, %v3647_v31  ;;  %v2113_v36 = vld [vmem:[%s23463_s4 + $0x70] sm:$0xff] }
 0x489   :  { %12609 = vmatpush1.bf16.msra.mxu0 %v16161_v9  ;;  %12051 = vmatprep.subr.bf16.mxu1 %v16168_v51  ;;  %v16202_v9 = vcombine.high %v3644_v38, %v3648_v17  ;;  %v3651_v51 = vld [vmem:[%s23463_s4 + $0x3080] sm:$0xff]  ;;  %v2110_v38 = vld [vmem:[%s23463_s4 + $0x58] sm:$0xff] }
 0x48a   :  { %12610 = vmatprep.subr.bf16.mxu0 %v16170_v58  ;;  %v3655_v58 = vld [vmem:[%s23463_s4 + $0x30a0] sm:$0xff]  ;;  %v2114_v17 = vld [vmem:[%s23463_s4 + $0x78] sm:$0xff] }
 0x48b   :  { %v16207_v22 = vcombine.low %v3651_v51, %v3655_v58 }
 0x48c   :  { %12052 = vmatpush1.bf16.msra.mxu1 %v16167_v55  ;;  %v16208_v55 = vcombine.high %v3651_v51, %v3655_v58  ;;  %v14670_v51 = vcombine.high %v2110_v38, %v2114_v17  ;;  %v2118_v58 = vld [vmem:[%s23463_s4 + $0x98] sm:$0xff] }
 0x48d   :  { %12611 = vmatpush1.bf16.msra.mxu0 %v16169_v19  ;;  %12053 = vmatprep.subr.bf16.mxu1 %v16176_v62  ;;  %v16210_v19 = vcombine.high %v3652_v28, %v3656_v32  ;;  %v3659_v62 = vld [vmem:[%s23463_s4 + $0x30c0] sm:$0xff] }
 0x48e   :  { %12612 = vmatprep.subr.bf16.mxu0 %v16178_v11  ;;  %v3663_v11 = vld [vmem:[%s23463_s4 + $0x30e0] sm:$0xff] }
 0x48f   :  { %v16215_v33 = vcombine.low %v3659_v62, %v3663_v11 }
 0x490   :  { %12054 = vmatpush1.bf16.msra.mxu1 %v16175_v47  ;;  %v16209_v47 = vcombine.low %v3652_v28, %v3656_v32  ;;  %v2122_v28 = vld [vmem:[%s23463_s4 + $0xb8] sm:$0xff] }
 0x491   :  { %12613 = vmatpush1.bf16.msra.mxu0 %v16177_v6  ;;  %12055 = vmatprep.subr.bf16.mxu1 %v16184_v23  ;;  %v16216_v6 = vcombine.high %v3659_v62, %v3663_v11  ;;  %v16218_v23 = vcombine.high %v3660_v4, %v3664_v3  ;;  %v2125_v62 = vld [vmem:[%s23463_s4 + $0xd0] sm:$0xff] }
 0x492   :  { %12614 = vmatprep.subr.bf16.mxu0 %v16186_v57  ;;  %v2101_v57 = vld [vmem:[%s23463_s4 + $0x10] sm:$0xff] }
 0x493   :  { %v14659_v31 = vcombine.low %v2101_v57, %v2105_v52  ;;  %v2129_v11 = vld [vmem:[%s23463_s4 + $0xf0] sm:$0xff] }
 0x494   :  { %12056 = vmatpush1.bf16.msra.mxu1 %v16183_v35  ;;  %v16217_v35 = vcombine.low %v3660_v4, %v3664_v3  ;;  %v2126_v4 = vld [vmem:[%s23463_s4 + $0xd8] sm:$0xff] }
 0x495   :  { %12615 = vmatpush1.bf16.msra.mxu0 %v16185_v63  ;;  %12068 = vmatprep.subr.bf16.mxu1 %v16192_v60  ;;  %v14660_v63 = vcombine.high %v2101_v57, %v2105_v52  ;;  %v14662_v60 = vcombine.high %v2102_v56, %v2106_v40  ;;  %v2130_v3 = vld [vmem:[%s23463_s4 + $0xf8] sm:$0xff]  ;;  %v2133_v57 = vld [vmem:[%s23463_s4 + $0x110] sm:$0xff] }
 0x496   :  { %12627 = vmatprep.subr.bf16.mxu0 %v16194_v59  ;;  %v2109_v59 = vld [vmem:[%s23463_s4 + $0x50] sm:$0xff] }
 0x497   :  { %12058 = vmatmul.mubr.bf16.vlgmr.msra.gmra.mrb[24].mxu1 %v18832_v2  ;;  %v14667_v32 = vcombine.low %v2109_v59, %v2113_v36  ;;  %v2137_v52 = vld [vmem:[%s23463_s4 + $0x130] sm:$0xff] }
 0x498   :  { %12617 = vmatmul.mubr.bf16.vlgmr.msra.gmra.mrb[28].mxu0 %v18832_v2  ;;  %12069 = vmatpush1.bf16.msra.mxu1 %v16191_v39  ;;  %v14661_v39 = vcombine.low %v2102_v56, %v2106_v40  ;;  %v2134_v56 = vld [vmem:[%s23463_s4 + $0x118] sm:$0xff] }
 0x499   :  { %12628 = vmatpush1.bf16.msra.mxu0 %v16193_v29  ;;  %12070 = vmatprep.subr.bf16.mxu1 %v16200_v20  ;;  %v14668_v29 = vcombine.high %v2109_v59, %v2113_v36  ;;  %v2117_v20 = vld [vmem:[%s23463_s4 + $0x90] sm:$0xff]  ;;  %v2138_v40 = vld [vmem:[%s23463_s4 + $0x138] sm:$0xff] }
 0x49a   :  { %12629 = vmatprep.subr.bf16.mxu0 %v16202_v9  ;;  %12100 = vmatprep.mubr.bf16.mxu1 %v23714_v45  ;;  %v2121_v9 = vld [vmem:[%s23463_s4 + $0xb0] sm:$0xff] }
 0x49b   :  { %12659 = vmatprep.mubr.bf16.mxu0 %v23714_v45  ;;  %v2141_v59 = vld [vmem:[%s23463_s4 + $0x150] sm:$0xff] }
 0x49c   :  { %12071 = vmatpush1.bf16.msra.mxu1 %v16199_v0  ;;  %v23715_v0 = vld [vmem:[#allocation21_spill] sm:$0xff]  ;;  %v2145_v36 = vld [vmem:[%s23463_s4 + $0x170] sm:$0xff] }
 0x49d   :  { %12630 = vmatpush1.bf16.msra.mxu0 %v16201_v61  ;;  %12072 = vmatprep.subr.bf16.mxu1 %v16208_v55  ;;  %v14669_v61 = vcombine.low %v2110_v38, %v2114_v17  ;;  %v14676_v55 = vcombine.high %v2117_v20, %v2121_v9  ;;  %v2146_v38 = vld [vmem:[%s23463_s4 + $0x178] sm:$0xff]  ;;  %v14691_v17 = vcombine.low %v2133_v57, %v2137_v52 }
 0x49e   :  { %12631 = vmatprep.subr.bf16.mxu0 %v16210_v19  ;;  %v14678_v19 = vcombine.high %v2118_v58, %v2122_v28 }
 0x4a0   :  { %12073 = vmatpush1.bf16.msra.mxu1 %v16207_v22  ;;  %v14675_v22 = vcombine.low %v2117_v20, %v2121_v9  ;;  %v2149_v9 = vld [vmem:[%s23463_s4 + $0x190] sm:$0xff] }
 0x4a1   :  { %12632 = vmatpush1.bf16.msra.mxu0 %v16209_v47  ;;  %12074 = vmatprep.subr.bf16.mxu1 %v16216_v6  ;;  %v14677_v47 = vcombine.low %v2118_v58, %v2122_v28  ;;  %v14684_v6 = vcombine.high %v2125_v62, %v2129_v11  ;;  %v2150_v58 = vld [vmem:[%s23463_s4 + $0x198] sm:$0xff] }
 0x4a2   :  { %12633 = vmatprep.subr.bf16.mxu0 %v16218_v23  ;;  %v14686_v23 = vcombine.high %v2126_v4, %v2130_v3  ;;  %v2154_v28 = vld [vmem:[%s23463_s4 + $0x1b8] sm:$0xff] }
 0x4a4   :  { %12075 = vmatpush1.bf16.msra.mxu1 %v16215_v33  ;;  %v14683_v33 = vcombine.low %v2125_v62, %v2129_v11  ;;  %v2161_v62 = vld [vmem:[%s23463_s4 + $0x1f0] sm:$0xff]  ;;  %v2158_v11 = vld [vmem:[%s23463_s4 + $0x1d8] sm:$0xff] }
 0x4a5   :  { %12634 = vmatpush1.bf16.msra.mxu0 %v16217_v35  ;;  %12670 = vmatprep.subr.bf16.mxu1 %v14660_v63  ;;  %v14685_v35 = vcombine.low %v2126_v4, %v2130_v3  ;;  %v14692_v63 = vcombine.high %v2133_v57, %v2137_v52  ;;  %v2162_v4 = vld [vmem:[%s23463_s4 + $0x1f8] sm:$0xff]  ;;  %v2169_v57 = vld [vmem:[%s23463_s4 + $0x230] sm:$0xff] }
 0x4a6   :  { %13229 = vmatprep.subr.bf16.mxu0 %v14662_v60  ;;  %v14694_v60 = vcombine.high %v2134_v56, %v2138_v40  ;;  %v2166_v52 = vld [vmem:[%s23463_s4 + $0x218] sm:$0xff] }
 0x4a7   :  { %16223 = vmatmul.mubr.msk.bf16.vlgmr.msra.gmra.mrb[24].mxu1 %vm993_vm10, %v18853_v54 }
 0x4a8   :  { %16224 = vmatmul.mubr.msk.bf16.vlgmr.msra.gmra.mrb[28].mxu0 %vm993_vm10, %v18853_v54  ;;  %12671 = vmatpush1.bf16.msra.mxu1 %v14659_v31  ;;  %v2142_v31 = vld [vmem:[%s23463_s4 + $0x158] sm:$0xff] }
 0x4a9   :  { %12702 = vmatprep.mubr.bf16.mxu1 %v23715_v0  ;;  %13230 = vmatpush1.bf16.msra.mxu0 %v14661_v39  ;;  %v14693_v39 = vcombine.low %v2134_v56, %v2138_v40  ;;  %v14702_v20 = vcombine.high %v2142_v31, %v2146_v38  ;;  %v2170_v56 = vld [vmem:[%s23463_s4 + $0x238] sm:$0xff] }
 0x4aa   :  { %13261 = vmatprep.mubr.bf16.mxu0 %v23715_v0  ;;  %12672 = vmatprep.subr.bf16.mxu1 %v14668_v29  ;;  %v14700_v29 = vcombine.high %v2141_v59, %v2145_v36  ;;  %v14701_v0 = vcombine.low %v2142_v31, %v2146_v38  ;;  %v2178_v31 = vld [vmem:[%s23463_s4 + $0x278] sm:$0xff] }
 0x4ab   :  { %13231 = vmatprep.subr.bf16.mxu0 %v14670_v51  ;;  %v2153_v51 = vld [vmem:[%s23463_s4 + $0x1b0] sm:$0xff] }
 0x4ac   :  { %12673 = vmatpush1.bf16.msra.mxu1 %v14667_v32  ;;  %v14699_v32 = vcombine.low %v2141_v59, %v2145_v36  ;;  %v14707_v3 = vcombine.low %v2149_v9, %v2153_v51  ;;  %v2177_v59 = vld [vmem:[%s23463_s4 + $0x270] sm:$0xff]  ;;  %v2174_v36 = vld [vmem:[%s23463_s4 + $0x258] sm:$0xff] }
 0x4ad   :  { %13232 = vmatpush1.bf16.msra.mxu0 %v14669_v61  ;;  %12674 = vmatprep.subr.bf16.mxu1 %v14676_v55  ;;  %v14708_v61 = vcombine.high %v2149_v9, %v2153_v51  ;;  %v14710_v55 = vcombine.high %v2150_v58, %v2154_v28  ;;  %v2185_v9 = vld [vmem:[%s23463_s4 + $0x2b0] sm:$0xff]  ;;  %v2182_v51 = vld [vmem:[%s23463_s4 + $0x298] sm:$0xff] }
 0x4ae   :  { %13233 = vmatprep.subr.bf16.mxu0 %v14678_v19  ;;  %v2157_v19 = vld [vmem:[%s23463_s4 + $0x1d0] sm:$0xff] }
 0x4af   :  { %v14715_v40 = vcombine.low %v2157_v19, %v2161_v62 }
 0x4b0   :  { %12675 = vmatpush1.bf16.msra.mxu1 %v14675_v22  ;;  %v14709_v22 = vcombine.low %v2150_v58, %v2154_v28  ;;  %v2186_v58 = vld [vmem:[%s23463_s4 + $0x2b8] sm:$0xff] }
 0x4b1   :  { %13234 = vmatpush1.bf16.msra.mxu0 %v14677_v47  ;;  %12676 = vmatprep.subr.bf16.mxu1 %v14684_v6  ;;  %v14716_v47 = vcombine.high %v2157_v19, %v2161_v62  ;;  %v14718_v6 = vcombine.high %v2158_v11, %v2162_v4  ;;  %v2193_v19 = vld [vmem:[%s23463_s4 + $0x2f0] sm:$0xff]  ;;  %v2190_v62 = vld [vmem:[%s23463_s4 + $0x2d8] sm:$0xff] }
 0x4b2   :  { %13235 = vmatprep.subr.bf16.mxu0 %v14686_v23  ;;  %v2165_v23 = vld [vmem:[%s23463_s4 + $0x210] sm:$0xff] }
 0x4b3   :  { %v14723_v38 = vcombine.low %v2165_v23, %v2169_v57 }
 0x4b4   :  { %12677 = vmatpush1.bf16.msra.mxu1 %v14683_v33  ;;  %v14717_v33 = vcombine.low %v2158_v11, %v2162_v4  ;;  %v2194_v11 = vld [vmem:[%s23463_s4 + $0x2f8] sm:$0xff] }
 0x4b5   :  { %13236 = vmatpush1.bf16.msra.mxu0 %v14685_v35  ;;  %12678 = vmatprep.subr.bf16.mxu1 %v14692_v63  ;;  %v14724_v35 = vcombine.high %v2165_v23, %v2169_v57  ;;  %v14726_v63 = vcombine.high %v2166_v52, %v2170_v56  ;;  %v2201_v23 = vld [vmem:[%s23463_s4 + $0x330] sm:$0xff]  ;;  %v2198_v57 = vld [vmem:[%s23463_s4 + $0x318] sm:$0xff] }
 0x4b6   :  { %13237 = vmatprep.subr.bf16.mxu0 %v14694_v60  ;;  %v2173_v60 = vld [vmem:[%s23463_s4 + $0x250] sm:$0xff] }
 0x4b7   :  { %v14731_v28 = vcombine.low %v2173_v60, %v2177_v59 }
 0x4b8   :  { %12679 = vmatpush1.bf16.msra.mxu1 %v14691_v17  ;;  %v14725_v17 = vcombine.low %v2166_v52, %v2170_v56  ;;  %v2202_v52 = vld [vmem:[%s23463_s4 + $0x338] sm:$0xff] }
 0x4b9   :  { %13238 = vmatpush1.bf16.msra.mxu0 %v14693_v39  ;;  %12680 = vmatprep.subr.bf16.mxu1 %v14700_v29  ;;  %v14732_v39 = vcombine.high %v2173_v60, %v2177_v59  ;;  %v14734_v29 = vcombine.high %v2174_v36, %v2178_v31  ;;  %v2209_v60 = vld [vmem:[%s23463_s4 + $0x370] sm:$0xff]  ;;  %v2206_v59 = vld [vmem:[%s23463_s4 + $0x358] sm:$0xff] }
 0x4ba   :  { %13239 = vmatprep.subr.bf16.mxu0 %v14702_v20  ;;  %v2181_v20 = vld [vmem:[%s23463_s4 + $0x290] sm:$0xff] }
 0x4bb   :  { %v14739_v4 = vcombine.low %v2181_v20, %v2185_v9 }
 0x4bc   :  { %12681 = vmatpush1.bf16.msra.mxu1 %v14699_v32  ;;  %v14733_v32 = vcombine.low %v2174_v36, %v2178_v31  ;;  %v2210_v36 = vld [vmem:[%s23463_s4 + $0x378] sm:$0xff] }
 0x4bd   :  { %13240 = vmatpush1.bf16.msra.mxu0 %v14701_v0  ;;  %12682 = vmatprep.subr.bf16.mxu1 %v14708_v61  ;;  %v14740_v0 = vcombine.high %v2181_v20, %v2185_v9  ;;  %v14742_v61 = vcombine.high %v2182_v51, %v2186_v58  ;;  %v2217_v20 = vld [vmem:[%s23463_s4 + $0x3b0] sm:$0xff]  ;;  %v2214_v9 = vld [vmem:[%s23463_s4 + $0x398] sm:$0xff] }
 0x4be   :  { %13241 = vmatprep.subr.bf16.mxu0 %v14710_v55  ;;  %v2189_v55 = vld [vmem:[%s23463_s4 + $0x2d0] sm:$0xff] }
 0x4bf   :  { %v14747_v56 = vcombine.low %v2189_v55, %v2193_v19 }
 0x4c0   :  { %12683 = vmatpush1.bf16.msra.mxu1 %v14707_v3  ;;  %v14741_v3 = vcombine.low %v2182_v51, %v2186_v58  ;;  %v2218_v51 = vld [vmem:[%s23463_s4 + $0x3b8] sm:$0xff] }
 0x4c1   :  { %13242 = vmatpush1.bf16.msra.mxu0 %v14709_v22  ;;  %12684 = vmatprep.subr.bf16.mxu1 %v14716_v47  ;;  %v14748_v22 = vcombine.high %v2189_v55, %v2193_v19  ;;  %v14750_v47 = vcombine.high %v2190_v62, %v2194_v11  ;;  %v2225_v55 = vld [vmem:[%s23463_s4 + $0x3f0] sm:$0xff]  ;;  %v2222_v19 = vld [vmem:[%s23463_s4 + $0x3d8] sm:$0xff] }
 0x4c2   :  { %13243 = vmatprep.subr.bf16.mxu0 %v14718_v6  ;;  %v2197_v6 = vld [vmem:[%s23463_s4 + $0x310] sm:$0xff] }
 0x4c3   :  { %v14755_v31 = vcombine.low %v2197_v6, %v2201_v23 }
 0x4c4   :  { %12685 = vmatpush1.bf16.msra.mxu1 %v14715_v40  ;;  %v14749_v40 = vcombine.low %v2190_v62, %v2194_v11  ;;  %v2226_v62 = vld [vmem:[%s23463_s4 + $0x3f8] sm:$0xff] }
 0x4c5   :  { %13244 = vmatpush1.bf16.msra.mxu0 %v14717_v33  ;;  %12686 = vmatprep.subr.bf16.mxu1 %v14724_v35  ;;  %v14756_v33 = vcombine.high %v2197_v6, %v2201_v23  ;;  %v14758_v35 = vcombine.high %v2198_v57, %v2202_v52  ;;  %v2233_v6 = vld [vmem:[%s23463_s4 + $0x430] sm:$0xff]  ;;  %v2230_v23 = vld [vmem:[%s23463_s4 + $0x418] sm:$0xff] }
 0x4c6   :  { %13245 = vmatprep.subr.bf16.mxu0 %v14726_v63  ;;  %v2205_v63 = vld [vmem:[%s23463_s4 + $0x350] sm:$0xff] }
 0x4c7   :  { %v14763_v58 = vcombine.low %v2205_v63, %v2209_v60 }
 0x4c8   :  { %12687 = vmatpush1.bf16.msra.mxu1 %v14723_v38  ;;  %v14757_v38 = vcombine.low %v2198_v57, %v2202_v52  ;;  %v2234_v57 = vld [vmem:[%s23463_s4 + $0x438] sm:$0xff] }
 0x4c9   :  { %13246 = vmatpush1.bf16.msra.mxu0 %v14725_v17  ;;  %12688 = vmatprep.subr.bf16.mxu1 %v14732_v39  ;;  %v14764_v17 = vcombine.high %v2205_v63, %v2209_v60  ;;  %v14766_v39 = vcombine.high %v2206_v59, %v2210_v36  ;;  %v2241_v63 = vld [vmem:[%s23463_s4 + $0x470] sm:$0xff] }
 0x4ca   :  { %13247 = vmatprep.subr.bf16.mxu0 %v14734_v29  ;;  %v2213_v29 = vld [vmem:[%s23463_s4 + $0x390] sm:$0xff] }
 0x4cb   :  { %v14771_v11 = vcombine.low %v2213_v29, %v2217_v20 }
 0x4cc   :  { %12689 = vmatpush1.bf16.msra.mxu1 %v14731_v28  ;;  %v14765_v28 = vcombine.low %v2206_v59, %v2210_v36  ;;  %v2238_v59 = vld [vmem:[%s23463_s4 + $0x458] sm:$0xff] }
 0x4cd   :  { %13248 = vmatpush1.bf16.msra.mxu0 %v14733_v32  ;;  %12690 = vmatprep.subr.bf16.mxu1 %v14740_v0  ;;  %v14772_v32 = vcombine.high %v2213_v29, %v2217_v20  ;;  %v14774_v0 = vcombine.high %v2214_v9, %v2218_v51  ;;  %v2242_v36 = vld [vmem:[%s23463_s4 + $0x478] sm:$0xff] }
 0x4ce   :  { %13249 = vmatprep.subr.bf16.mxu0 %v14742_v61  ;;  %v2221_v61 = vld [vmem:[%s23463_s4 + $0x3d0] sm:$0xff]  ;;  %v23716_v29 = vld [vmem:[#allocation17_spill] sm:$0xff]  ;;  %v14798_v20 = vcombine.high %v2238_v59, %v2242_v36 }
 0x4cf   :  { %v14779_v52 = vcombine.low %v2221_v61, %v2225_v55 }
 0x4d0   :  { %12691 = vmatpush1.bf16.msra.mxu1 %v14739_v4  ;;  %v14773_v4 = vcombine.low %v2214_v9, %v2218_v51  ;;  %v2246_v9 = vld [vmem:[%s23463_s4 + $0x498] sm:$0xff] }
 0x4d1   :  { %13250 = vmatpush1.bf16.msra.mxu0 %v14741_v3  ;;  %12692 = vmatprep.subr.bf16.mxu1 %v14748_v22  ;;  %v14780_v3 = vcombine.high %v2221_v61, %v2225_v55  ;;  %v14782_v22 = vcombine.high %v2222_v19, %v2226_v62  ;;  %v2250_v51 = vld [vmem:[%s23463_s4 + $0x4b8] sm:$0xff]  ;;  %v2253_v55 = vld [vmem:[%s23463_s4 + $0x4d0] sm:$0xff] }
 0x4d2   :  { %13251 = vmatprep.subr.bf16.mxu0 %v14750_v47  ;;  %v2229_v47 = vld [vmem:[%s23463_s4 + $0x410] sm:$0xff]  ;;  %v14806_v61 = vcombine.high %v2246_v9, %v2250_v51 }
 0x4d3   :  { %v14787_v60 = vcombine.low %v2229_v47, %v2233_v6 }
 0x4d4   :  { %12693 = vmatpush1.bf16.msra.mxu1 %v14747_v56  ;;  %v14781_v56 = vcombine.low %v2222_v19, %v2226_v62  ;;  %v2257_v19 = vld [vmem:[%s23463_s4 + $0x4f0] sm:$0xff]  ;;  %v2254_v62 = vld [vmem:[%s23463_s4 + $0x4d8] sm:$0xff] }
 0x4d5   :  { %13252 = vmatpush1.bf16.msra.mxu0 %v14749_v40  ;;  %12694 = vmatprep.subr.bf16.mxu1 %v14756_v33  ;;  %v14788_v40 = vcombine.high %v2229_v47, %v2233_v6  ;;  %v14790_v33 = vcombine.high %v2230_v23, %v2234_v57  ;;  %v2261_v6 = vld [vmem:[%s23463_s4 + $0x510] sm:$0xff] }
 0x4d6   :  { %13253 = vmatprep.subr.bf16.mxu0 %v14758_v35  ;;  %v2237_v35 = vld [vmem:[%s23463_s4 + $0x450] sm:$0xff] }
 0x4d8   :  { %12695 = vmatpush1.bf16.msra.mxu1 %v14755_v31  ;;  %v14789_v31 = vcombine.low %v2230_v23, %v2234_v57  ;;  %v2265_v23 = vld [vmem:[%s23463_s4 + $0x530] sm:$0xff]  ;;  %v2262_v57 = vld [vmem:[%s23463_s4 + $0x518] sm:$0xff] }
 0x4d9   :  { %13254 = vmatpush1.bf16.msra.mxu0 %v14757_v38  ;;  %12696 = vmatprep.subr.bf16.mxu1 %v14764_v17  ;;  %v14796_v38 = vcombine.high %v2237_v35, %v2241_v63  ;;  %v2245_v17 = vld [vmem:[%s23463_s4 + $0x490] sm:$0xff] }
 0x4da   :  { %13255 = vmatprep.subr.bf16.mxu0 %v14766_v39  ;;  %v2249_v39 = vld [vmem:[%s23463_s4 + $0x4b0] sm:$0xff] }
 0x4dc   :  { %12697 = vmatpush1.bf16.msra.mxu1 %v14763_v58  ;;  %v14795_v58 = vcombine.low %v2237_v35, %v2241_v63  ;;  %v2269_v63 = vld [vmem:[%s23463_s4 + $0x550] sm:$0xff] }
 0x4dd   :  { %13256 = vmatpush1.bf16.msra.mxu0 %v14765_v28  ;;  %12698 = vmatprep.subr.bf16.mxu1 %v14772_v32  ;;  %v23717_v28 = vld [vmem:[#allocation22_spill] sm:$0xff]  ;;  %v14797_v32 = vcombine.low %v2238_v59, %v2242_v36  ;;  %v2270_v59 = vld [vmem:[%s23463_s4 + $0x558] sm:$0xff] }
 0x4de   :  { %13257 = vmatprep.subr.bf16.mxu0 %v14774_v0  ;;  %v14804_v0 = vcombine.high %v2245_v17, %v2249_v39  ;;  %v2274_v36 = vld [vmem:[%s23463_s4 + $0x578] sm:$0xff] }
 0x4e0   :  { %12699 = vmatpush1.bf16.msra.mxu1 %v14771_v11  ;;  %v2258_v11 = vld [vmem:[%s23463_s4 + $0x4f8] sm:$0xff] }
 0x4e1   :  { %13258 = vmatpush1.bf16.msra.mxu0 %v14773_v4  ;;  %12700 = vmatprep.subr.bf16.mxu1 %v14780_v3  ;;  %v14803_v4 = vcombine.low %v2245_v17, %v2249_v39  ;;  %v14805_v3 = vcombine.low %v2246_v9, %v2250_v51  ;;  %v14814_v47 = vcombine.high %v2254_v62, %v2258_v11  ;;  %v2278_v9 = vld [vmem:[%s23463_s4 + $0x598] sm:$0xff] }
 0x4e2   :  { %13259 = vmatprep.subr.bf16.mxu0 %v14782_v22  ;;  %v14812_v22 = vcombine.high %v2253_v55, %v2257_v19  ;;  %v14830_v39 = vcombine.high %v2270_v59, %v2274_v36  ;;  %v2282_v51 = vld [vmem:[%s23463_s4 + $0x5b8] sm:$0xff] }
 0x4e4   :  { %12701 = vmatpush1.bf16.msra.mxu1 %v14779_v52  ;;  %v2266_v52 = vld [vmem:[%s23463_s4 + $0x538] sm:$0xff] }
 0x4e5   :  { %13260 = vmatpush1.bf16.msra.mxu0 %v14781_v56  ;;  %12713 = vmatprep.subr.bf16.mxu1 %v14788_v40  ;;  %v14811_v56 = vcombine.low %v2253_v55, %v2257_v19  ;;  %v14813_v40 = vcombine.low %v2254_v62, %v2258_v11  ;;  %v14822_v35 = vcombine.high %v2262_v57, %v2266_v52  ;;  %v2289_v55 = vld [vmem:[%s23463_s4 + $0x5f0] sm:$0xff]  ;;  %v2286_v19 = vld [vmem:[%s23463_s4 + $0x5d8] sm:$0xff] }
 0x4e6   :  { %13272 = vmatprep.subr.bf16.mxu0 %v14790_v33  ;;  %v14820_v33 = vcombine.high %v2261_v6, %v2265_v23  ;;  %v2290_v62 = vld [vmem:[%s23463_s4 + $0x5f8] sm:$0xff] }
 0x4e7   :  { %12703 = vmatmul.mubr.bf16.vlgmr.msra.gmra.mrb[28].mxu1 %v23716_v29 }
 0x4e8   :  { %13262 = vmatmul.mubr.bf16.vlgmr.msra.gmra.mrb[32].mxu0 %v23716_v29  ;;  %12714 = vmatpush1.bf16.msra.mxu1 %v14787_v60  ;;  %v2273_v60 = vld [vmem:[%s23463_s4 + $0x570] sm:$0xff] }
 0x4e9   :  { %12745 = vmatprep.mubr.bf16.mxu1 %v23717_v28  ;;  %13273 = vmatpush1.bf16.msra.mxu0 %v14789_v31  ;;  %v14819_v31 = vcombine.low %v2261_v6, %v2265_v23  ;;  %v14828_v17 = vcombine.high %v2269_v63, %v2273_v60  ;;  %v2277_v29 = vld [vmem:[%s23463_s4 + $0x590] sm:$0xff]  ;;  %v2294_v23 = vld [vmem:[%s23463_s4 + $0x618] sm:$0xff] }
 0x4ea   :  { %13304 = vmatprep.mubr.bf16.mxu0 %v23717_v28  ;;  %12715 = vmatprep.subr.bf16.mxu1 %v14796_v38  ;;  %v14821_v38 = vcombine.low %v2262_v57, %v2266_v52  ;;  %v14829_v28 = vcombine.low %v2270_v59, %v2274_v36  ;;  %v2297_v6 = vld [vmem:[%s23463_s4 + $0x630] sm:$0xff]  ;;  %v2298_v57 = vld [vmem:[%s23463_s4 + $0x638] sm:$0xff] }
 0x4eb   :  { %13274 = vmatprep.subr.bf16.mxu0 %v14798_v20  ;;  %v2281_v20 = vld [vmem:[%s23463_s4 + $0x5b0] sm:$0xff]  ;;  %v2306_v59 = vld [vmem:[%s23463_s4 + $0x678] sm:$0xff] }
 0x4ec   :  { %12716 = vmatpush1.bf16.msra.mxu1 %v14795_v58  ;;  %v14827_v58 = vcombine.low %v2269_v63, %v2273_v60  ;;  %v14835_v11 = vcombine.low %v2277_v29, %v2281_v20  ;;  %v2305_v63 = vld [vmem:[%s23463_s4 + $0x670] sm:$0xff]  ;;  %v2302_v60 = vld [vmem:[%s23463_s4 + $0x658] sm:$0xff] }
 0x4ed   :  { %13275 = vmatpush1.bf16.msra.mxu0 %v14797_v32  ;;  %12717 = vmatprep.subr.bf16.mxu1 %v14804_v0  ;;  %v14836_v32 = vcombine.high %v2277_v29, %v2281_v20  ;;  %v14838_v0 = vcombine.high %v2278_v9, %v2282_v51  ;;  %v2313_v29 = vld [vmem:[%s23463_s4 + $0x6b0] sm:$0xff]  ;;  %v2310_v20 = vld [vmem:[%s23463_s4 + $0x698] sm:$0xff] }
 0x4ee   :  { %13276 = vmatprep.subr.bf16.mxu0 %v14806_v61  ;;  %v2285_v61 = vld [vmem:[%s23463_s4 + $0x5d0] sm:$0xff] }
 0x4ef   :  { %v14843_v52 = vcombine.low %v2285_v61, %v2289_v55 }
 0x4f0   :  { %12718 = vmatpush1.bf16.msra.mxu1 %v14803_v4  ;;  %v14837_v4 = vcombine.low %v2278_v9, %v2282_v51  ;;  %v2314_v9 = vld [vmem:[%s23463_s4 + $0x6b8] sm:$0xff] }
 0x4f1   :  { %13277 = vmatpush1.bf16.msra.mxu0 %v14805_v3  ;;  %12719 = vmatprep.subr.bf16.mxu1 %v14812_v22  ;;  %v14844_v3 = vcombine.high %v2285_v61, %v2289_v55  ;;  %v14846_v22 = vcombine.high %v2286_v19, %v2290_v62  ;;  %v2321_v61 = vld [vmem:[%s23463_s4 + $0x6f0] sm:$0xff]  ;;  %v2318_v55 = vld [vmem:[%s23463_s4 + $0x6d8] sm:$0xff] }
 0x4f2   :  { %13278 = vmatprep.subr.bf16.mxu0 %v14814_v47  ;;  %v2293_v47 = vld [vmem:[%s23463_s4 + $0x610] sm:$0xff] }
 0x4f3   :  { %v14851_v36 = vcombine.low %v2293_v47, %v2297_v6 }
 0x4f4   :  { %12720 = vmatpush1.bf16.msra.mxu1 %v14811_v56  ;;  %v14845_v56 = vcombine.low %v2286_v19, %v2290_v62  ;;  %v2322_v19 = vld [vmem:[%s23463_s4 + $0x6f8] sm:$0xff] }
 0x4f5   :  { %13279 = vmatpush1.bf16.msra.mxu0 %v14813_v40  ;;  %12721 = vmatprep.subr.bf16.mxu1 %v14820_v33  ;;  %v14852_v40 = vcombine.high %v2293_v47, %v2297_v6  ;;  %v14854_v33 = vcombine.high %v2294_v23, %v2298_v57  ;;  %v2329_v47 = vld [vmem:[%s23463_s4 + $0x730] sm:$0xff]  ;;  %v2326_v6 = vld [vmem:[%s23463_s4 + $0x718] sm:$0xff] }
 0x4f6   :  { %13280 = vmatprep.subr.bf16.mxu0 %v14822_v35  ;;  %v2301_v35 = vld [vmem:[%s23463_s4 + $0x650] sm:$0xff] }
 0x4f7   :  { %v14859_v51 = vcombine.low %v2301_v35, %v2305_v63 }
 0x4f8   :  { %12722 = vmatpush1.bf16.msra.mxu1 %v14819_v31  ;;  %v14853_v31 = vcombine.low %v2294_v23, %v2298_v57  ;;  %v2330_v23 = vld [vmem:[%s23463_s4 + $0x738] sm:$0xff] }
 0x4f9   :  { %13281 = vmatpush1.bf16.msra.mxu0 %v14821_v38  ;;  %12723 = vmatprep.subr.bf16.mxu1 %v14828_v17  ;;  %v14860_v38 = vcombine.high %v2301_v35, %v2305_v63  ;;  %v14862_v17 = vcombine.high %v2302_v60, %v2306_v59  ;;  %v2337_v35 = vld [vmem:[%s23463_s4 + $0x770] sm:$0xff]  ;;  %v2334_v63 = vld [vmem:[%s23463_s4 + $0x758] sm:$0xff] }
 0x4fa   :  { %13282 = vmatprep.subr.bf16.mxu0 %v14830_v39  ;;  %v2309_v39 = vld [vmem:[%s23463_s4 + $0x690] sm:$0xff] }
 0x4fb   :  { %v14867_v62 = vcombine.low %v2309_v39, %v2313_v29 }
 0x4fc   :  { %12724 = vmatpush1.bf16.msra.mxu1 %v14827_v58  ;;  %v14861_v58 = vcombine.low %v2302_v60, %v2306_v59  ;;  %v2338_v60 = vld [vmem:[%s23463_s4 + $0x778] sm:$0xff] }
 0x4fd   :  { %13283 = vmatpush1.bf16.msra.mxu0 %v14829_v28  ;;  %12725 = vmatprep.subr.bf16.mxu1 %v14836_v32  ;;  %v14868_v28 = vcombine.high %v2309_v39, %v2313_v29  ;;  %v14870_v32 = vcombine.high %v2310_v20, %v2314_v9  ;;  %v2345_v39 = vld [vmem:[%s23463_s4 + $0x7b0] sm:$0xff]  ;;  %v2342_v29 = vld [vmem:[%s23463_s4 + $0x798] sm:$0xff] }
 0x4fe   :  { %13284 = vmatprep.subr.bf16.mxu0 %v14838_v0  ;;  %v2317_v0 = vld [vmem:[%s23463_s4 + $0x6d0] sm:$0xff] }
 0x4ff   :  { %v14875_v57 = vcombine.low %v2317_v0, %v2321_v61 }
 0x500   :  { %12726 = vmatpush1.bf16.msra.mxu1 %v14835_v11  ;;  %v14869_v11 = vcombine.low %v2310_v20, %v2314_v9  ;;  %v2346_v20 = vld [vmem:[%s23463_s4 + $0x7b8] sm:$0xff] }
 0x501   :  { %13285 = vmatpush1.bf16.msra.mxu0 %v14837_v4  ;;  %12727 = vmatprep.subr.bf16.mxu1 %v14844_v3  ;;  %v14876_v4 = vcombine.high %v2317_v0, %v2321_v61  ;;  %v14878_v3 = vcombine.high %v2318_v55, %v2322_v19  ;;  %v2353_v0 = vld [vmem:[%s23463_s4 + $0x7f0] sm:$0xff]  ;;  %v2350_v61 = vld [vmem:[%s23463_s4 + $0x7d8] sm:$0xff] }
 0x502   :  { %13286 = vmatprep.subr.bf16.mxu0 %v14846_v22  ;;  %v2325_v22 = vld [vmem:[%s23463_s4 + $0x710] sm:$0xff] }
 0x503   :  { %v14883_v59 = vcombine.low %v2325_v22, %v2329_v47 }
 0x504   :  { %12728 = vmatpush1.bf16.msra.mxu1 %v14843_v52  ;;  %v14877_v52 = vcombine.low %v2318_v55, %v2322_v19  ;;  %v2354_v55 = vld [vmem:[%s23463_s4 + $0x7f8] sm:$0xff] }
 0x505   :  { %13287 = vmatpush1.bf16.msra.mxu0 %v14845_v56  ;;  %12729 = vmatprep.subr.bf16.mxu1 %v14852_v40  ;;  %v14884_v56 = vcombine.high %v2325_v22, %v2329_v47  ;;  %v14886_v40 = vcombine.high %v2326_v6, %v2330_v23  ;;  %v2361_v22 = vld [vmem:[%s23463_s4 + $0x830] sm:$0xff]  ;;  %v2358_v47 = vld [vmem:[%s23463_s4 + $0x818] sm:$0xff] }
 0x506   :  { %13288 = vmatprep.subr.bf16.mxu0 %v14854_v33  ;;  %v2333_v33 = vld [vmem:[%s23463_s4 + $0x750] sm:$0xff] }
 0x507   :  { %v14891_v9 = vcombine.low %v2333_v33, %v2337_v35 }
 0x508   :  { %12730 = vmatpush1.bf16.msra.mxu1 %v14851_v36  ;;  %v14885_v36 = vcombine.low %v2326_v6, %v2330_v23  ;;  %v2362_v6 = vld [vmem:[%s23463_s4 + $0x838] sm:$0xff] }
 0x509   :  { %13289 = vmatpush1.bf16.msra.mxu0 %v14853_v31  ;;  %12731 = vmatprep.subr.bf16.mxu1 %v14860_v38  ;;  %v14892_v31 = vcombine.high %v2333_v33, %v2337_v35  ;;  %v14894_v38 = vcombine.high %v2334_v63, %v2338_v60  ;;  %v2369_v33 = vld [vmem:[%s23463_s4 + $0x870] sm:$0xff] }
 0x50a   :  { %13290 = vmatprep.subr.bf16.mxu0 %v14862_v17  ;;  %v2341_v17 = vld [vmem:[%s23463_s4 + $0x790] sm:$0xff] }
 0x50b   :  { %v14899_v19 = vcombine.low %v2341_v17, %v2345_v39 }
 0x50c   :  { %12732 = vmatpush1.bf16.msra.mxu1 %v14859_v51  ;;  %v14893_v51 = vcombine.low %v2334_v63, %v2338_v60  ;;  %v2366_v63 = vld [vmem:[%s23463_s4 + $0x858] sm:$0xff] }
 0x50d   :  { %13291 = vmatpush1.bf16.msra.mxu0 %v14861_v58  ;;  %12733 = vmatprep.subr.bf16.mxu1 %v14868_v28  ;;  %v14900_v58 = vcombine.high %v2341_v17, %v2345_v39  ;;  %v14902_v28 = vcombine.high %v2342_v29, %v2346_v20  ;;  %v2370_v60 = vld [vmem:[%s23463_s4 + $0x878] sm:$0xff] }
 0x50e   :  { %13292 = vmatprep.subr.bf16.mxu0 %v14870_v32  ;;  %v2349_v32 = vld [vmem:[%s23463_s4 + $0x7d0] sm:$0xff]  ;;  %v14926_v17 = vcombine.high %v2366_v63, %v2370_v60  ;;  %v2374_v39 = vld [vmem:[%s23463_s4 + $0x898] sm:$0xff] }
 0x50f   :  { %v14907_v23 = vcombine.low %v2349_v32, %v2353_v0 }
 0x510   :  { %12734 = vmatpush1.bf16.msra.mxu1 %v14867_v62  ;;  %v14901_v62 = vcombine.low %v2342_v29, %v2346_v20  ;;  %v2378_v29 = vld [vmem:[%s23463_s4 + $0x8b8] sm:$0xff] }
 0x511   :  { %13293 = vmatpush1.bf16.msra.mxu0 %v14869_v11  ;;  %12735 = vmatprep.subr.bf16.mxu1 %v14876_v4  ;;  %v14908_v11 = vcombine.high %v2349_v32, %v2353_v0  ;;  %v14910_v4 = vcombine.high %v2350_v61, %v2354_v55  ;;  %v2385_v32 = vld [vmem:[%s23463_s4 + $0x8f0] sm:$0xff]  ;;  %v2386_v0 = vld [vmem:[%s23463_s4 + $0x8f8] sm:$0xff] }
 0x512   :  { %13294 = vmatprep.subr.bf16.mxu0 %v14878_v3  ;;  %v2357_v3 = vld [vmem:[%s23463_s4 + $0x810] sm:$0xff] }
 0x513   :  { %v14915_v35 = vcombine.low %v2357_v3, %v2361_v22 }
 0x514   :  { %12736 = vmatpush1.bf16.msra.mxu1 %v14875_v57  ;;  %v14909_v57 = vcombine.low %v2350_v61, %v2354_v55  ;;  %v14933_v61 = vcombine.low %v2374_v39, %v2378_v29 }
 0x515   :  { %13295 = vmatpush1.bf16.msra.mxu0 %v14877_v52  ;;  %12737 = vmatprep.subr.bf16.mxu1 %v14884_v56  ;;  %v14916_v52 = vcombine.high %v2357_v3, %v2361_v22  ;;  %v14918_v56 = vcombine.high %v2358_v47, %v2362_v6  ;;  %v2394_v3 = vld [vmem:[%s23463_s4 + $0x938] sm:$0xff] }
 0x516   :  { %13296 = vmatprep.subr.bf16.mxu0 %v14886_v40  ;;  %v2365_v40 = vld [vmem:[%s23463_s4 + $0x850] sm:$0xff] }
 0x517   :  { %v14923_v20 = vcombine.low %v2365_v40, %v2369_v33 }
 0x518   :  { %12738 = vmatpush1.bf16.msra.mxu1 %v14883_v59  ;;  %v14917_v59 = vcombine.low %v2358_v47, %v2362_v6 }
 0x519   :  { %13297 = vmatpush1.bf16.msra.mxu0 %v14885_v36  ;;  %12739 = vmatprep.subr.bf16.mxu1 %v14892_v31  ;;  %v14924_v36 = vcombine.high %v2365_v40, %v2369_v33  ;;  %v2373_v31 = vld [vmem:[%s23463_s4 + $0x890] sm:$0xff]  ;;  %v2402_v40 = vld [vmem:[%s23463_s4 + $0x978] sm:$0xff] }
 0x51a   :  { %13298 = vmatprep.subr.bf16.mxu0 %v14894_v38  ;;  %v2377_v38 = vld [vmem:[%s23463_s4 + $0x8b0] sm:$0xff] }
 0x51c   :  { %12740 = vmatpush1.bf16.msra.mxu1 %v14891_v9  ;;  %v14925_v9 = vcombine.low %v2366_v63, %v2370_v60 }
 0x51d   :  { %13299 = vmatpush1.bf16.msra.mxu0 %v14893_v51  ;;  %12741 = vmatprep.subr.bf16.mxu1 %v14900_v58  ;;  %v14932_v51 = vcombine.high %v2373_v31, %v2377_v38  ;;  %v14934_v58 = vcombine.high %v2374_v39, %v2378_v29 }
 0x51e   :  { %13300 = vmatprep.subr.bf16.mxu0 %v14902_v28  ;;  %v2381_v28 = vld [vmem:[%s23463_s4 + $0x8d0] sm:$0xff] }
 0x51f   :  { %v14940_v55 = vcombine.high %v2381_v28, %v2385_v32  ;;  %v14939_v22 = vcombine.low %v2381_v28, %v2385_v32  ;;  %v2418_v28 = vld [vmem:[%s23463_s4 + $0x9f8] sm:$0xff] }
 0x520   :  { %12742 = vmatpush1.bf16.msra.mxu1 %v14899_v19 }
 0x521   :  { %13301 = vmatpush1.bf16.msra.mxu0 %v14901_v62  ;;  %12743 = vmatprep.subr.bf16.mxu1 %v14908_v11  ;;  %v2389_v62 = vld [vmem:[%s23463_s4 + $0x910] sm:$0xff] }
 0x522   :  { %13302 = vmatprep.subr.bf16.mxu0 %v14910_v4  ;;  %v2393_v11 = vld [vmem:[%s23463_s4 + $0x930] sm:$0xff]  ;;  %v2390_v4 = vld [vmem:[%s23463_s4 + $0x918] sm:$0xff] }
 0x523   :  { %v14948_v6 = vcombine.high %v2389_v62, %v2393_v11  ;;  %v14947_v33 = vcombine.low %v2389_v62, %v2393_v11  ;;  %v2426_v62 = vld [vmem:[%s23463_s4 + $0xa38] sm:$0xff] }
 0x524   :  { %12744 = vmatpush1.bf16.msra.mxu1 %v14907_v23  ;;  %v14950_v23 = vcombine.high %v2390_v4, %v2394_v3 }
 0x525   :  { %13303 = vmatpush1.bf16.msra.mxu0 %v14909_v57  ;;  %12756 = vmatprep.subr.bf16.mxu1 %v14916_v52  ;;  %v2397_v57 = vld [vmem:[%s23463_s4 + $0x950] sm:$0xff] }
 0x526   :  { %13315 = vmatprep.subr.bf16.mxu0 %v14918_v56  ;;  %v2401_v52 = vld [vmem:[%s23463_s4 + $0x970] sm:$0xff]  ;;  %v2398_v56 = vld [vmem:[%s23463_s4 + $0x958] sm:$0xff] }
 0x527   :  { %12746 = vmatmul.mubr.bf16.vlgmr.msra.gmra.mrb[28].mxu1 %v23697_v50  ;;  %v14956_v63 = vcombine.high %v2397_v57, %v2401_v52  ;;  %v14958_v60 = vcombine.high %v2398_v56, %v2402_v40  ;;  %v14957_v39 = vcombine.low %v2398_v56, %v2402_v40 }
 0x528   :  { %13305 = vmatmul.mubr.bf16.vlgmr.msra.gmra.mrb[32].mxu0 %v23697_v50  ;;  %12757 = vmatpush1.bf16.msra.mxu1 %v14915_v35  ;;  %v2382_v50 = vld [vmem:[%s23463_s4 + $0x8d8] sm:$0xff]  ;;  %v14949_v35 = vcombine.low %v2390_v4, %v2394_v3 }
 0x529   :  { %12788 = vmatprep.mubr.bf16.mxu1 %v23699_v27  ;;  %13316 = vmatpush1.bf16.msra.mxu0 %v14917_v59  ;;  %v14942_v19 = vcombine.high %v2382_v50, %v2386_v0  ;;  %v14941_v47 = vcombine.low %v2382_v50, %v2386_v0  ;;  %v2405_v59 = vld [vmem:[%s23463_s4 + $0x990] sm:$0xff] }
 0x52a   :  { %13347 = vmatprep.mubr.bf16.mxu0 %v23699_v27  ;;  %12758 = vmatprep.subr.bf16.mxu1 %v14924_v36  ;;  %v14931_v27 = vcombine.low %v2373_v31, %v2377_v38  ;;  %v2409_v36 = vld [vmem:[%s23463_s4 + $0x9b0] sm:$0xff]  ;;  %v2406_v31 = vld [vmem:[%s23463_s4 + $0x998] sm:$0xff] }
 0x52b   :  { %13317 = vmatprep.subr.bf16.mxu0 %v14926_v17  ;;  %v2410_v38 = vld [vmem:[%s23463_s4 + $0x9b8] sm:$0xff]  ;;  %v14955_v17 = vcombine.low %v2397_v57, %v2401_v52  ;;  %v14964_v29 = vcombine.high %v2405_v59, %v2409_v36  ;;  %v14963_v32 = vcombine.low %v2405_v59, %v2409_v36 }
 0x52c   :  { %12759 = vmatpush1.bf16.msra.mxu1 %v14923_v20  ;;  %v14966_v20 = vcombine.high %v2406_v31, %v2410_v38  ;;  %v14965_v50 = vcombine.low %v2406_v31, %v2410_v38  ;;  %v2434_v57 = vld [vmem:[%s23463_s4 + $0xa78] sm:$0xff] }
 0x52d   :  { %13318 = vmatpush1.bf16.msra.mxu0 %v14925_v9  ;;  %12760 = vmatprep.subr.bf16.mxu1 %v14932_v51  ;;  %v2413_v9 = vld [vmem:[%s23463_s4 + $0x9d0] sm:$0xff]  ;;  %v2442_v59 = vld [vmem:[%s23463_s4 + $0xab8] sm:$0xff] }
 0x52e   :  { %13319 = vmatprep.subr.bf16.mxu0 %v14934_v58  ;;  %v2417_v51 = vld [vmem:[%s23463_s4 + $0x9f0] sm:$0xff]  ;;  %v2414_v58 = vld [vmem:[%s23463_s4 + $0x9d8] sm:$0xff] }
 0x52f   :  { %v14972_v0 = vcombine.high %v2413_v9, %v2417_v51  ;;  %v14971_v11 = vcombine.low %v2413_v9, %v2417_v51  ;;  %v14973_v4 = vcombine.low %v2414_v58, %v2418_v28  ;;  %v2450_v9 = vld [vmem:[%s23463_s4 + $0xaf8] sm:$0xff] }
 0x530   :  { %12761 = vmatpush1.bf16.msra.mxu1 %v14931_v27  ;;  %v14974_v27 = vcombine.high %v2414_v58, %v2418_v28 }
 0x531   :  { %13320 = vmatpush1.bf16.msra.mxu0 %v14933_v61  ;;  %12762 = vmatprep.subr.bf16.mxu1 %v14940_v55  ;;  %v2421_v61 = vld [vmem:[%s23463_s4 + $0xa10] sm:$0xff] }
 0x532   :  { %13321 = vmatprep.subr.bf16.mxu0 %v14942_v19  ;;  %v2425_v55 = vld [vmem:[%s23463_s4 + $0xa30] sm:$0xff]  ;;  %v2422_v19 = vld [vmem:[%s23463_s4 + $0xa18] sm:$0xff] }
 0x533   :  { %v14980_v3 = vcombine.high %v2421_v61, %v2425_v55  ;;  %v14979_v52 = vcombine.low %v2421_v61, %v2425_v55  ;;  %v14981_v56 = vcombine.low %v2422_v19, %v2426_v62  ;;  %v2458_v61 = vld [vmem:[%s23463_s4 + $0xb38] sm:$0xff] }
 0x534   :  { %12763 = vmatpush1.bf16.msra.mxu1 %v14939_v22  ;;  %v14982_v22 = vcombine.high %v2422_v19, %v2426_v62 }
 0x535   :  { %13322 = vmatpush1.bf16.msra.mxu0 %v14941_v47  ;;  %12764 = vmatprep.subr.bf16.mxu1 %v14948_v6  ;;  %v2429_v47 = vld [vmem:[%s23463_s4 + $0xa50] sm:$0xff] }
 0x536   :  { %13323 = vmatprep.subr.bf16.mxu0 %v14950_v23  ;;  %v2433_v6 = vld [vmem:[%s23463_s4 + $0xa70] sm:$0xff]  ;;  %v2430_v23 = vld [vmem:[%s23463_s4 + $0xa58] sm:$0xff] }
 0x537   :  { %v14988_v40 = vcombine.high %v2429_v47, %v2433_v6  ;;  %v14987_v36 = vcombine.low %v2429_v47, %v2433_v6  ;;  %v14989_v31 = vcombine.low %v2430_v23, %v2434_v57  ;;  %v2466_v47 = vld [vmem:[%s23463_s4 + $0xb78] sm:$0xff] }
 0x538   :  { %12765 = vmatpush1.bf16.msra.mxu1 %v14947_v33  ;;  %v14990_v33 = vcombine.high %v2430_v23, %v2434_v57 }
 0x539   :  { %13324 = vmatpush1.bf16.msra.mxu0 %v14949_v35  ;;  %12766 = vmatprep.subr.bf16.mxu1 %v14956_v63  ;;  %v2437_v35 = vld [vmem:[%s23463_s4 + $0xa90] sm:$0xff] }
 0x53a   :  { %13325 = vmatprep.subr.bf16.mxu0 %v14958_v60  ;;  %v2441_v63 = vld [vmem:[%s23463_s4 + $0xab0] sm:$0xff]  ;;  %v2438_v60 = vld [vmem:[%s23463_s4 + $0xa98] sm:$0xff] }
 0x53b   :  { %v14996_v38 = vcombine.high %v2437_v35, %v2441_v63  ;;  %v14995_v51 = vcombine.low %v2437_v35, %v2441_v63  ;;  %v14997_v58 = vcombine.low %v2438_v60, %v2442_v59  ;;  %v2474_v35 = vld [vmem:[%s23463_s4 + $0xbb8] sm:$0xff] }
 0x53c   :  { %12767 = vmatpush1.bf16.msra.mxu1 %v14955_v17  ;;  %v14998_v17 = vcombine.high %v2438_v60, %v2442_v59 }
 0x53d   :  { %13326 = vmatpush1.bf16.msra.mxu0 %v14957_v39  ;;  %12768 = vmatprep.subr.bf16.mxu1 %v14964_v29  ;;  %v2445_v39 = vld [vmem:[%s23463_s4 + $0xad0] sm:$0xff] }
 0x53e   :  { %13327 = vmatprep.subr.bf16.mxu0 %v14966_v20  ;;  %v2449_v29 = vld [vmem:[%s23463_s4 + $0xaf0] sm:$0xff]  ;;  %v2446_v20 = vld [vmem:[%s23463_s4 + $0xad8] sm:$0xff] }
 0x53f   :  { %v15004_v28 = vcombine.high %v2445_v39, %v2449_v29  ;;  %v15003_v55 = vcombine.low %v2445_v39, %v2449_v29  ;;  %v15005_v19 = vcombine.low %v2446_v20, %v2450_v9  ;;  %v2482_v39 = vld [vmem:[%s23463_s4 + $0xbf8] sm:$0xff] }
 0x540   :  { %12769 = vmatpush1.bf16.msra.mxu1 %v14963_v32  ;;  %v15006_v32 = vcombine.high %v2446_v20, %v2450_v9 }
 0x541   :  { %13328 = vmatpush1.bf16.msra.mxu0 %v14965_v50  ;;  %12770 = vmatprep.subr.bf16.mxu1 %v14972_v0  ;;  %v2453_v50 = vld [vmem:[%s23463_s4 + $0xb10] sm:$0xff] }
 0x542   :  { %13329 = vmatprep.subr.bf16.mxu0 %v14974_v27  ;;  %v2457_v0 = vld [vmem:[%s23463_s4 + $0xb30] sm:$0xff]  ;;  %v2454_v27 = vld [vmem:[%s23463_s4 + $0xb18] sm:$0xff] }
 0x543   :  { %v15012_v62 = vcombine.high %v2453_v50, %v2457_v0  ;;  %v15011_v6 = vcombine.low %v2453_v50, %v2457_v0  ;;  %v15013_v23 = vcombine.low %v2454_v27, %v2458_v61  ;;  %v2490_v50 = vld [vmem:[%s23463_s4 + $0xc38] sm:$0xff] }
 0x544   :  { %12771 = vmatpush1.bf16.msra.mxu1 %v14971_v11  ;;  %v15014_v11 = vcombine.high %v2454_v27, %v2458_v61 }
 0x545   :  { %13330 = vmatpush1.bf16.msra.mxu0 %v14973_v4  ;;  %12772 = vmatprep.subr.bf16.mxu1 %v14980_v3  ;;  %v2461_v4 = vld [vmem:[%s23463_s4 + $0xb50] sm:$0xff] }
 0x546   :  { %13331 = vmatprep.subr.bf16.mxu0 %v14982_v22  ;;  %v2465_v3 = vld [vmem:[%s23463_s4 + $0xb70] sm:$0xff]  ;;  %v2462_v22 = vld [vmem:[%s23463_s4 + $0xb58] sm:$0xff] }
 0x547   :  { %v15020_v57 = vcombine.high %v2461_v4, %v2465_v3  ;;  %v15019_v63 = vcombine.low %v2461_v4, %v2465_v3  ;;  %v15021_v60 = vcombine.low %v2462_v22, %v2466_v47  ;;  %v2494_v4 = vld [vmem:[%s23463_s4 + $0xc58] sm:$0xff] }
 0x548   :  { %12773 = vmatpush1.bf16.msra.mxu1 %v14979_v52  ;;  %v15022_v52 = vcombine.high %v2462_v22, %v2466_v47  ;;  %v2498_v3 = vld [vmem:[%s23463_s4 + $0xc78] sm:$0xff] }
 0x549   :  { %13332 = vmatpush1.bf16.msra.mxu0 %v14981_v56  ;;  %12774 = vmatprep.subr.bf16.mxu1 %v14988_v40  ;;  %v2469_v56 = vld [vmem:[%s23463_s4 + $0xb90] sm:$0xff] }
 0x54a   :  { %13333 = vmatprep.subr.bf16.mxu0 %v14990_v33  ;;  %v2473_v40 = vld [vmem:[%s23463_s4 + $0xbb0] sm:$0xff]  ;;  %v2470_v33 = vld [vmem:[%s23463_s4 + $0xb98] sm:$0xff] }
 0x54b   :  { %v15028_v59 = vcombine.high %v2469_v56, %v2473_v40  ;;  %v15027_v29 = vcombine.low %v2469_v56, %v2473_v40  ;;  %v15029_v20 = vcombine.low %v2470_v33, %v2474_v35  ;;  %v2506_v56 = vld [vmem:[%s23463_s4 + $0xcb8] sm:$0xff] }
 0x54c   :  { %12775 = vmatpush1.bf16.msra.mxu1 %v14987_v36  ;;  %v15030_v36 = vcombine.high %v2470_v33, %v2474_v35  ;;  %v15053_v33 = vcombine.low %v2494_v4, %v2498_v3 }
 0x54d   :  { %13334 = vmatpush1.bf16.msra.mxu0 %v14989_v31  ;;  %12776 = vmatprep.subr.bf16.mxu1 %v14996_v38  ;;  %v2477_v31 = vld [vmem:[%s23463_s4 + $0xbd0] sm:$0xff] }
 0x54e   :  { %13335 = vmatprep.subr.bf16.mxu0 %v14998_v17  ;;  %v2481_v38 = vld [vmem:[%s23463_s4 + $0xbf0] sm:$0xff]  ;;  %v2478_v17 = vld [vmem:[%s23463_s4 + $0xbd8] sm:$0xff] }
 0x54f   :  { %v15036_v9 = vcombine.high %v2477_v31, %v2481_v38  ;;  %v15035_v0 = vcombine.low %v2477_v31, %v2481_v38  ;;  %v15037_v27 = vcombine.low %v2478_v17, %v2482_v39 }
 0x550   :  { %12777 = vmatpush1.bf16.msra.mxu1 %v14995_v51  ;;  %v15038_v51 = vcombine.high %v2478_v17, %v2482_v39  ;;  %v2517_v39 = vld [vmem:[%s23463_s4 + $0xd10] sm:$0xff] }
 0x551   :  { %13336 = vmatpush1.bf16.msra.mxu0 %v14997_v58  ;;  %12778 = vmatprep.subr.bf16.mxu1 %v15004_v28  ;;  %v2485_v58 = vld [vmem:[%s23463_s4 + $0xc10] sm:$0xff] }
 0x552   :  { %13337 = vmatprep.subr.bf16.mxu0 %v15006_v32  ;;  %v2489_v28 = vld [vmem:[%s23463_s4 + $0xc30] sm:$0xff]  ;;  %v2486_v32 = vld [vmem:[%s23463_s4 + $0xc18] sm:$0xff] }
 0x553   :  { %v15044_v61 = vcombine.high %v2485_v58, %v2489_v28  ;;  %v15045_v22 = vcombine.low %v2486_v32, %v2490_v50 }
 0x554   :  { %12779 = vmatpush1.bf16.msra.mxu1 %v15003_v55  ;;  %v15046_v55 = vcombine.high %v2486_v32, %v2490_v50  ;;  %v2525_v50 = vld [vmem:[%s23463_s4 + $0xd50] sm:$0xff] }
 0x555   :  { %13338 = vmatpush1.bf16.msra.mxu0 %v15005_v19  ;;  %12780 = vmatprep.subr.bf16.mxu1 %v15012_v62  ;;  %v2493_v19 = vld [vmem:[%s23463_s4 + $0xc50] sm:$0xff] }
 0x556   :  { %13339 = vmatprep.subr.bf16.mxu0 %v15014_v11  ;;  %v2497_v62 = vld [vmem:[%s23463_s4 + $0xc70] sm:$0xff]  ;;  %v15043_v11 = vcombine.low %v2485_v58, %v2489_v28 }
 0x557   :  { %v15052_v47 = vcombine.high %v2493_v19, %v2497_v62  ;;  %v15051_v40 = vcombine.low %v2493_v19, %v2497_v62  ;;  %v3667_v19 = vld [vmem:[%s23466_s5] sm:$0xff] }
 0x558   :  { %12781 = vmatpush1.bf16.msra.mxu1 %v15011_v6  ;;  %v2501_v6 = vld [vmem:[%s23463_s4 + $0xc90] sm:$0xff] }
 0x559   :  { %13340 = vmatpush1.bf16.msra.mxu0 %v15013_v23  ;;  %12782 = vmatprep.subr.bf16.mxu1 %v15020_v57  ;;  %v2505_v23 = vld [vmem:[%s23463_s4 + $0xcb0] sm:$0xff]  ;;  %v15054_v57 = vcombine.high %v2494_v4, %v2498_v3 }
 0x55a   :  { %13341 = vmatprep.subr.bf16.mxu0 %v15022_v52  ;;  %v2502_v52 = vld [vmem:[%s23463_s4 + $0xc98] sm:$0xff]  ;;  %v15060_v35 = vcombine.high %v2501_v6, %v2505_v23  ;;  %v2533_v3 = vld [vmem:[%s23463_s4 + $0xd90] sm:$0xff] }
 0x55b   :  { %v15061_v31 = vcombine.low %v2502_v52, %v2506_v56 }
 0x55c   :  { %12783 = vmatpush1.bf16.msra.mxu1 %v15019_v63  ;;  %v15062_v63 = vcombine.high %v2502_v52, %v2506_v56  ;;  %v3676_v56 = vrot.slane %v3667_v19, %v17553_v37  ;;  %v21458_v37 = vld [vmem:[%s23463_s4 + $0xdd8] sm:$0xff] }
 0x55d   :  { %13342 = vmatpush1.bf16.msra.mxu0 %v15021_v60  ;;  %12784 = vmatprep.subr.bf16.mxu1 %v15028_v59  ;;  %v2509_v60 = vld [vmem:[%s23463_s4 + $0xcd0] sm:$0xff] }
 0x55e   :  { %13343 = vmatprep.subr.bf16.mxu0 %v15030_v36  ;;  %v2513_v59 = vld [vmem:[%s23463_s4 + $0xcf0] sm:$0xff]  ;;  %v2514_v36 = vld [vmem:[%s23463_s4 + $0xcf8] sm:$0xff] }
 0x55f   :  { %v15068_v38 = vcombine.high %v2509_v60, %v2513_v59 }
 0x560   :  { %12785 = vmatpush1.bf16.msra.mxu1 %v15027_v29  ;;  %v2521_v29 = vld [vmem:[%s23463_s4 + $0xd30] sm:$0xff] }
 0x561   :  { %13344 = vmatpush1.bf16.msra.mxu0 %v15029_v20  ;;  %12786 = vmatprep.subr.bf16.mxu1 %v15036_v9  ;;  %v2518_v20 = vld [vmem:[%s23463_s4 + $0xd18] sm:$0xff]  ;;  %v15076_v28 = vcombine.high %v2517_v39, %v2521_v29 }
 0x562   :  { %13345 = vmatprep.subr.bf16.mxu0 %v15038_v51  ;;  %v2522_v9 = vld [vmem:[%s23463_s4 + $0xd38] sm:$0xff]  ;;  %v15067_v51 = vcombine.low %v2509_v60, %v2513_v59 }
 0x563   :  { %v15078_v32 = vcombine.high %v2518_v20, %v2522_v9  ;;  %v15077_v62 = vcombine.low %v2518_v20, %v2522_v9  ;;  %v21463_v60 = vld [vmem:[%s23463_s4 + $0xdf8] sm:$0xff] }
 0x564   :  { %12787 = vmatpush1.bf16.msra.mxu1 %v15035_v0  ;;  %v2529_v0 = vld [vmem:[%s23463_s4 + $0xd70] sm:$0xff] }
 0x565   :  { %13346 = vmatpush1.bf16.msra.mxu0 %v15037_v27  ;;  %12799 = vmatprep.subr.bf16.mxu1 %v15044_v61  ;;  %v2526_v27 = vld [vmem:[%s23463_s4 + $0xd58] sm:$0xff]  ;;  %v15083_v52 = vcombine.low %v2525_v50, %v2529_v0 }
 0x566   :  { %13358 = vmatprep.subr.bf16.mxu0 %v15046_v55  ;;  %v2530_v61 = vld [vmem:[%s23463_s4 + $0xd78] sm:$0xff]  ;;  %v15075_v55 = vcombine.low %v2517_v39, %v2521_v29 }
 0x567   :  { %12789 = vmatmul.mubr.bf16.vlgmr.msra.gmra.mrb[28].mxu1 %v23711_v7  ;;  %v15086_v4 = vcombine.high %v2526_v27, %v2530_v61 }
 0x568   :  { %13348 = vmatmul.mubr.bf16.vlgmr.msra.gmra.mrb[32].mxu0 %v23711_v7  ;;  %12800 = vmatpush1.bf16.msra.mxu1 %v15043_v11  ;;  %v2510_v7 = vld [vmem:[%s23463_s4 + $0xcd8] sm:$0xff]  ;;  %v15084_v11 = vcombine.high %v2525_v50, %v2529_v0 }
 0x569   :  { %12831 = vmatprep.mubr.bf16.mxu1 %v23712_v53  ;;  %13359 = vmatpush1.bf16.msra.mxu0 %v15045_v22  ;;  %v15070_v17 = vcombine.high %v2510_v7, %v2514_v36  ;;  %v15069_v58 = vcombine.low %v2510_v7, %v2514_v36  ;;  %v2537_v22 = vld [vmem:[%s23463_s4 + $0xdb0] sm:$0xff] }
 0x56a   :  { %13390 = vmatprep.mubr.bf16.mxu0 %v23712_v53  ;;  %12801 = vmatprep.subr.bf16.mxu1 %v15052_v47  ;;  %v15059_v53 = vcombine.low %v2501_v6, %v2505_v23  ;;  %v3672_v47 = vrot.slane %v3667_v19, %v17544_v46  ;;  %v2534_v6 = vld [vmem:[%s23463_s4 + $0xd98] sm:$0xff]  ;;  %v21448_v46 = vld [vmem:[%s23463_s4 + $0xdd0] sm:$0xff] }
 0x56b   :  { %13360 = vmatprep.subr.bf16.mxu0 %v15054_v57  ;;  %v2538_v23 = vld [vmem:[%s23463_s4 + $0xdb8] sm:$0xff]  ;;  %v3680_v57 = vrot.slane %v3667_v19, %v17546_v8 }
 0x56c   :  { %12802 = vmatpush1.bf16.msra.mxu1 %v15051_v40  ;;  %v15085_v40 = vcombine.low %v2526_v27, %v2530_v61  ;;  %v15094_v8 = vcombine.high %v2534_v6, %v2538_v23  ;;  %v15093_v9 = vcombine.low %v2534_v6, %v2538_v23  ;;  %v15101_v61 = vcombine.low %v21458_v37, %v21463_v60 }
 0x56d   :  { %13361 = vmatpush1.bf16.msra.mxu0 %v15053_v33  ;;  %12803 = vmatprep.subr.bf16.mxu1 %v15060_v35  ;;  %v15092_v33 = vcombine.high %v2533_v3, %v2537_v22  ;;  %v21453_v35 = vld [vmem:[%s23463_s4 + $0xdf0] sm:$0xff] }
 0x56e   :  { %13362 = vmatprep.subr.bf16.mxu0 %v15062_v63 }
 0x570   :  { %12804 = vmatpush1.bf16.msra.mxu1 %v15059_v53  ;;  %v3684_v53 = vrot.slane %v3667_v19, %v17555_v21  ;;  %v15100_v21 = vcombine.high %v21448_v46, %v21453_v35  ;;  %v15102_v19 = vcombine.high %v21458_v37, %v21463_v60  ;;  %v2562_v37 = vld [vmem:[%s23463_s4 + $0xe78] sm:$0xff] }
 0x571   :  { %13363 = vmatpush1.bf16.msra.mxu0 %v15061_v31  ;;  %12805 = vmatprep.subr.bf16.mxu1 %v15068_v38  ;;  %v15091_v31 = vcombine.low %v2533_v3, %v2537_v22  ;;  %v21469_v38 = vld [vmem:[%s23463_s4 + $0xe10] sm:$0xff] }
 0x572   :  { %13364 = vmatprep.subr.bf16.mxu0 %v15070_v17  ;;  %v21474_v17 = vld [vmem:[%s23463_s4 + $0xe30] sm:$0xff] }
 0x574   :  { %12806 = vmatpush1.bf16.msra.mxu1 %v15067_v51  ;;  %v15099_v51 = vcombine.low %v21448_v46, %v21453_v35  ;;  %v2557_v46 = vld [vmem:[%s23463_s4 + $0xe50] sm:$0xff] }
 0x575   :  { %13365 = vmatpush1.bf16.msra.mxu0 %v15069_v58  ;;  %12807 = vmatprep.subr.bf16.mxu1 %v15076_v28  ;;  %v21483_v58 = vld [vmem:[%s23463_s4 + $0xe18] sm:$0xff] }
 0x576   :  { %13366 = vmatprep.subr.bf16.mxu0 %v15078_v32  ;;  %v21488_v28 = vld [vmem:[%s23463_s4 + $0xe38] sm:$0xff] }
 0x577   :  { %v15109_v22 = vcombine.low %v21483_v58, %v21488_v28 }
 0x578   :  { %12808 = vmatpush1.bf16.msra.mxu1 %v15075_v55 }
 0x579   :  { %13367 = vmatpush1.bf16.msra.mxu0 %v15077_v62  ;;  %12809 = vmatprep.subr.bf16.mxu1 %v15084_v11  ;;  %v15107_v62 = vcombine.low %v21469_v38, %v21474_v17  ;;  %v15108_v11 = vcombine.high %v21469_v38, %v21474_v17 }
 0x57a   :  { %v12102_v63 = vpop.f32.mrb[24].mxu1  ;;  %13368 = vmatprep.subr.bf16.mxu0 %v15086_v4 }
 0x57b   :  { %v16396_v59 = vadd.f32 %v12102_v63, %v3672_v47  ;;  %v12661_v7 = vpop.f32.mrb[28].mxu0  ;;  %v12104_v36 = vpop.f32.mrb[25].mxu1 }
 0x57c   :  { %v16400_v39 = vadd.f32 %v12661_v7, %v3680_v57  ;;  %v12663_v29 = vpop.f32.mrb[29].mxu0  ;;  %v12106_v20 = vpop.f32.mrb[26].mxu1  ;;  %12810 = vmatpush1.bf16.msra.mxu1 %v15083_v52  ;;  %v16397_v32 = vadd.f32 %v12104_v36, %v3676_v56 }
 0x57d   :  { %v16398_v50 = vadd.f32 %v12106_v20, %v3672_v47  ;;  %v12665_v0 = vpop.f32.mrb[30].mxu0  ;;  %13369 = vmatpush1.bf16.msra.mxu0 %v15085_v40  ;;  %v12108_v27 = vpop.f32.mrb[27].mxu1  ;;  %12811 = vmatprep.subr.bf16.mxu1 %v15092_v33  ;;  %v13804_v55 = vmul.f32 0.01, %v16396_v59  ;;  %vm13788_vm1 = vcmp.ge.f32.partialorder %v16396_v59, 0.0  ;;  %v16401_v4 = vadd.f32 %v12663_v29, %v3684_v53 }
 0x57e   :  { %13370 = vmatprep.subr.bf16.mxu0 %v15094_v8  ;;  %v12667_v3 = vpop.f32.mrb[31].mxu0  ;;  %v13806_v47 = vmul.f32 0.01, %v16400_v39  ;;  %v16402_v23 = vadd.f32 %v12665_v0, %v3680_v57  ;;  %v16399_v52 = vadd.f32 %v12108_v27, %v3676_v56  ;;  %vm13790_vm3 = vcmp.ge.f32.partialorder %v16400_v39, 0.0  ;;  %v2561_v56 = vld [vmem:[%s23463_s4 + $0xe70] sm:$0xff]  ;;  %v2558_v8 = vld [vmem:[%s23463_s4 + $0xe58] sm:$0xff] }
 0x57f   :  { %vm13796_vm2 = vcmp.ge.f32.partialorder %v16398_v50, 0.0  ;;  %v13812_v6 = vmul.f32 0.01, %v16398_v50  ;;  %vm13789_vm4 = vcmp.ge.f32.partialorder %v16397_v32, 0.0  ;;  %v16403_v40 = vadd.f32 %v12667_v3, %v3684_v53  ;;  %v2574_v3 = vld [vmem:[%s23463_s4 + $0xed8] sm:$0xff] }
 0x580   :  { %12812 = vmatpush1.bf16.msra.mxu1 %v15091_v31  ;;  %v15110_v33 = vcombine.high %v21483_v58, %v21488_v28  ;;  %v21506_v35 = vsel %vm13788_vm1, %v16396_v59, %v13804_v55  ;;  %vm13798_vm5 = vcmp.ge.f32.partialorder %v16402_v23, 0.0  ;;  %v13814_v57 = vmul.f32 0.01, %v16402_v23 }
 0x581   :  { %13371 = vmatpush1.bf16.msra.mxu0 %v15093_v9  ;;  %12813 = vmatprep.subr.bf16.mxu1 %v15100_v21  ;;  %v21509_v63 = vsel %vm13796_vm2, %v16398_v50, %v13812_v6  ;;  %v13805_v60 = vmul.f32 0.01, %v16397_v32  ;;  %v13807_v59 = vmul.f32 0.01, %v16401_v4  ;;  %v13813_v36 = vmul.f32 0.01, %v16399_v52 }
 0x582   :  { %13372 = vmatprep.subr.bf16.mxu0 %v15102_v19  ;;  %v13836_v7 = vpack.c.bf16 %v21509_v63, %v21506_v35  ;;  %v21523_v53 = vsel %vm13790_vm3, %v16400_v39, %v13806_v47  ;;  %v21525_v31 = vsel %vm13798_vm5, %v16402_v23, %v13814_v57  ;;  %vm13797_vm6 = vcmp.ge.f32.partialorder %v16399_v52, 0.0  ;;  %v2565_v39 = vld [vmem:[%s23463_s4 + $0xe90] sm:$0xff]  ;;  %v2570_v21 = vld [vmem:[%s23463_s4 + $0xeb8] sm:$0xff] }
 0x583   :  { %v13815_v38 = vmul.f32 0.01, %v16403_v40  ;;  %vm13791_vm7 = vcmp.ge.f32.partialorder %v16401_v4, 0.0  ;;  %v13838_v17 = vpack.c.bf16 %v21525_v31, %v21523_v53  ;;  %vm13799_vm8 = vcmp.ge.f32.partialorder %v16403_v40, 0.0  ;;  %v2569_v9 = vld [vmem:[%s23463_s4 + $0xeb0] sm:$0xff]  ;;  %v2586_v57 = vld [vmem:[%s23463_s4 + $0xf38] sm:$0xff] }
 0x584   :  { %12814 = vmatpush1.bf16.msra.mxu1 %v15099_v51  ;;  %v15116_v29 = vcombine.high %v2557_v46, %v2561_v56  ;;  %v15118_v20 = vcombine.high %v2558_v8, %v2562_v37  ;;  %v2566_v51 = vld [vmem:[%s23463_s4 + $0xe98] sm:$0xff]  ;;  %v21542_v58 = vsel %vm13789_vm4, %v16397_v32, %v13805_v60  ;;  %v21545_v28 = vsel %vm13797_vm6, %v16399_v52, %v13813_v36  ;;  %v2593_v36 = vld [vmem:[%s23463_s4 + $0xf70] sm:$0xff] }
 0x585   :  { %13373 = vmatpush1.bf16.msra.mxu0 %v15101_v61  ;;  %12815 = vmatprep.subr.bf16.mxu1 %v15108_v11  ;;  %v15115_v50 = vcombine.low %v2557_v46, %v2561_v56  ;;  %v13837_v0 = vpack.c.bf16 %v21545_v28, %v21542_v58  ;;  %v21550_v27 = vsel %vm13791_vm7, %v16401_v4, %v13807_v59  ;;  %v2577_v4 = vld [vmem:[%s23463_s4 + $0xef0] sm:$0xff]  ;;  %v2582_v46 = vld [vmem:[%s23463_s4 + $0xf18] sm:$0xff] }
 0x586   :  { %13374 = vmatprep.subr.bf16.mxu0 %v15110_v33  ;;  %v21553_v61 = vsel %vm13799_vm8, %v16403_v40, %v13815_v38  ;;  %v15117_v55 = vcombine.low %v2558_v8, %v2562_v37  ;;  %v15124_v19 = vcombine.high %v2565_v39, %v2569_v9  ;;  %v15126_v11 = vcombine.high %v2566_v51, %v2570_v21  ;;  %v2581_v40 = vld [vmem:[%s23463_s4 + $0xf10] sm:$0xff]  ;;  %v2590_v38 = vld [vmem:[%s23463_s4 + $0xf58] sm:$0xff] }
 0x587   :  { %v13839_v32 = vpack.c.bf16 %v21553_v61, %v21550_v27  ;;  %v15123_v47 = vcombine.low %v2565_v39, %v2569_v9  ;;  %v15125_v6 = vcombine.low %v2566_v51, %v2570_v21  ;;  %v2585_v33 = vld [vmem:[%s23463_s4 + $0xf30] sm:$0xff]  ;;  %v15142_v60 = vcombine.high %v2582_v46, %v2586_v57  ;;  %v16783_v27 = vld [vmem:[%s23467_s6 + $0xd8] sm:$0xff]  }
 0x588   :  { %12816 = vmatpush1.bf16.msra.mxu1 %v15107_v62  ;;  %v2573_v62 = vld [vmem:[%s23463_s4 + $0xed0] sm:$0xff]  ;;  %v15140_v37 = vcombine.high %v2581_v40, %v2585_v33  ;;  %v15141_v39 = vcombine.low %v2582_v46, %v2586_v57  ;;  %v16784_v61 = vld [vmem:[%s23467_s6 + $0x18] sm:$0xff]  }
 0x589   :  { %13375 = vmatpush1.bf16.msra.mxu0 %v15109_v22  ;;  %12817 = vmatprep.subr.bf16.mxu1 %v15116_v29  ;;  %v2578_v22 = vld [vmem:[%s23463_s4 + $0xef8] sm:$0xff]  ;;  %v15132_v23 = vcombine.high %v2573_v62, %v2577_v4  ;;  %v15131_v56 = vcombine.low %v2573_v62, %v2577_v4  ;;  %v2589_v59 = vld [vmem:[%s23463_s4 + $0xf50] sm:$0xff] }
 0x58a   :  { %13376 = vmatprep.subr.bf16.mxu0 %v15118_v20  ;;  %v15134_v52 = vcombine.high %v2574_v3, %v2578_v22  ;;  %v15133_v8 = vcombine.low %v2574_v3, %v2578_v22  ;;  %v2594_v29 = vld [vmem:[%s23463_s4 + $0xf78] sm:$0xff]  ;;  %v15139_v20 = vcombine.low %v2581_v40, %v2585_v33  ;;  %v15148_v9 = vcombine.high %v2589_v59, %v2593_v36  ;;  %v2597_v21 = vld [vmem:[%s23463_s4 + $0xf90] sm:$0xff] }
 0x58b   :  { %v15150_v51 = vcombine.high %v2590_v38, %v2594_v29  ;;  %v15149_v62 = vcombine.low %v2590_v38, %v2594_v29  ;;  %v2605_v22 = vld [vmem:[%s23463_s4 + $0xfd0] sm:$0xff]  ;;  %v16814_v31 = vld [vmem:[%s23467_s6 + $0x158] sm:$0xff]  }
 0x58c   :  { %12818 = vmatpush1.bf16.msra.mxu1 %v15115_v50  ;;  %v2601_v50 = vld [vmem:[%s23463_s4 + $0xfb0] sm:$0xff] }
 0x58d   :  { %13377 = vmatpush1.bf16.msra.mxu0 %v15117_v55  ;;  %12819 = vmatprep.subr.bf16.mxu1 %v15124_v19  ;;  %v2598_v55 = vld [vmem:[%s23463_s4 + $0xf98] sm:$0xff]  ;;  %v15156_v4 = vcombine.high %v2597_v21, %v2601_v50  ;;  %v2613_v57 = vld [vmem:[%s23463_s4 + $0x1010] sm:$0xff] }
 0x58e   :  { %13378 = vmatprep.subr.bf16.mxu0 %v15126_v11  ;;  %v2602_v19 = vld [vmem:[%s23463_s4 + $0xfb8] sm:$0xff]  ;;  %v15147_v11 = vcombine.low %v2589_v59, %v2593_v36  ;;  %v2621_v29 = vld [vmem:[%s23463_s4 + $0x1050] sm:$0xff] }
 0x58f   :  { %v15158_v3 = vcombine.high %v2598_v55, %v2602_v19  ;;  %v15157_v40 = vcombine.low %v2598_v55, %v2602_v19  ;;  %v2629_v55 = vld [vmem:[%s23463_s4 + $0x1090] sm:$0xff] }
 0x590   :  { %12820 = vmatpush1.bf16.msra.mxu1 %v15123_v47  ;;  %v2609_v47 = vld [vmem:[%s23463_s4 + $0xff0] sm:$0xff] }
 0x591   :  { %13379 = vmatpush1.bf16.msra.mxu0 %v15125_v6  ;;  %12821 = vmatprep.subr.bf16.mxu1 %v15132_v23  ;;  %v2606_v6 = vld [vmem:[%s23463_s4 + $0xfd8] sm:$0xff]  ;;  %v15164_v33 = vcombine.high %v2605_v22, %v2609_v47  ;;  %v2633_v19 = vld [vmem:[%s23463_s4 + $0x10b0] sm:$0xff] }
 0x592   :  { %13380 = vmatprep.subr.bf16.mxu0 %v15134_v52  ;;  %v2610_v23 = vld [vmem:[%s23463_s4 + $0xff8] sm:$0xff]  ;;  %v15155_v52 = vcombine.low %v2597_v21, %v2601_v50  ;;  %v16780_v58 = vld [vmem:[%s23467_s6 + $0x10] sm:$0xff]  }
 0x593   :  { %v15166_v46 = vcombine.high %v2606_v6, %v2610_v23  ;;  %v15165_v59 = vcombine.low %v2606_v6, %v2610_v23  ;;  %v2637_v23 = vld [vmem:[%s23463_s4 + $0x10d0] sm:$0xff] }
 0x594   :  { %12822 = vmatpush1.bf16.msra.mxu1 %v15131_v56  ;;  %v2617_v56 = vld [vmem:[%s23463_s4 + $0x1030] sm:$0xff] }
 0x595   :  { %13381 = vmatpush1.bf16.msra.mxu0 %v15133_v8  ;;  %12823 = vmatprep.subr.bf16.mxu1 %v15140_v37  ;;  %v2614_v8 = vld [vmem:[%s23463_s4 + $0x1018] sm:$0xff]  ;;  %v15172_v36 = vcombine.high %v2613_v57, %v2617_v56  ;;  %v16781_v28 = vld [vmem:[%s23467_s6 + $0x90] sm:$0xff]  }
 0x596   :  { %13382 = vmatprep.subr.bf16.mxu0 %v15142_v60  ;;  %v2618_v37 = vld [vmem:[%s23463_s4 + $0x1038] sm:$0xff]  ;;  %v15163_v60 = vcombine.low %v2605_v22, %v2609_v47  ;;  %v15188_v47 = vcombine.high %v2629_v55, %v2633_v19  ;;  %v16810_v35 = vld [vmem:[%s23467_s6 + $0x150] sm:$0xff]  }
 0x597   :  { %v15174_v38 = vcombine.high %v2614_v8, %v2618_v37  ;;  %v15173_v21 = vcombine.low %v2614_v8, %v2618_v37  ;;  %v2649_v8 = vld [vmem:[%s23463_s4 + $0x1130] sm:$0xff]  ;;  %v2646_v37 = vld [vmem:[%s23463_s4 + $0x1118] sm:$0xff] }
 0x598   :  { %12824 = vmatpush1.bf16.msra.mxu1 %v15139_v20  ;;  %v2625_v20 = vld [vmem:[%s23463_s4 + $0x1070] sm:$0xff] }
 0x599   :  { %13383 = vmatpush1.bf16.msra.mxu0 %v15141_v39  ;;  %12825 = vmatprep.subr.bf16.mxu1 %v15148_v9  ;;  %v15171_v39 = vcombine.low %v2613_v57, %v2617_v56  ;;  %v2622_v9 = vld [vmem:[%s23463_s4 + $0x1058] sm:$0xff]  ;;  %v15180_v50 = vcombine.high %v2621_v29, %v2625_v20  ;;  %v2645_v56 = vld [vmem:[%s23463_s4 + $0x1110] sm:$0xff] }
 0x59a   :  { %13384 = vmatprep.subr.bf16.mxu0 %v15150_v51  ;;  %v2626_v51 = vld [vmem:[%s23463_s4 + $0x1078] sm:$0xff]  ;;  %v16811_v63 = vld [vmem:[%s23467_s6 + $0x1d0] sm:$0xff]  }
 0x59b   :  { %v15181_v22 = vcombine.low %v2622_v9, %v2626_v51  ;;  %v16813_v53 = vld [vmem:[%s23467_s6 + $0x190] sm:$0xff]  }
 0x59c   :  { %12826 = vmatpush1.bf16.msra.mxu1 %v15147_v11  ;;  %v15182_v11 = vcombine.high %v2622_v9, %v2626_v51  ;;  %v2654_v9 = vld [vmem:[%s23463_s4 + $0x1158] sm:$0xff] }
 0x59d   :  { %13385 = vmatpush1.bf16.msra.mxu0 %v15149_v62  ;;  %12827 = vmatprep.subr.bf16.mxu1 %v15156_v4  ;;  %v2630_v62 = vld [vmem:[%s23463_s4 + $0x1098] sm:$0xff] }
 0x59e   :  { %13386 = vmatprep.subr.bf16.mxu0 %v15158_v3  ;;  %v2634_v4 = vld [vmem:[%s23463_s4 + $0x10b8] sm:$0xff]  ;;  %v15179_v3 = vcombine.low %v2621_v29, %v2625_v20  ;;  %v2653_v20 = vld [vmem:[%s23463_s4 + $0x1150] sm:$0xff] }
 0x59f   :  { %v15190_v6 = vcombine.high %v2630_v62, %v2634_v4  ;;  %v2658_v51 = vld [vmem:[%s23463_s4 + $0x1178] sm:$0xff] }
 0x5a0   :  { %12828 = vmatpush1.bf16.msra.mxu1 %v15155_v52  ;;  %v2641_v52 = vld [vmem:[%s23463_s4 + $0x10f0] sm:$0xff] }
 0x5a1   :  { %13387 = vmatpush1.bf16.msra.mxu0 %v15157_v40  ;;  %12829 = vmatprep.subr.bf16.mxu1 %v15164_v33  ;;  %v2642_v40 = vld [vmem:[%s23463_s4 + $0x10f8] sm:$0xff]  ;;  %v15189_v33 = vcombine.low %v2630_v62, %v2634_v4  ;;  %v2665_v62 = vld [vmem:[%s23463_s4 + $0x11b0] sm:$0xff] }
 0x5a2   :  { %13388 = vmatprep.subr.bf16.mxu0 %v15166_v46  ;;  %v15196_v46 = vcombine.high %v2637_v23, %v2641_v52  ;;  %v2662_v4 = vld [vmem:[%s23463_s4 + $0x1198] sm:$0xff] }
 0x5a4   :  { %12830 = vmatpush1.bf16.msra.mxu1 %v15163_v60  ;;  %v2650_v60 = vld [vmem:[%s23463_s4 + $0x1138] sm:$0xff] }
 0x5a5   :  { %13389 = vmatpush1.bf16.msra.mxu0 %v15165_v59  ;;  %12842 = vmatprep.subr.bf16.mxu1 %v15172_v36  ;;  %v15195_v59 = vcombine.low %v2637_v23, %v2641_v52  ;;  %v15206_v29 = vcombine.high %v2646_v37, %v2650_v60  ;;  %v2669_v52 = vld [vmem:[%s23463_s4 + $0x11d0] sm:$0xff] }
 0x5a6   :  { %13401 = vmatprep.subr.bf16.mxu0 %v15174_v38  ;;  %v15204_v38 = vcombine.high %v2645_v56, %v2649_v8 }
 0x5a7   :  { %12832 = vmatmul.mubr.bf16.vlgmr.msra.gmra.mrb[28].mxu1 %v18333_v26 }
 0x5a8   :  { %13391 = vmatmul.mubr.bf16.vlgmr.msra.gmra.mrb[32].mxu0 %v18333_v26  ;;  %12843 = vmatpush1.bf16.msra.mxu1 %v15171_v39  ;;  %v2638_v26 = vld [vmem:[%s23463_s4 + $0x10d8] sm:$0xff]  ;;  %v2657_v39 = vld [vmem:[%s23463_s4 + $0x1170] sm:$0xff] }
 0x5a9   :  { %12874 = vmatprep.mubr.bf16.mxu1 %v18335_v41  ;;  %13402 = vmatpush1.bf16.msra.mxu0 %v15173_v21  ;;  %v15198_v57 = vcombine.high %v2638_v26, %v2642_v40  ;;  %v15197_v36 = vcombine.low %v2638_v26, %v2642_v40  ;;  %v15203_v21 = vcombine.low %v2645_v56, %v2649_v8  ;;  %v2673_v26 = vld [vmem:[%s23463_s4 + $0x11f0] sm:$0xff]  ;;  %v2670_v40 = vld [vmem:[%s23463_s4 + $0x11d8] sm:$0xff] }
 0x5aa   :  { %13433 = vmatprep.mubr.bf16.mxu0 %v18335_v41  ;;  %12844 = vmatprep.subr.bf16.mxu1 %v15180_v50  ;;  %v15187_v41 = vcombine.low %v2629_v55, %v2633_v19  ;;  %v15205_v50 = vcombine.low %v2646_v37, %v2650_v60  ;;  %v15212_v55 = vcombine.high %v2653_v20, %v2657_v39  ;;  %v2677_v8 = vld [vmem:[%s23463_s4 + $0x1210] sm:$0xff]  ;;  %v2678_v60 = vld [vmem:[%s23463_s4 + $0x1218] sm:$0xff] }
 0x5ab   :  { %13403 = vmatprep.subr.bf16.mxu0 %v15182_v11  ;;  %v15214_v19 = vcombine.high %v2654_v9, %v2658_v51  ;;  %v2661_v11 = vld [vmem:[%s23463_s4 + $0x1190] sm:$0xff] }
 0x5ac   :  { %12845 = vmatpush1.bf16.msra.mxu1 %v15179_v3  ;;  %v2666_v3 = vld [vmem:[%s23463_s4 + $0x11b8] sm:$0xff]  ;;  %v2681_v37 = vld [vmem:[%s23463_s4 + $0x1230] sm:$0xff] }
 0x5ad   :  { %13404 = vmatpush1.bf16.msra.mxu0 %v15181_v22  ;;  %12846 = vmatprep.subr.bf16.mxu1 %v15188_v47  ;;  %v15211_v22 = vcombine.low %v2653_v20, %v2657_v39  ;;  %v15213_v47 = vcombine.low %v2654_v9, %v2658_v51  ;;  %v15222_v23 = vcombine.high %v2662_v4, %v2666_v3  ;;  %v2685_v39 = vld [vmem:[%s23463_s4 + $0x1250] sm:$0xff]  ;;  %v2686_v51 = vld [vmem:[%s23463_s4 + $0x1258] sm:$0xff] }
 0x5ae   :  { %13405 = vmatprep.subr.bf16.mxu0 %v15190_v6  ;;  %v15220_v6 = vcombine.high %v2661_v11, %v2665_v62  ;;  %v2689_v9 = vld [vmem:[%s23463_s4 + $0x1270] sm:$0xff] }
 0x5b0   :  { %12847 = vmatpush1.bf16.msra.mxu1 %v15187_v41  ;;  %v2674_v41 = vld [vmem:[%s23463_s4 + $0x11f8] sm:$0xff] }
 0x5b1   :  { %13406 = vmatpush1.bf16.msra.mxu0 %v15189_v33  ;;  %12848 = vmatprep.subr.bf16.mxu1 %v15196_v46  ;;  %v15219_v33 = vcombine.low %v2661_v11, %v2665_v62  ;;  %v15221_v46 = vcombine.low %v2662_v4, %v2666_v3  ;;  %v15230_v56 = vcombine.high %v2670_v40, %v2674_v41  ;;  %v2693_v62 = vld [vmem:[%s23463_s4 + $0x1290] sm:$0xff]  ;;  %v2694_v3 = vld [vmem:[%s23463_s4 + $0x1298] sm:$0xff] }
 0x5b2   :  { %13407 = vmatprep.subr.bf16.mxu0 %v15198_v57  ;;  %v15228_v57 = vcombine.high %v2669_v52, %v2673_v26  ;;  %v2697_v4 = vld [vmem:[%s23463_s4 + $0x12b0] sm:$0xff] }
 0x5b4   :  { %12849 = vmatpush1.bf16.msra.mxu1 %v15195_v59  ;;  %v2682_v59 = vld [vmem:[%s23463_s4 + $0x1238] sm:$0xff] }
 0x5b5   :  { %13408 = vmatpush1.bf16.msra.mxu0 %v15197_v36  ;;  %12850 = vmatprep.subr.bf16.mxu1 %v15204_v38  ;;  %v15227_v36 = vcombine.low %v2669_v52, %v2673_v26  ;;  %v15229_v38 = vcombine.low %v2670_v40, %v2674_v41  ;;  %v15238_v20 = vcombine.high %v2678_v60, %v2682_v59  ;;  %v2701_v26 = vld [vmem:[%s23463_s4 + $0x12d0] sm:$0xff]  ;;  %v2702_v41 = vld [vmem:[%s23463_s4 + $0x12d8] sm:$0xff] }
 0x5b6   :  { %13409 = vmatprep.subr.bf16.mxu0 %v15206_v29  ;;  %v15236_v29 = vcombine.high %v2677_v8, %v2681_v37  ;;  %v2705_v40 = vld [vmem:[%s23463_s4 + $0x12f0] sm:$0xff] }
 0x5b8   :  { %12851 = vmatpush1.bf16.msra.mxu1 %v15203_v21  ;;  %v2690_v21 = vld [vmem:[%s23463_s4 + $0x1278] sm:$0xff] }
 0x5b9   :  { %13410 = vmatpush1.bf16.msra.mxu0 %v15205_v50  ;;  %12852 = vmatprep.subr.bf16.mxu1 %v15212_v55  ;;  %v15235_v50 = vcombine.low %v2677_v8, %v2681_v37  ;;  %v15237_v55 = vcombine.low %v2678_v60, %v2682_v59  ;;  %v15246_v11 = vcombine.high %v2686_v51, %v2690_v21  ;;  %v2709_v37 = vld [vmem:[%s23463_s4 + $0x1310] sm:$0xff]  ;;  %v2710_v59 = vld [vmem:[%s23463_s4 + $0x1318] sm:$0xff] }
 0x5ba   :  { %13411 = vmatprep.subr.bf16.mxu0 %v15214_v19  ;;  %v15244_v19 = vcombine.high %v2685_v39, %v2689_v9  ;;  %v2713_v60 = vld [vmem:[%s23463_s4 + $0x1330] sm:$0xff] }
 0x5bc   :  { %12853 = vmatpush1.bf16.msra.mxu1 %v15211_v22  ;;  %v2698_v22 = vld [vmem:[%s23463_s4 + $0x12b8] sm:$0xff] }
 0x5bd   :  { %13412 = vmatpush1.bf16.msra.mxu0 %v15213_v47  ;;  %12854 = vmatprep.subr.bf16.mxu1 %v15220_v6  ;;  %v15243_v47 = vcombine.low %v2685_v39, %v2689_v9  ;;  %v15245_v6 = vcombine.low %v2686_v51, %v2690_v21  ;;  %v15254_v52 = vcombine.high %v2694_v3, %v2698_v22  ;;  %v2717_v9 = vld [vmem:[%s23463_s4 + $0x1350] sm:$0xff]  ;;  %v2718_v21 = vld [vmem:[%s23463_s4 + $0x1358] sm:$0xff] }
 0x5be   :  { %13413 = vmatprep.subr.bf16.mxu0 %v15222_v23  ;;  %v15252_v23 = vcombine.high %v2693_v62, %v2697_v4  ;;  %v2721_v51 = vld [vmem:[%s23463_s4 + $0x1370] sm:$0xff] }
 0x5c0   :  { %12855 = vmatpush1.bf16.msra.mxu1 %v15219_v33  ;;  %v2706_v33 = vld [vmem:[%s23463_s4 + $0x12f8] sm:$0xff] }
 0x5c1   :  { %13414 = vmatpush1.bf16.msra.mxu0 %v15221_v46  ;;  %12856 = vmatprep.subr.bf16.mxu1 %v15228_v57  ;;  %v15251_v46 = vcombine.low %v2693_v62, %v2697_v4  ;;  %v15253_v57 = vcombine.low %v2694_v3, %v2698_v22  ;;  %v15262_v8 = vcombine.high %v2702_v41, %v2706_v33  ;;  %v2725_v4 = vld [vmem:[%s23463_s4 + $0x1390] sm:$0xff]  ;;  %v2726_v22 = vld [vmem:[%s23463_s4 + $0x1398] sm:$0xff] }
 0x5c2   :  { %13415 = vmatprep.subr.bf16.mxu0 %v15230_v56  ;;  %v15260_v56 = vcombine.high %v2701_v26, %v2705_v40  ;;  %v2729_v3 = vld [vmem:[%s23463_s4 + $0x13b0] sm:$0xff] }
 0x5c4   :  { %12857 = vmatpush1.bf16.msra.mxu1 %v15227_v36  ;;  %v2714_v36 = vld [vmem:[%s23463_s4 + $0x1338] sm:$0xff] }
 0x5c5   :  { %13416 = vmatpush1.bf16.msra.mxu0 %v15229_v38  ;;  %12858 = vmatprep.subr.bf16.mxu1 %v15236_v29  ;;  %v15259_v38 = vcombine.low %v2701_v26, %v2705_v40  ;;  %v15261_v29 = vcombine.low %v2702_v41, %v2706_v33  ;;  %v15270_v39 = vcombine.high %v2710_v59, %v2714_v36  ;;  %v2733_v40 = vld [vmem:[%s23463_s4 + $0x13d0] sm:$0xff]  ;;  %v2734_v33 = vld [vmem:[%s23463_s4 + $0x13d8] sm:$0xff] }
 0x5c6   :  { %13417 = vmatprep.subr.bf16.mxu0 %v15238_v20  ;;  %v15268_v20 = vcombine.high %v2709_v37, %v2713_v60  ;;  %v2737_v41 = vld [vmem:[%s23463_s4 + $0x13f0] sm:$0xff] }
 0x5c8   :  { %12859 = vmatpush1.bf16.msra.mxu1 %v15235_v50  ;;  %v2722_v50 = vld [vmem:[%s23463_s4 + $0x1378] sm:$0xff] }
 0x5c9   :  { %13418 = vmatpush1.bf16.msra.mxu0 %v15237_v55  ;;  %12860 = vmatprep.subr.bf16.mxu1 %v15244_v19  ;;  %v15267_v55 = vcombine.low %v2709_v37, %v2713_v60  ;;  %v15269_v19 = vcombine.low %v2710_v59, %v2714_v36  ;;  %v15278_v62 = vcombine.high %v2718_v21, %v2722_v50  ;;  %v2741_v60 = vld [vmem:[%s23463_s4 + $0x1410] sm:$0xff]  ;;  %v2742_v36 = vld [vmem:[%s23463_s4 + $0x1418] sm:$0xff] }
 0x5ca   :  { %13419 = vmatprep.subr.bf16.mxu0 %v15246_v11  ;;  %v15276_v11 = vcombine.high %v2717_v9, %v2721_v51  ;;  %v2745_v59 = vld [vmem:[%s23463_s4 + $0x1430] sm:$0xff] }
 0x5cc   :  { %12861 = vmatpush1.bf16.msra.mxu1 %v15243_v47  ;;  %v2730_v47 = vld [vmem:[%s23463_s4 + $0x13b8] sm:$0xff] }
 0x5cd   :  { %13420 = vmatpush1.bf16.msra.mxu0 %v15245_v6  ;;  %12862 = vmatprep.subr.bf16.mxu1 %v15252_v23  ;;  %v15275_v6 = vcombine.low %v2717_v9, %v2721_v51  ;;  %v15277_v23 = vcombine.low %v2718_v21, %v2722_v50  ;;  %v15286_v26 = vcombine.high %v2726_v22, %v2730_v47  ;;  %v2749_v51 = vld [vmem:[%s23463_s4 + $0x1450] sm:$0xff] }
 0x5ce   :  { %13421 = vmatprep.subr.bf16.mxu0 %v15254_v52  ;;  %v15284_v52 = vcombine.high %v2725_v4, %v2729_v3  ;;  %v2753_v21 = vld [vmem:[%s23463_s4 + $0x1470] sm:$0xff]  ;;  %v15299_v50 = vcombine.low %v2741_v60, %v2745_v59 }
 0x5d0   :  { %12863 = vmatpush1.bf16.msra.mxu1 %v15251_v46  ;;  %v2738_v46 = vld [vmem:[%s23463_s4 + $0x13f8] sm:$0xff] }
 0x5d1   :  { %13422 = vmatpush1.bf16.msra.mxu0 %v15253_v57  ;;  %12864 = vmatprep.subr.bf16.mxu1 %v15260_v56  ;;  %v15283_v57 = vcombine.low %v2725_v4, %v2729_v3  ;;  %v15285_v56 = vcombine.low %v2726_v22, %v2730_v47  ;;  %v15294_v37 = vcombine.high %v2734_v33, %v2738_v46  ;;  %v2757_v4 = vld [vmem:[%s23463_s4 + $0x1490] sm:$0xff]  ;;  %v2758_v47 = vld [vmem:[%s23463_s4 + $0x1498] sm:$0xff] }
 0x5d2   :  { %13423 = vmatprep.subr.bf16.mxu0 %v15262_v8  ;;  %v15292_v8 = vcombine.high %v2733_v40, %v2737_v41  ;;  %v2761_v3 = vld [vmem:[%s23463_s4 + $0x14b0] sm:$0xff] }
 0x5d4   :  { %12865 = vmatpush1.bf16.msra.mxu1 %v15259_v38  ;;  %v2746_v38 = vld [vmem:[%s23463_s4 + $0x1438] sm:$0xff] }
 0x5d5   :  { %13424 = vmatpush1.bf16.msra.mxu0 %v15261_v29  ;;  %12866 = vmatprep.subr.bf16.mxu1 %v15268_v20  ;;  %v15291_v29 = vcombine.low %v2733_v40, %v2737_v41  ;;  %v15293_v20 = vcombine.low %v2734_v33, %v2738_v46  ;;  %v15302_v9 = vcombine.high %v2742_v36, %v2746_v38  ;;  %v2765_v41 = vld [vmem:[%s23463_s4 + $0x14d0] sm:$0xff]  ;;  %v2770_v46 = vld [vmem:[%s23463_s4 + $0x14f8] sm:$0xff] }
 0x5d6   :  { %13425 = vmatprep.subr.bf16.mxu0 %v15270_v39  ;;  %v15300_v39 = vcombine.high %v2741_v60, %v2745_v59  ;;  %v2769_v33 = vld [vmem:[%s23463_s4 + $0x14f0] sm:$0xff]  ;;  %v2774_v59 = vld [vmem:[%s23463_s4 + $0x1518] sm:$0xff] }
 0x5d7   :  { %v2777_v60 = vld [vmem:[%s23463_s4 + $0x1530] sm:$0xff] }
 0x5d8   :  { %12867 = vmatpush1.bf16.msra.mxu1 %v15267_v55  ;;  %v2750_v55 = vld [vmem:[%s23463_s4 + $0x1458] sm:$0xff] }
 0x5d9   :  { %13426 = vmatpush1.bf16.msra.mxu0 %v15269_v19  ;;  %12868 = vmatprep.subr.bf16.mxu1 %v15276_v11  ;;  %v2754_v19 = vld [vmem:[%s23463_s4 + $0x1478] sm:$0xff]  ;;  %v15301_v11 = vcombine.low %v2742_v36, %v2746_v38  ;;  %v15323_v38 = vcombine.low %v2765_v41, %v2769_v33 }
 0x5da   :  { %13427 = vmatprep.subr.bf16.mxu0 %v15278_v62  ;;  %v15308_v62 = vcombine.high %v2749_v51, %v2753_v21  ;;  %v15310_v22 = vcombine.high %v2750_v55, %v2754_v19  ;;  %v2778_v36 = vld [vmem:[%s23463_s4 + $0x1538] sm:$0xff] }
 0x5dc   :  { %12869 = vmatpush1.bf16.msra.mxu1 %v15275_v6  ;;  %v2762_v6 = vld [vmem:[%s23463_s4 + $0x14b8] sm:$0xff] }
 0x5dd   :  { %13428 = vmatpush1.bf16.msra.mxu0 %v15277_v23  ;;  %12870 = vmatprep.subr.bf16.mxu1 %v15284_v52  ;;  %v15307_v23 = vcombine.low %v2749_v51, %v2753_v21  ;;  %v15309_v52 = vcombine.low %v2750_v55, %v2754_v19  ;;  %v15318_v40 = vcombine.high %v2758_v47, %v2762_v6  ;;  %v2785_v51 = vld [vmem:[%s23463_s4 + $0x1570] sm:$0xff]  ;;  %v2782_v21 = vld [vmem:[%s23463_s4 + $0x1558] sm:$0xff] }
 0x5de   :  { %13429 = vmatprep.subr.bf16.mxu0 %v15286_v26  ;;  %v15316_v26 = vcombine.high %v2757_v4, %v2761_v3  ;;  %v15333_v19 = vcombine.low %v2774_v59, %v2778_v36 }
 0x5e0   :  { %12871 = vmatpush1.bf16.msra.mxu1 %v15283_v57  ;;  %v15317_v57 = vcombine.low %v2758_v47, %v2762_v6  ;;  %v2794_v47 = vld [vmem:[%s23463_s4 + $0x15b8] sm:$0xff] }
 0x5e1   :  { %13430 = vmatpush1.bf16.msra.mxu0 %v15285_v56  ;;  %12872 = vmatprep.subr.bf16.mxu1 %v15292_v8  ;;  %v15324_v56 = vcombine.high %v2765_v41, %v2769_v33  ;;  %v2801_v41 = vld [vmem:[%s23463_s4 + $0x15f0] sm:$0xff]  ;;  %v2798_v33 = vld [vmem:[%s23463_s4 + $0x15d8] sm:$0xff] }
 0x5e2   :  { %13431 = vmatprep.subr.bf16.mxu0 %v15294_v37  ;;  %v2773_v37 = vld [vmem:[%s23463_s4 + $0x1510] sm:$0xff] }
 0x5e3   :  { %v15331_v55 = vcombine.low %v2773_v37, %v2777_v60 }
 0x5e4   :  { %12873 = vmatpush1.bf16.msra.mxu1 %v15291_v29 }
 0x5e5   :  { %13432 = vmatpush1.bf16.msra.mxu0 %v15293_v20  ;;  %12885 = vmatprep.subr.bf16.mxu1 %v15300_v39  ;;  %v15332_v20 = vcombine.high %v2773_v37, %v2777_v60  ;;  %v15334_v39 = vcombine.high %v2774_v59, %v2778_v36  ;;  %v2809_v37 = vld [vmem:[%s23463_s4 + $0x1630] sm:$0xff]  ;;  %v2806_v60 = vld [vmem:[%s23463_s4 + $0x1618] sm:$0xff] }
 0x5e6   :  { %13444 = vmatprep.subr.bf16.mxu0 %v15302_v9  ;;  %v2781_v9 = vld [vmem:[%s23463_s4 + $0x1550] sm:$0xff]  ;;  %v2810_v59 = vld [vmem:[%s23463_s4 + $0x1638] sm:$0xff] }
 0x5e7   :  { %12875 = vmatmul.mubr.bf16.vlgmr.msra.gmra.mrb[28].mxu1 %v18343_v30  ;;  %v15339_v6 = vcombine.low %v2781_v9, %v2785_v51 }
 0x5e8   :  { %13434 = vmatmul.mubr.bf16.vlgmr.msra.gmra.mrb[32].mxu0 %v18343_v30  ;;  %12886 = vmatpush1.bf16.msra.mxu1 %v15299_v50  ;;  %v2766_v30 = vld [vmem:[%s23463_s4 + $0x14d8] sm:$0xff] }
 0x5e9   :  { %12917 = vmatprep.mubr.bf16.mxu1 %v18345_v5  ;;  %13445 = vmatpush1.bf16.msra.mxu0 %v15301_v11  ;;  %v15326_v8 = vcombine.high %v2766_v30, %v2770_v46  ;;  %v15325_v29 = vcombine.low %v2766_v30, %v2770_v46  ;;  %v2786_v50 = vld [vmem:[%s23463_s4 + $0x1578] sm:$0xff]  ;;  %v15340_v11 = vcombine.high %v2781_v9, %v2785_v51  ;;  %v2817_v9 = vld [vmem:[%s23463_s4 + $0x1670] sm:$0xff] }
 0x5ea   :  { %13476 = vmatprep.mubr.bf16.mxu0 %v18345_v5  ;;  %12887 = vmatprep.subr.bf16.mxu1 %v15308_v62  ;;  %v15315_v5 = vcombine.low %v2757_v4, %v2761_v3  ;;  %v15342_v62 = vcombine.high %v2782_v21, %v2786_v50  ;;  %v2789_v4 = vld [vmem:[%s23463_s4 + $0x1590] sm:$0xff]  ;;  %v2802_v30 = vld [vmem:[%s23463_s4 + $0x15f8] sm:$0xff] }
 0x5eb   :  { %13446 = vmatprep.subr.bf16.mxu0 %v15310_v22  ;;  %v2793_v3 = vld [vmem:[%s23463_s4 + $0x15b0] sm:$0xff]  ;;  %v2790_v22 = vld [vmem:[%s23463_s4 + $0x1598] sm:$0xff] }
 0x5ec   :  { %12888 = vmatpush1.bf16.msra.mxu1 %v15307_v23  ;;  %v15341_v23 = vcombine.low %v2782_v21, %v2786_v50  ;;  %v15347_v46 = vcombine.low %v2789_v4, %v2793_v3  ;;  %v2814_v51 = vld [vmem:[%s23463_s4 + $0x1658] sm:$0xff] }
 0x5ed   :  { %13447 = vmatpush1.bf16.msra.mxu0 %v15309_v52  ;;  %12889 = vmatprep.subr.bf16.mxu1 %v15316_v26  ;;  %v15348_v52 = vcombine.high %v2789_v4, %v2793_v3  ;;  %v15350_v26 = vcombine.high %v2790_v22, %v2794_v47  ;;  %v2818_v21 = vld [vmem:[%s23463_s4 + $0x1678] sm:$0xff]  ;;  %v2825_v4 = vld [vmem:[%s23463_s4 + $0x16b0] sm:$0xff] }
 0x5ee   :  { %13448 = vmatprep.subr.bf16.mxu0 %v15318_v40  ;;  %v2797_v40 = vld [vmem:[%s23463_s4 + $0x15d0] sm:$0xff]  ;;  %v2822_v3 = vld [vmem:[%s23463_s4 + $0x1698] sm:$0xff] }
 0x5ef   :  { %v15355_v36 = vcombine.low %v2797_v40, %v2801_v41 }
 0x5f0   :  { %12890 = vmatpush1.bf16.msra.mxu1 %v15315_v5  ;;  %v15349_v5 = vcombine.low %v2790_v22, %v2794_v47  ;;  %v2826_v22 = vld [vmem:[%s23463_s4 + $0x16b8] sm:$0xff] }
 0x5f1   :  { %13449 = vmatpush1.bf16.msra.mxu0 %v15317_v57  ;;  %12891 = vmatprep.subr.bf16.mxu1 %v15324_v56  ;;  %v15356_v57 = vcombine.high %v2797_v40, %v2801_v41  ;;  %v15358_v56 = vcombine.high %v2798_v33, %v2802_v30  ;;  %v2833_v40 = vld [vmem:[%s23463_s4 + $0x16f0] sm:$0xff]  ;;  %v2830_v41 = vld [vmem:[%s23463_s4 + $0x16d8] sm:$0xff] }
 0x5f2   :  { %13450 = vmatprep.subr.bf16.mxu0 %v15326_v8  ;;  %v2805_v8 = vld [vmem:[%s23463_s4 + $0x1610] sm:$0xff] }
 0x5f3   :  { %v15363_v50 = vcombine.low %v2805_v8, %v2809_v37 }
 0x5f4   :  { %12892 = vmatpush1.bf16.msra.mxu1 %v15323_v38  ;;  %v15357_v38 = vcombine.low %v2798_v33, %v2802_v30  ;;  %v2834_v33 = vld [vmem:[%s23463_s4 + $0x16f8] sm:$0xff] }
 0x5f5   :  { %13451 = vmatpush1.bf16.msra.mxu0 %v15325_v29  ;;  %12893 = vmatprep.subr.bf16.mxu1 %v15332_v20  ;;  %v15364_v29 = vcombine.high %v2805_v8, %v2809_v37  ;;  %v15366_v20 = vcombine.high %v2806_v60, %v2810_v59  ;;  %v2841_v8 = vld [vmem:[%s23463_s4 + $0x1730] sm:$0xff]  ;;  %v2838_v37 = vld [vmem:[%s23463_s4 + $0x1718] sm:$0xff] }
 0x5f6   :  { %13452 = vmatprep.subr.bf16.mxu0 %v15334_v39  ;;  %v2813_v39 = vld [vmem:[%s23463_s4 + $0x1650] sm:$0xff] }
 0x5f7   :  { %v15371_v47 = vcombine.low %v2813_v39, %v2817_v9 }
 0x5f8   :  { %12894 = vmatpush1.bf16.msra.mxu1 %v15331_v55  ;;  %v15365_v55 = vcombine.low %v2806_v60, %v2810_v59  ;;  %v2842_v60 = vld [vmem:[%s23463_s4 + $0x1738] sm:$0xff] }
 0x5f9   :  { %13453 = vmatpush1.bf16.msra.mxu0 %v15333_v19  ;;  %12895 = vmatprep.subr.bf16.mxu1 %v15340_v11  ;;  %v15372_v19 = vcombine.high %v2813_v39, %v2817_v9  ;;  %v15374_v11 = vcombine.high %v2814_v51, %v2818_v21  ;;  %v2849_v39 = vld [vmem:[%s23463_s4 + $0x1770] sm:$0xff]  ;;  %v2846_v9 = vld [vmem:[%s23463_s4 + $0x1758] sm:$0xff] }
 0x5fa   :  { %13454 = vmatprep.subr.bf16.mxu0 %v15342_v62  ;;  %v2821_v62 = vld [vmem:[%s23463_s4 + $0x1690] sm:$0xff] }
 0x5fb   :  { %v15379_v30 = vcombine.low %v2821_v62, %v2825_v4 }
 0x5fc   :  { %12896 = vmatpush1.bf16.msra.mxu1 %v15339_v6  ;;  %v15373_v6 = vcombine.low %v2814_v51, %v2818_v21  ;;  %v2850_v51 = vld [vmem:[%s23463_s4 + $0x1778] sm:$0xff] }
 0x5fd   :  { %13455 = vmatpush1.bf16.msra.mxu0 %v15341_v23  ;;  %12897 = vmatprep.subr.bf16.mxu1 %v15348_v52  ;;  %v15380_v23 = vcombine.high %v2821_v62, %v2825_v4  ;;  %v15382_v52 = vcombine.high %v2822_v3, %v2826_v22  ;;  %v2857_v62 = vld [vmem:[%s23463_s4 + $0x17b0] sm:$0xff]  ;;  %v2854_v4 = vld [vmem:[%s23463_s4 + $0x1798] sm:$0xff] }
 0x5fe   :  { %13456 = vmatprep.subr.bf16.mxu0 %v15350_v26  ;;  %v2829_v26 = vld [vmem:[%s23463_s4 + $0x16d0] sm:$0xff] }
 0x5ff   :  { %v15387_v59 = vcombine.low %v2829_v26, %v2833_v40 }
 0x600   :  { %12898 = vmatpush1.bf16.msra.mxu1 %v15347_v46  ;;  %v15381_v46 = vcombine.low %v2822_v3, %v2826_v22  ;;  %v2858_v3 = vld [vmem:[%s23463_s4 + $0x17b8] sm:$0xff] }
 0x601   :  { %13457 = vmatpush1.bf16.msra.mxu0 %v15349_v5  ;;  %12899 = vmatprep.subr.bf16.mxu1 %v15356_v57  ;;  %v15388_v5 = vcombine.high %v2829_v26, %v2833_v40  ;;  %v15390_v57 = vcombine.high %v2830_v41, %v2834_v33  ;;  %v2865_v26 = vld [vmem:[%s23463_s4 + $0x17f0] sm:$0xff]  ;;  %v2862_v40 = vld [vmem:[%s23463_s4 + $0x17d8] sm:$0xff] }
 0x602   :  { %13458 = vmatprep.subr.bf16.mxu0 %v15358_v56  ;;  %v2837_v56 = vld [vmem:[%s23463_s4 + $0x1710] sm:$0xff] }
 0x603   :  { %v15395_v21 = vcombine.low %v2837_v56, %v2841_v8 }
 0x604   :  { %12900 = vmatpush1.bf16.msra.mxu1 %v15355_v36  ;;  %v15389_v36 = vcombine.low %v2830_v41, %v2834_v33  ;;  %v2866_v41 = vld [vmem:[%s23463_s4 + $0x17f8] sm:$0xff] }
 0x605   :  { %13459 = vmatpush1.bf16.msra.mxu0 %v15357_v38  ;;  %12901 = vmatprep.subr.bf16.mxu1 %v15364_v29  ;;  %v15396_v38 = vcombine.high %v2837_v56, %v2841_v8  ;;  %v15398_v29 = vcombine.high %v2838_v37, %v2842_v60  ;;  %v2873_v56 = vld [vmem:[%s23463_s4 + $0x1830] sm:$0xff]  ;;  %v2870_v8 = vld [vmem:[%s23463_s4 + $0x1818] sm:$0xff] }
 0x606   :  { %13460 = vmatprep.subr.bf16.mxu0 %v15366_v20  ;;  %v2845_v20 = vld [vmem:[%s23463_s4 + $0x1750] sm:$0xff] }
 0x607   :  { %v15403_v22 = vcombine.low %v2845_v20, %v2849_v39 }
 0x608   :  { %12902 = vmatpush1.bf16.msra.mxu1 %v15363_v50  ;;  %v15397_v50 = vcombine.low %v2838_v37, %v2842_v60  ;;  %v2874_v37 = vld [vmem:[%s23463_s4 + $0x1838] sm:$0xff] }
 0x609   :  { %13461 = vmatpush1.bf16.msra.mxu0 %v15365_v55  ;;  %12903 = vmatprep.subr.bf16.mxu1 %v15372_v19  ;;  %v15404_v55 = vcombine.high %v2845_v20, %v2849_v39  ;;  %v15406_v19 = vcombine.high %v2846_v9, %v2850_v51  ;;  %v2881_v20 = vld [vmem:[%s23463_s4 + $0x1870] sm:$0xff] }
 0x60a   :  { %13462 = vmatprep.subr.bf16.mxu0 %v15374_v11  ;;  %v2853_v11 = vld [vmem:[%s23463_s4 + $0x1790] sm:$0xff] }
 0x60b   :  { %v15411_v33 = vcombine.low %v2853_v11, %v2857_v62 }
 0x60c   :  { %12904 = vmatpush1.bf16.msra.mxu1 %v15371_v47  ;;  %v15405_v47 = vcombine.low %v2846_v9, %v2850_v51  ;;  %v2878_v9 = vld [vmem:[%s23463_s4 + $0x1858] sm:$0xff] }
 0x60d   :  { %13463 = vmatpush1.bf16.msra.mxu0 %v15373_v6  ;;  %12905 = vmatprep.subr.bf16.mxu1 %v15380_v23  ;;  %v15412_v6 = vcombine.high %v2853_v11, %v2857_v62  ;;  %v15414_v23 = vcombine.high %v2854_v4, %v2858_v3  ;;  %v2882_v51 = vld [vmem:[%s23463_s4 + $0x1878] sm:$0xff] }
 0x60e   :  { %13464 = vmatprep.subr.bf16.mxu0 %v15382_v52  ;;  %v2861_v52 = vld [vmem:[%s23463_s4 + $0x17d0] sm:$0xff]  ;;  %v15438_v11 = vcombine.high %v2878_v9, %v2882_v51  ;;  %v2886_v62 = vld [vmem:[%s23463_s4 + $0x1898] sm:$0xff] }
 0x60f   :  { %v15419_v60 = vcombine.low %v2861_v52, %v2865_v26 }
 0x610   :  { %12906 = vmatpush1.bf16.msra.mxu1 %v15379_v30  ;;  %v15413_v30 = vcombine.low %v2854_v4, %v2858_v3  ;;  %v2890_v4 = vld [vmem:[%s23463_s4 + $0x18b8] sm:$0xff] }
 0x611   :  { %13465 = vmatpush1.bf16.msra.mxu0 %v15381_v46  ;;  %12907 = vmatprep.subr.bf16.mxu1 %v15388_v5  ;;  %v15420_v46 = vcombine.high %v2861_v52, %v2865_v26  ;;  %v15422_v5 = vcombine.high %v2862_v40, %v2866_v41  ;;  %v2897_v52 = vld [vmem:[%s23463_s4 + $0x18f0] sm:$0xff]  ;;  %v2898_v26 = vld [vmem:[%s23463_s4 + $0x18f8] sm:$0xff] }
 0x612   :  { %13466 = vmatprep.subr.bf16.mxu0 %v15390_v57  ;;  %v2869_v57 = vld [vmem:[%s23463_s4 + $0x1810] sm:$0xff] }
 0x613   :  { %v15427_v39 = vcombine.low %v2869_v57, %v2873_v56 }
 0x614   :  { %12908 = vmatpush1.bf16.msra.mxu1 %v15387_v59  ;;  %v15421_v59 = vcombine.low %v2862_v40, %v2866_v41  ;;  %v15445_v40 = vcombine.low %v2886_v62, %v2890_v4 }
 0x615   :  { %13467 = vmatpush1.bf16.msra.mxu0 %v15389_v36  ;;  %12909 = vmatprep.subr.bf16.mxu1 %v15396_v38  ;;  %v15428_v36 = vcombine.high %v2869_v57, %v2873_v56  ;;  %v15430_v38 = vcombine.high %v2870_v8, %v2874_v37  ;;  %v2906_v57 = vld [vmem:[%s23463_s4 + $0x1938] sm:$0xff] }
 0x616   :  { %13468 = vmatprep.subr.bf16.mxu0 %v15398_v29  ;;  %v2877_v29 = vld [vmem:[%s23463_s4 + $0x1850] sm:$0xff] }
 0x617   :  { %v15435_v3 = vcombine.low %v2877_v29, %v2881_v20 }
 0x618   :  { %12910 = vmatpush1.bf16.msra.mxu1 %v15395_v21  ;;  %v15429_v21 = vcombine.low %v2870_v8, %v2874_v37 }
 0x619   :  { %13469 = vmatpush1.bf16.msra.mxu0 %v15397_v50  ;;  %12911 = vmatprep.subr.bf16.mxu1 %v15404_v55  ;;  %v15436_v50 = vcombine.high %v2877_v29, %v2881_v20  ;;  %v2885_v55 = vld [vmem:[%s23463_s4 + $0x1890] sm:$0xff]  ;;  %v2914_v29 = vld [vmem:[%s23463_s4 + $0x1978] sm:$0xff] }
 0x61a   :  { %13470 = vmatprep.subr.bf16.mxu0 %v15406_v19  ;;  %v2889_v19 = vld [vmem:[%s23463_s4 + $0x18b0] sm:$0xff] }
 0x61c   :  { %12912 = vmatpush1.bf16.msra.mxu1 %v15403_v22  ;;  %v15437_v22 = vcombine.low %v2878_v9, %v2882_v51 }
 0x61d   :  { %13471 = vmatpush1.bf16.msra.mxu0 %v15405_v47  ;;  %12913 = vmatprep.subr.bf16.mxu1 %v15412_v6  ;;  %v15444_v47 = vcombine.high %v2885_v55, %v2889_v19  ;;  %v15446_v6 = vcombine.high %v2886_v62, %v2890_v4 }
 0x61e   :  { %13472 = vmatprep.subr.bf16.mxu0 %v15414_v23  ;;  %v2893_v23 = vld [vmem:[%s23463_s4 + $0x18d0] sm:$0xff] }
 0x61f   :  { %v15452_v41 = vcombine.high %v2893_v23, %v2897_v52  ;;  %v15451_v56 = vcombine.low %v2893_v23, %v2897_v52  ;;  %v2930_v23 = vld [vmem:[%s23463_s4 + $0x19f8] sm:$0xff] }
 0x620   :  { %12914 = vmatpush1.bf16.msra.mxu1 %v15411_v33 }
 0x621   :  { %13473 = vmatpush1.bf16.msra.mxu0 %v15413_v30  ;;  %12915 = vmatprep.subr.bf16.mxu1 %v15420_v46  ;;  %v2901_v30 = vld [vmem:[%s23463_s4 + $0x1910] sm:$0xff] }
 0x622   :  { %13474 = vmatprep.subr.bf16.mxu0 %v15422_v5  ;;  %v2905_v46 = vld [vmem:[%s23463_s4 + $0x1930] sm:$0xff]  ;;  %v2902_v5 = vld [vmem:[%s23463_s4 + $0x1918] sm:$0xff] }
 0x623   :  { %v15460_v37 = vcombine.high %v2901_v30, %v2905_v46  ;;  %v15459_v20 = vcombine.low %v2901_v30, %v2905_v46  ;;  %v2938_v30 = vld [vmem:[%s23463_s4 + $0x1a38] sm:$0xff] }
 0x624   :  { %12916 = vmatpush1.bf16.msra.mxu1 %v15419_v60  ;;  %v15462_v60 = vcombine.high %v2902_v5, %v2906_v57 }
 0x625   :  { %13475 = vmatpush1.bf16.msra.mxu0 %v15421_v59  ;;  %12928 = vmatprep.subr.bf16.mxu1 %v15428_v36  ;;  %v2909_v59 = vld [vmem:[%s23463_s4 + $0x1950] sm:$0xff] }
 0x626   :  { %13487 = vmatprep.subr.bf16.mxu0 %v15430_v38  ;;  %v2913_v36 = vld [vmem:[%s23463_s4 + $0x1970] sm:$0xff]  ;;  %v2910_v38 = vld [vmem:[%s23463_s4 + $0x1958] sm:$0xff] }
 0x627   :  { %12918 = vmatmul.mubr.bf16.vlgmr.msra.gmra.mrb[28].mxu1 %v18347_v25  ;;  %v15468_v9 = vcombine.high %v2909_v59, %v2913_v36  ;;  %v15470_v51 = vcombine.high %v2910_v38, %v2914_v29  ;;  %v15469_v62 = vcombine.low %v2910_v38, %v2914_v29 }
 0x628   :  { %13477 = vmatmul.mubr.bf16.vlgmr.msra.gmra.mrb[32].mxu0 %v18347_v25  ;;  %12929 = vmatpush1.bf16.msra.mxu1 %v15427_v39  ;;  %v2894_v25 = vld [vmem:[%s23463_s4 + $0x18d8] sm:$0xff]  ;;  %v15461_v39 = vcombine.low %v2902_v5, %v2906_v57 }
 0x629   :  { %12960 = vmatprep.mubr.bf16.mxu1 %v18509_v44  ;;  %13488 = vmatpush1.bf16.msra.mxu0 %v15429_v21  ;;  %v15454_v33 = vcombine.high %v2894_v25, %v2898_v26  ;;  %v15453_v8 = vcombine.low %v2894_v25, %v2898_v26  ;;  %v2917_v21 = vld [vmem:[%s23463_s4 + $0x1990] sm:$0xff] }
 0x62a   :  { %13519 = vmatprep.mubr.bf16.mxu0 %v18509_v44  ;;  %12930 = vmatprep.subr.bf16.mxu1 %v15436_v50  ;;  %v15443_v44 = vcombine.low %v2885_v55, %v2889_v19  ;;  %v2921_v50 = vld [vmem:[%s23463_s4 + $0x19b0] sm:$0xff]  ;;  %v2918_v55 = vld [vmem:[%s23463_s4 + $0x1998] sm:$0xff] }
 0x62b   :  { %13489 = vmatprep.subr.bf16.mxu0 %v15438_v11  ;;  %v2922_v19 = vld [vmem:[%s23463_s4 + $0x19b8] sm:$0xff]  ;;  %v15467_v11 = vcombine.low %v2909_v59, %v2913_v36  ;;  %v15476_v4 = vcombine.high %v2917_v21, %v2921_v50  ;;  %v15475_v52 = vcombine.low %v2917_v21, %v2921_v50 }
 0x62c   :  { %12931 = vmatpush1.bf16.msra.mxu1 %v15435_v3  ;;  %v15478_v3 = vcombine.high %v2918_v55, %v2922_v19  ;;  %v15477_v25 = vcombine.low %v2918_v55, %v2922_v19  ;;  %v2946_v59 = vld [vmem:[%s23463_s4 + $0x1a78] sm:$0xff] }
 0x62d   :  { %13490 = vmatpush1.bf16.msra.mxu0 %v15437_v22  ;;  %12932 = vmatprep.subr.bf16.mxu1 %v15444_v47  ;;  %v2925_v22 = vld [vmem:[%s23463_s4 + $0x19d0] sm:$0xff]  ;;  %v2954_v21 = vld [vmem:[%s23463_s4 + $0x1ab8] sm:$0xff] }
 0x62e   :  { %13491 = vmatprep.subr.bf16.mxu0 %v15446_v6  ;;  %v2929_v47 = vld [vmem:[%s23463_s4 + $0x19f0] sm:$0xff]  ;;  %v2926_v6 = vld [vmem:[%s23463_s4 + $0x19d8] sm:$0xff] }
 0x62f   :  { %v15484_v26 = vcombine.high %v2925_v22, %v2929_v47  ;;  %v15483_v46 = vcombine.low %v2925_v22, %v2929_v47  ;;  %v15485_v5 = vcombine.low %v2926_v6, %v2930_v23  ;;  %v2962_v22 = vld [vmem:[%s23463_s4 + $0x1af8] sm:$0xff] }
 0x630   :  { %12933 = vmatpush1.bf16.msra.mxu1 %v15443_v44  ;;  %v15486_v44 = vcombine.high %v2926_v6, %v2930_v23 }
 0x631   :  { %13492 = vmatpush1.bf16.msra.mxu0 %v15445_v40  ;;  %12934 = vmatprep.subr.bf16.mxu1 %v15452_v41  ;;  %v2933_v40 = vld [vmem:[%s23463_s4 + $0x1a10] sm:$0xff] }
 0x632   :  { %13493 = vmatprep.subr.bf16.mxu0 %v15454_v33  ;;  %v2937_v41 = vld [vmem:[%s23463_s4 + $0x1a30] sm:$0xff]  ;;  %v2934_v33 = vld [vmem:[%s23463_s4 + $0x1a18] sm:$0xff] }
 0x633   :  { %v15492_v57 = vcombine.high %v2933_v40, %v2937_v41  ;;  %v15491_v36 = vcombine.low %v2933_v40, %v2937_v41  ;;  %v15493_v38 = vcombine.low %v2934_v33, %v2938_v30  ;;  %v2970_v40 = vld [vmem:[%s23463_s4 + $0x1b38] sm:$0xff] }
 0x634   :  { %12935 = vmatpush1.bf16.msra.mxu1 %v15451_v56  ;;  %v15494_v56 = vcombine.high %v2934_v33, %v2938_v30 }
 0x635   :  { %13494 = vmatpush1.bf16.msra.mxu0 %v15453_v8  ;;  %12936 = vmatprep.subr.bf16.mxu1 %v15460_v37  ;;  %v2941_v8 = vld [vmem:[%s23463_s4 + $0x1a50] sm:$0xff] }
 0x636   :  { %13495 = vmatprep.subr.bf16.mxu0 %v15462_v60  ;;  %v2945_v37 = vld [vmem:[%s23463_s4 + $0x1a70] sm:$0xff]  ;;  %v2942_v60 = vld [vmem:[%s23463_s4 + $0x1a58] sm:$0xff] }
 0x637   :  { %v15500_v29 = vcombine.high %v2941_v8, %v2945_v37  ;;  %v15499_v50 = vcombine.low %v2941_v8, %v2945_v37  ;;  %v15501_v55 = vcombine.low %v2942_v60, %v2946_v59  ;;  %v2978_v8 = vld [vmem:[%s23463_s4 + $0x1b78] sm:$0xff] }
 0x638   :  { %12937 = vmatpush1.bf16.msra.mxu1 %v15459_v20  ;;  %v15502_v20 = vcombine.high %v2942_v60, %v2946_v59 }
 0x639   :  { %13496 = vmatpush1.bf16.msra.mxu0 %v15461_v39  ;;  %12938 = vmatprep.subr.bf16.mxu1 %v15468_v9  ;;  %v2949_v39 = vld [vmem:[%s23463_s4 + $0x1a90] sm:$0xff] }
 0x63a   :  { %13497 = vmatprep.subr.bf16.mxu0 %v15470_v51  ;;  %v2953_v9 = vld [vmem:[%s23463_s4 + $0x1ab0] sm:$0xff]  ;;  %v2950_v51 = vld [vmem:[%s23463_s4 + $0x1a98] sm:$0xff] }
 0x63b   :  { %v15508_v19 = vcombine.high %v2949_v39, %v2953_v9  ;;  %v15507_v47 = vcombine.low %v2949_v39, %v2953_v9  ;;  %v15509_v6 = vcombine.low %v2950_v51, %v2954_v21  ;;  %v2986_v39 = vld [vmem:[%s23463_s4 + $0x1bb8] sm:$0xff] }
 0x63c   :  { %12939 = vmatpush1.bf16.msra.mxu1 %v15467_v11  ;;  %v15510_v11 = vcombine.high %v2950_v51, %v2954_v21 }
 0x63d   :  { %13498 = vmatpush1.bf16.msra.mxu0 %v15469_v62  ;;  %12940 = vmatprep.subr.bf16.mxu1 %v15476_v4  ;;  %v2957_v62 = vld [vmem:[%s23463_s4 + $0x1ad0] sm:$0xff] }
 0x63e   :  { %13499 = vmatprep.subr.bf16.mxu0 %v15478_v3  ;;  %v2961_v4 = vld [vmem:[%s23463_s4 + $0x1af0] sm:$0xff]  ;;  %v2958_v3 = vld [vmem:[%s23463_s4 + $0x1ad8] sm:$0xff] }
 0x63f   :  { %v15516_v23 = vcombine.high %v2957_v62, %v2961_v4  ;;  %v15515_v41 = vcombine.low %v2957_v62, %v2961_v4  ;;  %v15517_v33 = vcombine.low %v2958_v3, %v2962_v22  ;;  %v2994_v62 = vld [vmem:[%s23463_s4 + $0x1bf8] sm:$0xff] }
 0x640   :  { %12941 = vmatpush1.bf16.msra.mxu1 %v15475_v52  ;;  %v15518_v52 = vcombine.high %v2958_v3, %v2962_v22 }
 0x641   :  { %13500 = vmatpush1.bf16.msra.mxu0 %v15477_v25  ;;  %12942 = vmatprep.subr.bf16.mxu1 %v15484_v26  ;;  %v2965_v25 = vld [vmem:[%s23463_s4 + $0x1b10] sm:$0xff] }
 0x642   :  { %13501 = vmatprep.subr.bf16.mxu0 %v15486_v44  ;;  %v2969_v26 = vld [vmem:[%s23463_s4 + $0x1b30] sm:$0xff]  ;;  %v2966_v44 = vld [vmem:[%s23463_s4 + $0x1b18] sm:$0xff] }
 0x643   :  { %v15524_v30 = vcombine.high %v2965_v25, %v2969_v26  ;;  %v15523_v37 = vcombine.low %v2965_v25, %v2969_v26  ;;  %v15525_v60 = vcombine.low %v2966_v44, %v2970_v40  ;;  %v3002_v25 = vld [vmem:[%s23463_s4 + $0x1c38] sm:$0xff] }
 0x644   :  { %12943 = vmatpush1.bf16.msra.mxu1 %v15483_v46  ;;  %v15526_v46 = vcombine.high %v2966_v44, %v2970_v40 }
 0x645   :  { %13502 = vmatpush1.bf16.msra.mxu0 %v15485_v5  ;;  %12944 = vmatprep.subr.bf16.mxu1 %v15492_v57  ;;  %v2973_v5 = vld [vmem:[%s23463_s4 + $0x1b50] sm:$0xff] }
 0x646   :  { %13503 = vmatprep.subr.bf16.mxu0 %v15494_v56  ;;  %v2977_v57 = vld [vmem:[%s23463_s4 + $0x1b70] sm:$0xff]  ;;  %v2974_v56 = vld [vmem:[%s23463_s4 + $0x1b58] sm:$0xff] }
 0x647   :  { %v15532_v59 = vcombine.high %v2973_v5, %v2977_v57  ;;  %v15531_v9 = vcombine.low %v2973_v5, %v2977_v57  ;;  %v15533_v51 = vcombine.low %v2974_v56, %v2978_v8  ;;  %v3006_v5 = vld [vmem:[%s23463_s4 + $0x1c58] sm:$0xff] }
 0x648   :  { %12945 = vmatpush1.bf16.msra.mxu1 %v15491_v36  ;;  %v15534_v36 = vcombine.high %v2974_v56, %v2978_v8  ;;  %v3010_v57 = vld [vmem:[%s23463_s4 + $0x1c78] sm:$0xff] }
 0x649   :  { %13504 = vmatpush1.bf16.msra.mxu0 %v15493_v38  ;;  %12946 = vmatprep.subr.bf16.mxu1 %v15500_v29  ;;  %v2981_v38 = vld [vmem:[%s23463_s4 + $0x1b90] sm:$0xff] }
 0x64a   :  { %13505 = vmatprep.subr.bf16.mxu0 %v15502_v20  ;;  %v2985_v29 = vld [vmem:[%s23463_s4 + $0x1bb0] sm:$0xff]  ;;  %v2982_v20 = vld [vmem:[%s23463_s4 + $0x1b98] sm:$0xff] }
 0x64b   :  { %v15540_v21 = vcombine.high %v2981_v38, %v2985_v29  ;;  %v15539_v4 = vcombine.low %v2981_v38, %v2985_v29  ;;  %v15541_v3 = vcombine.low %v2982_v20, %v2986_v39  ;;  %v3018_v38 = vld [vmem:[%s23463_s4 + $0x1cb8] sm:$0xff] }
 0x64c   :  { %12947 = vmatpush1.bf16.msra.mxu1 %v15499_v50  ;;  %v15542_v50 = vcombine.high %v2982_v20, %v2986_v39  ;;  %v15565_v20 = vcombine.low %v3006_v5, %v3010_v57 }
 0x64d   :  { %13506 = vmatpush1.bf16.msra.mxu0 %v15501_v55  ;;  %12948 = vmatprep.subr.bf16.mxu1 %v15508_v19  ;;  %v2989_v55 = vld [vmem:[%s23463_s4 + $0x1bd0] sm:$0xff] }
 0x64e   :  { %13507 = vmatprep.subr.bf16.mxu0 %v15510_v11  ;;  %v2993_v19 = vld [vmem:[%s23463_s4 + $0x1bf0] sm:$0xff]  ;;  %v2990_v11 = vld [vmem:[%s23463_s4 + $0x1bd8] sm:$0xff] }
 0x64f   :  { %v15548_v22 = vcombine.high %v2989_v55, %v2993_v19  ;;  %v15547_v26 = vcombine.low %v2989_v55, %v2993_v19  ;;  %v15549_v44 = vcombine.low %v2990_v11, %v2994_v62 }
 0x650   :  { %12949 = vmatpush1.bf16.msra.mxu1 %v15507_v47  ;;  %v15550_v47 = vcombine.high %v2990_v11, %v2994_v62  ;;  %v3029_v62 = vld [vmem:[%s23463_s4 + $0x1d10] sm:$0xff] }
 0x651   :  { %13508 = vmatpush1.bf16.msra.mxu0 %v15509_v6  ;;  %12950 = vmatprep.subr.bf16.mxu1 %v15516_v23  ;;  %v2997_v6 = vld [vmem:[%s23463_s4 + $0x1c10] sm:$0xff] }
 0x652   :  { %13509 = vmatprep.subr.bf16.mxu0 %v15518_v52  ;;  %v3001_v23 = vld [vmem:[%s23463_s4 + $0x1c30] sm:$0xff]  ;;  %v2998_v52 = vld [vmem:[%s23463_s4 + $0x1c18] sm:$0xff] }
 0x653   :  { %v15556_v40 = vcombine.high %v2997_v6, %v3001_v23  ;;  %v15557_v56 = vcombine.low %v2998_v52, %v3002_v25 }
 0x654   :  { %12951 = vmatpush1.bf16.msra.mxu1 %v15515_v41  ;;  %v15558_v41 = vcombine.high %v2998_v52, %v3002_v25  ;;  %v3037_v25 = vld [vmem:[%s23463_s4 + $0x1d50] sm:$0xff] }
 0x655   :  { %13510 = vmatpush1.bf16.msra.mxu0 %v15517_v33  ;;  %12952 = vmatprep.subr.bf16.mxu1 %v15524_v30  ;;  %v3005_v33 = vld [vmem:[%s23463_s4 + $0x1c50] sm:$0xff] }
 0x656   :  { %13511 = vmatprep.subr.bf16.mxu0 %v15526_v46  ;;  %v3009_v30 = vld [vmem:[%s23463_s4 + $0x1c70] sm:$0xff]  ;;  %v15555_v46 = vcombine.low %v2997_v6, %v3001_v23 }
 0x657   :  { %v15564_v8 = vcombine.high %v3005_v33, %v3009_v30  ;;  %v15563_v29 = vcombine.low %v3005_v33, %v3009_v30 }
 0x658   :  { %12953 = vmatpush1.bf16.msra.mxu1 %v15523_v37  ;;  %v3013_v37 = vld [vmem:[%s23463_s4 + $0x1c90] sm:$0xff] }
 0x659   :  { %13512 = vmatpush1.bf16.msra.mxu0 %v15525_v60  ;;  %12954 = vmatprep.subr.bf16.mxu1 %v15532_v59  ;;  %v3017_v60 = vld [vmem:[%s23463_s4 + $0x1cb0] sm:$0xff]  ;;  %v15566_v59 = vcombine.high %v3006_v5, %v3010_v57 }
 0x65a   :  { %13513 = vmatprep.subr.bf16.mxu0 %v15534_v36  ;;  %v3014_v36 = vld [vmem:[%s23463_s4 + $0x1c98] sm:$0xff]  ;;  %v15572_v39 = vcombine.high %v3013_v37, %v3017_v60  ;;  %v3045_v5 = vld [vmem:[%s23463_s4 + $0x1d90] sm:$0xff] }
 0x65b   :  { %v15573_v55 = vcombine.low %v3014_v36, %v3018_v38  ;;  %v3049_v57 = vld [vmem:[%s23463_s4 + $0x1db0] sm:$0xff] }
 0x65c   :  { %12955 = vmatpush1.bf16.msra.mxu1 %v15531_v9  ;;  %v15574_v9 = vcombine.high %v3014_v36, %v3018_v38  ;;  %v3053_v38 = vld [vmem:[%s23463_s4 + $0x1dd0] sm:$0xff] }
 0x65d   :  { %13514 = vmatpush1.bf16.msra.mxu0 %v15533_v51  ;;  %12956 = vmatprep.subr.bf16.mxu1 %v15540_v21  ;;  %v3021_v51 = vld [vmem:[%s23463_s4 + $0x1cd0] sm:$0xff] }
 0x65e   :  { %13515 = vmatprep.subr.bf16.mxu0 %v15542_v50  ;;  %v3025_v21 = vld [vmem:[%s23463_s4 + $0x1cf0] sm:$0xff]  ;;  %v3026_v50 = vld [vmem:[%s23463_s4 + $0x1cf8] sm:$0xff] }
 0x65f   :  { %v15580_v19 = vcombine.high %v3021_v51, %v3025_v21 }
 0x660   :  { %12957 = vmatpush1.bf16.msra.mxu1 %v15539_v4  ;;  %v3033_v4 = vld [vmem:[%s23463_s4 + $0x1d30] sm:$0xff] }
 0x661   :  { %13516 = vmatpush1.bf16.msra.mxu0 %v15541_v3  ;;  %12958 = vmatprep.subr.bf16.mxu1 %v15548_v22  ;;  %v3030_v3 = vld [vmem:[%s23463_s4 + $0x1d18] sm:$0xff]  ;;  %v15588_v23 = vcombine.high %v3029_v62, %v3033_v4 }
 0x662   :  { %13517 = vmatprep.subr.bf16.mxu0 %v15550_v47  ;;  %v3034_v22 = vld [vmem:[%s23463_s4 + $0x1d38] sm:$0xff]  ;;  %v15579_v47 = vcombine.low %v3021_v51, %v3025_v21 }
 0x663   :  { %v15590_v52 = vcombine.high %v3030_v3, %v3034_v22  ;;  %v15589_v33 = vcombine.low %v3030_v3, %v3034_v22  ;;  %v3069_v22 = vld [vmem:[%s23463_s4 + $0x1e50] sm:$0xff] }
 0x664   :  { %12959 = vmatpush1.bf16.msra.mxu1 %v15547_v26  ;;  %v3041_v26 = vld [vmem:[%s23463_s4 + $0x1d70] sm:$0xff] }
 0x665   :  { %13518 = vmatpush1.bf16.msra.mxu0 %v15549_v44  ;;  %12971 = vmatprep.subr.bf16.mxu1 %v15556_v40  ;;  %v3038_v44 = vld [vmem:[%s23463_s4 + $0x1d58] sm:$0xff]  ;;  %v15596_v30 = vcombine.high %v3037_v25, %v3041_v26 }
 0x666   :  { %13530 = vmatprep.subr.bf16.mxu0 %v15558_v41  ;;  %v3042_v40 = vld [vmem:[%s23463_s4 + $0x1d78] sm:$0xff]  ;;  %v15587_v41 = vcombine.low %v3029_v62, %v3033_v4 }
 0x667   :  { %12961 = vmatmul.mubr.bf16.vlgmr.msra.gmra.mrb[28].mxu1 %v18511_v1 }
 0x668   :  { %13520 = vmatmul.mubr.bf16.vlgmr.msra.gmra.mrb[32].mxu0 %v18511_v1  ;;  %12972 = vmatpush1.bf16.msra.mxu1 %v15555_v46  ;;  %v3022_v1 = vld [vmem:[%s23463_s4 + $0x1cd8] sm:$0xff]  ;;  %v15598_v46 = vcombine.high %v3038_v44, %v3042_v40 }
 0x669   :  { %13003 = vmatprep.mubr.bf16.mxu1 %v18521_v14  ;;  %13531 = vmatpush1.bf16.msra.mxu0 %v15557_v56  ;;  %v15582_v11 = vcombine.high %v3022_v1, %v3026_v50  ;;  %v15581_v6 = vcombine.low %v3022_v1, %v3026_v50  ;;  %v3046_v56 = vld [vmem:[%s23463_s4 + $0x1d98] sm:$0xff]  ;;  %v3061_v50 = vld [vmem:[%s23463_s4 + $0x1e10] sm:$0xff] }
 0x66a   :  { %13562 = vmatprep.mubr.bf16.mxu0 %v18521_v14  ;;  %12973 = vmatprep.subr.bf16.mxu1 %v15564_v8  ;;  %v15571_v14 = vcombine.low %v3013_v37, %v3017_v60  ;;  %v3050_v8 = vld [vmem:[%s23463_s4 + $0x1db8] sm:$0xff]  ;;  %v15595_v37 = vcombine.low %v3037_v25, %v3041_v26  ;;  %v15597_v60 = vcombine.low %v3038_v44, %v3042_v40  ;;  %v3077_v40 = vld [vmem:[%s23463_s4 + $0x1e90] sm:$0xff] }
 0x66b   :  { %13532 = vmatprep.subr.bf16.mxu0 %v15566_v59  ;;  %v15604_v59 = vcombine.high %v3045_v5, %v3049_v57  ;;  %v15606_v36 = vcombine.high %v3046_v56, %v3050_v8  ;;  %v15605_v51 = vcombine.low %v3046_v56, %v3050_v8  ;;  %v3085_v8 = vld [vmem:[%s23463_s4 + $0x1ed0] sm:$0xff] }
 0x66c   :  { %12974 = vmatpush1.bf16.msra.mxu1 %v15563_v29  ;;  %v3057_v29 = vld [vmem:[%s23463_s4 + $0x1df0] sm:$0xff] }
 0x66d   :  { %13533 = vmatpush1.bf16.msra.mxu0 %v15565_v20  ;;  %12975 = vmatprep.subr.bf16.mxu1 %v15572_v39  ;;  %v3054_v20 = vld [vmem:[%s23463_s4 + $0x1dd8] sm:$0xff]  ;;  %v15612_v21 = vcombine.high %v3053_v38, %v3057_v29 }
 0x66e   :  { %13534 = vmatprep.subr.bf16.mxu0 %v15574_v9  ;;  %v3058_v39 = vld [vmem:[%s23463_s4 + $0x1df8] sm:$0xff]  ;;  %v15603_v9 = vcombine.low %v3045_v5, %v3049_v57 }
 0x66f   :  { %v15614_v1 = vcombine.high %v3054_v20, %v3058_v39  ;;  %v15613_v62 = vcombine.low %v3054_v20, %v3058_v39  ;;  %v3093_v39 = vld [vmem:[%s23463_s4 + $0x1f10] sm:$0xff] }
 0x670   :  { %12976 = vmatpush1.bf16.msra.mxu1 %v15571_v14  ;;  %v3065_v14 = vld [vmem:[%s23463_s4 + $0x1e30] sm:$0xff] }
 0x671   :  { %13535 = vmatpush1.bf16.msra.mxu0 %v15573_v55  ;;  %12977 = vmatprep.subr.bf16.mxu1 %v15580_v19  ;;  %v3062_v55 = vld [vmem:[%s23463_s4 + $0x1e18] sm:$0xff]  ;;  %v15620_v4 = vcombine.high %v3061_v50, %v3065_v14 }
 0x672   :  { %13536 = vmatprep.subr.bf16.mxu0 %v15582_v11  ;;  %v3066_v19 = vld [vmem:[%s23463_s4 + $0x1e38] sm:$0xff]  ;;  %v15611_v11 = vcombine.low %v3053_v38, %v3057_v29 }
 0x673   :  { %v15622_v3 = vcombine.high %v3062_v55, %v3066_v19  ;;  %v15621_v25 = vcombine.low %v3062_v55, %v3066_v19  ;;  %v3101_v19 = vld [vmem:[%s23463_s4 + $0x1f50] sm:$0xff] }
 0x674   :  { %12978 = vmatpush1.bf16.msra.mxu1 %v15579_v47  ;;  %v3073_v47 = vld [vmem:[%s23463_s4 + $0x1e70] sm:$0xff] }
 0x675   :  { %13537 = vmatpush1.bf16.msra.mxu0 %v15581_v6  ;;  %12979 = vmatprep.subr.bf16.mxu1 %v15588_v23  ;;  %v3070_v6 = vld [vmem:[%s23463_s4 + $0x1e58] sm:$0xff]  ;;  %v15628_v26 = vcombine.high %v3069_v22, %v3073_v47 }
 0x676   :  { %13538 = vmatprep.subr.bf16.mxu0 %v15590_v52  ;;  %v3074_v23 = vld [vmem:[%s23463_s4 + $0x1e78] sm:$0xff]  ;;  %v15619_v52 = vcombine.low %v3061_v50, %v3065_v14 }
 0x677   :  { %v15630_v44 = vcombine.high %v3070_v6, %v3074_v23  ;;  %v15629_v5 = vcombine.low %v3070_v6, %v3074_v23  ;;  %v3109_v23 = vld [vmem:[%s23463_s4 + $0x1f90] sm:$0xff] }
 0x678   :  { %12980 = vmatpush1.bf16.msra.mxu1 %v15587_v41  ;;  %v3081_v41 = vld [vmem:[%s23463_s4 + $0x1eb0] sm:$0xff] }
 0x679   :  { %13539 = vmatpush1.bf16.msra.mxu0 %v15589_v33  ;;  %12981 = vmatprep.subr.bf16.mxu1 %v15596_v30  ;;  %v3078_v33 = vld [vmem:[%s23463_s4 + $0x1e98] sm:$0xff]  ;;  %v15636_v57 = vcombine.high %v3077_v40, %v3081_v41 }
 0x67a   :  { %13540 = vmatprep.subr.bf16.mxu0 %v15598_v46  ;;  %v3082_v30 = vld [vmem:[%s23463_s4 + $0x1eb8] sm:$0xff]  ;;  %v15627_v46 = vcombine.low %v3069_v22, %v3073_v47 }
 0x67b   :  { %v15638_v56 = vcombine.high %v3078_v33, %v3082_v30  ;;  %v15637_v38 = vcombine.low %v3078_v33, %v3082_v30  ;;  %v3117_v30 = vld [vmem:[%s23463_s4 + $0x1fd0] sm:$0xff] }
 0x67c   :  { %12982 = vmatpush1.bf16.msra.mxu1 %v15595_v37  ;;  %v3089_v37 = vld [vmem:[%s23463_s4 + $0x1ef0] sm:$0xff] }
 0x67d   :  { %13541 = vmatpush1.bf16.msra.mxu0 %v15597_v60  ;;  %12983 = vmatprep.subr.bf16.mxu1 %v15604_v59  ;;  %v3086_v60 = vld [vmem:[%s23463_s4 + $0x1ed8] sm:$0xff]  ;;  %v15644_v29 = vcombine.high %v3085_v8, %v3089_v37 }
 0x67e   :  { %13542 = vmatprep.subr.bf16.mxu0 %v15606_v36  ;;  %v3090_v59 = vld [vmem:[%s23463_s4 + $0x1ef8] sm:$0xff]  ;;  %v15635_v36 = vcombine.low %v3077_v40, %v3081_v41 }
 0x67f   :  { %v15646_v20 = vcombine.high %v3086_v60, %v3090_v59  ;;  %v15645_v50 = vcombine.low %v3086_v60, %v3090_v59  ;;  %v3125_v59 = vld [vmem:[%s23463_s4 + $0x2010] sm:$0xff] }
 0x680   :  { %12984 = vmatpush1.bf16.msra.mxu1 %v15603_v9  ;;  %v3097_v9 = vld [vmem:[%s23463_s4 + $0x1f30] sm:$0xff] }
 0x681   :  { %13543 = vmatpush1.bf16.msra.mxu0 %v15605_v51  ;;  %12985 = vmatprep.subr.bf16.mxu1 %v15612_v21  ;;  %v3094_v51 = vld [vmem:[%s23463_s4 + $0x1f18] sm:$0xff]  ;;  %v15652_v14 = vcombine.high %v3093_v39, %v3097_v9 }
 0x682   :  { %13544 = vmatprep.subr.bf16.mxu0 %v15614_v1  ;;  %v3098_v21 = vld [vmem:[%s23463_s4 + $0x1f38] sm:$0xff]  ;;  %v15643_v1 = vcombine.low %v3085_v8, %v3089_v37 }
 0x683   :  { %v15654_v55 = vcombine.high %v3094_v51, %v3098_v21  ;;  %v15653_v22 = vcombine.low %v3094_v51, %v3098_v21  ;;  %v3133_v21 = vld [vmem:[%s23463_s4 + $0x2050] sm:$0xff] }
 0x684   :  { %12986 = vmatpush1.bf16.msra.mxu1 %v15611_v11  ;;  %v3105_v11 = vld [vmem:[%s23463_s4 + $0x1f70] sm:$0xff] }
 0x685   :  { %13545 = vmatpush1.bf16.msra.mxu0 %v15613_v62  ;;  %12987 = vmatprep.subr.bf16.mxu1 %v15620_v4  ;;  %v3102_v62 = vld [vmem:[%s23463_s4 + $0x1f58] sm:$0xff]  ;;  %v15660_v47 = vcombine.high %v3101_v19, %v3105_v11 }
 0x686   :  { %13546 = vmatprep.subr.bf16.mxu0 %v15622_v3  ;;  %v3106_v4 = vld [vmem:[%s23463_s4 + $0x1f78] sm:$0xff]  ;;  %v15651_v3 = vcombine.low %v3093_v39, %v3097_v9 }
 0x687   :  { %v15662_v6 = vcombine.high %v3102_v62, %v3106_v4  ;;  %v15661_v40 = vcombine.low %v3102_v62, %v3106_v4  ;;  %v3141_v62 = vld [vmem:[%s23463_s4 + $0x2090] sm:$0xff] }
 0x688   :  { %12988 = vmatpush1.bf16.msra.mxu1 %v15619_v52  ;;  %v3113_v52 = vld [vmem:[%s23463_s4 + $0x1fb0] sm:$0xff] }
 0x689   :  { %13547 = vmatpush1.bf16.msra.mxu0 %v15621_v25  ;;  %12989 = vmatprep.subr.bf16.mxu1 %v15628_v26  ;;  %v3110_v25 = vld [vmem:[%s23463_s4 + $0x1f98] sm:$0xff]  ;;  %v15668_v41 = vcombine.high %v3109_v23, %v3113_v52  ;;  %v3145_v4 = vld [vmem:[%s23463_s4 + $0x20b0] sm:$0xff] }
 0x68a   :  { %13548 = vmatprep.subr.bf16.mxu0 %v15630_v44  ;;  %v3114_v26 = vld [vmem:[%s23463_s4 + $0x1fb8] sm:$0xff]  ;;  %v15659_v44 = vcombine.low %v3101_v19, %v3105_v11 }
 0x68b   :  { %v15670_v33 = vcombine.high %v3110_v25, %v3114_v26  ;;  %v15669_v8 = vcombine.low %v3110_v25, %v3114_v26  ;;  %v3149_v26 = vld [vmem:[%s23463_s4 + $0x20d0] sm:$0xff] }
 0x68c   :  { %12990 = vmatpush1.bf16.msra.mxu1 %v15627_v46  ;;  %v3121_v46 = vld [vmem:[%s23463_s4 + $0x1ff0] sm:$0xff] }
 0x68d   :  { %13549 = vmatpush1.bf16.msra.mxu0 %v15629_v5  ;;  %12991 = vmatprep.subr.bf16.mxu1 %v15636_v57  ;;  %v3118_v5 = vld [vmem:[%s23463_s4 + $0x1fd8] sm:$0xff]  ;;  %v15676_v37 = vcombine.high %v3117_v30, %v3121_v46 }
 0x68e   :  { %13550 = vmatprep.subr.bf16.mxu0 %v15638_v56  ;;  %v3122_v57 = vld [vmem:[%s23463_s4 + $0x1ff8] sm:$0xff]  ;;  %v15667_v56 = vcombine.low %v3109_v23, %v3113_v52  ;;  %v15700_v52 = vcombine.high %v3141_v62, %v3145_v4 }
 0x68f   :  { %v15678_v60 = vcombine.high %v3118_v5, %v3122_v57  ;;  %v15677_v39 = vcombine.low %v3118_v5, %v3122_v57  ;;  %v3161_v5 = vld [vmem:[%s23463_s4 + $0x2130] sm:$0xff]  ;;  %v3158_v57 = vld [vmem:[%s23463_s4 + $0x2118] sm:$0xff] }
 0x690   :  { %12992 = vmatpush1.bf16.msra.mxu1 %v15635_v36  ;;  %v3129_v36 = vld [vmem:[%s23463_s4 + $0x2030] sm:$0xff] }
 0x691   :  { %13551 = vmatpush1.bf16.msra.mxu0 %v15637_v38  ;;  %12993 = vmatprep.subr.bf16.mxu1 %v15644_v29  ;;  %v3126_v38 = vld [vmem:[%s23463_s4 + $0x2018] sm:$0xff]  ;;  %v15684_v9 = vcombine.high %v3125_v59, %v3129_v36 }
 0x692   :  { %13552 = vmatprep.subr.bf16.mxu0 %v15646_v20  ;;  %v3130_v29 = vld [vmem:[%s23463_s4 + $0x2038] sm:$0xff]  ;;  %v15675_v20 = vcombine.low %v3117_v30, %v3121_v46  ;;  %v3157_v46 = vld [vmem:[%s23463_s4 + $0x2110] sm:$0xff] }
 0x693   :  { %v15686_v51 = vcombine.high %v3126_v38, %v3130_v29  ;;  %v15685_v19 = vcombine.low %v3126_v38, %v3130_v29  ;;  %v3169_v38 = vld [vmem:[%s23463_s4 + $0x2170] sm:$0xff]  ;;  %v3166_v29 = vld [vmem:[%s23463_s4 + $0x2158] sm:$0xff] }
 0x694   :  { %12994 = vmatpush1.bf16.msra.mxu1 %v15643_v1  ;;  %v3137_v1 = vld [vmem:[%s23463_s4 + $0x2070] sm:$0xff] }
 0x695   :  { %13553 = vmatpush1.bf16.msra.mxu0 %v15645_v50  ;;  %12995 = vmatprep.subr.bf16.mxu1 %v15652_v14  ;;  %v15683_v50 = vcombine.low %v3125_v59, %v3129_v36  ;;  %v3134_v14 = vld [vmem:[%s23463_s4 + $0x2058] sm:$0xff]  ;;  %v15692_v11 = vcombine.high %v3133_v21, %v3137_v1  ;;  %v3165_v36 = vld [vmem:[%s23463_s4 + $0x2150] sm:$0xff] }
 0x696   :  { %13554 = vmatprep.subr.bf16.mxu0 %v15654_v55  ;;  %v3138_v55 = vld [vmem:[%s23463_s4 + $0x2078] sm:$0xff] }
 0x697   :  { %v15693_v23 = vcombine.low %v3134_v14, %v3138_v55 }
 0x698   :  { %12996 = vmatpush1.bf16.msra.mxu1 %v15651_v3  ;;  %v15694_v3 = vcombine.high %v3134_v14, %v3138_v55  ;;  %v3174_v14 = vld [vmem:[%s23463_s4 + $0x2198] sm:$0xff] }
 0x699   :  { %13555 = vmatpush1.bf16.msra.mxu0 %v15653_v22  ;;  %12997 = vmatprep.subr.bf16.mxu1 %v15660_v47  ;;  %v3142_v22 = vld [vmem:[%s23463_s4 + $0x2098] sm:$0xff] }
 0x69a   :  { %13556 = vmatprep.subr.bf16.mxu0 %v15662_v6  ;;  %v3146_v47 = vld [vmem:[%s23463_s4 + $0x20b8] sm:$0xff]  ;;  %v15691_v6 = vcombine.low %v3133_v21, %v3137_v1  ;;  %v3173_v1 = vld [vmem:[%s23463_s4 + $0x2190] sm:$0xff] }
 0x69b   :  { %v15702_v25 = vcombine.high %v3142_v22, %v3146_v47  ;;  %v3178_v55 = vld [vmem:[%s23463_s4 + $0x21b8] sm:$0xff] }
 0x69c   :  { %12998 = vmatpush1.bf16.msra.mxu1 %v15659_v44  ;;  %v3153_v44 = vld [vmem:[%s23463_s4 + $0x20f0] sm:$0xff] }
 0x69d   :  { %13557 = vmatpush1.bf16.msra.mxu0 %v15661_v40  ;;  %12999 = vmatprep.subr.bf16.mxu1 %v15668_v41  ;;  %v3154_v40 = vld [vmem:[%s23463_s4 + $0x20f8] sm:$0xff]  ;;  %v15701_v41 = vcombine.low %v3142_v22, %v3146_v47  ;;  %v3185_v22 = vld [vmem:[%s23463_s4 + $0x21f0] sm:$0xff] }
 0x69e   :  { %13558 = vmatprep.subr.bf16.mxu0 %v15670_v33  ;;  %v15708_v33 = vcombine.high %v3149_v26, %v3153_v44  ;;  %v3182_v47 = vld [vmem:[%s23463_s4 + $0x21d8] sm:$0xff] }
 0x6a0   :  { %13000 = vmatpush1.bf16.msra.mxu1 %v15667_v56  ;;  %v3162_v56 = vld [vmem:[%s23463_s4 + $0x2138] sm:$0xff] }
 0x6a1   :  { %13559 = vmatpush1.bf16.msra.mxu0 %v15669_v8  ;;  %13001 = vmatprep.subr.bf16.mxu1 %v15676_v37  ;;  %v15707_v8 = vcombine.low %v3149_v26, %v3153_v44  ;;  %v15718_v59 = vcombine.high %v3158_v57, %v3162_v56  ;;  %v3189_v44 = vld [vmem:[%s23463_s4 + $0x2210] sm:$0xff] }
 0x6a2   :  { %13560 = vmatprep.subr.bf16.mxu0 %v15678_v60  ;;  %v15716_v60 = vcombine.high %v3157_v46, %v3161_v5 }
 0x6a4   :  { %13002 = vmatpush1.bf16.msra.mxu1 %v15675_v20  ;;  %v3170_v20 = vld [vmem:[%s23463_s4 + $0x2178] sm:$0xff] }
 0x6a5   :  { %13561 = vmatpush1.bf16.msra.mxu0 %v15677_v39  ;;  %13014 = vmatprep.subr.bf16.mxu1 %v15684_v9  ;;  %v15715_v39 = vcombine.low %v3157_v46, %v3161_v5  ;;  %v15717_v9 = vcombine.low %v3158_v57, %v3162_v56  ;;  %v15726_v21 = vcombine.high %v3166_v29, %v3170_v20  ;;  %v3197_v5 = vld [vmem:[%s23463_s4 + $0x2250] sm:$0xff]  ;;  %v3198_v56 = vld [vmem:[%s23463_s4 + $0x2258] sm:$0xff] }
 0x6a6   :  { %13573 = vmatprep.subr.bf16.mxu0 %v15686_v51  ;;  %v15724_v51 = vcombine.high %v3165_v36, %v3169_v38  ;;  %v3201_v57 = vld [vmem:[%s23463_s4 + $0x2270] sm:$0xff] }
 0x6a7   :  { %13004 = vmatmul.mubr.bf16.vlgmr.msra.gmra.mrb[28].mxu1 %v23713_v48 }
 0x6a8   :  { %13563 = vmatmul.mubr.bf16.vlgmr.msra.gmra.mrb[32].mxu0 %v23713_v48  ;;  %13015 = vmatpush1.bf16.msra.mxu1 %v15683_v50  ;;  %v3150_v48 = vld [vmem:[%s23463_s4 + $0x20d8] sm:$0xff]  ;;  %v3177_v50 = vld [vmem:[%s23463_s4 + $0x21b0] sm:$0xff] }
 0x6a9   :  { %13046 = vmatprep.mubr.bf16.mxu1 %v18692_v24  ;;  %13574 = vmatpush1.bf16.msra.mxu0 %v15685_v19  ;;  %v15710_v30 = vcombine.high %v3150_v48, %v3154_v40  ;;  %v15709_v37 = vcombine.low %v3150_v48, %v3154_v40  ;;  %v15723_v19 = vcombine.low %v3165_v36, %v3169_v38  ;;  %v3193_v48 = vld [vmem:[%s23463_s4 + $0x2230] sm:$0xff]  ;;  %v3190_v40 = vld [vmem:[%s23463_s4 + $0x2218] sm:$0xff] }
 0x6aa   :  { %13605 = vmatprep.mubr.bf16.mxu0 %v18692_v24  ;;  %13016 = vmatprep.subr.bf16.mxu1 %v15692_v11  ;;  %v15699_v24 = vcombine.low %v3141_v62, %v3145_v4  ;;  %v15725_v11 = vcombine.low %v3166_v29, %v3170_v20  ;;  %v15732_v62 = vcombine.high %v3173_v1, %v3177_v50  ;;  %v3205_v38 = vld [vmem:[%s23463_s4 + $0x2290] sm:$0xff]  ;;  %v3206_v20 = vld [vmem:[%s23463_s4 + $0x2298] sm:$0xff] }
 0x6ab   :  { %13575 = vmatprep.subr.bf16.mxu0 %v15694_v3  ;;  %v15734_v4 = vcombine.high %v3174_v14, %v3178_v55  ;;  %v3181_v3 = vld [vmem:[%s23463_s4 + $0x21d0] sm:$0xff] }
 0x6ac   :  { %13017 = vmatpush1.bf16.msra.mxu1 %v15691_v6  ;;  %v3186_v6 = vld [vmem:[%s23463_s4 + $0x21f8] sm:$0xff]  ;;  %v3209_v29 = vld [vmem:[%s23463_s4 + $0x22b0] sm:$0xff] }
 0x6ad   :  { %13576 = vmatpush1.bf16.msra.mxu0 %v15693_v23  ;;  %13018 = vmatprep.subr.bf16.mxu1 %v15700_v52  ;;  %v15731_v23 = vcombine.low %v3173_v1, %v3177_v50  ;;  %v15733_v52 = vcombine.low %v3174_v14, %v3178_v55  ;;  %v15742_v26 = vcombine.high %v3182_v47, %v3186_v6  ;;  %v3213_v50 = vld [vmem:[%s23463_s4 + $0x22d0] sm:$0xff]  ;;  %v3214_v55 = vld [vmem:[%s23463_s4 + $0x22d8] sm:$0xff] }
 0x6ae   :  { %13577 = vmatprep.subr.bf16.mxu0 %v15702_v25  ;;  %v15740_v25 = vcombine.high %v3181_v3, %v3185_v22  ;;  %v3217_v14 = vld [vmem:[%s23463_s4 + $0x22f0] sm:$0xff] }
 0x6b0   :  { %13019 = vmatpush1.bf16.msra.mxu1 %v15699_v24  ;;  %v3194_v24 = vld [vmem:[%s23463_s4 + $0x2238] sm:$0xff] }
 0x6b1   :  { %13578 = vmatpush1.bf16.msra.mxu0 %v15701_v41  ;;  %13020 = vmatprep.subr.bf16.mxu1 %v15708_v33  ;;  %v15739_v41 = vcombine.low %v3181_v3, %v3185_v22  ;;  %v15741_v33 = vcombine.low %v3182_v47, %v3186_v6  ;;  %v15750_v46 = vcombine.high %v3190_v40, %v3194_v24  ;;  %v3221_v22 = vld [vmem:[%s23463_s4 + $0x2310] sm:$0xff]  ;;  %v3222_v6 = vld [vmem:[%s23463_s4 + $0x2318] sm:$0xff] }
 0x6b2   :  { %13579 = vmatprep.subr.bf16.mxu0 %v15710_v30  ;;  %v15748_v30 = vcombine.high %v3189_v44, %v3193_v48  ;;  %v3225_v47 = vld [vmem:[%s23463_s4 + $0x2330] sm:$0xff] }
 0x6b4   :  { %13021 = vmatpush1.bf16.msra.mxu1 %v15707_v8  ;;  %v3202_v8 = vld [vmem:[%s23463_s4 + $0x2278] sm:$0xff] }
 0x6b5   :  { %13580 = vmatpush1.bf16.msra.mxu0 %v15709_v37  ;;  %13022 = vmatprep.subr.bf16.mxu1 %v15716_v60  ;;  %v15747_v37 = vcombine.low %v3189_v44, %v3193_v48  ;;  %v15749_v60 = vcombine.low %v3190_v40, %v3194_v24  ;;  %v15758_v36 = vcombine.high %v3198_v56, %v3202_v8  ;;  %v3229_v48 = vld [vmem:[%s23463_s4 + $0x2350] sm:$0xff]  ;;  %v3230_v24 = vld [vmem:[%s23463_s4 + $0x2358] sm:$0xff] }
 0x6b6   :  { %13581 = vmatprep.subr.bf16.mxu0 %v15718_v59  ;;  %v15756_v59 = vcombine.high %v3197_v5, %v3201_v57  ;;  %v3233_v40 = vld [vmem:[%s23463_s4 + $0x2370] sm:$0xff] }
 0x6b8   :  { %13023 = vmatpush1.bf16.msra.mxu1 %v15715_v39  ;;  %v3210_v39 = vld [vmem:[%s23463_s4 + $0x22b8] sm:$0xff] }
 0x6b9   :  { %13582 = vmatpush1.bf16.msra.mxu0 %v15717_v9  ;;  %13024 = vmatprep.subr.bf16.mxu1 %v15724_v51  ;;  %v15755_v9 = vcombine.low %v3197_v5, %v3201_v57  ;;  %v15757_v51 = vcombine.low %v3198_v56, %v3202_v8  ;;  %v15766_v1 = vcombine.high %v3206_v20, %v3210_v39  ;;  %v3237_v57 = vld [vmem:[%s23463_s4 + $0x2390] sm:$0xff]  ;;  %v3238_v8 = vld [vmem:[%s23463_s4 + $0x2398] sm:$0xff] }
 0x6ba   :  { %13583 = vmatprep.subr.bf16.mxu0 %v15726_v21  ;;  %v15764_v21 = vcombine.high %v3205_v38, %v3209_v29  ;;  %v3241_v56 = vld [vmem:[%s23463_s4 + $0x23b0] sm:$0xff] }
 0x6bc   :  { %13025 = vmatpush1.bf16.msra.mxu1 %v15723_v19  ;;  %v3218_v19 = vld [vmem:[%s23463_s4 + $0x22f8] sm:$0xff] }
 0x6bd   :  { %13584 = vmatpush1.bf16.msra.mxu0 %v15725_v11  ;;  %13026 = vmatprep.subr.bf16.mxu1 %v15732_v62  ;;  %v15763_v11 = vcombine.low %v3205_v38, %v3209_v29  ;;  %v15765_v62 = vcombine.low %v3206_v20, %v3210_v39  ;;  %v15774_v3 = vcombine.high %v3214_v55, %v3218_v19  ;;  %v3245_v29 = vld [vmem:[%s23463_s4 + $0x23d0] sm:$0xff]  ;;  %v3246_v39 = vld [vmem:[%s23463_s4 + $0x23d8] sm:$0xff] }
 0x6be   :  { %13585 = vmatprep.subr.bf16.mxu0 %v15734_v4  ;;  %v15772_v4 = vcombine.high %v3213_v50, %v3217_v14  ;;  %v3249_v20 = vld [vmem:[%s23463_s4 + $0x23f0] sm:$0xff] }
 0x6c0   :  { %13027 = vmatpush1.bf16.msra.mxu1 %v15731_v23  ;;  %v3226_v23 = vld [vmem:[%s23463_s4 + $0x2338] sm:$0xff] }
 0x6c1   :  { %13586 = vmatpush1.bf16.msra.mxu0 %v15733_v52  ;;  %13028 = vmatprep.subr.bf16.mxu1 %v15740_v25  ;;  %v15771_v52 = vcombine.low %v3213_v50, %v3217_v14  ;;  %v15773_v25 = vcombine.low %v3214_v55, %v3218_v19  ;;  %v15782_v44 = vcombine.high %v3222_v6, %v3226_v23  ;;  %v3253_v14 = vld [vmem:[%s23463_s4 + $0x2410] sm:$0xff]  ;;  %v3254_v19 = vld [vmem:[%s23463_s4 + $0x2418] sm:$0xff] }
 0x6c2   :  { %13587 = vmatprep.subr.bf16.mxu0 %v15742_v26  ;;  %v15780_v26 = vcombine.high %v3221_v22, %v3225_v47  ;;  %v3257_v55 = vld [vmem:[%s23463_s4 + $0x2430] sm:$0xff] }
 0x6c4   :  { %13029 = vmatpush1.bf16.msra.mxu1 %v15739_v41  ;;  %v3234_v41 = vld [vmem:[%s23463_s4 + $0x2378] sm:$0xff] }
 0x6c5   :  { %13588 = vmatpush1.bf16.msra.mxu0 %v15741_v33  ;;  %13030 = vmatprep.subr.bf16.mxu1 %v15748_v30  ;;  %v15779_v33 = vcombine.low %v3221_v22, %v3225_v47  ;;  %v15781_v30 = vcombine.low %v3222_v6, %v3226_v23  ;;  %v15790_v5 = vcombine.high %v3230_v24, %v3234_v41  ;;  %v3261_v47 = vld [vmem:[%s23463_s4 + $0x2450] sm:$0xff] }
 0x6c6   :  { %13589 = vmatprep.subr.bf16.mxu0 %v15750_v46  ;;  %v15788_v46 = vcombine.high %v3229_v48, %v3233_v40  ;;  %v3265_v6 = vld [vmem:[%s23463_s4 + $0x2470] sm:$0xff]  ;;  %v15811_v23 = vcombine.low %v3253_v14, %v3257_v55 }
 0x6c8   :  { %13031 = vmatpush1.bf16.msra.mxu1 %v15747_v37  ;;  %v3242_v37 = vld [vmem:[%s23463_s4 + $0x23b8] sm:$0xff] }
 0x6c9   :  { %13590 = vmatpush1.bf16.msra.mxu0 %v15749_v60  ;;  %13032 = vmatprep.subr.bf16.mxu1 %v15756_v59  ;;  %v15787_v60 = vcombine.low %v3229_v48, %v3233_v40  ;;  %v15789_v59 = vcombine.low %v3230_v24, %v3234_v41  ;;  %v15798_v38 = vcombine.high %v3238_v8, %v3242_v37  ;;  %v3269_v48 = vld [vmem:[%s23463_s4 + $0x2490] sm:$0xff]  ;;  %v3270_v41 = vld [vmem:[%s23463_s4 + $0x2498] sm:$0xff] }
 0x6ca   :  { %13591 = vmatprep.subr.bf16.mxu0 %v15758_v36  ;;  %v15796_v36 = vcombine.high %v3237_v57, %v3241_v56  ;;  %v3273_v40 = vld [vmem:[%s23463_s4 + $0x24b0] sm:$0xff] }
 0x6cc   :  { %13033 = vmatpush1.bf16.msra.mxu1 %v15755_v9  ;;  %v3250_v9 = vld [vmem:[%s23463_s4 + $0x23f8] sm:$0xff] }
 0x6cd   :  { %13592 = vmatpush1.bf16.msra.mxu0 %v15757_v51  ;;  %13034 = vmatprep.subr.bf16.mxu1 %v15764_v21  ;;  %v15795_v51 = vcombine.low %v3237_v57, %v3241_v56  ;;  %v15797_v21 = vcombine.low %v3238_v8, %v3242_v37  ;;  %v15806_v50 = vcombine.high %v3246_v39, %v3250_v9  ;;  %v3277_v56 = vld [vmem:[%s23463_s4 + $0x24d0] sm:$0xff]  ;;  %v3282_v37 = vld [vmem:[%s23463_s4 + $0x24f8] sm:$0xff] }
 0x6ce   :  { %13593 = vmatprep.subr.bf16.mxu0 %v15766_v1  ;;  %v15804_v1 = vcombine.high %v3245_v29, %v3249_v20  ;;  %v3281_v8 = vld [vmem:[%s23463_s4 + $0x24f0] sm:$0xff] }
 0x6d0   :  { %13035 = vmatpush1.bf16.msra.mxu1 %v15763_v11  ;;  %v3258_v11 = vld [vmem:[%s23463_s4 + $0x2438] sm:$0xff] }
 0x6d1   :  { %13594 = vmatpush1.bf16.msra.mxu0 %v15765_v62  ;;  %13036 = vmatprep.subr.bf16.mxu1 %v15772_v4  ;;  %v15803_v62 = vcombine.low %v3245_v29, %v3249_v20  ;;  %v15805_v4 = vcombine.low %v3246_v39, %v3250_v9  ;;  %v15814_v22 = vcombine.high %v3254_v19, %v3258_v11  ;;  %v3289_v29 = vld [vmem:[%s23463_s4 + $0x2530] sm:$0xff]  ;;  %v3286_v20 = vld [vmem:[%s23463_s4 + $0x2518] sm:$0xff] }
 0x6d2   :  { %13595 = vmatprep.subr.bf16.mxu0 %v15774_v3  ;;  %v15812_v3 = vcombine.high %v3253_v14, %v3257_v55  ;;  %v3290_v39 = vld [vmem:[%s23463_s4 + $0x2538] sm:$0xff]  ;;  %v15835_v9 = vcombine.low %v3277_v56, %v3281_v8  ;;  %v3297_v14 = vld [vmem:[%s23463_s4 + $0x2570] sm:$0xff] }
 0x6d3   :  { %v3294_v55 = vld [vmem:[%s23463_s4 + $0x2558] sm:$0xff] }
 0x6d4   :  { %13037 = vmatpush1.bf16.msra.mxu1 %v15771_v52  ;;  %v3262_v52 = vld [vmem:[%s23463_s4 + $0x2458] sm:$0xff] }
 0x6d5   :  { %13596 = vmatpush1.bf16.msra.mxu0 %v15773_v25  ;;  %13038 = vmatprep.subr.bf16.mxu1 %v15780_v26  ;;  %v3266_v25 = vld [vmem:[%s23463_s4 + $0x2478] sm:$0xff]  ;;  %v15813_v26 = vcombine.low %v3254_v19, %v3258_v11 }
 0x6d6   :  { %13597 = vmatprep.subr.bf16.mxu0 %v15782_v44  ;;  %v15820_v44 = vcombine.high %v3261_v47, %v3265_v6  ;;  %v15822_v24 = vcombine.high %v3262_v52, %v3266_v25  ;;  %v3298_v19 = vld [vmem:[%s23463_s4 + $0x2578] sm:$0xff] }
 0x6d8   :  { %13039 = vmatpush1.bf16.msra.mxu1 %v15779_v33  ;;  %v3274_v33 = vld [vmem:[%s23463_s4 + $0x24b8] sm:$0xff] }
 0x6d9   :  { %13598 = vmatpush1.bf16.msra.mxu0 %v15781_v30  ;;  %13040 = vmatprep.subr.bf16.mxu1 %v15788_v46  ;;  %v15819_v30 = vcombine.low %v3261_v47, %v3265_v6  ;;  %v15821_v46 = vcombine.low %v3262_v52, %v3266_v25  ;;  %v15830_v57 = vcombine.high %v3270_v41, %v3274_v33  ;;  %v3305_v47 = vld [vmem:[%s23463_s4 + $0x25b0] sm:$0xff]  ;;  %v3302_v6 = vld [vmem:[%s23463_s4 + $0x2598] sm:$0xff] }
 0x6da   :  { %13599 = vmatprep.subr.bf16.mxu0 %v15790_v5  ;;  %v15828_v5 = vcombine.high %v3269_v48, %v3273_v40  ;;  %v15853_v25 = vcombine.low %v3294_v55, %v3298_v19 }
 0x6dc   :  { %13041 = vmatpush1.bf16.msra.mxu1 %v15787_v60  ;;  %v15829_v60 = vcombine.low %v3270_v41, %v3274_v33  ;;  %v3314_v41 = vld [vmem:[%s23463_s4 + $0x25f8] sm:$0xff] }
 0x6dd   :  { %13600 = vmatpush1.bf16.msra.mxu0 %v15789_v59  ;;  %13042 = vmatprep.subr.bf16.mxu1 %v15796_v36  ;;  %v15836_v59 = vcombine.high %v3277_v56, %v3281_v8  ;;  %v3321_v56 = vld [vmem:[%s23463_s4 + $0x2630] sm:$0xff]  ;;  %v3318_v8 = vld [vmem:[%s23463_s4 + $0x2618] sm:$0xff] }
 0x6de   :  { %13601 = vmatprep.subr.bf16.mxu0 %v15798_v38  ;;  %v3285_v38 = vld [vmem:[%s23463_s4 + $0x2510] sm:$0xff] }
 0x6df   :  { %v15843_v11 = vcombine.low %v3285_v38, %v3289_v29 }
 0x6e0   :  { %13043 = vmatpush1.bf16.msra.mxu1 %v15795_v51 }
 0x6e1   :  { %13602 = vmatpush1.bf16.msra.mxu0 %v15797_v21  ;;  %13044 = vmatprep.subr.bf16.mxu1 %v15804_v1  ;;  %v15844_v21 = vcombine.high %v3285_v38, %v3289_v29  ;;  %v15846_v1 = vcombine.high %v3286_v20, %v3290_v39  ;;  %v3329_v38 = vld [vmem:[%s23463_s4 + $0x2670] sm:$0xff]  ;;  %v3326_v29 = vld [vmem:[%s23463_s4 + $0x2658] sm:$0xff] }
 0x6e2   :  { %13603 = vmatprep.subr.bf16.mxu0 %v15806_v50  ;;  %v3293_v50 = vld [vmem:[%s23463_s4 + $0x2550] sm:$0xff] }
 0x6e3   :  { %v15851_v52 = vcombine.low %v3293_v50, %v3297_v14 }
 0x6e4   :  { %13045 = vmatpush1.bf16.msra.mxu1 %v15803_v62  ;;  %v15845_v62 = vcombine.low %v3286_v20, %v3290_v39  ;;  %v3330_v20 = vld [vmem:[%s23463_s4 + $0x2678] sm:$0xff] }
 0x6e5   :  { %13604 = vmatpush1.bf16.msra.mxu0 %v15805_v4  ;;  %13057 = vmatprep.subr.bf16.mxu1 %v15812_v3  ;;  %v15852_v4 = vcombine.high %v3293_v50, %v3297_v14  ;;  %v15854_v3 = vcombine.high %v3294_v55, %v3298_v19  ;;  %v3337_v50 = vld [vmem:[%s23463_s4 + $0x26b0] sm:$0xff]  ;;  %v3334_v14 = vld [vmem:[%s23463_s4 + $0x2698] sm:$0xff] }
 0x6e6   :  { %13616 = vmatprep.subr.bf16.mxu0 %v15814_v22  ;;  %v3301_v22 = vld [vmem:[%s23463_s4 + $0x2590] sm:$0xff]  ;;  %v3338_v55 = vld [vmem:[%s23463_s4 + $0x26b8] sm:$0xff] }
 0x6e7   :  { %13047 = vmatmul.mubr.bf16.vlgmr.msra.gmra.mrb[28].mxu1 %v18694_v49  ;;  %v15859_v33 = vcombine.low %v3301_v22, %v3305_v47 }
 0x6e8   :  { %13606 = vmatmul.mubr.bf16.vlgmr.msra.gmra.mrb[32].mxu0 %v18694_v49  ;;  %13058 = vmatpush1.bf16.msra.mxu1 %v15811_v23  ;;  %v3278_v49 = vld [vmem:[%s23463_s4 + $0x24d8] sm:$0xff] }
 0x6e9   :  { %13089 = vmatprep.mubr.bf16.mxu1 %v18704_v34  ;;  %13617 = vmatpush1.bf16.msra.mxu0 %v15813_v26  ;;  %v15838_v36 = vcombine.high %v3278_v49, %v3282_v37  ;;  %v15837_v51 = vcombine.low %v3278_v49, %v3282_v37  ;;  %v3306_v23 = vld [vmem:[%s23463_s4 + $0x25b8] sm:$0xff]  ;;  %v15860_v26 = vcombine.high %v3301_v22, %v3305_v47  ;;  %v3345_v22 = vld [vmem:[%s23463_s4 + $0x26f0] sm:$0xff] }
 0x6ea   :  { %13648 = vmatprep.mubr.bf16.mxu0 %v18704_v34  ;;  %13059 = vmatprep.subr.bf16.mxu1 %v15820_v44  ;;  %v15827_v34 = vcombine.low %v3269_v48, %v3273_v40  ;;  %v15862_v44 = vcombine.high %v3302_v6, %v3306_v23  ;;  %v3309_v48 = vld [vmem:[%s23463_s4 + $0x25d0] sm:$0xff]  ;;  %v3322_v49 = vld [vmem:[%s23463_s4 + $0x2638] sm:$0xff] }
 0x6eb   :  { %13618 = vmatprep.subr.bf16.mxu0 %v15822_v24  ;;  %v3313_v40 = vld [vmem:[%s23463_s4 + $0x25f0] sm:$0xff]  ;;  %v3310_v24 = vld [vmem:[%s23463_s4 + $0x25d8] sm:$0xff] }
 0x6ec   :  { %13060 = vmatpush1.bf16.msra.mxu1 %v15819_v30  ;;  %v15861_v30 = vcombine.low %v3302_v6, %v3306_v23  ;;  %v15867_v37 = vcombine.low %v3309_v48, %v3313_v40  ;;  %v3342_v47 = vld [vmem:[%s23463_s4 + $0x26d8] sm:$0xff] }
 0x6ed   :  { %13619 = vmatpush1.bf16.msra.mxu0 %v15821_v46  ;;  %13061 = vmatprep.subr.bf16.mxu1 %v15828_v5  ;;  %v15868_v46 = vcombine.high %v3309_v48, %v3313_v40  ;;  %v15870_v5 = vcombine.high %v3310_v24, %v3314_v41  ;;  %v3346_v6 = vld [vmem:[%s23463_s4 + $0x26f8] sm:$0xff]  ;;  %v3353_v48 = vld [vmem:[%s23463_s4 + $0x2730] sm:$0xff] }
 0x6ee   :  { %13620 = vmatprep.subr.bf16.mxu0 %v15830_v57  ;;  %v3317_v57 = vld [vmem:[%s23463_s4 + $0x2610] sm:$0xff]  ;;  %v3350_v40 = vld [vmem:[%s23463_s4 + $0x2718] sm:$0xff] }
 0x6ef   :  { %v15875_v39 = vcombine.low %v3317_v57, %v3321_v56 }
 0x6f0   :  { %13062 = vmatpush1.bf16.msra.mxu1 %v15827_v34  ;;  %v15869_v34 = vcombine.low %v3310_v24, %v3314_v41  ;;  %v3354_v24 = vld [vmem:[%s23463_s4 + $0x2738] sm:$0xff] }
 0x6f1   :  { %13621 = vmatpush1.bf16.msra.mxu0 %v15829_v60  ;;  %13063 = vmatprep.subr.bf16.mxu1 %v15836_v59  ;;  %v15876_v60 = vcombine.high %v3317_v57, %v3321_v56  ;;  %v15878_v59 = vcombine.high %v3318_v8, %v3322_v49  ;;  %v3361_v57 = vld [vmem:[%s23463_s4 + $0x2770] sm:$0xff]  ;;  %v3358_v56 = vld [vmem:[%s23463_s4 + $0x2758] sm:$0xff] }
 0x6f2   :  { %13622 = vmatprep.subr.bf16.mxu0 %v15838_v36  ;;  %v3325_v36 = vld [vmem:[%s23463_s4 + $0x2650] sm:$0xff] }
 0x6f3   :  { %v15883_v19 = vcombine.low %v3325_v36, %v3329_v38 }
 0x6f4   :  { %13064 = vmatpush1.bf16.msra.mxu1 %v15835_v9  ;;  %v15877_v9 = vcombine.low %v3318_v8, %v3322_v49  ;;  %v3362_v8 = vld [vmem:[%s23463_s4 + $0x2778] sm:$0xff] }
 0x6f5   :  { %13623 = vmatpush1.bf16.msra.mxu0 %v15837_v51  ;;  %13065 = vmatprep.subr.bf16.mxu1 %v15844_v21  ;;  %v15884_v51 = vcombine.high %v3325_v36, %v3329_v38  ;;  %v15886_v21 = vcombine.high %v3326_v29, %v3330_v20  ;;  %v3369_v36 = vld [vmem:[%s23463_s4 + $0x27b0] sm:$0xff]  ;;  %v3366_v38 = vld [vmem:[%s23463_s4 + $0x2798] sm:$0xff] }
 0x6f6   :  { %13624 = vmatprep.subr.bf16.mxu0 %v15846_v1  ;;  %v3333_v1 = vld [vmem:[%s23463_s4 + $0x2690] sm:$0xff] }
 0x6f7   :  { %v15891_v23 = vcombine.low %v3333_v1, %v3337_v50 }
 0x6f8   :  { %13066 = vmatpush1.bf16.msra.mxu1 %v15843_v11  ;;  %v15885_v11 = vcombine.low %v3326_v29, %v3330_v20  ;;  %v3370_v29 = vld [vmem:[%s23463_s4 + $0x27b8] sm:$0xff] }
 0x6f9   :  { %13625 = vmatpush1.bf16.msra.mxu0 %v15845_v62  ;;  %13067 = vmatprep.subr.bf16.mxu1 %v15852_v4  ;;  %v15892_v62 = vcombine.high %v3333_v1, %v3337_v50  ;;  %v15894_v4 = vcombine.high %v3334_v14, %v3338_v55  ;;  %v3377_v1 = vld [vmem:[%s23463_s4 + $0x27f0] sm:$0xff]  ;;  %v3374_v50 = vld [vmem:[%s23463_s4 + $0x27d8] sm:$0xff] }
 0x6fa   :  { %13626 = vmatprep.subr.bf16.mxu0 %v15854_v3  ;;  %v3341_v3 = vld [vmem:[%s23463_s4 + $0x26d0] sm:$0xff] }
 0x6fb   :  { %v15899_v41 = vcombine.low %v3341_v3, %v3345_v22 }
 0x6fc   :  { %13068 = vmatpush1.bf16.msra.mxu1 %v15851_v52  ;;  %v15893_v52 = vcombine.low %v3334_v14, %v3338_v55  ;;  %v3378_v14 = vld [vmem:[%s23463_s4 + $0x27f8] sm:$0xff] }
 0x6fd   :  { %13627 = vmatpush1.bf16.msra.mxu0 %v15853_v25  ;;  %13069 = vmatprep.subr.bf16.mxu1 %v15860_v26  ;;  %v15900_v25 = vcombine.high %v3341_v3, %v3345_v22  ;;  %v15902_v26 = vcombine.high %v3342_v47, %v3346_v6  ;;  %v3385_v3 = vld [vmem:[%s23463_s4 + $0x2830] sm:$0xff]  ;;  %v3382_v22 = vld [vmem:[%s23463_s4 + $0x2818] sm:$0xff] }
 0x6fe   :  { %13628 = vmatprep.subr.bf16.mxu0 %v15862_v44  ;;  %v3349_v44 = vld [vmem:[%s23463_s4 + $0x2710] sm:$0xff] }
 0x6ff   :  { %v15907_v49 = vcombine.low %v3349_v44, %v3353_v48 }
 0x700   :  { %13070 = vmatpush1.bf16.msra.mxu1 %v15859_v33  ;;  %v15901_v33 = vcombine.low %v3342_v47, %v3346_v6  ;;  %v3386_v47 = vld [vmem:[%s23463_s4 + $0x2838] sm:$0xff] }
 0x701   :  { %13629 = vmatpush1.bf16.msra.mxu0 %v15861_v30  ;;  %13071 = vmatprep.subr.bf16.mxu1 %v15868_v46  ;;  %v15908_v30 = vcombine.high %v3349_v44, %v3353_v48  ;;  %v15910_v46 = vcombine.high %v3350_v40, %v3354_v24  ;;  %v3393_v44 = vld [vmem:[%s23463_s4 + $0x2870] sm:$0xff] }
 0x702   :  { %13630 = vmatprep.subr.bf16.mxu0 %v15870_v5  ;;  %v3357_v5 = vld [vmem:[%s23463_s4 + $0x2750] sm:$0xff] }
 0x703   :  { %v15915_v20 = vcombine.low %v3357_v5, %v3361_v57 }
 0x704   :  { %13072 = vmatpush1.bf16.msra.mxu1 %v15867_v37  ;;  %v15909_v37 = vcombine.low %v3350_v40, %v3354_v24  ;;  %v3390_v40 = vld [vmem:[%s23463_s4 + $0x2858] sm:$0xff] }
 0x705   :  { %13631 = vmatpush1.bf16.msra.mxu0 %v15869_v34  ;;  %13073 = vmatprep.subr.bf16.mxu1 %v15876_v60  ;;  %v15916_v34 = vcombine.high %v3357_v5, %v3361_v57  ;;  %v15918_v60 = vcombine.high %v3358_v56, %v3362_v8  ;;  %v3394_v24 = vld [vmem:[%s23463_s4 + $0x2878] sm:$0xff] }
 0x706   :  { %13632 = vmatprep.subr.bf16.mxu0 %v15878_v59  ;;  %v3365_v59 = vld [vmem:[%s23463_s4 + $0x2790] sm:$0xff]  ;;  %v15950_v5 = vcombine.high %v3390_v40, %v3394_v24  ;;  %v3398_v57 = vld [vmem:[%s23463_s4 + $0x2898] sm:$0xff] }
 0x707   :  { %v15923_v55 = vcombine.low %v3365_v59, %v3369_v36 }
 0x708   :  { %13074 = vmatpush1.bf16.msra.mxu1 %v15875_v39  ;;  %v15917_v39 = vcombine.low %v3358_v56, %v3362_v8  ;;  %v3402_v56 = vld [vmem:[%s23463_s4 + $0x28b8] sm:$0xff] }
 0x709   :  { %13633 = vmatpush1.bf16.msra.mxu0 %v15877_v9  ;;  %13075 = vmatprep.subr.bf16.mxu1 %v15884_v51  ;;  %v15924_v9 = vcombine.high %v3365_v59, %v3369_v36  ;;  %v15926_v51 = vcombine.high %v3366_v38, %v3370_v29  ;;  %v3409_v59 = vld [vmem:[%s23463_s4 + $0x28f0] sm:$0xff]  ;;  %v3410_v36 = vld [vmem:[%s23463_s4 + $0x28f8] sm:$0xff] }
 0x70a   :  { %13634 = vmatprep.subr.bf16.mxu0 %v15886_v21  ;;  %v3373_v21 = vld [vmem:[%s23463_s4 + $0x27d0] sm:$0xff] }
 0x70b   :  { %v15931_v6 = vcombine.low %v3373_v21, %v3377_v1 }
 0x70c   :  { %13076 = vmatpush1.bf16.msra.mxu1 %v15883_v19  ;;  %v15925_v19 = vcombine.low %v3366_v38, %v3370_v29  ;;  %v15957_v38 = vcombine.low %v3398_v57, %v3402_v56 }
 0x70d   :  { %13635 = vmatpush1.bf16.msra.mxu0 %v15885_v11  ;;  %13077 = vmatprep.subr.bf16.mxu1 %v15892_v62  ;;  %v15932_v11 = vcombine.high %v3373_v21, %v3377_v1  ;;  %v15934_v62 = vcombine.high %v3374_v50, %v3378_v14  ;;  %v3418_v21 = vld [vmem:[%s23463_s4 + $0x2938] sm:$0xff] }
 0x70e   :  { %13636 = vmatprep.subr.bf16.mxu0 %v15894_v4  ;;  %v3381_v4 = vld [vmem:[%s23463_s4 + $0x2810] sm:$0xff] }
 0x70f   :  { %v15939_v48 = vcombine.low %v3381_v4, %v3385_v3 }
 0x710   :  { %13078 = vmatpush1.bf16.msra.mxu1 %v15891_v23  ;;  %v15933_v23 = vcombine.low %v3374_v50, %v3378_v14 }
 0x711   :  { %13637 = vmatpush1.bf16.msra.mxu0 %v15893_v52  ;;  %13079 = vmatprep.subr.bf16.mxu1 %v15900_v25  ;;  %v15940_v52 = vcombine.high %v3381_v4, %v3385_v3  ;;  %v15942_v25 = vcombine.high %v3382_v22, %v3386_v47  ;;  %v3426_v4 = vld [vmem:[%s23463_s4 + $0x2978] sm:$0xff] }
 0x712   :  { %13638 = vmatprep.subr.bf16.mxu0 %v15902_v26  ;;  %v3389_v26 = vld [vmem:[%s23463_s4 + $0x2850] sm:$0xff] }
 0x713   :  { %v15947_v8 = vcombine.low %v3389_v26, %v3393_v44 }
 0x714   :  { %13080 = vmatpush1.bf16.msra.mxu1 %v15899_v41  ;;  %v15941_v41 = vcombine.low %v3382_v22, %v3386_v47 }
 0x715   :  { %13639 = vmatpush1.bf16.msra.mxu0 %v15901_v33  ;;  %13081 = vmatprep.subr.bf16.mxu1 %v15908_v30  ;;  %v15948_v33 = vcombine.high %v3389_v26, %v3393_v44  ;;  %v3397_v30 = vld [vmem:[%s23463_s4 + $0x2890] sm:$0xff]  ;;  %v3434_v26 = vld [vmem:[%s23463_s4 + $0x29b8] sm:$0xff] }
 0x716   :  { %13640 = vmatprep.subr.bf16.mxu0 %v15910_v46  ;;  %v3401_v46 = vld [vmem:[%s23463_s4 + $0x28b0] sm:$0xff] }
 0x718   :  { %13082 = vmatpush1.bf16.msra.mxu1 %v15907_v49  ;;  %v15949_v49 = vcombine.low %v3390_v40, %v3394_v24 }
 0x719   :  { %13641 = vmatpush1.bf16.msra.mxu0 %v15909_v37  ;;  %13083 = vmatprep.subr.bf16.mxu1 %v15916_v34  ;;  %v15956_v37 = vcombine.high %v3397_v30, %v3401_v46  ;;  %v15958_v34 = vcombine.high %v3398_v57, %v3402_v56  ;;  %v3445_v57 = vld [vmem:[%s23463_s4 + $0x2a10] sm:$0xff] }
 0x71a   :  { %13642 = vmatprep.subr.bf16.mxu0 %v15918_v60  ;;  %v3405_v60 = vld [vmem:[%s23463_s4 + $0x28d0] sm:$0xff] }
 0x71b   :  { %v15964_v29 = vcombine.high %v3405_v60, %v3409_v59  ;;  %v15963_v1 = vcombine.low %v3405_v60, %v3409_v59  ;;  %v3450_v60 = vld [vmem:[%s23463_s4 + $0x2a38] sm:$0xff] }
 0x71c   :  { %13084 = vmatpush1.bf16.msra.mxu1 %v15915_v20 }
 0x71d   :  { %13643 = vmatpush1.bf16.msra.mxu0 %v15917_v39  ;;  %13085 = vmatprep.subr.bf16.mxu1 %v15924_v9  ;;  %v3413_v39 = vld [vmem:[%s23463_s4 + $0x2910] sm:$0xff] }
 0x71e   :  { %13644 = vmatprep.subr.bf16.mxu0 %v15926_v51  ;;  %v3417_v9 = vld [vmem:[%s23463_s4 + $0x2930] sm:$0xff]  ;;  %v3414_v51 = vld [vmem:[%s23463_s4 + $0x2918] sm:$0xff] }
 0x71f   :  { %v15972_v14 = vcombine.high %v3413_v39, %v3417_v9  ;;  %v15971_v3 = vcombine.low %v3413_v39, %v3417_v9  ;;  %v15973_v22 = vcombine.low %v3414_v51, %v3418_v21  ;;  %v3458_v39 = vld [vmem:[%s23463_s4 + $0x2a78] sm:$0xff] }
 0x720   :  { %13086 = vmatpush1.bf16.msra.mxu1 %v15923_v55  ;;  %v15974_v55 = vcombine.high %v3414_v51, %v3418_v21  ;;  %v3461_v51 = vld [vmem:[%s23463_s4 + $0x2a90] sm:$0xff] }
 0x721   :  { %13645 = vmatpush1.bf16.msra.mxu0 %v15925_v19  ;;  %13087 = vmatprep.subr.bf16.mxu1 %v15932_v11  ;;  %v3421_v19 = vld [vmem:[%s23463_s4 + $0x2950] sm:$0xff] }
 0x722   :  { %13646 = vmatprep.subr.bf16.mxu0 %v15934_v62  ;;  %v3425_v11 = vld [vmem:[%s23463_s4 + $0x2970] sm:$0xff]  ;;  %v3422_v62 = vld [vmem:[%s23463_s4 + $0x2958] sm:$0xff] }
 0x723   :  { %v15980_v47 = vcombine.high %v3421_v19, %v3425_v11  ;;  %v15979_v44 = vcombine.low %v3421_v19, %v3425_v11  ;;  %v15981_v40 = vcombine.low %v3422_v62, %v3426_v4  ;;  %v3466_v19 = vld [vmem:[%s23463_s4 + $0x2ab8] sm:$0xff] }
 0x724   :  { %13088 = vmatpush1.bf16.msra.mxu1 %v15931_v6  ;;  %v15982_v6 = vcombine.high %v3422_v62, %v3426_v4  ;;  %v3469_v62 = vld [vmem:[%s23463_s4 + $0x2ad0] sm:$0xff] }
 0x725   :  { %13647 = vmatpush1.bf16.msra.mxu0 %v15933_v23  ;;  %13100 = vmatprep.subr.bf16.mxu1 %v15940_v52  ;;  %v3429_v23 = vld [vmem:[%s23463_s4 + $0x2990] sm:$0xff] }
 0x726   :  { %13659 = vmatprep.subr.bf16.mxu0 %v15942_v25  ;;  %v3433_v52 = vld [vmem:[%s23463_s4 + $0x29b0] sm:$0xff]  ;;  %v3430_v25 = vld [vmem:[%s23463_s4 + $0x2998] sm:$0xff] }
 0x727   :  { %13090 = vmatmul.mubr.bf16.vlgmr.msra.gmra.mrb[28].mxu1 %v18706_v43  ;;  %v15988_v24 = vcombine.high %v3429_v23, %v3433_v52  ;;  %v15989_v56 = vcombine.low %v3430_v25, %v3434_v26 }
 0x728   :  { %13649 = vmatmul.mubr.bf16.vlgmr.msra.gmra.mrb[32].mxu0 %v18706_v43  ;;  %13101 = vmatpush1.bf16.msra.mxu1 %v15939_v48  ;;  %v3406_v43 = vld [vmem:[%s23463_s4 + $0x28d8] sm:$0xff]  ;;  %v3437_v48 = vld [vmem:[%s23463_s4 + $0x29d0] sm:$0xff] }
 0x729   :  { %13132 = vmatprep.mubr.bf16.mxu1 %v18812_v18  ;;  %13660 = vmatpush1.bf16.msra.mxu0 %v15941_v41  ;;  %v15966_v20 = vcombine.high %v3406_v43, %v3410_v36  ;;  %v15965_v50 = vcombine.low %v3406_v43, %v3410_v36  ;;  %v3441_v41 = vld [vmem:[%s23463_s4 + $0x29f0] sm:$0xff] }
 0x72a   :  { %13691 = vmatprep.mubr.bf16.mxu0 %v18812_v18  ;;  %13102 = vmatprep.subr.bf16.mxu1 %v15948_v33  ;;  %v15955_v18 = vcombine.low %v3397_v30, %v3401_v46  ;;  %v15990_v33 = vcombine.high %v3430_v25, %v3434_v26  ;;  %v3438_v30 = vld [vmem:[%s23463_s4 + $0x29d8] sm:$0xff]  ;;  %v15995_v59 = vcombine.low %v3437_v48, %v3441_v41  ;;  %v3453_v43 = vld [vmem:[%s23463_s4 + $0x2a50] sm:$0xff] }
 0x72b   :  { %13661 = vmatprep.subr.bf16.mxu0 %v15950_v5  ;;  %v3442_v46 = vld [vmem:[%s23463_s4 + $0x29f8] sm:$0xff]  ;;  %v15987_v5 = vcombine.low %v3429_v23, %v3433_v52  ;;  %v3477_v25 = vld [vmem:[%s23463_s4 + $0x2b10] sm:$0xff] }
 0x72c   :  { %13103 = vmatpush1.bf16.msra.mxu1 %v15947_v8  ;;  %v15996_v8 = vcombine.high %v3437_v48, %v3441_v41  ;;  %v15997_v36 = vcombine.low %v3438_v30, %v3442_v46  ;;  %v3474_v23 = vld [vmem:[%s23463_s4 + $0x2af8] sm:$0xff]  ;;  %v3481_v48 = vld [vmem:[%s23463_s4 + $0x2b30] sm:$0xff] }
 0x72d   :  { %13662 = vmatpush1.bf16.msra.mxu0 %v15949_v49  ;;  %13104 = vmatprep.subr.bf16.mxu1 %v15956_v37  ;;  %v3449_v49 = vld [vmem:[%s23463_s4 + $0x2a30] sm:$0xff]  ;;  %v15998_v37 = vcombine.high %v3438_v30, %v3442_v46  ;;  %v3482_v41 = vld [vmem:[%s23463_s4 + $0x2b38] sm:$0xff] }
 0x72e   :  { %13663 = vmatprep.subr.bf16.mxu0 %v15958_v34  ;;  %v3446_v34 = vld [vmem:[%s23463_s4 + $0x2a18] sm:$0xff]  ;;  %v16003_v9 = vcombine.low %v3445_v57, %v3449_v49  ;;  %v3485_v30 = vld [vmem:[%s23463_s4 + $0x2b50] sm:$0xff] }
 0x72f   :  { %v16005_v21 = vcombine.low %v3446_v34, %v3450_v60 }
 0x730   :  { %13105 = vmatpush1.bf16.msra.mxu1 %v15955_v18  ;;  %v16004_v18 = vcombine.high %v3445_v57, %v3449_v49  ;;  %v3489_v57 = vld [vmem:[%s23463_s4 + $0x2b70] sm:$0xff]  ;;  %v3490_v49 = vld [vmem:[%s23463_s4 + $0x2b78] sm:$0xff] }
 0x731   :  { %13664 = vmatpush1.bf16.msra.mxu0 %v15957_v38  ;;  %13106 = vmatprep.subr.bf16.mxu1 %v15964_v29  ;;  %v3457_v38 = vld [vmem:[%s23463_s4 + $0x2a70] sm:$0xff]  ;;  %v16006_v29 = vcombine.high %v3446_v34, %v3450_v60 }
 0x732   :  { %13665 = vmatprep.subr.bf16.mxu0 %v15966_v20  ;;  %v3454_v20 = vld [vmem:[%s23463_s4 + $0x2a58] sm:$0xff]  ;;  %v16011_v11 = vcombine.low %v3453_v43, %v3457_v38  ;;  %v3493_v34 = vld [vmem:[%s23463_s4 + $0x2b90] sm:$0xff] }
 0x733   :  { %v16013_v4 = vcombine.low %v3454_v20, %v3458_v39 }
 0x734   :  { %13107 = vmatpush1.bf16.msra.mxu1 %v15963_v1  ;;  %v16012_v1 = vcombine.high %v3453_v43, %v3457_v38  ;;  %v3497_v43 = vld [vmem:[%s23463_s4 + $0x2bb0] sm:$0xff]  ;;  %v3498_v38 = vld [vmem:[%s23463_s4 + $0x2bb8] sm:$0xff] }
 0x735   :  { %13666 = vmatpush1.bf16.msra.mxu0 %v15965_v50  ;;  %13108 = vmatprep.subr.bf16.mxu1 %v15972_v14  ;;  %v3465_v50 = vld [vmem:[%s23463_s4 + $0x2ab0] sm:$0xff]  ;;  %v16014_v14 = vcombine.high %v3454_v20, %v3458_v39 }
 0x736   :  { %13667 = vmatprep.subr.bf16.mxu0 %v15974_v55  ;;  %v3462_v55 = vld [vmem:[%s23463_s4 + $0x2a98] sm:$0xff]  ;;  %v16019_v52 = vcombine.low %v3461_v51, %v3465_v50  ;;  %v3501_v20 = vld [vmem:[%s23463_s4 + $0x2bd0] sm:$0xff] }
 0x737   :  { %v16021_v26 = vcombine.low %v3462_v55, %v3466_v19 }
 0x738   :  { %13109 = vmatpush1.bf16.msra.mxu1 %v15971_v3  ;;  %v16020_v3 = vcombine.high %v3461_v51, %v3465_v50  ;;  %v3505_v51 = vld [vmem:[%s23463_s4 + $0x2bf0] sm:$0xff]  ;;  %v3506_v50 = vld [vmem:[%s23463_s4 + $0x2bf8] sm:$0xff] }
 0x739   :  { %13668 = vmatpush1.bf16.msra.mxu0 %v15973_v22  ;;  %13110 = vmatprep.subr.bf16.mxu1 %v15980_v47  ;;  %v3473_v22 = vld [vmem:[%s23463_s4 + $0x2af0] sm:$0xff]  ;;  %v16022_v47 = vcombine.high %v3462_v55, %v3466_v19 }
 0x73a   :  { %13669 = vmatprep.subr.bf16.mxu0 %v15982_v6  ;;  %v3470_v6 = vld [vmem:[%s23463_s4 + $0x2ad8] sm:$0xff]  ;;  %v3509_v55 = vld [vmem:[%s23463_s4 + $0x2c10] sm:$0xff] }
 0x73b   :  { %v16029_v46 = vcombine.low %v3470_v6, %v3474_v23 }
 0x73c   :  { %13111 = vmatpush1.bf16.msra.mxu1 %v15979_v44  ;;  %v16028_v44 = vcombine.high %v3469_v62, %v3473_v22 }
 0x73d   :  { %13670 = vmatpush1.bf16.msra.mxu0 %v15981_v40  ;;  %13112 = vmatprep.subr.bf16.mxu1 %v15988_v24  ;;  %v16030_v40 = vcombine.high %v3470_v6, %v3474_v23  ;;  %v3478_v24 = vld [vmem:[%s23463_s4 + $0x2b18] sm:$0xff] }
 0x73e   :  { %13671 = vmatprep.subr.bf16.mxu0 %v15990_v33  ;;  %v16027_v33 = vcombine.low %v3469_v62, %v3473_v22  ;;  %v16037_v60 = vcombine.low %v3478_v24, %v3482_v41  ;;  %v3513_v62 = vld [vmem:[%s23463_s4 + $0x2c30] sm:$0xff]  ;;  %v3514_v22 = vld [vmem:[%s23463_s4 + $0x2c38] sm:$0xff] }
 0x73f   :  { %v16068_v23 = vcombine.high %v3509_v55, %v3513_v62 }
 0x740   :  { %13113 = vmatpush1.bf16.msra.mxu1 %v15987_v5  ;;  %v16036_v5 = vcombine.high %v3477_v25, %v3481_v48 }
 0x741   :  { %13672 = vmatpush1.bf16.msra.mxu0 %v15989_v56  ;;  %13114 = vmatprep.subr.bf16.mxu1 %v15996_v8  ;;  %v16038_v56 = vcombine.high %v3478_v24, %v3482_v41  ;;  %v3486_v8 = vld [vmem:[%s23463_s4 + $0x2b58] sm:$0xff]  ;;  %v3525_v24 = vld [vmem:[%s23463_s4 + $0x2c90] sm:$0xff] }
 0x742   :  { %13673 = vmatprep.subr.bf16.mxu0 %v15998_v37  ;;  %v16035_v37 = vcombine.low %v3477_v25, %v3481_v48  ;;  %v16045_v39 = vcombine.low %v3486_v8, %v3490_v49  ;;  %v3521_v25 = vld [vmem:[%s23463_s4 + $0x2c70] sm:$0xff]  ;;  %v3522_v48 = vld [vmem:[%s23463_s4 + $0x2c78] sm:$0xff] }
 0x744   :  { %13115 = vmatpush1.bf16.msra.mxu1 %v15995_v59  ;;  %v16044_v59 = vcombine.high %v3485_v30, %v3489_v57 }
 0x745   :  { %13674 = vmatpush1.bf16.msra.mxu0 %v15997_v36  ;;  %13116 = vmatprep.subr.bf16.mxu1 %v16004_v18  ;;  %v16046_v36 = vcombine.high %v3486_v8, %v3490_v49  ;;  %v3494_v18 = vld [vmem:[%s23463_s4 + $0x2b98] sm:$0xff]  ;;  %v3533_v8 = vld [vmem:[%s23463_s4 + $0x2cd0] sm:$0xff] }
 0x746   :  { %13675 = vmatprep.subr.bf16.mxu0 %v16006_v29  ;;  %v16043_v29 = vcombine.low %v3485_v30, %v3489_v57  ;;  %v16053_v19 = vcombine.low %v3494_v18, %v3498_v38  ;;  %v3530_v57 = vld [vmem:[%s23463_s4 + $0x2cb8] sm:$0xff] }
 0x748   :  { %13117 = vmatpush1.bf16.msra.mxu1 %v16003_v9  ;;  %v16052_v9 = vcombine.high %v3493_v34, %v3497_v43 }
 0x749   :  { %13676 = vmatpush1.bf16.msra.mxu0 %v16005_v21  ;;  %13118 = vmatprep.subr.bf16.mxu1 %v16012_v1  ;;  %v16054_v21 = vcombine.high %v3494_v18, %v3498_v38  ;;  %v3502_v1 = vld [vmem:[%s23463_s4 + $0x2bd8] sm:$0xff] }
 0x74a   :  { %13677 = vmatprep.subr.bf16.mxu0 %v16014_v14  ;;  %v16051_v14 = vcombine.low %v3493_v34, %v3497_v43  ;;  %v16061_v6 = vcombine.low %v3502_v1, %v3506_v50  ;;  %v3537_v34 = vld [vmem:[%s23463_s4 + $0x2cf0] sm:$0xff] }
 0x74b   :  { %v16092_v38 = vcombine.high %v3533_v8, %v3537_v34 }
 0x74c   :  { %13119 = vmatpush1.bf16.msra.mxu1 %v16011_v11  ;;  %v16060_v11 = vcombine.high %v3501_v20, %v3505_v51 }
 0x74d   :  { %13678 = vmatpush1.bf16.msra.mxu0 %v16013_v4  ;;  %13120 = vmatprep.subr.bf16.mxu1 %v16020_v3  ;;  %v16062_v4 = vcombine.high %v3502_v1, %v3506_v50  ;;  %v3510_v3 = vld [vmem:[%s23463_s4 + $0x2c18] sm:$0xff] }
 0x74e   :  { %13679 = vmatprep.subr.bf16.mxu0 %v16022_v47  ;;  %v16059_v47 = vcombine.low %v3501_v20, %v3505_v51  ;;  %v16069_v41 = vcombine.low %v3510_v3, %v3514_v22  ;;  %v3546_v20 = vld [vmem:[%s23463_s4 + $0x2d38] sm:$0xff]  ;;  %v3549_v51 = vld [vmem:[%s23463_s4 + $0x2d50] sm:$0xff] }
 0x750   :  { %13121 = vmatpush1.bf16.msra.mxu1 %v16019_v52  ;;  %v3517_v52 = vld [vmem:[%s23463_s4 + $0x2c50] sm:$0xff] }
 0x751   :  { %13680 = vmatpush1.bf16.msra.mxu0 %v16021_v26  ;;  %13122 = vmatprep.subr.bf16.mxu1 %v16028_v44  ;;  %v16070_v26 = vcombine.high %v3510_v3, %v3514_v22  ;;  %v3518_v44 = vld [vmem:[%s23463_s4 + $0x2c58] sm:$0xff]  ;;  %v16076_v30 = vcombine.high %v3517_v52, %v3521_v25  ;;  %v3557_v22 = vld [vmem:[%s23463_s4 + $0x2d90] sm:$0xff] }
 0x752   :  { %13681 = vmatprep.subr.bf16.mxu0 %v16030_v40  ;;  %v16067_v40 = vcombine.low %v3509_v55, %v3513_v62  ;;  %v16077_v49 = vcombine.low %v3518_v44, %v3522_v48  ;;  %v3554_v55 = vld [vmem:[%s23463_s4 + $0x2d78] sm:$0xff] }
 0x754   :  { %13123 = vmatpush1.bf16.msra.mxu1 %v16027_v33  ;;  %v3529_v33 = vld [vmem:[%s23463_s4 + $0x2cb0] sm:$0xff] }
 0x755   :  { %13682 = vmatpush1.bf16.msra.mxu0 %v16029_v46  ;;  %13124 = vmatprep.subr.bf16.mxu1 %v16036_v5  ;;  %v3526_v46 = vld [vmem:[%s23463_s4 + $0x2c98] sm:$0xff]  ;;  %v16078_v5 = vcombine.high %v3518_v44, %v3522_v48  ;;  %v16083_v43 = vcombine.low %v3525_v24, %v3529_v33  ;;  %v3565_v48 = vld [vmem:[%s23463_s4 + $0x2dd0] sm:$0xff] }
 0x756   :  { %13683 = vmatprep.subr.bf16.mxu0 %v16038_v56  ;;  %v16075_v56 = vcombine.low %v3517_v52, %v3521_v25  ;;  %v16085_v18 = vcombine.low %v3526_v46, %v3530_v57 }
 0x758   :  { %13125 = vmatpush1.bf16.msra.mxu1 %v16035_v37  ;;  %v16084_v37 = vcombine.high %v3525_v24, %v3529_v33  ;;  %v3566_v24 = vld [vmem:[%s23463_s4 + $0x2dd8] sm:$0xff] }
 0x759   :  { %13684 = vmatpush1.bf16.msra.mxu0 %v16037_v60  ;;  %13126 = vmatprep.subr.bf16.mxu1 %v16044_v59  ;;  %v16086_v60 = vcombine.high %v3526_v46, %v3530_v57  ;;  %v3538_v59 = vld [vmem:[%s23463_s4 + $0x2cf8] sm:$0xff]  ;;  %v3573_v57 = vld [vmem:[%s23463_s4 + $0x2e10] sm:$0xff] }
 0x75a   :  { %13685 = vmatprep.subr.bf16.mxu0 %v16046_v36  ;;  %v3541_v36 = vld [vmem:[%s23463_s4 + $0x2d10] sm:$0xff] }
 0x75c   :  { %13127 = vmatpush1.bf16.msra.mxu1 %v16043_v29  ;;  %v3542_v29 = vld [vmem:[%s23463_s4 + $0x2d18] sm:$0xff] }
 0x75d   :  { %13686 = vmatpush1.bf16.msra.mxu0 %v16045_v39  ;;  %13128 = vmatprep.subr.bf16.mxu1 %v16052_v9  ;;  %v16091_v9 = vcombine.low %v3533_v8, %v3537_v34  ;;  %v16101_v62 = vcombine.low %v3542_v29, %v3546_v20  ;;  %v3574_v8 = vld [vmem:[%s23463_s4 + $0x2e18] sm:$0xff] }
 0x75e   :  { %13687 = vmatprep.subr.bf16.mxu0 %v16054_v21  ;;  %v3553_v21 = vld [vmem:[%s23463_s4 + $0x2d70] sm:$0xff] }
 0x75f   :  { %v16107_v52 = vcombine.low %v3549_v51, %v3553_v21 }
 0x760   :  { %13129 = vmatpush1.bf16.msra.mxu1 %v16051_v14  ;;  %v3550_v14 = vld [vmem:[%s23463_s4 + $0x2d58] sm:$0xff] }
 0x761   :  { %13688 = vmatpush1.bf16.msra.mxu0 %v16053_v19  ;;  %13130 = vmatprep.subr.bf16.mxu1 %v16060_v11  ;;  %v16102_v19 = vcombine.high %v3542_v29, %v3546_v20  ;;  %v16110_v3 = vcombine.high %v3550_v14, %v3554_v55  ;;  %v16109_v25 = vcombine.low %v3550_v14, %v3554_v55 }
 0x762   :  { %13689 = vmatprep.subr.bf16.mxu0 %v16062_v4  ;;  %v16108_v4 = vcombine.high %v3549_v51, %v3553_v21  ;;  %v3590_v51 = vld [vmem:[%s23463_s4 + $0x2e98] sm:$0xff] }
 0x763   :  { %v3594_v21 = vld [vmem:[%s23463_s4 + $0x2eb8] sm:$0xff] }
 0x764   :  { %13131 = vmatpush1.bf16.msra.mxu1 %v16059_v47  ;;  %v3561_v47 = vld [vmem:[%s23463_s4 + $0x2db0] sm:$0xff]  ;;  %v16150_v55 = vcombine.high %v3590_v51, %v3594_v21 }
 0x765   :  { %13690 = vmatpush1.bf16.msra.mxu0 %v16061_v6  ;;  %13143 = vmatprep.subr.bf16.mxu1 %v16068_v23  ;;  %v3558_v6 = vld [vmem:[%s23463_s4 + $0x2d98] sm:$0xff]  ;;  %v16115_v33 = vcombine.low %v3557_v22, %v3561_v47 }
 0x766   :  { %13702 = vmatprep.subr.bf16.mxu0 %v16070_v26  ;;  %v3562_v23 = vld [vmem:[%s23463_s4 + $0x2db8] sm:$0xff]  ;;  %v16116_v26 = vcombine.high %v3557_v22, %v3561_v47  ;;  %v16149_v22 = vcombine.low %v3590_v51, %v3594_v21  ;;  %v3637_v21 = vld [vmem:[%s23463_s4 + $0x3010] sm:$0xff] }
 0x767   :  { %13133 = vmatmul.mubr.bf16.vlgmr.msra.gmra.mrb[28].mxu1 %v18814_v42  ;;  %v16118_v44 = vcombine.high %v3558_v6, %v3562_v23 }
 0x768   :  { %13692 = vmatmul.mubr.bf16.vlgmr.msra.gmra.mrb[32].mxu0 %v18814_v42  ;;  %13144 = vmatpush1.bf16.msra.mxu1 %v16067_v40  ;;  %v3534_v42 = vld [vmem:[%s23463_s4 + $0x2cd8] sm:$0xff]  ;;  %v3569_v40 = vld [vmem:[%s23463_s4 + $0x2df0] sm:$0xff] }
 0x769   :  { %13175 = vmatprep.mubr.bf16.mxu1 %v18822_v10  ;;  %13703 = vmatpush1.bf16.msra.mxu0 %v16069_v41  ;;  %v16094_v39 = vcombine.high %v3534_v42, %v3538_v59  ;;  %v16093_v1 = vcombine.low %v3534_v42, %v3538_v59  ;;  %v3570_v41 = vld [vmem:[%s23463_s4 + $0x2df8] sm:$0xff]  ;;  %v16124_v46 = vcombine.high %v3565_v48, %v3569_v40  ;;  %v3581_v59 = vld [vmem:[%s23463_s4 + $0x2e50] sm:$0xff] }
 0x76a   :  { %13734 = vmatprep.mubr.bf16.mxu0 %v18822_v10  ;;  %13145 = vmatprep.subr.bf16.mxu1 %v16076_v30  ;;  %v3545_v10 = vld [vmem:[%s23463_s4 + $0x2d30] sm:$0xff]  ;;  %v16117_v30 = vcombine.low %v3558_v6, %v3562_v23  ;;  %v16125_v34 = vcombine.low %v3566_v24, %v3570_v41 }
 0x76b   :  { %13704 = vmatprep.subr.bf16.mxu0 %v16078_v5  ;;  %v16100_v50 = vcombine.high %v3541_v36, %v3545_v10  ;;  %v16099_v11 = vcombine.low %v3541_v36, %v3545_v10  ;;  %v16126_v5 = vcombine.high %v3566_v24, %v3570_v41  ;;  %v3582_v36 = vld [vmem:[%s23463_s4 + $0x2e58] sm:$0xff]  ;;  %v3605_v23 = vld [vmem:[%s23463_s4 + $0x2f10] sm:$0xff] }
 0x76c   :  { %13146 = vmatpush1.bf16.msra.mxu1 %v16075_v56  ;;  %v3577_v56 = vld [vmem:[%s23463_s4 + $0x2e30] sm:$0xff]  ;;  %v3586_v10 = vld [vmem:[%s23463_s4 + $0x2e78] sm:$0xff] }
 0x76d   :  { %13705 = vmatpush1.bf16.msra.mxu0 %v16077_v49  ;;  %13147 = vmatprep.subr.bf16.mxu1 %v16084_v37  ;;  %v3578_v49 = vld [vmem:[%s23463_s4 + $0x2e38] sm:$0xff]  ;;  %v16123_v37 = vcombine.low %v3565_v48, %v3569_v40  ;;  %v16142_v20 = vcombine.high %v3582_v36, %v3586_v10  ;;  %v3613_v41 = vld [vmem:[%s23463_s4 + $0x2f50] sm:$0xff] }
 0x76e   :  { %13706 = vmatprep.subr.bf16.mxu0 %v16086_v60  ;;  %v16132_v60 = vcombine.high %v3573_v57, %v3577_v56  ;;  %v16134_v42 = vcombine.high %v3574_v8, %v3578_v49 }
 0x770   :  { %13148 = vmatpush1.bf16.msra.mxu1 %v16083_v43  ;;  %v3585_v43 = vld [vmem:[%s23463_s4 + $0x2e70] sm:$0xff] }
 0x771   :  { %13707 = vmatpush1.bf16.msra.mxu0 %v16085_v18  ;;  %13149 = vmatprep.subr.bf16.mxu1 %v16092_v38  ;;  %v16131_v18 = vcombine.low %v3573_v57, %v3577_v56  ;;  %v16133_v38 = vcombine.low %v3574_v8, %v3578_v49  ;;  %v16140_v29 = vcombine.high %v3581_v59, %v3585_v43  ;;  %v3621_v49 = vld [vmem:[%s23463_s4 + $0x2f90] sm:$0xff] }
 0x772   :  { %13708 = vmatprep.subr.bf16.mxu0 %v16094_v39  ;;  %v3589_v39 = vld [vmem:[%s23463_s4 + $0x2e90] sm:$0xff] }
 0x774   :  { %13150 = vmatpush1.bf16.msra.mxu1 %v16091_v9  ;;  %v3593_v9 = vld [vmem:[%s23463_s4 + $0x2eb0] sm:$0xff] }
 0x775   :  { %13709 = vmatpush1.bf16.msra.mxu0 %v16093_v1  ;;  %13151 = vmatprep.subr.bf16.mxu1 %v16100_v50  ;;  %v16139_v1 = vcombine.low %v3581_v59, %v3585_v43  ;;  %v16141_v50 = vcombine.low %v3582_v36, %v3586_v10  ;;  %v16148_v14 = vcombine.high %v3589_v39, %v3593_v9  ;;  %v3629_v10 = vld [vmem:[%s23463_s4 + $0x2fd0] sm:$0xff] }
 0x776   :  { %13710 = vmatprep.subr.bf16.mxu0 %v16102_v19  ;;  %v3597_v19 = vld [vmem:[%s23463_s4 + $0x2ed0] sm:$0xff] }
 0x778   :  { %13152 = vmatpush1.bf16.msra.mxu1 %v16099_v11  ;;  %v3601_v11 = vld [vmem:[%s23463_s4 + $0x2ef0] sm:$0xff] }
 0x779   :  { %13711 = vmatpush1.bf16.msra.mxu0 %v16101_v62  ;;  %13153 = vmatprep.subr.bf16.mxu1 %v16108_v4  ;;  %v3598_v62 = vld [vmem:[%s23463_s4 + $0x2ed8] sm:$0xff]  ;;  %v16156_v47 = vcombine.high %v3597_v19, %v3601_v11 }
 0x77a   :  { %13712 = vmatprep.subr.bf16.mxu0 %v16110_v3  ;;  %v3602_v4 = vld [vmem:[%s23463_s4 + $0x2ef8] sm:$0xff]  ;;  %v16147_v3 = vcombine.low %v3589_v39, %v3593_v9 }
 0x77b   :  { %v16158_v6 = vcombine.high %v3598_v62, %v3602_v4  ;;  %v16157_v48 = vcombine.low %v3598_v62, %v3602_v4  ;;  %v3645_v4 = vld [vmem:[%s23463_s4 + $0x3050] sm:$0xff] }
 0x77c   :  { %13154 = vmatpush1.bf16.msra.mxu1 %v16107_v52  ;;  %v3609_v52 = vld [vmem:[%s23463_s4 + $0x2f30] sm:$0xff] }
 0x77d   :  { %13713 = vmatpush1.bf16.msra.mxu0 %v16109_v25  ;;  %13155 = vmatprep.subr.bf16.mxu1 %v16116_v26  ;;  %v3606_v25 = vld [vmem:[%s23463_s4 + $0x2f18] sm:$0xff]  ;;  %v16164_v40 = vcombine.high %v3605_v23, %v3609_v52 }
 0x77e   :  { %13714 = vmatprep.subr.bf16.mxu0 %v16118_v44  ;;  %v3610_v26 = vld [vmem:[%s23463_s4 + $0x2f38] sm:$0xff]  ;;  %v16155_v44 = vcombine.low %v3597_v19, %v3601_v11 }
 0x77f   :  { %v16166_v24 = vcombine.high %v3606_v25, %v3610_v26  ;;  %v16165_v57 = vcombine.low %v3606_v25, %v3610_v26  ;;  %v3653_v26 = vld [vmem:[%s23463_s4 + $0x3090] sm:$0xff] }
 0x780   :  { %13156 = vmatpush1.bf16.msra.mxu1 %v16115_v33  ;;  %v3617_v33 = vld [vmem:[%s23463_s4 + $0x2f70] sm:$0xff] }
 0x781   :  { %13715 = vmatpush1.bf16.msra.mxu0 %v16117_v30  ;;  %13157 = vmatprep.subr.bf16.mxu1 %v16124_v46  ;;  %v3614_v30 = vld [vmem:[%s23463_s4 + $0x2f58] sm:$0xff]  ;;  %v16172_v56 = vcombine.high %v3613_v41, %v3617_v33 }
 0x782   :  { %13716 = vmatprep.subr.bf16.mxu0 %v16126_v5  ;;  %v3618_v46 = vld [vmem:[%s23463_s4 + $0x2f78] sm:$0xff]  ;;  %v16163_v5 = vcombine.low %v3605_v23, %v3609_v52 }
 0x783   :  { %v16174_v8 = vcombine.high %v3614_v30, %v3618_v46  ;;  %v16173_v59 = vcombine.low %v3614_v30, %v3618_v46  ;;  %v3661_v46 = vld [vmem:[%s23463_s4 + $0x30d0] sm:$0xff] }
 0x784   :  { %13158 = vmatpush1.bf16.msra.mxu1 %v16123_v37  ;;  %v3625_v37 = vld [vmem:[%s23463_s4 + $0x2fb0] sm:$0xff] }
 0x785   :  { %13717 = vmatpush1.bf16.msra.mxu0 %v16125_v34  ;;  %13159 = vmatprep.subr.bf16.mxu1 %v16132_v60  ;;  %v3622_v34 = vld [vmem:[%s23463_s4 + $0x2f98] sm:$0xff]  ;;  %v16180_v43 = vcombine.high %v3621_v49, %v3625_v37 }
 0x786   :  { %13718 = vmatprep.subr.bf16.mxu0 %v16134_v42  ;;  %v3626_v60 = vld [vmem:[%s23463_s4 + $0x2fb8] sm:$0xff]  ;;  %v16171_v42 = vcombine.low %v3613_v41, %v3617_v33 }
 0x787   :  { %v16182_v36 = vcombine.high %v3622_v34, %v3626_v60  ;;  %v16181_v39 = vcombine.low %v3622_v34, %v3626_v60 }
 0x788   :  { %13160 = vmatpush1.bf16.msra.mxu1 %v16131_v18  ;;  %v3633_v18 = vld [vmem:[%s23463_s4 + $0x2ff0] sm:$0xff] }
 0x789   :  { %13719 = vmatpush1.bf16.msra.mxu0 %v16133_v38  ;;  %13161 = vmatprep.subr.bf16.mxu1 %v16140_v29  ;;  %v3630_v38 = vld [vmem:[%s23463_s4 + $0x2fd8] sm:$0xff]  ;;  %v16188_v9 = vcombine.high %v3629_v10, %v3633_v18 }
 0x78a   :  { %13720 = vmatprep.subr.bf16.mxu0 %v16142_v20  ;;  %v3634_v29 = vld [vmem:[%s23463_s4 + $0x2ff8] sm:$0xff]  ;;  %v16179_v20 = vcombine.low %v3621_v49, %v3625_v37 }
 0x78b   :  { %v16190_v51 = vcombine.high %v3630_v38, %v3634_v29  ;;  %v16189_v19 = vcombine.low %v3630_v38, %v3634_v29  ;;  %v16777_v38 = vld [vmem:[%s23467_s6 + $0x88] sm:$0xff]   ;;  %v16778_v29 = vld [vmem:[%s23467_s6 + $0x50] sm:$0xff]  }
 0x78c   :  { %13162 = vmatpush1.bf16.msra.mxu1 %v16139_v1  ;;  %v3641_v1 = vld [vmem:[%s23463_s4 + $0x3030] sm:$0xff] }
 0x78d   :  { %13721 = vmatpush1.bf16.msra.mxu0 %v16141_v50  ;;  %13163 = vmatprep.subr.bf16.mxu1 %v16148_v14  ;;  %v3638_v50 = vld [vmem:[%s23463_s4 + $0x3018] sm:$0xff]  ;;  %v16196_v11 = vcombine.high %v3637_v21, %v3641_v1 }
 0x78e   :  { %13722 = vmatprep.subr.bf16.mxu0 %v16150_v55  ;;  %v3642_v14 = vld [vmem:[%s23463_s4 + $0x3038] sm:$0xff]  ;;  %v16187_v55 = vcombine.low %v3629_v10, %v3633_v18  ;;  %v16775_v10 = vld [vmem:[%s23467_s6 + $0xc8] sm:$0xff]  }
 0x78f   :  { %v16198_v62 = vcombine.high %v3638_v50, %v3642_v14  ;;  %v16197_v23 = vcombine.low %v3638_v50, %v3642_v14  ;;  %v16776_v18 = vld [vmem:[%s23467_s6 + $0x8] sm:$0xff]  }
 0x790   :  { %13164 = vmatpush1.bf16.msra.mxu1 %v16147_v3  ;;  %v3649_v3 = vld [vmem:[%s23463_s4 + $0x3070] sm:$0xff]  ;;  %v16792_v50 = vld [vmem:[%s23467_s6 + $0x28] sm:$0xff]  }
 0x791   :  { %13723 = vmatpush1.bf16.msra.mxu0 %v16149_v22  ;;  %13165 = vmatprep.subr.bf16.mxu1 %v16156_v47  ;;  %v3646_v22 = vld [vmem:[%s23463_s4 + $0x3058] sm:$0xff]  ;;  %v16204_v52 = vcombine.high %v3645_v4, %v3649_v3  ;;  %v16793_v14 = vld [vmem:[%s23467_s6 + $0xa8] sm:$0xff]  }
 0x792   :  { %13724 = vmatprep.subr.bf16.mxu0 %v16158_v6  ;;  %v3650_v47 = vld [vmem:[%s23463_s4 + $0x3078] sm:$0xff]  ;;  %v16195_v6 = vcombine.low %v3637_v21, %v3641_v1  ;;  %v16790_v21 = vld [vmem:[%s23467_s6 + $0x68] sm:$0xff]  }
 0x793   :  { %v16206_v25 = vcombine.high %v3646_v22, %v3650_v47  ;;  %v16205_v41 = vcombine.low %v3646_v22, %v3650_v47  ;;  %v16791_v1 = vld [vmem:[%s23467_s6 + $0xe8] sm:$0xff]   ;;  %v16800_v22 = vld [vmem:[%s23467_s6 + $0x38] sm:$0xff]  }
 0x794   :  { %13166 = vmatpush1.bf16.msra.mxu1 %v16155_v44  ;;  %v3657_v44 = vld [vmem:[%s23463_s4 + $0x30b0] sm:$0xff]  ;;  %v16801_v47 = vld [vmem:[%s23467_s6 + $0xb8] sm:$0xff]  }
 0x795   :  { %13725 = vmatpush1.bf16.msra.mxu0 %v16157_v48  ;;  %13167 = vmatprep.subr.bf16.mxu1 %v16164_v40  ;;  %v3654_v48 = vld [vmem:[%s23463_s4 + $0x3098] sm:$0xff]  ;;  %v16212_v33 = vcombine.high %v3653_v26, %v3657_v44 }
 0x796   :  { %13726 = vmatprep.subr.bf16.mxu0 %v16166_v24  ;;  %v3658_v40 = vld [vmem:[%s23463_s4 + $0x30b8] sm:$0xff]  ;;  %v16203_v24 = vcombine.low %v3645_v4, %v3649_v3 }
 0x797   :  { %v16214_v30 = vcombine.high %v3654_v48, %v3658_v40  ;;  %v16798_v4 = vld [vmem:[%s23467_s6 + $0x78] sm:$0xff]  }
 0x798   :  { %13168 = vmatpush1.bf16.msra.mxu1 %v16163_v5  ;;  %v3665_v5 = vld [vmem:[%s23463_s4 + $0x30f0] sm:$0xff]  ;;  %v16799_v3 = vld [vmem:[%s23467_s6 + $0xf8] sm:$0xff]  }
 0x799   :  { %13727 = vmatpush1.bf16.msra.mxu0 %v16165_v57  ;;  %13169 = vmatprep.subr.bf16.mxu1 %v16172_v56  ;;  %v3666_v57 = vld [vmem:[%s23463_s4 + $0x30f8] sm:$0xff]  ;;  %v16211_v56 = vcombine.low %v3653_v26, %v3657_v44  ;;  %v16220_v49 = vcombine.high %v3661_v46, %v3665_v5  ;;  %v16219_v34 = vcombine.low %v3661_v46, %v3665_v5  ;;  %v16806_v26 = vld [vmem:[%s23467_s6 + $0x148] sm:$0xff]   ;;  %v16820_v46 = vld [vmem:[%s23467_s6 + $0x120] sm:$0xff]  }
 0x79a   :  { %13728 = vmatprep.subr.bf16.mxu0 %v16174_v8  ;;  %v16213_v8 = vcombine.low %v3654_v48, %v3658_v40  ;;  %v16807_v44 = vld [vmem:[%s23467_s6 + $0x1c8] sm:$0xff]   ;;  %v16821_v5 = vld [vmem:[%s23467_s6 + $0x1a0] sm:$0xff]  }
 0x79b   :  { %v16808_v48 = vld [vmem:[%s23467_s6 + $0x108] sm:$0xff]  }
 0x79c   :  { %13170 = vmatpush1.bf16.msra.mxu1 %v16171_v42  ;;  %v16770_v42 = vld [vmem:[%s23467_s6 + $0x40] sm:$0xff]   ;;  %v16809_v40 = vld [vmem:[%s23467_s6 + $0x188] sm:$0xff]  }
 0x79d   :  { %13729 = vmatpush1.bf16.msra.mxu0 %v16173_v59  ;;  %13171 = vmatprep.subr.bf16.mxu1 %v16180_v43  ;;  %v16772_v59 = vld [vmem:[%s23467_s6] sm:$0xff]  }
 0x79e   :  { %13730 = vmatprep.subr.bf16.mxu0 %v16182_v36  ;;  %v16773_v43 = vld [vmem:[%s23467_s6 + $0x80] sm:$0xff]   ;;  %v16774_v36 = vld [vmem:[%s23467_s6 + $0x48] sm:$0xff]  }
 0x7a0   :  { %13172 = vmatpush1.bf16.msra.mxu1 %v16179_v20  ;;  %v16786_v20 = vld [vmem:[%s23467_s6 + $0x60] sm:$0xff]  }
 0x7a1   :  { %13731 = vmatpush1.bf16.msra.mxu0 %v16181_v39  ;;  %13173 = vmatprep.subr.bf16.mxu1 %v16188_v9  ;;  %v16787_v39 = vld [vmem:[%s23467_s6 + $0xe0] sm:$0xff]  }
 0x7a2   :  { %13732 = vmatprep.subr.bf16.mxu0 %v16190_v51  ;;  %v16788_v9 = vld [vmem:[%s23467_s6 + $0x20] sm:$0xff]  }
 0x7a3   :  { %v16789_v51 = vld [vmem:[%s23467_s6 + $0xa0] sm:$0xff]  }
 0x7a4   :  { %13174 = vmatpush1.bf16.msra.mxu1 %v16187_v55  ;;  %v16794_v55 = vld [vmem:[%s23467_s6 + $0x70] sm:$0xff]  }
 0x7a5   :  { %13733 = vmatpush1.bf16.msra.mxu0 %v16189_v19  ;;  %13186 = vmatprep.subr.bf16.mxu1 %v16196_v11  ;;  %v16795_v19 = vld [vmem:[%s23467_s6 + $0xf0] sm:$0xff]  }
 0x7a6   :  { %13745 = vmatprep.subr.bf16.mxu0 %v16198_v62  ;;  %v16796_v11 = vld [vmem:[%s23467_s6 + $0x30] sm:$0xff]  }
 0x7a7   :  { %13176 = vmatmul.mubr.bf16.vlgmr.msra.gmra.mrb[28].mxu1 %v18832_v2  ;;  %v16797_v62 = vld [vmem:[%s23467_s6 + $0xb0] sm:$0xff]  }
 0x7a8   :  { %13735 = vmatmul.mubr.bf16.vlgmr.msra.gmra.mrb[32].mxu0 %v18832_v2  ;;  %13187 = vmatpush1.bf16.msra.mxu1 %v16195_v6  ;;  %v3662_v2 = vld [vmem:[%s23463_s4 + $0x30d8] sm:$0xff]  ;;  %v16802_v6 = vld [vmem:[%s23467_s6 + $0x140] sm:$0xff]  }
 0x7a9   :  { %13746 = vmatpush1.bf16.msra.mxu0 %v16197_v23  ;;  %13188 = vmatprep.subr.bf16.mxu1 %v16204_v52  ;;  %v16222_v37 = vcombine.high %v3662_v2, %v3666_v57  ;;  %v16221_v60 = vcombine.low %v3662_v2, %v3666_v57  ;;  %v16803_v23 = vld [vmem:[%s23467_s6 + $0x1c0] sm:$0xff]   ;;  %v16822_v2 = vld [vmem:[%s23467_s6 + $0x168] sm:$0xff]  }
 0x7aa   :  { %13747 = vmatprep.subr.bf16.mxu0 %v16206_v25  ;;  %13218 = vmatprep.mubr.bf16.mxu1 %v23714_v45  ;;  %v16804_v52 = vld [vmem:[%s23467_s6 + $0x100] sm:$0xff]   ;;  %v16823_v57 = vld [vmem:[%s23467_s6 + $0x1e8] sm:$0xff]  }
 0x7ab   :  { %13777 = vmatprep.mubr.bf16.mxu0 %v23714_v45  ;;  %v16771_v45 = vld [vmem:[%s23467_s6 + $0xc0] sm:$0xff]  }
 0x7ac   :  { %13189 = vmatpush1.bf16.msra.mxu1 %v16203_v24  ;;  %v16805_v25 = vld [vmem:[%s23467_s6 + $0x180] sm:$0xff]   ;;  %v16816_v24 = vld [vmem:[%s23467_s6 + $0x118] sm:$0xff]  }
 0x7ad   :  { %13748 = vmatpush1.bf16.msra.mxu0 %v16205_v41  ;;  %13190 = vmatprep.subr.bf16.mxu1 %v16212_v33  ;;  %v16817_v41 = vld [vmem:[%s23467_s6 + $0x198] sm:$0xff]   ;;  %v16818_v33 = vld [vmem:[%s23467_s6 + $0x160] sm:$0xff]  }
 0x7ae   :  { %13749 = vmatprep.subr.bf16.mxu0 %v16214_v30  ;;  %v16819_v30 = vld [vmem:[%s23467_s6 + $0x1e0] sm:$0xff]  }
 0x7b0   :  { %13191 = vmatpush1.bf16.msra.mxu1 %v16211_v56  ;;  %v16824_v56 = vld [vmem:[%s23467_s6 + $0x128] sm:$0xff]  }
 0x7b1   :  { %13750 = vmatpush1.bf16.msra.mxu0 %v16213_v8  ;;  %13192 = vmatprep.subr.bf16.mxu1 %v16220_v49  ;;  %v16825_v8 = vld [vmem:[%s23467_s6 + $0x1a8] sm:$0xff]   ;;  %v16826_v49 = vld [vmem:[%s23467_s6 + $0x170] sm:$0xff]  }
 0x7b2   :  { %13751 = vmatprep.subr.bf16.mxu0 %v16222_v37  ;;  %v16827_v37 = vld [vmem:[%s23467_s6 + $0x1f0] sm:$0xff]  }
 0x7b4   :  { %13193 = vmatpush1.bf16.msra.mxu1 %v16219_v34  ;;  %v16828_v34 = vld [vmem:[%s23467_s6 + $0x130] sm:$0xff]  }
 0x7b5   :  { %13752 = vmatpush1.bf16.msra.mxu0 %v16221_v60  ;;  %16296 = vmatprep.subr.bf16.mxu1 %v16770_v42  ;;  %v16829_v60 = vld [vmem:[%s23467_s6 + $0x1b0] sm:$0xff]   ;;  %v16830_v42 = vld [vmem:[%s23467_s6 + $0x178] sm:$0xff]  }
 0x7b6   :  { %16318 = vmatprep.subr.bf16.mxu0 %v16771_v45  ;;  %v16831_v45 = vld [vmem:[%s23467_s6 + $0x1f8] sm:$0xff]  }
 0x7b7   :  { %16225 = vmatmul.mubr.msk.bf16.vlgmr.msra.gmra.mrb[28].mxu1 %vm993_vm10, %v18853_v54 }
 0x7b8   :  { %16226 = vmatmul.mubr.msk.bf16.vlgmr.msra.gmra.mrb[32].mxu0 %vm993_vm10, %v18853_v54  ;;  %16297 = vmatpush3.bf16.msra.mxu1 %v16772_v59  ;;  %v16779_v54 = vld [vmem:[%s23467_s6 + $0xd0] sm:$0xff]   ;;  %v16832_v59 = vld [vmem:[%s23467_s6 + $0x138] sm:$0xff]  }
 0x7b9   :  { %14388 = vmatprep.mubr.bf16.mxu1 %v13837_v0  ;;  %16319 = vmatpush3.bf16.msra.mxu0 %v16773_v43  ;;  %v16782_v0 = vld [vmem:[%s23467_s6 + $0x58] sm:$0xff]  }
 0x7ba   :  { %14429 = vmatprep.mubr.bf16.mxu0 %v13839_v32  ;;  %16298 = vmatprep.subr.bf16.mxu1 %v16774_v36  ;;  %v16785_v32 = vld [vmem:[%s23467_s6 + $0x98] sm:$0xff]   ;;  %v16842_v36 = vld [vmem:[%s23466_s5] sm:$0xff] }
 0x7bb   :  { %16320 = vmatprep.subr.bf16.mxu0 %v16775_v10  ;;  %v16833_v43 = vld [vmem:[%s23467_s6 + $0x1b8] sm:$0xff]   ;;  %v3688_v10 = vrot.slane %v16842_v36, %v17559_v12 }
 0x7bc   :  { %16299 = vmatpush3.bf16.msra.mxu1 %v16776_v18  ;;  %v3696_v18 = vrot.slane %v16842_v36, %v17561_v13 }
 0x7bd   :  { %16321 = vmatpush3.bf16.msra.mxu0 %v16777_v38  ;;  %16300 = vmatprep.subr.bf16.mxu1 %v16778_v29  ;;  %v3692_v38 = vrot.slane %v16842_v36, %v17569_v15  ;;  %v3700_v29 = vrot.slane %v16842_v36, %v17571_v16 }
 0x7be   :  { %16322 = vmatprep.subr.bf16.mxu0 %v16779_v54 }
 0x7c0   :  { %16301 = vmatpush3.bf16.msra.mxu1 %v16780_v58 }
 0x7c1   :  { %16323 = vmatpush3.bf16.msra.mxu0 %v16781_v28  ;;  %16302 = vmatprep.subr.bf16.mxu1 %v16782_v0 }
 0x7c2   :  { %16324 = vmatprep.subr.bf16.mxu0 %v16783_v27 }
 0x7c4   :  { %16303 = vmatpush3.bf16.msra.mxu1 %v16784_v61 }
 0x7c5   :  { %16325 = vmatpush3.bf16.msra.mxu0 %v16785_v32  ;;  %16304 = vmatprep.subr.bf16.mxu1 %v16786_v20 }
 0x7c6   :  { %16326 = vmatprep.subr.bf16.mxu0 %v16787_v39 }
 0x7c8   :  { %16305 = vmatpush3.bf16.msra.mxu1 %v16788_v9 }
 0x7c9   :  { %16327 = vmatpush3.bf16.msra.mxu0 %v16789_v51  ;;  %16306 = vmatprep.subr.bf16.mxu1 %v16790_v21 }
 0x7ca   :  { %16328 = vmatprep.subr.bf16.mxu0 %v16791_v1 }
 0x7cc   :  { %16307 = vmatpush3.bf16.msra.mxu1 %v16792_v50 }
 0x7cd   :  { %16329 = vmatpush3.bf16.msra.mxu0 %v16793_v14  ;;  %16308 = vmatprep.subr.bf16.mxu1 %v16794_v55 }
 0x7ce   :  { %16330 = vmatprep.subr.bf16.mxu0 %v16795_v19 }
 0x7d0   :  { %16309 = vmatpush3.bf16.msra.mxu1 %v16796_v11 }
 0x7d1   :  { %16331 = vmatpush3.bf16.msra.mxu0 %v16797_v62  ;;  %16310 = vmatprep.subr.bf16.mxu1 %v16798_v4 }
 0x7d2   :  { %16332 = vmatprep.subr.bf16.mxu0 %v16799_v3 }
 0x7d4   :  { %16311 = vmatpush3.bf16.msra.mxu1 %v16800_v22 }
 0x7d5   :  { %16333 = vmatpush3.bf16.msra.mxu0 %v16801_v47  ;;  %16340 = vmatprep.subr.bf16.mxu1 %v16802_v6 }
 0x7d6   :  { %16362 = vmatprep.subr.bf16.mxu0 %v16803_v23 }
 0x7d7   :  { %14389 = vmatmul.mubr.bf16.vlgmr.msra.gmra.mrb[32].mxu1 %v13836_v7  ;;  %v16812_v7 = vld [vmem:[%s23467_s6 + $0x110] sm:$0xff]  }
 0x7d8   :  { %14430 = vmatmul.mubr.bf16.vlgmr.msra.gmra.mrb[36].mxu0 %v13838_v17  ;;  %16341 = vmatpush3.bf16.msra.mxu1 %v16804_v52  ;;  %v16815_v17 = vld [vmem:[%s23467_s6 + $0x1d8] sm:$0xff]  }
 0x7d9   :  { %16363 = vmatpush3.bf16.msra.mxu0 %v16805_v25  ;;  %16342 = vmatprep.subr.bf16.mxu1 %v16806_v26 }
 0x7da   :  { %16364 = vmatprep.subr.bf16.mxu0 %v16807_v44 }
 0x7dc   :  { %16343 = vmatpush3.bf16.msra.mxu1 %v16808_v48 }
 0x7dd   :  { %16365 = vmatpush3.bf16.msra.mxu0 %v16809_v40  ;;  %16344 = vmatprep.subr.bf16.mxu1 %v16810_v35 }
 0x7de   :  { %16366 = vmatprep.subr.bf16.mxu0 %v16811_v63 }
 0x7e0   :  { %16345 = vmatpush3.bf16.msra.mxu1 %v16812_v7 }
 0x7e1   :  { %16367 = vmatpush3.bf16.msra.mxu0 %v16813_v53  ;;  %16346 = vmatprep.subr.bf16.mxu1 %v16814_v31 }
 0x7e2   :  { %16368 = vmatprep.subr.bf16.mxu0 %v16815_v17 }
 0x7e4   :  { %16347 = vmatpush3.bf16.msra.mxu1 %v16816_v24 }
 0x7e5   :  { %16369 = vmatpush3.bf16.msra.mxu0 %v16817_v41  ;;  %16348 = vmatprep.subr.bf16.mxu1 %v16818_v33 }
 0x7e6   :  { %16370 = vmatprep.subr.bf16.mxu0 %v16819_v30 }
 0x7e8   :  { %16349 = vmatpush3.bf16.msra.mxu1 %v16820_v46 }
 0x7e9   :  { %16371 = vmatpush3.bf16.msra.mxu0 %v16821_v5  ;;  %16350 = vmatprep.subr.bf16.mxu1 %v16822_v2 }
 0x7ea   :  { %16372 = vmatprep.subr.bf16.mxu0 %v16823_v57 }
 0x7ec   :  { %16351 = vmatpush3.bf16.msra.mxu1 %v16824_v56 }
 0x7ed   :  { %16373 = vmatpush3.bf16.msra.mxu0 %v16825_v8  ;;  %16352 = vmatprep.subr.bf16.mxu1 %v16826_v49 }
 0x7ee   :  { %16374 = vmatprep.subr.bf16.mxu0 %v16827_v37 }
 0x7f0   :  { %16353 = vmatpush3.bf16.msra.mxu1 %v16828_v34 }
 0x7f1   :  { %16375 = vmatpush3.bf16.msra.mxu0 %v16829_v60  ;;  %16354 = vmatprep.subr.bf16.mxu1 %v16830_v42 }
 0x7f2   :  { %16376 = vmatprep.subr.bf16.mxu0 %v16831_v45 }
 0x7f4   :  { %16355 = vmatpush3.bf16.msra.mxu1 %v16832_v59 }
 0x7f5   :  { %16377 = vmatpush3.bf16.msra.mxu0 %v16833_v43 }
 0x88a   :  { %v13220_v54 = vpop.f32.mrb[28].mxu1 }
 0x88b   :  { %v16404_v58 = vadd.f32 %v13220_v54, %v3688_v10  ;;  %v13779_v28 = vpop.f32.mrb[32].mxu0  ;;  %v13222_v0 = vpop.f32.mrb[29].mxu1 }
 0x88c   :  { %v16408_v27 = vadd.f32 %v13779_v28, %v3696_v18  ;;  %v16405_v61 = vadd.f32 %v13222_v0, %v3692_v38  ;;  %v13781_v32 = vpop.f32.mrb[33].mxu0  ;;  %v13224_v20 = vpop.f32.mrb[30].mxu1 }
 0x88d   :  { %v13808_v39 = vmul.f32 0.01, %v16404_v58  ;;  %v16409_v9 = vadd.f32 %v13781_v32, %v3700_v29  ;;  %v16406_v51 = vadd.f32 %v13224_v20, %v3688_v10  ;;  %v13783_v21 = vpop.f32.mrb[34].mxu0  ;;  %v13226_v1 = vpop.f32.mrb[31].mxu1  ;;  %vm13792_vm10 = vcmp.ge.f32.partialorder %v16404_v58, 0.0 }
 0x88e   :  { %vm13794_vm9 = vcmp.ge.f32.partialorder %v16408_v27, 0.0  ;;  %v13810_v12 = vmul.f32 0.01, %v16408_v27  ;;  %vm13793_vm11 = vcmp.ge.f32.partialorder %v16405_v61, 0.0  ;;  %v13785_v13 = vpop.f32.mrb[35].mxu0  ;;  %v16410_v50 = vadd.f32 %v13783_v21, %v3696_v18 }
 0x88f   :  { %vm13800_vm12 = vcmp.ge.f32.partialorder %v16406_v51, 0.0  ;;  %v13809_v15 = vmul.f32 0.01, %v16405_v61  ;;  %v13816_v16 = vmul.f32 0.01, %v16406_v51  ;;  %v16407_v14 = vadd.f32 %v13226_v1, %v3692_v38 }
 0x890   :  { %v13824_v55 = vsel %vm13792_vm10, %v16404_v58, %v13808_v39  ;;  %vm13795_vm13 = vcmp.ge.f32.partialorder %v16409_v9, 0.0  ;;  %v13811_v19 = vmul.f32 0.01, %v16409_v9  ;;  %v16411_v11 = vadd.f32 %v13785_v13, %v3700_v29 }
 0x891   :  { %v13832_v62 = vsel %vm13800_vm12, %v16406_v51, %v13816_v16  ;;  %vm13802_vm14 = vcmp.ge.f32.partialorder %v16410_v50, 0.0  ;;  %v13818_v4 = vmul.f32 0.01, %v16410_v50  ;;  %vm13801_vm15 = vcmp.ge.f32.partialorder %v16407_v14, 0.0 }
 0x892   :  { %v13840_v3 = vpack.c.bf16 %v13832_v62, %v13824_v55  ;;  %v13817_v22 = vmul.f32 0.01, %v16407_v14  ;;  %vm13803_vm0 = vcmp.ge.f32.partialorder %v16411_v11, 0.0  ;;  %v13819_v47 = vmul.f32 0.01, %v16411_v11 }
 0x893   :  { %v13826_v6 = vsel %vm13794_vm9, %v16408_v27, %v13810_v12  ;;  %v13834_v23 = vsel %vm13802_vm14, %v16410_v50, %v13818_v4  ;;  %v13825_v52 = vsel %vm13793_vm11, %v16405_v61, %v13809_v15  ;;  %v13827_v44 = vsel %vm13795_vm13, %v16409_v9, %v13811_v19 }
 0x894   :  { %v13842_v25 = vpack.c.bf16 %v13834_v23, %v13826_v6  ;;  %v13833_v26 = vsel %vm13801_vm15, %v16407_v14, %v13817_v22  ;;  %v13835_v48 = vsel %vm13803_vm0, %v16411_v11, %v13819_v47 }
 0x895   :  { %v13841_v40 = vpack.c.bf16 %v13833_v26, %v13825_v52  ;;  %v13843_v35 = vpack.c.bf16 %v13835_v48, %v13827_v44 }
 0x897   :  { %14470 = vmatprep.mubr.bf16.mxu1 %v13841_v40  ;;  %14511 = vmatprep.mubr.bf16.mxu0 %v13843_v35 }
 0x898   :  { %14471 = vmatmul.mubr.bf16.vlgmr.msra.gmra.mrb[36].mxu1 %v13840_v3  ;;  %14512 = vmatmul.mubr.bf16.vlgmr.msra.gmra.mrb[40].mxu0 %v13842_v25 }
 0x8aa   :  { %v16312_v63 = vpop.f32.mrb[32].mxu1 }
 0x8ab   :  { %v16334_v7 = vpop.f32.mrb[36].mxu0  ;;  %v16313_v53 = vpop.f32.mrb[33].mxu1 }
 0x8ac   :  { %v16314_v31 = vadd.f32 %v16313_v53, %v16312_v63  ;;  %v16335_v17 = vpop.f32.mrb[37].mxu0  ;;  %v16315_v24 = vpop.f32.mrb[34].mxu1 }
 0x8ad   :  { %v16336_v41 = vadd.f32 %v16335_v17, %v16334_v7  ;;  %v16337_v33 = vpop.f32.mrb[38].mxu0  ;;  %v16316_v30 = vpop.f32.mrb[35].mxu1 }
 0x8ae   :  { %v16317_v46 = vadd.f32 %v16316_v30, %v16315_v24  ;;  %v16338_v5 = vpop.f32.mrb[39].mxu0 }
 0x8af   :  { %v14432_v2 = vadd.f32 %v16336_v41, %v16314_v31  ;;  %v16339_v57 = vadd.f32 %v16338_v5, %v16337_v33 }
 0x8b1   :  { %v14435_v56 = vadd.f32 %v16339_v57, %v16317_v46 }
 0x96b   :  { %v16356_v8 = vpop.f32.mrb[36].mxu1  ;;  %v16378_v49 = vpop.f32.mrb[40].mxu0 }
 0x96c   :  { %v16357_v37 = vpop.f32.mrb[37].mxu1  ;;  %v16379_v34 = vpop.f32.mrb[41].mxu0 }
 0x96d   :  { %v16358_v60 = vadd.f32 %v16357_v37, %v16356_v8  ;;  %v16380_v42 = vadd.f32 %v16379_v34, %v16378_v49  ;;  %v16359_v45 = vpop.f32.mrb[38].mxu1  ;;  %v16381_v59 = vpop.f32.mrb[42].mxu0 }
 0x96e   :  { %v16360_v43 = vpop.f32.mrb[39].mxu1  ;;  %v16382_v36 = vpop.f32.mrb[43].mxu0 }
 0x96f   :  { %v14473_v10 = vadd.f32 %v16358_v60, %v14432_v2  ;;  %v16361_v18 = vadd.f32 %v16360_v43, %v16359_v45  ;;  %v16383_v38 = vadd.f32 %v16382_v36, %v16381_v59 }
 0x971   :  { %v14514_v29 = vadd.f32 %v16380_v42, %v14473_v10  ;;  %v14476_v54 = vadd.f32 %v16361_v18, %v14435_v56 }
 0x973   :  { %14520 = vst [vmem:[%s23468_s7] sm:$0xff] %v14514_v29  ;;  %v14517_v58 = vadd.f32 %v16383_v38, %v14476_v54 }
 0x975   :  { %14521 = vst [vmem:[%s23468_s7 + $0x8] sm:$0xff] %v14517_v58 }

</bundles_post_ra>
